<compile_context>
chip_gen: v6e
topology: v6e:2x2x1
jax: 0.10.0
libtpu: 0.0.40
codegen_flags: <defaults>
</compile_context>

<pallas_src>
import functools

import jax
import jax.numpy as jnp
from jax import lax
from jax.experimental import pallas as pl
from jax.experimental.pallas import tpu as pltpu


def _silu_ref(z):
    # Exact SiLU for the pure-JAX reference.
    return z * (1.0 / (1.0 + jnp.exp(-z)))


def _silu_kernel(z):
    # In-kernel SiLU: exp and the reciprocal both go to the EUP slot
    # (approx vrcp), leaving the VALU for the conv FMAs.
    return z * pl.reciprocal(1.0 + jnp.exp(-z), approx=True)


# ------------------------------ Pallas kernel ------------------------------ #

def _ghost_conv_kernel(x_ref, w1_ref, b1_ref, w2_ref, b2_ref, o_ref,
                       *, c1, c_, H, W, pad):
    """Fused GhostConv for one image.

    x_ref : (1, c1, H+2p, W+2p)  bf16  VMEM   (spatially pre-padded input)
    w1_ref: (c_, c1)             f32   SMEM   (BN1 scale folded in)
    b1_ref: (c_,)                f32   SMEM
    w2_ref: (c_, 25)             f32   SMEM   (BN2 scale folded in, 5x5 taps)
    b2_ref: (c_,)                f32   SMEM
    o_ref : (1, 2*c_, H, W)      f32   VMEM
    """
    Hp = H + 2 * pad
    Wp = W + 2 * pad
    x = x_ref[0].astype(jnp.float32)                       # (c1, Hp, Wp)

    # The padded ring of the cv1 output must be exactly zero (PyTorch pads the
    # *activations* with zeros before cv2), so mask away silu(bias) in the ring.
    row = lax.broadcasted_iota(jnp.int32, (Hp, Wp), 0)
    col = lax.broadcasted_iota(jnp.int32, (Hp, Wp), 1)
    interior = ((row >= pad) & (row < pad + H) &
                (col >= pad) & (col < pad + W))

    # One output channel at a time: compute cv1[o], store it, feed it straight
    # into the depthwise cv2[o], store that too.  Keeps the live vreg set small.
    for o in range(c_):
        # ---- cv1: 1x1 conv + (folded) BN + SiLU on the padded extent so the
        #      depthwise conv below gets its halo for free (VPU scalar FMAs).
        acc1 = w1_ref[o, 0] * x[0]
        for ci in range(1, c1):
            acc1 = acc1 + w1_ref[o, ci] * x[ci]
        y = _silu_kernel(acc1 + b1_ref[o])                  # (Hp, Wp)

        # First half of the concat: the valid (H, W) region of cv1.
        o_ref[0, o, :, :] = y[pad:pad + H, pad:pad + W].astype(o_ref.dtype)

        # Zero-padded cv1 activation seen by cv2.
        y_pad = jnp.where(interior, y, 0.0)                 # (Hp, Wp)

        # ---- cv2: 5x5 depthwise conv + (folded) BN + SiLU as 25 shifted FMAs.
        # Column (lane-offset) shifts are hoisted: 5 lane relayouts per channel
        # instead of 25; the remaining per-tap shifts are sublane-only.
        cols = [y_pad[:, dx:dx + W] for dx in range(5)]     # each (Hp, W)
        acc2 = w2_ref[o, 0] * cols[0][0:H, :]
        for tap in range(1, 25):
            dy, dx = divmod(tap, 5)
            acc2 = acc2 + w2_ref[o, tap] * cols[dx][dy:dy + H, :]

        # Second half of the concat.
        o_ref[0, c_ + o, :, :] = _silu_kernel(acc2 + b2_ref[o]).astype(o_ref.dtype)


# --------------------------------- wrapper ---------------------------------- #

def ghost_conv_forward(params, x_nchw):
    """x: (N, c1, H, W) float32 NCHW -> (N, c2, H, W) float32 NCHW."""
    N, c1, H, W = x_nchw.shape
    c_ = params["w1"].shape[0]
    c2 = 2 * c_
    pad = 2                                   # autopad(5) = 2 for the depthwise conv
    Hp, Wp = H + 2 * pad, W + 2 * pad

    # Pad once in HBM and ship activations as bf16 (halves HBM read traffic);
    # all accumulation inside the kernel is f32.
    xp = jnp.pad(x_nchw, ((0, 0), (0, 0), (pad, pad), (pad, pad)))
    xp = xp.astype(jnp.bfloat16)

    kernel = functools.partial(_ghost_conv_kernel,
                               c1=c1, c_=c_, H=H, W=W, pad=pad)

    flops = N * (2 * c1 * c_ * Hp * Wp + 2 * 25 * c_ * H * W)
    transcendentals = 2 * N * c_ * (Hp * Wp + H * W)   # exp + approx-rcp per SiLU
    bytes_accessed = (N * c1 * Hp * Wp * 2            # bf16 input
                      + N * c2 * H * W * 4            # f32 output
                      + (c_ * c1 + 25 * c_ + 2 * c_) * 4)

    smem = pl.BlockSpec(memory_space=pltpu.MemorySpace.SMEM)
    return pl.pallas_call(
        kernel,
        grid=(N,),
        in_specs=[
            pl.BlockSpec((1, c1, Hp, Wp), lambda n: (n, 0, 0, 0)),
            smem,   # w1 (BN1 folded)
            smem,   # b1
            smem,   # w2 (BN2 folded)
            smem,   # b2
        ],
        out_specs=pl.BlockSpec((1, c2, H, W), lambda n: (n, 0, 0, 0)),
        out_shape=jax.ShapeDtypeStruct((N, c2, H, W), jnp.float32),
        compiler_params=pltpu.CompilerParams(
            dimension_semantics=("parallel",)),
        cost_estimate=pl.CostEstimate(
            flops=flops, transcendentals=transcendentals,
            bytes_accessed=bytes_accessed),
    )(xp, params["w1"], params["b1"], params["w2"], params["b2"])


# ------------------------------ params & reference -------------------------- #

def _bn_affine(key, c, eps=1e-5):
    k1, k2, k3, k4 = jax.random.split(key, 4)
    gamma = jax.random.uniform(k1, (c,), minval=0.5, maxval=1.5)
    beta = 0.1 * jax.random.normal(k2, (c,))
    mean = 0.1 * jax.random.normal(k3, (c,))
    var = jax.random.uniform(k4, (c,), minval=0.5, maxval=1.5)
    scale = gamma / jnp.sqrt(var + eps)
    bias = beta - mean * scale
    return scale.astype(jnp.float32), bias.astype(jnp.float32)


def init_ghost_conv_params(key, c1, c2):
    c_ = c2 // 2
    ks = jax.random.split(key, 4)
    w1 = 0.1 * jax.random.normal(ks[0], (c_, c1), dtype=jnp.float32)
    s1, b1 = _bn_affine(ks[1], c_)
    w2 = 0.1 * jax.random.normal(ks[2], (c_, 5, 5), dtype=jnp.float32)
    s2, b2 = _bn_affine(ks[3], c_)
    # Fold BN scale into the conv weights; only the bias is added in-kernel.
    return dict(
        w1=(w1 * s1[:, None]).astype(jnp.float32),
        b1=b1,
        w2=(w2 * s2[:, None, None]).reshape(c_, 25).astype(jnp.float32),
        b2=b2,
    )


def ghost_conv_reference(params, x):
    """Pure-JAX reference (f32, NCHW) on the same BN-folded parameters."""
    c_ = params["w1"].shape[0]
    y1 = jnp.einsum("oc,nchw->nohw", params["w1"], x)
    y1 = _silu_ref(y1 + params["b1"][None, :, None, None])
    w2 = params["w2"].reshape(c_, 1, 5, 5)
    y2 = lax.conv_general_dilated(
        y1, w2, window_strides=(1, 1), padding=((2, 2), (2, 2)),
        dimension_numbers=("NCHW", "OIHW", "NCHW"),
        feature_group_count=c_)
    y2 = _silu_ref(y2 + params["b2"][None, :, None, None])
    return jnp.concatenate([y1, y2], axis=1)


# ----------------------------------- main ----------------------------------- #

if __name__ == "__main__":
    key = jax.random.PRNGKey(0)
    kx, kp = jax.random.split(key)

    # GhostConv(c1=4, c2=16) on a (2, 4, 16, 16) NCHW input.
    N, c1, c2, H, W = 2, 4, 16, 16, 16
    x = jax.random.normal(kx, (N, c1, H, W), dtype=jnp.float32)
    params = init_ghost_conv_params(kp, c1, c2)

    out = ghost_conv_forward(params, x)
    out = jax.block_until_ready(out)

    ref = ghost_conv_reference(params, x)

    assert out.shape == (N, c2, H, W), out.shape
    assert bool(jnp.all(jnp.isfinite(out)))
    # bf16 activation cast + approx-reciprocal SiLU on the kernel path
    # -> loose-ish tolerance vs the exact f32 reference.
    assert bool(jnp.allclose(out, ref, rtol=5e-2, atol=3e-2)), \
        float(jnp.max(jnp.abs(out - ref)))
    print("KERNEL_OK")
</pallas_src>

<mosaic_0001>
module attributes {stable_mosaic.version = 11 : i64} {
  func.func @_ghost_conv_kernel(%arg0: i32, %arg1: memref<1x4x20x20xbf16, #tpu.memory_space<vmem>>, %arg2: memref<8x4xf32, #tpu.memory_space<smem>>, %arg3: memref<8xf32, #tpu.memory_space<smem>>, %arg4: memref<8x25xf32, #tpu.memory_space<smem>>, %arg5: memref<8xf32, #tpu.memory_space<smem>>, %arg6: memref<1x16x16x16xf32, #tpu.memory_space<vmem>>) attributes {dimension_semantics = [#tpu.dimension_semantics<parallel>], iteration_bounds = array<i64: 2>, scalar_prefetch = 0 : i64, scratch_operands = 0 : i64, tpu.core_type = #tpu.core_type<tc>, window_params = [{transform_indices = @transform_0, window_bounds = array<i64: 1, 4, 20, 20>}, {transform_indices = @transform_1, window_bounds = array<i64: 8, 4>}, {transform_indices = @transform_2, window_bounds = array<i64: 8>}, {transform_indices = @transform_3, window_bounds = array<i64: 8, 25>}, {transform_indices = @transform_4, window_bounds = array<i64: 8>}, {transform_indices = @transform_5, window_bounds = array<i64: 1, 16, 16, 16>}]} {
    %c0 = arith.constant 0 : index
    %c0_0 = arith.constant 0 : index
    %c0_1 = arith.constant 0 : index
    %c0_2 = arith.constant 0 : index
    %0 = vector.load %arg1[%c0, %c0_0, %c0_1, %c0_2] : memref<1x4x20x20xbf16, #tpu.memory_space<vmem>>, vector<1x4x20x20xbf16>
    %1 = vector.shape_cast %0 : vector<1x4x20x20xbf16> to vector<4x20x20xbf16>
    %2 = arith.extf %1 : vector<4x20x20xbf16> to vector<4x20x20xf32>
    %3 = tpu.iota {dimensions = array<i32: 0>} : vector<20x20xi32>
    %4 = tpu.iota {dimensions = array<i32: 1>} : vector<20x20xi32>
    %c2_i32 = arith.constant 2 : i32
    %5 = vector.broadcast %c2_i32 : i32 to vector<20x20xi32>
    %6 = arith.cmpi sge, %3, %5 : vector<20x20xi32>
    %c18_i32 = arith.constant 18 : i32
    %7 = vector.broadcast %c18_i32 : i32 to vector<20x20xi32>
    %8 = arith.cmpi slt, %3, %7 : vector<20x20xi32>
    %9 = arith.andi %6, %8 : vector<20x20xi1>
    %c2_i32_3 = arith.constant 2 : i32
    %10 = vector.broadcast %c2_i32_3 : i32 to vector<20x20xi32>
    %11 = arith.cmpi sge, %4, %10 : vector<20x20xi32>
    %12 = arith.andi %9, %11 : vector<20x20xi1>
    %c18_i32_4 = arith.constant 18 : i32
    %13 = vector.broadcast %c18_i32_4 : i32 to vector<20x20xi32>
    %14 = arith.cmpi slt, %4, %13 : vector<20x20xi32>
    %15 = arith.andi %12, %14 : vector<20x20xi1>
    %c0_5 = arith.constant 0 : index
    %c0_6 = arith.constant 0 : index
    %16 = memref.load %arg2[%c0_5, %c0_6] : memref<8x4xf32, #tpu.memory_space<smem>>
    %17 = vector.extract_strided_slice %2 {offsets = [0, 0, 0], sizes = [1, 20, 20], strides = [1, 1, 1]} : vector<4x20x20xf32> to vector<1x20x20xf32>
    %18 = vector.shape_cast %17 : vector<1x20x20xf32> to vector<20x20xf32>
    %19 = vector.broadcast %16 : f32 to vector<20x20xf32>
    %20 = arith.mulf %19, %18 : vector<20x20xf32>
    %c0_7 = arith.constant 0 : index
    %c1 = arith.constant 1 : index
    %21 = memref.load %arg2[%c0_7, %c1] : memref<8x4xf32, #tpu.memory_space<smem>>
    %22 = vector.extract_strided_slice %2 {offsets = [1, 0, 0], sizes = [1, 20, 20], strides = [1, 1, 1]} : vector<4x20x20xf32> to vector<1x20x20xf32>
    %23 = vector.shape_cast %22 : vector<1x20x20xf32> to vector<20x20xf32>
    %24 = vector.broadcast %21 : f32 to vector<20x20xf32>
    %25 = arith.mulf %24, %23 : vector<20x20xf32>
    %26 = arith.addf %20, %25 : vector<20x20xf32>
    %c0_8 = arith.constant 0 : index
    %c2 = arith.constant 2 : index
    %27 = memref.load %arg2[%c0_8, %c2] : memref<8x4xf32, #tpu.memory_space<smem>>
    %28 = vector.extract_strided_slice %2 {offsets = [2, 0, 0], sizes = [1, 20, 20], strides = [1, 1, 1]} : vector<4x20x20xf32> to vector<1x20x20xf32>
    %29 = vector.shape_cast %28 : vector<1x20x20xf32> to vector<20x20xf32>
    %30 = vector.broadcast %27 : f32 to vector<20x20xf32>
    %31 = arith.mulf %30, %29 : vector<20x20xf32>
    %32 = arith.addf %26, %31 : vector<20x20xf32>
    %c0_9 = arith.constant 0 : index
    %c3 = arith.constant 3 : index
    %33 = memref.load %arg2[%c0_9, %c3] : memref<8x4xf32, #tpu.memory_space<smem>>
    %34 = vector.extract_strided_slice %2 {offsets = [3, 0, 0], sizes = [1, 20, 20], strides = [1, 1, 1]} : vector<4x20x20xf32> to vector<1x20x20xf32>
    %35 = vector.shape_cast %34 : vector<1x20x20xf32> to vector<20x20xf32>
    %36 = vector.broadcast %33 : f32 to vector<20x20xf32>
    %37 = arith.mulf %36, %35 : vector<20x20xf32>
    %38 = arith.addf %32, %37 : vector<20x20xf32>
    %c0_10 = arith.constant 0 : index
    %39 = memref.load %arg3[%c0_10] : memref<8xf32, #tpu.memory_space<smem>>
    %40 = vector.broadcast %39 : f32 to vector<20x20xf32>
    %41 = arith.addf %38, %40 : vector<20x20xf32>
    %cst = arith.constant 0.000000e+00 : f32
    %42 = vector.broadcast %cst : f32 to vector<20x20xf32>
    %43 = arith.subf %42, %41 : vector<20x20xf32>
    %44 = math.exp %43 : vector<20x20xf32>
    %cst_11 = arith.constant 1.000000e+00 : f32
    %45 = vector.broadcast %cst_11 : f32 to vector<20x20xf32>
    %46 = arith.addf %45, %44 : vector<20x20xf32>
    %47 = tpu.reciprocal %46 {approx = true} : vector<20x20xf32> -> vector<20x20xf32>
    %48 = arith.mulf %41, %47 : vector<20x20xf32>
    %49 = vector.extract_strided_slice %48 {offsets = [2, 2], sizes = [16, 16], strides = [1, 1]} : vector<20x20xf32> to vector<16x16xf32>
    %c0_12 = arith.constant 0 : index
    %c0_13 = arith.constant 0 : index
    %c0_14 = arith.constant 0 : index
    %c0_15 = arith.constant 0 : index
    %50 = vector.load %arg6[%c0_12, %c0_13, %c0_14, %c0_15] : memref<1x16x16x16xf32, #tpu.memory_space<vmem>>, vector<1x1x16x16xf32>
    %51 = vector.shape_cast %50 : vector<1x1x16x16xf32> to vector<16x16xf32>
    %52 = vector.shape_cast %49 : vector<16x16xf32> to vector<1x1x16x16xf32>
    tpu.vector_store %arg6[%c0_12, %c0_13, %c0_14, %c0_15], %52 {strides = array<i32>} : memref<1x16x16x16xf32, #tpu.memory_space<vmem>>, vector<1x1x16x16xf32>,
    %cst_16 = arith.constant 0.000000e+00 : f32
    %53 = vector.broadcast %cst_16 : f32 to vector<20x20xf32>
    %54 = arith.select %15, %48, %53 : vector<20x20xi1>, vector<20x20xf32>
    %55 = vector.extract_strided_slice %54 {offsets = [0, 0], sizes = [20, 16], strides = [1, 1]} : vector<20x20xf32> to vector<20x16xf32>
    %56 = vector.extract_strided_slice %54 {offsets = [0, 1], sizes = [20, 16], strides = [1, 1]} : vector<20x20xf32> to vector<20x16xf32>
    %57 = vector.extract_strided_slice %54 {offsets = [0, 2], sizes = [20, 16], strides = [1, 1]} : vector<20x20xf32> to vector<20x16xf32>
    %58 = vector.extract_strided_slice %54 {offsets = [0, 3], sizes = [20, 16], strides = [1, 1]} : vector<20x20xf32> to vector<20x16xf32>
    %59 = vector.extract_strided_slice %54 {offsets = [0, 4], sizes = [20, 16], strides = [1, 1]} : vector<20x20xf32> to vector<20x16xf32>
    %c0_17 = arith.constant 0 : index
    %c0_18 = arith.constant 0 : index
    %60 = memref.load %arg4[%c0_17, %c0_18] : memref<8x25xf32, #tpu.memory_space<smem>>
    %61 = vector.extract_strided_slice %55 {offsets = [0, 0], sizes = [16, 16], strides = [1, 1]} : vector<20x16xf32> to vector<16x16xf32>
    %62 = vector.broadcast %60 : f32 to vector<16x16xf32>
    %63 = arith.mulf %62, %61 : vector<16x16xf32>
    %c0_19 = arith.constant 0 : index
    %c1_20 = arith.constant 1 : index
    %64 = memref.load %arg4[%c0_19, %c1_20] : memref<8x25xf32, #tpu.memory_space<smem>>
    %65 = vector.extract_strided_slice %56 {offsets = [0, 0], sizes = [16, 16], strides = [1, 1]} : vector<20x16xf32> to vector<16x16xf32>
    %66 = vector.broadcast %64 : f32 to vector<16x16xf32>
    %67 = arith.mulf %66, %65 : vector<16x16xf32>
    %68 = arith.addf %63, %67 : vector<16x16xf32>
    %c0_21 = arith.constant 0 : index
    %c2_22 = arith.constant 2 : index
    %69 = memref.load %arg4[%c0_21, %c2_22] : memref<8x25xf32, #tpu.memory_space<smem>>
    %70 = vector.extract_strided_slice %57 {offsets = [0, 0], sizes = [16, 16], strides = [1, 1]} : vector<20x16xf32> to vector<16x16xf32>
    %71 = vector.broadcast %69 : f32 to vector<16x16xf32>
    %72 = arith.mulf %71, %70 : vector<16x16xf32>
    %73 = arith.addf %68, %72 : vector<16x16xf32>
    %c0_23 = arith.constant 0 : index
    %c3_24 = arith.constant 3 : index
    %74 = memref.load %arg4[%c0_23, %c3_24] : memref<8x25xf32, #tpu.memory_space<smem>>
    %75 = vector.extract_strided_slice %58 {offsets = [0, 0], sizes = [16, 16], strides = [1, 1]} : vector<20x16xf32> to vector<16x16xf32>
    %76 = vector.broadcast %74 : f32 to vector<16x16xf32>
    %77 = arith.mulf %76, %75 : vector<16x16xf32>
    %78 = arith.addf %73, %77 : vector<16x16xf32>
    %c0_25 = arith.constant 0 : index
    %c4 = arith.constant 4 : index
    %79 = memref.load %arg4[%c0_25, %c4] : memref<8x25xf32, #tpu.memory_space<smem>>
    %80 = vector.extract_strided_slice %59 {offsets = [0, 0], sizes = [16, 16], strides = [1, 1]} : vector<20x16xf32> to vector<16x16xf32>
    %81 = vector.broadcast %79 : f32 to vector<16x16xf32>
    %82 = arith.mulf %81, %80 : vector<16x16xf32>
    %83 = arith.addf %78, %82 : vector<16x16xf32>
    %c0_26 = arith.constant 0 : index
    %c5 = arith.constant 5 : index
    %84 = memref.load %arg4[%c0_26, %c5] : memref<8x25xf32, #tpu.memory_space<smem>>
    %85 = vector.extract_strided_slice %55 {offsets = [1, 0], sizes = [16, 16], strides = [1, 1]} : vector<20x16xf32> to vector<16x16xf32>
    %86 = vector.broadcast %84 : f32 to vector<16x16xf32>
    %87 = arith.mulf %86, %85 : vector<16x16xf32>
    %88 = arith.addf %83, %87 : vector<16x16xf32>
    %c0_27 = arith.constant 0 : index
    %c6 = arith.constant 6 : index
    %89 = memref.load %arg4[%c0_27, %c6] : memref<8x25xf32, #tpu.memory_space<smem>>
    %90 = vector.extract_strided_slice %56 {offsets = [1, 0], sizes = [16, 16], strides = [1, 1]} : vector<20x16xf32> to vector<16x16xf32>
    %91 = vector.broadcast %89 : f32 to vector<16x16xf32>
    %92 = arith.mulf %91, %90 : vector<16x16xf32>
    %93 = arith.addf %88, %92 : vector<16x16xf32>
    %c0_28 = arith.constant 0 : index
    %c7 = arith.constant 7 : index
    %94 = memref.load %arg4[%c0_28, %c7] : memref<8x25xf32, #tpu.memory_space<smem>>
    %95 = vector.extract_strided_slice %57 {offsets = [1, 0], sizes = [16, 16], strides = [1, 1]} : vector<20x16xf32> to vector<16x16xf32>
    %96 = vector.broadcast %94 : f32 to vector<16x16xf32>
    %97 = arith.mulf %96, %95 : vector<16x16xf32>
    %98 = arith.addf %93, %97 : vector<16x16xf32>
    %c0_29 = arith.constant 0 : index
    %c8 = arith.constant 8 : index
    %99 = memref.load %arg4[%c0_29, %c8] : memref<8x25xf32, #tpu.memory_space<smem>>
    %100 = vector.extract_strided_slice %58 {offsets = [1, 0], sizes = [16, 16], strides = [1, 1]} : vector<20x16xf32> to vector<16x16xf32>
    %101 = vector.broadcast %99 : f32 to vector<16x16xf32>
    %102 = arith.mulf %101, %100 : vector<16x16xf32>
    %103 = arith.addf %98, %102 : vector<16x16xf32>
    %c0_30 = arith.constant 0 : index
    %c9 = arith.constant 9 : index
    %104 = memref.load %arg4[%c0_30, %c9] : memref<8x25xf32, #tpu.memory_space<smem>>
    %105 = vector.extract_strided_slice %59 {offsets = [1, 0], sizes = [16, 16], strides = [1, 1]} : vector<20x16xf32> to vector<16x16xf32>
    %106 = vector.broadcast %104 : f32 to vector<16x16xf32>
    %107 = arith.mulf %106, %105 : vector<16x16xf32>
    %108 = arith.addf %103, %107 : vector<16x16xf32>
    %c0_31 = arith.constant 0 : index
    %c10 = arith.constant 10 : index
    %109 = memref.load %arg4[%c0_31, %c10] : memref<8x25xf32, #tpu.memory_space<smem>>
    %110 = vector.extract_strided_slice %55 {offsets = [2, 0], sizes = [16, 16], strides = [1, 1]} : vector<20x16xf32> to vector<16x16xf32>
    %111 = vector.broadcast %109 : f32 to vector<16x16xf32>
    %112 = arith.mulf %111, %110 : vector<16x16xf32>
    %113 = arith.addf %108, %112 : vector<16x16xf32>
    %c0_32 = arith.constant 0 : index
    %c11 = arith.constant 11 : index
    %114 = memref.load %arg4[%c0_32, %c11] : memref<8x25xf32, #tpu.memory_space<smem>>
    %115 = vector.extract_strided_slice %56 {offsets = [2, 0], sizes = [16, 16], strides = [1, 1]} : vector<20x16xf32> to vector<16x16xf32>
    %116 = vector.broadcast %114 : f32 to vector<16x16xf32>
    %117 = arith.mulf %116, %115 : vector<16x16xf32>
    %118 = arith.addf %113, %117 : vector<16x16xf32>
    %c0_33 = arith.constant 0 : index
    %c12 = arith.constant 12 : index
    %119 = memref.load %arg4[%c0_33, %c12] : memref<8x25xf32, #tpu.memory_space<smem>>
    %120 = vector.extract_strided_slice %57 {offsets = [2, 0], sizes = [16, 16], strides = [1, 1]} : vector<20x16xf32> to vector<16x16xf32>
    %121 = vector.broadcast %119 : f32 to vector<16x16xf32>
    %122 = arith.mulf %121, %120 : vector<16x16xf32>
    %123 = arith.addf %118, %122 : vector<16x16xf32>
    %c0_34 = arith.constant 0 : index
    %c13 = arith.constant 13 : index
    %124 = memref.load %arg4[%c0_34, %c13] : memref<8x25xf32, #tpu.memory_space<smem>>
    %125 = vector.extract_strided_slice %58 {offsets = [2, 0], sizes = [16, 16], strides = [1, 1]} : vector<20x16xf32> to vector<16x16xf32>
    %126 = vector.broadcast %124 : f32 to vector<16x16xf32>
    %127 = arith.mulf %126, %125 : vector<16x16xf32>
    %128 = arith.addf %123, %127 : vector<16x16xf32>
    %c0_35 = arith.constant 0 : index
    %c14 = arith.constant 14 : index
    %129 = memref.load %arg4[%c0_35, %c14] : memref<8x25xf32, #tpu.memory_space<smem>>
    %130 = vector.extract_strided_slice %59 {offsets = [2, 0], sizes = [16, 16], strides = [1, 1]} : vector<20x16xf32> to vector<16x16xf32>
    %131 = vector.broadcast %129 : f32 to vector<16x16xf32>
    %132 = arith.mulf %131, %130 : vector<16x16xf32>
    %133 = arith.addf %128, %132 : vector<16x16xf32>
    %c0_36 = arith.constant 0 : index
    %c15 = arith.constant 15 : index
    %134 = memref.load %arg4[%c0_36, %c15] : memref<8x25xf32, #tpu.memory_space<smem>>
    %135 = vector.extract_strided_slice %55 {offsets = [3, 0], sizes = [16, 16], strides = [1, 1]} : vector<20x16xf32> to vector<16x16xf32>
    %136 = vector.broadcast %134 : f32 to vector<16x16xf32>
    %137 = arith.mulf %136, %135 : vector<16x16xf32>
    %138 = arith.addf %133, %137 : vector<16x16xf32>
    %c0_37 = arith.constant 0 : index
    %c16 = arith.constant 16 : index
    %139 = memref.load %arg4[%c0_37, %c16] : memref<8x25xf32, #tpu.memory_space<smem>>
    %140 = vector.extract_strided_slice %56 {offsets = [3, 0], sizes = [16, 16], strides = [1, 1]} : vector<20x16xf32> to vector<16x16xf32>
    %141 = vector.broadcast %139 : f32 to vector<16x16xf32>
    %142 = arith.mulf %141, %140 : vector<16x16xf32>
    %143 = arith.addf %138, %142 : vector<16x16xf32>
    %c0_38 = arith.constant 0 : index
    %c17 = arith.constant 17 : index
    %144 = memref.load %arg4[%c0_38, %c17] : memref<8x25xf32, #tpu.memory_space<smem>>
    %145 = vector.extract_strided_slice %57 {offsets = [3, 0], sizes = [16, 16], strides = [1, 1]} : vector<20x16xf32> to vector<16x16xf32>
    %146 = vector.broadcast %144 : f32 to vector<16x16xf32>
    %147 = arith.mulf %146, %145 : vector<16x16xf32>
    %148 = arith.addf %143, %147 : vector<16x16xf32>
    %c0_39 = arith.constant 0 : index
    %c18 = arith.constant 18 : index
    %149 = memref.load %arg4[%c0_39, %c18] : memref<8x25xf32, #tpu.memory_space<smem>>
    %150 = vector.extract_strided_slice %58 {offsets = [3, 0], sizes = [16, 16], strides = [1, 1]} : vector<20x16xf32> to vector<16x16xf32>
    %151 = vector.broadcast %149 : f32 to vector<16x16xf32>
    %152 = arith.mulf %151, %150 : vector<16x16xf32>
    %153 = arith.addf %148, %152 : vector<16x16xf32>
    %c0_40 = arith.constant 0 : index
    %c19 = arith.constant 19 : index
    %154 = memref.load %arg4[%c0_40, %c19] : memref<8x25xf32, #tpu.memory_space<smem>>
    %155 = vector.extract_strided_slice %59 {offsets = [3, 0], sizes = [16, 16], strides = [1, 1]} : vector<20x16xf32> to vector<16x16xf32>
    %156 = vector.broadcast %154 : f32 to vector<16x16xf32>
    %157 = arith.mulf %156, %155 : vector<16x16xf32>
    %158 = arith.addf %153, %157 : vector<16x16xf32>
    %c0_41 = arith.constant 0 : index
    %c20 = arith.constant 20 : index
    %159 = memref.load %arg4[%c0_41, %c20] : memref<8x25xf32, #tpu.memory_space<smem>>
    %160 = vector.extract_strided_slice %55 {offsets = [4, 0], sizes = [16, 16], strides = [1, 1]} : vector<20x16xf32> to vector<16x16xf32>
    %161 = vector.broadcast %159 : f32 to vector<16x16xf32>
    %162 = arith.mulf %161, %160 : vector<16x16xf32>
    %163 = arith.addf %158, %162 : vector<16x16xf32>
    %c0_42 = arith.constant 0 : index
    %c21 = arith.constant 21 : index
    %164 = memref.load %arg4[%c0_42, %c21] : memref<8x25xf32, #tpu.memory_space<smem>>
    %165 = vector.extract_strided_slice %56 {offsets = [4, 0], sizes = [16, 16], strides = [1, 1]} : vector<20x16xf32> to vector<16x16xf32>
    %166 = vector.broadcast %164 : f32 to vector<16x16xf32>
    %167 = arith.mulf %166, %165 : vector<16x16xf32>
    %168 = arith.addf %163, %167 : vector<16x16xf32>
    %c0_43 = arith.constant 0 : index
    %c22 = arith.constant 22 : index
    %169 = memref.load %arg4[%c0_43, %c22] : memref<8x25xf32, #tpu.memory_space<smem>>
    %170 = vector.extract_strided_slice %57 {offsets = [4, 0], sizes = [16, 16], strides = [1, 1]} : vector<20x16xf32> to vector<16x16xf32>
    %171 = vector.broadcast %169 : f32 to vector<16x16xf32>
    %172 = arith.mulf %171, %170 : vector<16x16xf32>
    %173 = arith.addf %168, %172 : vector<16x16xf32>
    %c0_44 = arith.constant 0 : index
    %c23 = arith.constant 23 : index
    %174 = memref.load %arg4[%c0_44, %c23] : memref<8x25xf32, #tpu.memory_space<smem>>
    %175 = vector.extract_strided_slice %58 {offsets = [4, 0], sizes = [16, 16], strides = [1, 1]} : vector<20x16xf32> to vector<16x16xf32>
    %176 = vector.broadcast %174 : f32 to vector<16x16xf32>
    %177 = arith.mulf %176, %175 : vector<16x16xf32>
    %178 = arith.addf %173, %177 : vector<16x16xf32>
    %c0_45 = arith.constant 0 : index
    %c24 = arith.constant 24 : index
    %179 = memref.load %arg4[%c0_45, %c24] : memref<8x25xf32, #tpu.memory_space<smem>>
    %180 = vector.extract_strided_slice %59 {offsets = [4, 0], sizes = [16, 16], strides = [1, 1]} : vector<20x16xf32> to vector<16x16xf32>
    %181 = vector.broadcast %179 : f32 to vector<16x16xf32>
    %182 = arith.mulf %181, %180 : vector<16x16xf32>
    %183 = arith.addf %178, %182 : vector<16x16xf32>
    %c0_46 = arith.constant 0 : index
    %184 = memref.load %arg5[%c0_46] : memref<8xf32, #tpu.memory_space<smem>>
    %185 = vector.broadcast %184 : f32 to vector<16x16xf32>
    %186 = arith.addf %183, %185 : vector<16x16xf32>
    %cst_47 = arith.constant 0.000000e+00 : f32
    %187 = vector.broadcast %cst_47 : f32 to vector<16x16xf32>
    %188 = arith.subf %187, %186 : vector<16x16xf32>
    %189 = math.exp %188 : vector<16x16xf32>
    %cst_48 = arith.constant 1.000000e+00 : f32
    %190 = vector.broadcast %cst_48 : f32 to vector<16x16xf32>
    %191 = arith.addf %190, %189 : vector<16x16xf32>
    %192 = tpu.reciprocal %191 {approx = true} : vector<16x16xf32> -> vector<16x16xf32>
    %193 = arith.mulf %186, %192 : vector<16x16xf32>
    %c0_49 = arith.constant 0 : index
    %c8_50 = arith.constant 8 : index
    %c0_51 = arith.constant 0 : index
    %c0_52 = arith.constant 0 : index
    %194 = vector.load %arg6[%c0_49, %c8_50, %c0_51, %c0_52] : memref<1x16x16x16xf32, #tpu.memory_space<vmem>>, vector<1x1x16x16xf32>
    %195 = vector.shape_cast %194 : vector<1x1x16x16xf32> to vector<16x16xf32>
    %196 = vector.shape_cast %193 : vector<16x16xf32> to vector<1x1x16x16xf32>
    tpu.vector_store %arg6[%c0_49, %c8_50, %c0_51, %c0_52], %196 {strides = array<i32>} : memref<1x16x16x16xf32, #tpu.memory_space<vmem>>, vector<1x1x16x16xf32>,
    %c1_53 = arith.constant 1 : index
    %c0_54 = arith.constant 0 : index
    %197 = memref.load %arg2[%c1_53, %c0_54] : memref<8x4xf32, #tpu.memory_space<smem>>
    %198 = vector.extract_strided_slice %2 {offsets = [0, 0, 0], sizes = [1, 20, 20], strides = [1, 1, 1]} : vector<4x20x20xf32> to vector<1x20x20xf32>
    %199 = vector.shape_cast %198 : vector<1x20x20xf32> to vector<20x20xf32>
    %200 = vector.broadcast %197 : f32 to vector<20x20xf32>
    %201 = arith.mulf %200, %199 : vector<20x20xf32>
    %c1_55 = arith.constant 1 : index
    %c1_56 = arith.constant 1 : index
    %202 = memref.load %arg2[%c1_55, %c1_56] : memref<8x4xf32, #tpu.memory_space<smem>>
    %203 = vector.extract_strided_slice %2 {offsets = [1, 0, 0], sizes = [1, 20, 20], strides = [1, 1, 1]} : vector<4x20x20xf32> to vector<1x20x20xf32>
    %204 = vector.shape_cast %203 : vector<1x20x20xf32> to vector<20x20xf32>
    %205 = vector.broadcast %202 : f32 to vector<20x20xf32>
    %206 = arith.mulf %205, %204 : vector<20x20xf32>
    %207 = arith.addf %201, %206 : vector<20x20xf32>
    %c1_57 = arith.constant 1 : index
    %c2_58 = arith.constant 2 : index
    %208 = memref.load %arg2[%c1_57, %c2_58] : memref<8x4xf32, #tpu.memory_space<smem>>
    %209 = vector.extract_strided_slice %2 {offsets = [2, 0, 0], sizes = [1, 20, 20], strides = [1, 1, 1]} : vector<4x20x20xf32> to vector<1x20x20xf32>
    %210 = vector.shape_cast %209 : vector<1x20x20xf32> to vector<20x20xf32>
    %211 = vector.broadcast %208 : f32 to vector<20x20xf32>
    %212 = arith.mulf %211, %210 : vector<20x20xf32>
    %213 = arith.addf %207, %212 : vector<20x20xf32>
    %c1_59 = arith.constant 1 : index
    %c3_60 = arith.constant 3 : index
    %214 = memref.load %arg2[%c1_59, %c3_60] : memref<8x4xf32, #tpu.memory_space<smem>>
    %215 = vector.extract_strided_slice %2 {offsets = [3, 0, 0], sizes = [1, 20, 20], strides = [1, 1, 1]} : vector<4x20x20xf32> to vector<1x20x20xf32>
    %216 = vector.shape_cast %215 : vector<1x20x20xf32> to vector<20x20xf32>
    %217 = vector.broadcast %214 : f32 to vector<20x20xf32>
    %218 = arith.mulf %217, %216 : vector<20x20xf32>
    %219 = arith.addf %213, %218 : vector<20x20xf32>
    %c1_61 = arith.constant 1 : index
    %220 = memref.load %arg3[%c1_61] : memref<8xf32, #tpu.memory_space<smem>>
    %221 = vector.broadcast %220 : f32 to vector<20x20xf32>
    %222 = arith.addf %219, %221 : vector<20x20xf32>
    %cst_62 = arith.constant 0.000000e+00 : f32
    %223 = vector.broadcast %cst_62 : f32 to vector<20x20xf32>
    %224 = arith.subf %223, %222 : vector<20x20xf32>
    %225 = math.exp %224 : vector<20x20xf32>
    %cst_63 = arith.constant 1.000000e+00 : f32
    %226 = vector.broadcast %cst_63 : f32 to vector<20x20xf32>
    %227 = arith.addf %226, %225 : vector<20x20xf32>
    %228 = tpu.reciprocal %227 {approx = true} : vector<20x20xf32> -> vector<20x20xf32>
    %229 = arith.mulf %222, %228 : vector<20x20xf32>
    %230 = vector.extract_strided_slice %229 {offsets = [2, 2], sizes = [16, 16], strides = [1, 1]} : vector<20x20xf32> to vector<16x16xf32>
    %c0_64 = arith.constant 0 : index
    %c1_65 = arith.constant 1 : index
    %c0_66 = arith.constant 0 : index
    %c0_67 = arith.constant 0 : index
    %231 = vector.load %arg6[%c0_64, %c1_65, %c0_66, %c0_67] : memref<1x16x16x16xf32, #tpu.memory_space<vmem>>, vector<1x1x16x16xf32>
    %232 = vector.shape_cast %231 : vector<1x1x16x16xf32> to vector<16x16xf32>
    %233 = vector.shape_cast %230 : vector<16x16xf32> to vector<1x1x16x16xf32>
    tpu.vector_store %arg6[%c0_64, %c1_65, %c0_66, %c0_67], %233 {strides = array<i32>} : memref<1x16x16x16xf32, #tpu.memory_space<vmem>>, vector<1x1x16x16xf32>,
    %cst_68 = arith.constant 0.000000e+00 : f32
    %234 = vector.broadcast %cst_68 : f32 to vector<20x20xf32>
    %235 = arith.select %15, %229, %234 : vector<20x20xi1>, vector<20x20xf32>
    %236 = vector.extract_strided_slice %235 {offsets = [0, 0], sizes = [20, 16], strides = [1, 1]} : vector<20x20xf32> to vector<20x16xf32>
    %237 = vector.extract_strided_slice %235 {offsets = [0, 1], sizes = [20, 16], strides = [1, 1]} : vector<20x20xf32> to vector<20x16xf32>
    %238 = vector.extract_strided_slice %235 {offsets = [0, 2], sizes = [20, 16], strides = [1, 1]} : vector<20x20xf32> to vector<20x16xf32>
    %239 = vector.extract_strided_slice %235 {offsets = [0, 3], sizes = [20, 16], strides = [1, 1]} : vector<20x20xf32> to vector<20x16xf32>
    %240 = vector.extract_strided_slice %235 {offsets = [0, 4], sizes = [20, 16], strides = [1, 1]} : vector<20x20xf32> to vector<20x16xf32>
    %c1_69 = arith.constant 1 : index
    %c0_70 = arith.constant 0 : index
    %241 = memref.load %arg4[%c1_69, %c0_70] : memref<8x25xf32, #tpu.memory_space<smem>>
    %242 = vector.extract_strided_slice %236 {offsets = [0, 0], sizes = [16, 16], strides = [1, 1]} : vector<20x16xf32> to vector<16x16xf32>
    %243 = vector.broadcast %241 : f32 to vector<16x16xf32>
    %244 = arith.mulf %243, %242 : vector<16x16xf32>
    %c1_71 = arith.constant 1 : index
    %c1_72 = arith.constant 1 : index
    %245 = memref.load %arg4[%c1_71, %c1_72] : memref<8x25xf32, #tpu.memory_space<smem>>
    %246 = vector.extract_strided_slice %237 {offsets = [0, 0], sizes = [16, 16], strides = [1, 1]} : vector<20x16xf32> to vector<16x16xf32>
    %247 = vector.broadcast %245 : f32 to vector<16x16xf32>
    %248 = arith.mulf %247, %246 : vector<16x16xf32>
    %249 = arith.addf %244, %248 : vector<16x16xf32>
    %c1_73 = arith.constant 1 : index
    %c2_74 = arith.constant 2 : index
    %250 = memref.load %arg4[%c1_73, %c2_74] : memref<8x25xf32, #tpu.memory_space<smem>>
    %251 = vector.extract_strided_slice %238 {offsets = [0, 0], sizes = [16, 16], strides = [1, 1]} : vector<20x16xf32> to vector<16x16xf32>
    %252 = vector.broadcast %250 : f32 to vector<16x16xf32>
    %253 = arith.mulf %252, %251 : vector<16x16xf32>
    %254 = arith.addf %249, %253 : vector<16x16xf32>
    %c1_75 = arith.constant 1 : index
    %c3_76 = arith.constant 3 : index
    %255 = memref.load %arg4[%c1_75, %c3_76] : memref<8x25xf32, #tpu.memory_space<smem>>
    %256 = vector.extract_strided_slice %239 {offsets = [0, 0], sizes = [16, 16], strides = [1, 1]} : vector<20x16xf32> to vector<16x16xf32>
    %257 = vector.broadcast %255 : f32 to vector<16x16xf32>
    %258 = arith.mulf %257, %256 : vector<16x16xf32>
    %259 = arith.addf %254, %258 : vector<16x16xf32>
    %c1_77 = arith.constant 1 : index
    %c4_78 = arith.constant 4 : index
    %260 = memref.load %arg4[%c1_77, %c4_78] : memref<8x25xf32, #tpu.memory_space<smem>>
    %261 = vector.extract_strided_slice %240 {offsets = [0, 0], sizes = [16, 16], strides = [1, 1]} : vector<20x16xf32> to vector<16x16xf32>
    %262 = vector.broadcast %260 : f32 to vector<16x16xf32>
    %263 = arith.mulf %262, %261 : vector<16x16xf32>
    %264 = arith.addf %259, %263 : vector<16x16xf32>
    %c1_79 = arith.constant 1 : index
    %c5_80 = arith.constant 5 : index
    %265 = memref.load %arg4[%c1_79, %c5_80] : memref<8x25xf32, #tpu.memory_space<smem>>
    %266 = vector.extract_strided_slice %236 {offsets = [1, 0], sizes = [16, 16], strides = [1, 1]} : vector<20x16xf32> to vector<16x16xf32>
    %267 = vector.broadcast %265 : f32 to vector<16x16xf32>
    %268 = arith.mulf %267, %266 : vector<16x16xf32>
    %269 = arith.addf %264, %268 : vector<16x16xf32>
    %c1_81 = arith.constant 1 : index
    %c6_82 = arith.constant 6 : index
    %270 = memref.load %arg4[%c1_81, %c6_82] : memref<8x25xf32, #tpu.memory_space<smem>>
    %271 = vector.extract_strided_slice %237 {offsets = [1, 0], sizes = [16, 16], strides = [1, 1]} : vector<20x16xf32> to vector<16x16xf32>
    %272 = vector.broadcast %270 : f32 to vector<16x16xf32>
    %273 = arith.mulf %272, %271 : vector<16x16xf32>
    %274 = arith.addf %269, %273 : vector<16x16xf32>
    %c1_83 = arith.constant 1 : index
    %c7_84 = arith.constant 7 : index
    %275 = memref.load %arg4[%c1_83, %c7_84] : memref<8x25xf32, #tpu.memory_space<smem>>
    %276 = vector.extract_strided_slice %238 {offsets = [1, 0], sizes = [16, 16], strides = [1, 1]} : vector<20x16xf32> to vector<16x16xf32>
    %277 = vector.broadcast %275 : f32 to vector<16x16xf32>
    %278 = arith.mulf %277, %276 : vector<16x16xf32>
    %279 = arith.addf %274, %278 : vector<16x16xf32>
    %c1_85 = arith.constant 1 : index
    %c8_86 = arith.constant 8 : index
    %280 = memref.load %arg4[%c1_85, %c8_86] : memref<8x25xf32, #tpu.memory_space<smem>>
    %281 = vector.extract_strided_slice %239 {offsets = [1, 0], sizes = [16, 16], strides = [1, 1]} : vector<20x16xf32> to vector<16x16xf32>
    %282 = vector.broadcast %280 : f32 to vector<16x16xf32>
    %283 = arith.mulf %282, %281 : vector<16x16xf32>
    %284 = arith.addf %279, %283 : vector<16x16xf32>
    %c1_87 = arith.constant 1 : index
    %c9_88 = arith.constant 9 : index
    %285 = memref.load %arg4[%c1_87, %c9_88] : memref<8x25xf32, #tpu.memory_space<smem>>
    %286 = vector.extract_strided_slice %240 {offsets = [1, 0], sizes = [16, 16], strides = [1, 1]} : vector<20x16xf32> to vector<16x16xf32>
    %287 = vector.broadcast %285 : f32 to vector<16x16xf32>
    %288 = arith.mulf %287, %286 : vector<16x16xf32>
    %289 = arith.addf %284, %288 : vector<16x16xf32>
    %c1_89 = arith.constant 1 : index
    %c10_90 = arith.constant 10 : index
    %290 = memref.load %arg4[%c1_89, %c10_90] : memref<8x25xf32, #tpu.memory_space<smem>>
    %291 = vector.extract_strided_slice %236 {offsets = [2, 0], sizes = [16, 16], strides = [1, 1]} : vector<20x16xf32> to vector<16x16xf32>
    %292 = vector.broadcast %290 : f32 to vector<16x16xf32>
    %293 = arith.mulf %292, %291 : vector<16x16xf32>
    %294 = arith.addf %289, %293 : vector<16x16xf32>
    %c1_91 = arith.constant 1 : index
    %c11_92 = arith.constant 11 : index
    %295 = memref.load %arg4[%c1_91, %c11_92] : memref<8x25xf32, #tpu.memory_space<smem>>
    %296 = vector.extract_strided_slice %237 {offsets = [2, 0], sizes = [16, 16], strides = [1, 1]} : vector<20x16xf32> to vector<16x16xf32>
    %297 = vector.broadcast %295 : f32 to vector<16x16xf32>
    %298 = arith.mulf %297, %296 : vector<16x16xf32>
    %299 = arith.addf %294, %298 : vector<16x16xf32>
    %c1_93 = arith.constant 1 : index
    %c12_94 = arith.constant 12 : index
    %300 = memref.load %arg4[%c1_93, %c12_94] : memref<8x25xf32, #tpu.memory_space<smem>>
    %301 = vector.extract_strided_slice %238 {offsets = [2, 0], sizes = [16, 16], strides = [1, 1]} : vector<20x16xf32> to vector<16x16xf32>
    %302 = vector.broadcast %300 : f32 to vector<16x16xf32>
    %303 = arith.mulf %302, %301 : vector<16x16xf32>
    %304 = arith.addf %299, %303 : vector<16x16xf32>
    %c1_95 = arith.constant 1 : index
    %c13_96 = arith.constant 13 : index
    %305 = memref.load %arg4[%c1_95, %c13_96] : memref<8x25xf32, #tpu.memory_space<smem>>
    %306 = vector.extract_strided_slice %239 {offsets = [2, 0], sizes = [16, 16], strides = [1, 1]} : vector<20x16xf32> to vector<16x16xf32>
    %307 = vector.broadcast %305 : f32 to vector<16x16xf32>
    %308 = arith.mulf %307, %306 : vector<16x16xf32>
    %309 = arith.addf %304, %308 : vector<16x16xf32>
    %c1_97 = arith.constant 1 : index
    %c14_98 = arith.constant 14 : index
    %310 = memref.load %arg4[%c1_97, %c14_98] : memref<8x25xf32, #tpu.memory_space<smem>>
    %311 = vector.extract_strided_slice %240 {offsets = [2, 0], sizes = [16, 16], strides = [1, 1]} : vector<20x16xf32> to vector<16x16xf32>
    %312 = vector.broadcast %310 : f32 to vector<16x16xf32>
    %313 = arith.mulf %312, %311 : vector<16x16xf32>
    %314 = arith.addf %309, %313 : vector<16x16xf32>
    %c1_99 = arith.constant 1 : index
    %c15_100 = arith.constant 15 : index
    %315 = memref.load %arg4[%c1_99, %c15_100] : memref<8x25xf32, #tpu.memory_space<smem>>
    %316 = vector.extract_strided_slice %236 {offsets = [3, 0], sizes = [16, 16], strides = [1, 1]} : vector<20x16xf32> to vector<16x16xf32>
    %317 = vector.broadcast %315 : f32 to vector<16x16xf32>
    %318 = arith.mulf %317, %316 : vector<16x16xf32>
    %319 = arith.addf %314, %318 : vector<16x16xf32>
    %c1_101 = arith.constant 1 : index
    %c16_102 = arith.constant 16 : index
    %320 = memref.load %arg4[%c1_101, %c16_102] : memref<8x25xf32, #tpu.memory_space<smem>>
    %321 = vector.extract_strided_slice %237 {offsets = [3, 0], sizes = [16, 16], strides = [1, 1]} : vector<20x16xf32> to vector<16x16xf32>
    %322 = vector.broadcast %320 : f32 to vector<16x16xf32>
    %323 = arith.mulf %322, %321 : vector<16x16xf32>
    %324 = arith.addf %319, %323 : vector<16x16xf32>
    %c1_103 = arith.constant 1 : index
    %c17_104 = arith.constant 17 : index
    %325 = memref.load %arg4[%c1_103, %c17_104] : memref<8x25xf32, #tpu.memory_space<smem>>
    %326 = vector.extract_strided_slice %238 {offsets = [3, 0], sizes = [16, 16], strides = [1, 1]} : vector<20x16xf32> to vector<16x16xf32>
    %327 = vector.broadcast %325 : f32 to vector<16x16xf32>
    %328 = arith.mulf %327, %326 : vector<16x16xf32>
    %329 = arith.addf %324, %328 : vector<16x16xf32>
    %c1_105 = arith.constant 1 : index
    %c18_106 = arith.constant 18 : index
    %330 = memref.load %arg4[%c1_105, %c18_106] : memref<8x25xf32, #tpu.memory_space<smem>>
    %331 = vector.extract_strided_slice %239 {offsets = [3, 0], sizes = [16, 16], strides = [1, 1]} : vector<20x16xf32> to vector<16x16xf32>
    %332 = vector.broadcast %330 : f32 to vector<16x16xf32>
    %333 = arith.mulf %332, %331 : vector<16x16xf32>
    %334 = arith.addf %329, %333 : vector<16x16xf32>
    %c1_107 = arith.constant 1 : index
    %c19_108 = arith.constant 19 : index
    %335 = memref.load %arg4[%c1_107, %c19_108] : memref<8x25xf32, #tpu.memory_space<smem>>
    %336 = vector.extract_strided_slice %240 {offsets = [3, 0], sizes = [16, 16], strides = [1, 1]} : vector<20x16xf32> to vector<16x16xf32>
    %337 = vector.broadcast %335 : f32 to vector<16x16xf32>
    %338 = arith.mulf %337, %336 : vector<16x16xf32>
    %339 = arith.addf %334, %338 : vector<16x16xf32>
    %c1_109 = arith.constant 1 : index
    %c20_110 = arith.constant 20 : index
    %340 = memref.load %arg4[%c1_109, %c20_110] : memref<8x25xf32, #tpu.memory_space<smem>>
    %341 = vector.extract_strided_slice %236 {offsets = [4, 0], sizes = [16, 16], strides = [1, 1]} : vector<20x16xf32> to vector<16x16xf32>
    %342 = vector.broadcast %340 : f32 to vector<16x16xf32>
    %343 = arith.mulf %342, %341 : vector<16x16xf32>
    %344 = arith.addf %339, %343 : vector<16x16xf32>
    %c1_111 = arith.constant 1 : index
    %c21_112 = arith.constant 21 : index
    %345 = memref.load %arg4[%c1_111, %c21_112] : memref<8x25xf32, #tpu.memory_space<smem>>
    %346 = vector.extract_strided_slice %237 {offsets = [4, 0], sizes = [16, 16], strides = [1, 1]} : vector<20x16xf32> to vector<16x16xf32>
    %347 = vector.broadcast %345 : f32 to vector<16x16xf32>
    %348 = arith.mulf %347, %346 : vector<16x16xf32>
    %349 = arith.addf %344, %348 : vector<16x16xf32>
    %c1_113 = arith.constant 1 : index
    %c22_114 = arith.constant 22 : index
    %350 = memref.load %arg4[%c1_113, %c22_114] : memref<8x25xf32, #tpu.memory_space<smem>>
    %351 = vector.extract_strided_slice %238 {offsets = [4, 0], sizes = [16, 16], strides = [1, 1]} : vector<20x16xf32> to vector<16x16xf32>
    %352 = vector.broadcast %350 : f32 to vector<16x16xf32>
    %353 = arith.mulf %352, %351 : vector<16x16xf32>
    %354 = arith.addf %349, %353 : vector<16x16xf32>
    %c1_115 = arith.constant 1 : index
    %c23_116 = arith.constant 23 : index
    %355 = memref.load %arg4[%c1_115, %c23_116] : memref<8x25xf32, #tpu.memory_space<smem>>
    %356 = vector.extract_strided_slice %239 {offsets = [4, 0], sizes = [16, 16], strides = [1, 1]} : vector<20x16xf32> to vector<16x16xf32>
    %357 = vector.broadcast %355 : f32 to vector<16x16xf32>
    %358 = arith.mulf %357, %356 : vector<16x16xf32>
    %359 = arith.addf %354, %358 : vector<16x16xf32>
    %c1_117 = arith.constant 1 : index
    %c24_118 = arith.constant 24 : index
    %360 = memref.load %arg4[%c1_117, %c24_118] : memref<8x25xf32, #tpu.memory_space<smem>>
    %361 = vector.extract_strided_slice %240 {offsets = [4, 0], sizes = [16, 16], strides = [1, 1]} : vector<20x16xf32> to vector<16x16xf32>
    %362 = vector.broadcast %360 : f32 to vector<16x16xf32>
    %363 = arith.mulf %362, %361 : vector<16x16xf32>
    %364 = arith.addf %359, %363 : vector<16x16xf32>
    %c1_119 = arith.constant 1 : index
    %365 = memref.load %arg5[%c1_119] : memref<8xf32, #tpu.memory_space<smem>>
    %366 = vector.broadcast %365 : f32 to vector<16x16xf32>
    %367 = arith.addf %364, %366 : vector<16x16xf32>
    %cst_120 = arith.constant 0.000000e+00 : f32
    %368 = vector.broadcast %cst_120 : f32 to vector<16x16xf32>
    %369 = arith.subf %368, %367 : vector<16x16xf32>
    %370 = math.exp %369 : vector<16x16xf32>
    %cst_121 = arith.constant 1.000000e+00 : f32
    %371 = vector.broadcast %cst_121 : f32 to vector<16x16xf32>
    %372 = arith.addf %371, %370 : vector<16x16xf32>
    %373 = tpu.reciprocal %372 {approx = true} : vector<16x16xf32> -> vector<16x16xf32>
    %374 = arith.mulf %367, %373 : vector<16x16xf32>
    %c0_122 = arith.constant 0 : index
    %c9_123 = arith.constant 9 : index
    %c0_124 = arith.constant 0 : index
    %c0_125 = arith.constant 0 : index
    %375 = vector.load %arg6[%c0_122, %c9_123, %c0_124, %c0_125] : memref<1x16x16x16xf32, #tpu.memory_space<vmem>>, vector<1x1x16x16xf32>
    %376 = vector.shape_cast %375 : vector<1x1x16x16xf32> to vector<16x16xf32>
    %377 = vector.shape_cast %374 : vector<16x16xf32> to vector<1x1x16x16xf32>
    tpu.vector_store %arg6[%c0_122, %c9_123, %c0_124, %c0_125], %377 {strides = array<i32>} : memref<1x16x16x16xf32, #tpu.memory_space<vmem>>, vector<1x1x16x16xf32>,
    %c2_126 = arith.constant 2 : index
    %c0_127 = arith.constant 0 : index
    %378 = memref.load %arg2[%c2_126, %c0_127] : memref<8x4xf32, #tpu.memory_space<smem>>
    %379 = vector.extract_strided_slice %2 {offsets = [0, 0, 0], sizes = [1, 20, 20], strides = [1, 1, 1]} : vector<4x20x20xf32> to vector<1x20x20xf32>
    %380 = vector.shape_cast %379 : vector<1x20x20xf32> to vector<20x20xf32>
    %381 = vector.broadcast %378 : f32 to vector<20x20xf32>
    %382 = arith.mulf %381, %380 : vector<20x20xf32>
    %c2_128 = arith.constant 2 : index
    %c1_129 = arith.constant 1 : index
    %383 = memref.load %arg2[%c2_128, %c1_129] : memref<8x4xf32, #tpu.memory_space<smem>>
    %384 = vector.extract_strided_slice %2 {offsets = [1, 0, 0], sizes = [1, 20, 20], strides = [1, 1, 1]} : vector<4x20x20xf32> to vector<1x20x20xf32>
    %385 = vector.shape_cast %384 : vector<1x20x20xf32> to vector<20x20xf32>
    %386 = vector.broadcast %383 : f32 to vector<20x20xf32>
    %387 = arith.mulf %386, %385 : vector<20x20xf32>
    %388 = arith.addf %382, %387 : vector<20x20xf32>
    %c2_130 = arith.constant 2 : index
    %c2_131 = arith.constant 2 : index
    %389 = memref.load %arg2[%c2_130, %c2_131] : memref<8x4xf32, #tpu.memory_space<smem>>
    %390 = vector.extract_strided_slice %2 {offsets = [2, 0, 0], sizes = [1, 20, 20], strides = [1, 1, 1]} : vector<4x20x20xf32> to vector<1x20x20xf32>
    %391 = vector.shape_cast %390 : vector<1x20x20xf32> to vector<20x20xf32>
    %392 = vector.broadcast %389 : f32 to vector<20x20xf32>
    %393 = arith.mulf %392, %391 : vector<20x20xf32>
    %394 = arith.addf %388, %393 : vector<20x20xf32>
    %c2_132 = arith.constant 2 : index
    %c3_133 = arith.constant 3 : index
    %395 = memref.load %arg2[%c2_132, %c3_133] : memref<8x4xf32, #tpu.memory_space<smem>>
    %396 = vector.extract_strided_slice %2 {offsets = [3, 0, 0], sizes = [1, 20, 20], strides = [1, 1, 1]} : vector<4x20x20xf32> to vector<1x20x20xf32>
    %397 = vector.shape_cast %396 : vector<1x20x20xf32> to vector<20x20xf32>
    %398 = vector.broadcast %395 : f32 to vector<20x20xf32>
    %399 = arith.mulf %398, %397 : vector<20x20xf32>
    %400 = arith.addf %394, %399 : vector<20x20xf32>
    %c2_134 = arith.constant 2 : index
    %401 = memref.load %arg3[%c2_134] : memref<8xf32, #tpu.memory_space<smem>>
    %402 = vector.broadcast %401 : f32 to vector<20x20xf32>
    %403 = arith.addf %400, %402 : vector<20x20xf32>
    %cst_135 = arith.constant 0.000000e+00 : f32
    %404 = vector.broadcast %cst_135 : f32 to vector<20x20xf32>
    %405 = arith.subf %404, %403 : vector<20x20xf32>
    %406 = math.exp %405 : vector<20x20xf32>
    %cst_136 = arith.constant 1.000000e+00 : f32
    %407 = vector.broadcast %cst_136 : f32 to vector<20x20xf32>
    %408 = arith.addf %407, %406 : vector<20x20xf32>
    %409 = tpu.reciprocal %408 {approx = true} : vector<20x20xf32> -> vector<20x20xf32>
    %410 = arith.mulf %403, %409 : vector<20x20xf32>
    %411 = vector.extract_strided_slice %410 {offsets = [2, 2], sizes = [16, 16], strides = [1, 1]} : vector<20x20xf32> to vector<16x16xf32>
    %c0_137 = arith.constant 0 : index
    %c2_138 = arith.constant 2 : index
    %c0_139 = arith.constant 0 : index
    %c0_140 = arith.constant 0 : index
    %412 = vector.load %arg6[%c0_137, %c2_138, %c0_139, %c0_140] : memref<1x16x16x16xf32, #tpu.memory_space<vmem>>, vector<1x1x16x16xf32>
    %413 = vector.shape_cast %412 : vector<1x1x16x16xf32> to vector<16x16xf32>
    %414 = vector.shape_cast %411 : vector<16x16xf32> to vector<1x1x16x16xf32>
    tpu.vector_store %arg6[%c0_137, %c2_138, %c0_139, %c0_140], %414 {strides = array<i32>} : memref<1x16x16x16xf32, #tpu.memory_space<vmem>>, vector<1x1x16x16xf32>,
    %cst_141 = arith.constant 0.000000e+00 : f32
    %415 = vector.broadcast %cst_141 : f32 to vector<20x20xf32>
    %416 = arith.select %15, %410, %415 : vector<20x20xi1>, vector<20x20xf32>
    %417 = vector.extract_strided_slice %416 {offsets = [0, 0], sizes = [20, 16], strides = [1, 1]} : vector<20x20xf32> to vector<20x16xf32>
    %418 = vector.extract_strided_slice %416 {offsets = [0, 1], sizes = [20, 16], strides = [1, 1]} : vector<20x20xf32> to vector<20x16xf32>
    %419 = vector.extract_strided_slice %416 {offsets = [0, 2], sizes = [20, 16], strides = [1, 1]} : vector<20x20xf32> to vector<20x16xf32>
    %420 = vector.extract_strided_slice %416 {offsets = [0, 3], sizes = [20, 16], strides = [1, 1]} : vector<20x20xf32> to vector<20x16xf32>
    %421 = vector.extract_strided_slice %416 {offsets = [0, 4], sizes = [20, 16], strides = [1, 1]} : vector<20x20xf32> to vector<20x16xf32>
    %c2_142 = arith.constant 2 : index
    %c0_143 = arith.constant 0 : index
    %422 = memref.load %arg4[%c2_142, %c0_143] : memref<8x25xf32, #tpu.memory_space<smem>>
    %423 = vector.extract_strided_slice %417 {offsets = [0, 0], sizes = [16, 16], strides = [1, 1]} : vector<20x16xf32> to vector<16x16xf32>
    %424 = vector.broadcast %422 : f32 to vector<16x16xf32>
    %425 = arith.mulf %424, %423 : vector<16x16xf32>
    %c2_144 = arith.constant 2 : index
    %c1_145 = arith.constant 1 : index
    %426 = memref.load %arg4[%c2_144, %c1_145] : memref<8x25xf32, #tpu.memory_space<smem>>
    %427 = vector.extract_strided_slice %418 {offsets = [0, 0], sizes = [16, 16], strides = [1, 1]} : vector<20x16xf32> to vector<16x16xf32>
    %428 = vector.broadcast %426 : f32 to vector<16x16xf32>
    %429 = arith.mulf %428, %427 : vector<16x16xf32>
    %430 = arith.addf %425, %429 : vector<16x16xf32>
    %c2_146 = arith.constant 2 : index
    %c2_147 = arith.constant 2 : index
    %431 = memref.load %arg4[%c2_146, %c2_147] : memref<8x25xf32, #tpu.memory_space<smem>>
    %432 = vector.extract_strided_slice %419 {offsets = [0, 0], sizes = [16, 16], strides = [1, 1]} : vector<20x16xf32> to vector<16x16xf32>
    %433 = vector.broadcast %431 : f32 to vector<16x16xf32>
    %434 = arith.mulf %433, %432 : vector<16x16xf32>
    %435 = arith.addf %430, %434 : vector<16x16xf32>
    %c2_148 = arith.constant 2 : index
    %c3_149 = arith.constant 3 : index
    %436 = memref.load %arg4[%c2_148, %c3_149] : memref<8x25xf32, #tpu.memory_space<smem>>
    %437 = vector.extract_strided_slice %420 {offsets = [0, 0], sizes = [16, 16], strides = [1, 1]} : vector<20x16xf32> to vector<16x16xf32>
    %438 = vector.broadcast %436 : f32 to vector<16x16xf32>
    %439 = arith.mulf %438, %437 : vector<16x16xf32>
    %440 = arith.addf %435, %439 : vector<16x16xf32>
    %c2_150 = arith.constant 2 : index
    %c4_151 = arith.constant 4 : index
    %441 = memref.load %arg4[%c2_150, %c4_151] : memref<8x25xf32, #tpu.memory_space<smem>>
    %442 = vector.extract_strided_slice %421 {offsets = [0, 0], sizes = [16, 16], strides = [1, 1]} : vector<20x16xf32> to vector<16x16xf32>
    %443 = vector.broadcast %441 : f32 to vector<16x16xf32>
    %444 = arith.mulf %443, %442 : vector<16x16xf32>
    %445 = arith.addf %440, %444 : vector<16x16xf32>
    %c2_152 = arith.constant 2 : index
    %c5_153 = arith.constant 5 : index
    %446 = memref.load %arg4[%c2_152, %c5_153] : memref<8x25xf32, #tpu.memory_space<smem>>
    %447 = vector.extract_strided_slice %417 {offsets = [1, 0], sizes = [16, 16], strides = [1, 1]} : vector<20x16xf32> to vector<16x16xf32>
    %448 = vector.broadcast %446 : f32 to vector<16x16xf32>
    %449 = arith.mulf %448, %447 : vector<16x16xf32>
    %450 = arith.addf %445, %449 : vector<16x16xf32>
    %c2_154 = arith.constant 2 : index
    %c6_155 = arith.constant 6 : index
    %451 = memref.load %arg4[%c2_154, %c6_155] : memref<8x25xf32, #tpu.memory_space<smem>>
    %452 = vector.extract_strided_slice %418 {offsets = [1, 0], sizes = [16, 16], strides = [1, 1]} : vector<20x16xf32> to vector<16x16xf32>
    %453 = vector.broadcast %451 : f32 to vector<16x16xf32>
    %454 = arith.mulf %453, %452 : vector<16x16xf32>
    %455 = arith.addf %450, %454 : vector<16x16xf32>
    %c2_156 = arith.constant 2 : index
    %c7_157 = arith.constant 7 : index
    %456 = memref.load %arg4[%c2_156, %c7_157] : memref<8x25xf32, #tpu.memory_space<smem>>
    %457 = vector.extract_strided_slice %419 {offsets = [1, 0], sizes = [16, 16], strides = [1, 1]} : vector<20x16xf32> to vector<16x16xf32>
    %458 = vector.broadcast %456 : f32 to vector<16x16xf32>
    %459 = arith.mulf %458, %457 : vector<16x16xf32>
    %460 = arith.addf %455, %459 : vector<16x16xf32>
    %c2_158 = arith.constant 2 : index
    %c8_159 = arith.constant 8 : index
    %461 = memref.load %arg4[%c2_158, %c8_159] : memref<8x25xf32, #tpu.memory_space<smem>>
    %462 = vector.extract_strided_slice %420 {offsets = [1, 0], sizes = [16, 16], strides = [1, 1]} : vector<20x16xf32> to vector<16x16xf32>
    %463 = vector.broadcast %461 : f32 to vector<16x16xf32>
    %464 = arith.mulf %463, %462 : vector<16x16xf32>
    %465 = arith.addf %460, %464 : vector<16x16xf32>
    %c2_160 = arith.constant 2 : index
    %c9_161 = arith.constant 9 : index
    %466 = memref.load %arg4[%c2_160, %c9_161] : memref<8x25xf32, #tpu.memory_space<smem>>
    %467 = vector.extract_strided_slice %421 {offsets = [1, 0], sizes = [16, 16], strides = [1, 1]} : vector<20x16xf32> to vector<16x16xf32>
    %468 = vector.broadcast %466 : f32 to vector<16x16xf32>
    %469 = arith.mulf %468, %467 : vector<16x16xf32>
    %470 = arith.addf %465, %469 : vector<16x16xf32>
    %c2_162 = arith.constant 2 : index
    %c10_163 = arith.constant 10 : index
    %471 = memref.load %arg4[%c2_162, %c10_163] : memref<8x25xf32, #tpu.memory_space<smem>>
    %472 = vector.extract_strided_slice %417 {offsets = [2, 0], sizes = [16, 16], strides = [1, 1]} : vector<20x16xf32> to vector<16x16xf32>
    %473 = vector.broadcast %471 : f32 to vector<16x16xf32>
    %474 = arith.mulf %473, %472 : vector<16x16xf32>
    %475 = arith.addf %470, %474 : vector<16x16xf32>
    %c2_164 = arith.constant 2 : index
    %c11_165 = arith.constant 11 : index
    %476 = memref.load %arg4[%c2_164, %c11_165] : memref<8x25xf32, #tpu.memory_space<smem>>
    %477 = vector.extract_strided_slice %418 {offsets = [2, 0], sizes = [16, 16], strides = [1, 1]} : vector<20x16xf32> to vector<16x16xf32>
    %478 = vector.broadcast %476 : f32 to vector<16x16xf32>
    %479 = arith.mulf %478, %477 : vector<16x16xf32>
    %480 = arith.addf %475, %479 : vector<16x16xf32>
    %c2_166 = arith.constant 2 : index
    %c12_167 = arith.constant 12 : index
    %481 = memref.load %arg4[%c2_166, %c12_167] : memref<8x25xf32, #tpu.memory_space<smem>>
    %482 = vector.extract_strided_slice %419 {offsets = [2, 0], sizes = [16, 16], strides = [1, 1]} : vector<20x16xf32> to vector<16x16xf32>
    %483 = vector.broadcast %481 : f32 to vector<16x16xf32>
    %484 = arith.mulf %483, %482 : vector<16x16xf32>
    %485 = arith.addf %480, %484 : vector<16x16xf32>
    %c2_168 = arith.constant 2 : index
    %c13_169 = arith.constant 13 : index
    %486 = memref.load %arg4[%c2_168, %c13_169] : memref<8x25xf32, #tpu.memory_space<smem>>
    %487 = vector.extract_strided_slice %420 {offsets = [2, 0], sizes = [16, 16], strides = [1, 1]} : vector<20x16xf32> to vector<16x16xf32>
    %488 = vector.broadcast %486 : f32 to vector<16x16xf32>
    %489 = arith.mulf %488, %487 : vector<16x16xf32>
    %490 = arith.addf %485, %489 : vector<16x16xf32>
    %c2_170 = arith.constant 2 : index
    %c14_171 = arith.constant 14 : index
    %491 = memref.load %arg4[%c2_170, %c14_171] : memref<8x25xf32, #tpu.memory_space<smem>>
    %492 = vector.extract_strided_slice %421 {offsets = [2, 0], sizes = [16, 16], strides = [1, 1]} : vector<20x16xf32> to vector<16x16xf32>
    %493 = vector.broadcast %491 : f32 to vector<16x16xf32>
    %494 = arith.mulf %493, %492 : vector<16x16xf32>
    %495 = arith.addf %490, %494 : vector<16x16xf32>
    %c2_172 = arith.constant 2 : index
    %c15_173 = arith.constant 15 : index
    %496 = memref.load %arg4[%c2_172, %c15_173] : memref<8x25xf32, #tpu.memory_space<smem>>
    %497 = vector.extract_strided_slice %417 {offsets = [3, 0], sizes = [16, 16], strides = [1, 1]} : vector<20x16xf32> to vector<16x16xf32>
    %498 = vector.broadcast %496 : f32 to vector<16x16xf32>
    %499 = arith.mulf %498, %497 : vector<16x16xf32>
    %500 = arith.addf %495, %499 : vector<16x16xf32>
    %c2_174 = arith.constant 2 : index
    %c16_175 = arith.constant 16 : index
    %501 = memref.load %arg4[%c2_174, %c16_175] : memref<8x25xf32, #tpu.memory_space<smem>>
    %502 = vector.extract_strided_slice %418 {offsets = [3, 0], sizes = [16, 16], strides = [1, 1]} : vector<20x16xf32> to vector<16x16xf32>
    %503 = vector.broadcast %501 : f32 to vector<16x16xf32>
    %504 = arith.mulf %503, %502 : vector<16x16xf32>
    %505 = arith.addf %500, %504 : vector<16x16xf32>
    %c2_176 = arith.constant 2 : index
    %c17_177 = arith.constant 17 : index
    %506 = memref.load %arg4[%c2_176, %c17_177] : memref<8x25xf32, #tpu.memory_space<smem>>
    %507 = vector.extract_strided_slice %419 {offsets = [3, 0], sizes = [16, 16], strides = [1, 1]} : vector<20x16xf32> to vector<16x16xf32>
    %508 = vector.broadcast %506 : f32 to vector<16x16xf32>
    %509 = arith.mulf %508, %507 : vector<16x16xf32>
    %510 = arith.addf %505, %509 : vector<16x16xf32>
    %c2_178 = arith.constant 2 : index
    %c18_179 = arith.constant 18 : index
    %511 = memref.load %arg4[%c2_178, %c18_179] : memref<8x25xf32, #tpu.memory_space<smem>>
    %512 = vector.extract_strided_slice %420 {offsets = [3, 0], sizes = [16, 16], strides = [1, 1]} : vector<20x16xf32> to vector<16x16xf32>
    %513 = vector.broadcast %511 : f32 to vector<16x16xf32>
    %514 = arith.mulf %513, %512 : vector<16x16xf32>
    %515 = arith.addf %510, %514 : vector<16x16xf32>
    %c2_180 = arith.constant 2 : index
    %c19_181 = arith.constant 19 : index
    %516 = memref.load %arg4[%c2_180, %c19_181] : memref<8x25xf32, #tpu.memory_space<smem>>
    %517 = vector.extract_strided_slice %421 {offsets = [3, 0], sizes = [16, 16], strides = [1, 1]} : vector<20x16xf32> to vector<16x16xf32>
    %518 = vector.broadcast %516 : f32 to vector<16x16xf32>
    %519 = arith.mulf %518, %517 : vector<16x16xf32>
    %520 = arith.addf %515, %519 : vector<16x16xf32>
    %c2_182 = arith.constant 2 : index
    %c20_183 = arith.constant 20 : index
    %521 = memref.load %arg4[%c2_182, %c20_183] : memref<8x25xf32, #tpu.memory_space<smem>>
    %522 = vector.extract_strided_slice %417 {offsets = [4, 0], sizes = [16, 16], strides = [1, 1]} : vector<20x16xf32> to vector<16x16xf32>
    %523 = vector.broadcast %521 : f32 to vector<16x16xf32>
    %524 = arith.mulf %523, %522 : vector<16x16xf32>
    %525 = arith.addf %520, %524 : vector<16x16xf32>
    %c2_184 = arith.constant 2 : index
    %c21_185 = arith.constant 21 : index
    %526 = memref.load %arg4[%c2_184, %c21_185] : memref<8x25xf32, #tpu.memory_space<smem>>
    %527 = vector.extract_strided_slice %418 {offsets = [4, 0], sizes = [16, 16], strides = [1, 1]} : vector<20x16xf32> to vector<16x16xf32>
    %528 = vector.broadcast %526 : f32 to vector<16x16xf32>
    %529 = arith.mulf %528, %527 : vector<16x16xf32>
    %530 = arith.addf %525, %529 : vector<16x16xf32>
    %c2_186 = arith.constant 2 : index
    %c22_187 = arith.constant 22 : index
    %531 = memref.load %arg4[%c2_186, %c22_187] : memref<8x25xf32, #tpu.memory_space<smem>>
    %532 = vector.extract_strided_slice %419 {offsets = [4, 0], sizes = [16, 16], strides = [1, 1]} : vector<20x16xf32> to vector<16x16xf32>
    %533 = vector.broadcast %531 : f32 to vector<16x16xf32>
    %534 = arith.mulf %533, %532 : vector<16x16xf32>
    %535 = arith.addf %530, %534 : vector<16x16xf32>
    %c2_188 = arith.constant 2 : index
    %c23_189 = arith.constant 23 : index
    %536 = memref.load %arg4[%c2_188, %c23_189] : memref<8x25xf32, #tpu.memory_space<smem>>
    %537 = vector.extract_strided_slice %420 {offsets = [4, 0], sizes = [16, 16], strides = [1, 1]} : vector<20x16xf32> to vector<16x16xf32>
    %538 = vector.broadcast %536 : f32 to vector<16x16xf32>
    %539 = arith.mulf %538, %537 : vector<16x16xf32>
    %540 = arith.addf %535, %539 : vector<16x16xf32>
    %c2_190 = arith.constant 2 : index
    %c24_191 = arith.constant 24 : index
    %541 = memref.load %arg4[%c2_190, %c24_191] : memref<8x25xf32, #tpu.memory_space<smem>>
    %542 = vector.extract_strided_slice %421 {offsets = [4, 0], sizes = [16, 16], strides = [1, 1]} : vector<20x16xf32> to vector<16x16xf32>
    %543 = vector.broadcast %541 : f32 to vector<16x16xf32>
    %544 = arith.mulf %543, %542 : vector<16x16xf32>
    %545 = arith.addf %540, %544 : vector<16x16xf32>
    %c2_192 = arith.constant 2 : index
    %546 = memref.load %arg5[%c2_192] : memref<8xf32, #tpu.memory_space<smem>>
    %547 = vector.broadcast %546 : f32 to vector<16x16xf32>
    %548 = arith.addf %545, %547 : vector<16x16xf32>
    %cst_193 = arith.constant 0.000000e+00 : f32
    %549 = vector.broadcast %cst_193 : f32 to vector<16x16xf32>
    %550 = arith.subf %549, %548 : vector<16x16xf32>
    %551 = math.exp %550 : vector<16x16xf32>
    %cst_194 = arith.constant 1.000000e+00 : f32
    %552 = vector.broadcast %cst_194 : f32 to vector<16x16xf32>
    %553 = arith.addf %552, %551 : vector<16x16xf32>
    %554 = tpu.reciprocal %553 {approx = true} : vector<16x16xf32> -> vector<16x16xf32>
    %555 = arith.mulf %548, %554 : vector<16x16xf32>
    %c0_195 = arith.constant 0 : index
    %c10_196 = arith.constant 10 : index
    %c0_197 = arith.constant 0 : index
    %c0_198 = arith.constant 0 : index
    %556 = vector.load %arg6[%c0_195, %c10_196, %c0_197, %c0_198] : memref<1x16x16x16xf32, #tpu.memory_space<vmem>>, vector<1x1x16x16xf32>
    %557 = vector.shape_cast %556 : vector<1x1x16x16xf32> to vector<16x16xf32>
    %558 = vector.shape_cast %555 : vector<16x16xf32> to vector<1x1x16x16xf32>
    tpu.vector_store %arg6[%c0_195, %c10_196, %c0_197, %c0_198], %558 {strides = array<i32>} : memref<1x16x16x16xf32, #tpu.memory_space<vmem>>, vector<1x1x16x16xf32>,
    %c3_199 = arith.constant 3 : index
    %c0_200 = arith.constant 0 : index
    %559 = memref.load %arg2[%c3_199, %c0_200] : memref<8x4xf32, #tpu.memory_space<smem>>
    %560 = vector.extract_strided_slice %2 {offsets = [0, 0, 0], sizes = [1, 20, 20], strides = [1, 1, 1]} : vector<4x20x20xf32> to vector<1x20x20xf32>
    %561 = vector.shape_cast %560 : vector<1x20x20xf32> to vector<20x20xf32>
    %562 = vector.broadcast %559 : f32 to vector<20x20xf32>
    %563 = arith.mulf %562, %561 : vector<20x20xf32>
    %c3_201 = arith.constant 3 : index
    %c1_202 = arith.constant 1 : index
    %564 = memref.load %arg2[%c3_201, %c1_202] : memref<8x4xf32, #tpu.memory_space<smem>>
    %565 = vector.extract_strided_slice %2 {offsets = [1, 0, 0], sizes = [1, 20, 20], strides = [1, 1, 1]} : vector<4x20x20xf32> to vector<1x20x20xf32>
    %566 = vector.shape_cast %565 : vector<1x20x20xf32> to vector<20x20xf32>
    %567 = vector.broadcast %564 : f32 to vector<20x20xf32>
    %568 = arith.mulf %567, %566 : vector<20x20xf32>
    %569 = arith.addf %563, %568 : vector<20x20xf32>
    %c3_203 = arith.constant 3 : index
    %c2_204 = arith.constant 2 : index
    %570 = memref.load %arg2[%c3_203, %c2_204] : memref<8x4xf32, #tpu.memory_space<smem>>
    %571 = vector.extract_strided_slice %2 {offsets = [2, 0, 0], sizes = [1, 20, 20], strides = [1, 1, 1]} : vector<4x20x20xf32> to vector<1x20x20xf32>
    %572 = vector.shape_cast %571 : vector<1x20x20xf32> to vector<20x20xf32>
    %573 = vector.broadcast %570 : f32 to vector<20x20xf32>
    %574 = arith.mulf %573, %572 : vector<20x20xf32>
    %575 = arith.addf %569, %574 : vector<20x20xf32>
    %c3_205 = arith.constant 3 : index
    %c3_206 = arith.constant 3 : index
    %576 = memref.load %arg2[%c3_205, %c3_206] : memref<8x4xf32, #tpu.memory_space<smem>>
    %577 = vector.extract_strided_slice %2 {offsets = [3, 0, 0], sizes = [1, 20, 20], strides = [1, 1, 1]} : vector<4x20x20xf32> to vector<1x20x20xf32>
    %578 = vector.shape_cast %577 : vector<1x20x20xf32> to vector<20x20xf32>
    %579 = vector.broadcast %576 : f32 to vector<20x20xf32>
    %580 = arith.mulf %579, %578 : vector<20x20xf32>
    %581 = arith.addf %575, %580 : vector<20x20xf32>
    %c3_207 = arith.constant 3 : index
    %582 = memref.load %arg3[%c3_207] : memref<8xf32, #tpu.memory_space<smem>>
    %583 = vector.broadcast %582 : f32 to vector<20x20xf32>
    %584 = arith.addf %581, %583 : vector<20x20xf32>
    %cst_208 = arith.constant 0.000000e+00 : f32
    %585 = vector.broadcast %cst_208 : f32 to vector<20x20xf32>
    %586 = arith.subf %585, %584 : vector<20x20xf32>
    %587 = math.exp %586 : vector<20x20xf32>
    %cst_209 = arith.constant 1.000000e+00 : f32
    %588 = vector.broadcast %cst_209 : f32 to vector<20x20xf32>
    %589 = arith.addf %588, %587 : vector<20x20xf32>
    %590 = tpu.reciprocal %589 {approx = true} : vector<20x20xf32> -> vector<20x20xf32>
    %591 = arith.mulf %584, %590 : vector<20x20xf32>
    %592 = vector.extract_strided_slice %591 {offsets = [2, 2], sizes = [16, 16], strides = [1, 1]} : vector<20x20xf32> to vector<16x16xf32>
    %c0_210 = arith.constant 0 : index
    %c3_211 = arith.constant 3 : index
    %c0_212 = arith.constant 0 : index
    %c0_213 = arith.constant 0 : index
    %593 = vector.load %arg6[%c0_210, %c3_211, %c0_212, %c0_213] : memref<1x16x16x16xf32, #tpu.memory_space<vmem>>, vector<1x1x16x16xf32>
    %594 = vector.shape_cast %593 : vector<1x1x16x16xf32> to vector<16x16xf32>
    %595 = vector.shape_cast %592 : vector<16x16xf32> to vector<1x1x16x16xf32>
    tpu.vector_store %arg6[%c0_210, %c3_211, %c0_212, %c0_213], %595 {strides = array<i32>} : memref<1x16x16x16xf32, #tpu.memory_space<vmem>>, vector<1x1x16x16xf32>,
    %cst_214 = arith.constant 0.000000e+00 : f32
    %596 = vector.broadcast %cst_214 : f32 to vector<20x20xf32>
    %597 = arith.select %15, %591, %596 : vector<20x20xi1>, vector<20x20xf32>
    %598 = vector.extract_strided_slice %597 {offsets = [0, 0], sizes = [20, 16], strides = [1, 1]} : vector<20x20xf32> to vector<20x16xf32>
    %599 = vector.extract_strided_slice %597 {offsets = [0, 1], sizes = [20, 16], strides = [1, 1]} : vector<20x20xf32> to vector<20x16xf32>
    %600 = vector.extract_strided_slice %597 {offsets = [0, 2], sizes = [20, 16], strides = [1, 1]} : vector<20x20xf32> to vector<20x16xf32>
    %601 = vector.extract_strided_slice %597 {offsets = [0, 3], sizes = [20, 16], strides = [1, 1]} : vector<20x20xf32> to vector<20x16xf32>
    %602 = vector.extract_strided_slice %597 {offsets = [0, 4], sizes = [20, 16], strides = [1, 1]} : vector<20x20xf32> to vector<20x16xf32>
    %c3_215 = arith.constant 3 : index
    %c0_216 = arith.constant 0 : index
    %603 = memref.load %arg4[%c3_215, %c0_216] : memref<8x25xf32, #tpu.memory_space<smem>>
    %604 = vector.extract_strided_slice %598 {offsets = [0, 0], sizes = [16, 16], strides = [1, 1]} : vector<20x16xf32> to vector<16x16xf32>
    %605 = vector.broadcast %603 : f32 to vector<16x16xf32>
    %606 = arith.mulf %605, %604 : vector<16x16xf32>
    %c3_217 = arith.constant 3 : index
    %c1_218 = arith.constant 1 : index
    %607 = memref.load %arg4[%c3_217, %c1_218] : memref<8x25xf32, #tpu.memory_space<smem>>
    %608 = vector.extract_strided_slice %599 {offsets = [0, 0], sizes = [16, 16], strides = [1, 1]} : vector<20x16xf32> to vector<16x16xf32>
    %609 = vector.broadcast %607 : f32 to vector<16x16xf32>
    %610 = arith.mulf %609, %608 : vector<16x16xf32>
    %611 = arith.addf %606, %610 : vector<16x16xf32>
    %c3_219 = arith.constant 3 : index
    %c2_220 = arith.constant 2 : index
    %612 = memref.load %arg4[%c3_219, %c2_220] : memref<8x25xf32, #tpu.memory_space<smem>>
    %613 = vector.extract_strided_slice %600 {offsets = [0, 0], sizes = [16, 16], strides = [1, 1]} : vector<20x16xf32> to vector<16x16xf32>
    %614 = vector.broadcast %612 : f32 to vector<16x16xf32>
    %615 = arith.mulf %614, %613 : vector<16x16xf32>
    %616 = arith.addf %611, %615 : vector<16x16xf32>
    %c3_221 = arith.constant 3 : index
    %c3_222 = arith.constant 3 : index
    %617 = memref.load %arg4[%c3_221, %c3_222] : memref<8x25xf32, #tpu.memory_space<smem>>
    %618 = vector.extract_strided_slice %601 {offsets = [0, 0], sizes = [16, 16], strides = [1, 1]} : vector<20x16xf32> to vector<16x16xf32>
    %619 = vector.broadcast %617 : f32 to vector<16x16xf32>
    %620 = arith.mulf %619, %618 : vector<16x16xf32>
    %621 = arith.addf %616, %620 : vector<16x16xf32>
    %c3_223 = arith.constant 3 : index
    %c4_224 = arith.constant 4 : index
    %622 = memref.load %arg4[%c3_223, %c4_224] : memref<8x25xf32, #tpu.memory_space<smem>>
    %623 = vector.extract_strided_slice %602 {offsets = [0, 0], sizes = [16, 16], strides = [1, 1]} : vector<20x16xf32> to vector<16x16xf32>
    %624 = vector.broadcast %622 : f32 to vector<16x16xf32>
    %625 = arith.mulf %624, %623 : vector<16x16xf32>
    %626 = arith.addf %621, %625 : vector<16x16xf32>
    %c3_225 = arith.constant 3 : index
    %c5_226 = arith.constant 5 : index
    %627 = memref.load %arg4[%c3_225, %c5_226] : memref<8x25xf32, #tpu.memory_space<smem>>
    %628 = vector.extract_strided_slice %598 {offsets = [1, 0], sizes = [16, 16], strides = [1, 1]} : vector<20x16xf32> to vector<16x16xf32>
    %629 = vector.broadcast %627 : f32 to vector<16x16xf32>
    %630 = arith.mulf %629, %628 : vector<16x16xf32>
    %631 = arith.addf %626, %630 : vector<16x16xf32>
    %c3_227 = arith.constant 3 : index
    %c6_228 = arith.constant 6 : index
    %632 = memref.load %arg4[%c3_227, %c6_228] : memref<8x25xf32, #tpu.memory_space<smem>>
    %633 = vector.extract_strided_slice %599 {offsets = [1, 0], sizes = [16, 16], strides = [1, 1]} : vector<20x16xf32> to vector<16x16xf32>
    %634 = vector.broadcast %632 : f32 to vector<16x16xf32>
    %635 = arith.mulf %634, %633 : vector<16x16xf32>
    %636 = arith.addf %631, %635 : vector<16x16xf32>
    %c3_229 = arith.constant 3 : index
    %c7_230 = arith.constant 7 : index
    %637 = memref.load %arg4[%c3_229, %c7_230] : memref<8x25xf32, #tpu.memory_space<smem>>
    %638 = vector.extract_strided_slice %600 {offsets = [1, 0], sizes = [16, 16], strides = [1, 1]} : vector<20x16xf32> to vector<16x16xf32>
    %639 = vector.broadcast %637 : f32 to vector<16x16xf32>
    %640 = arith.mulf %639, %638 : vector<16x16xf32>
    %641 = arith.addf %636, %640 : vector<16x16xf32>
    %c3_231 = arith.constant 3 : index
    %c8_232 = arith.constant 8 : index
    %642 = memref.load %arg4[%c3_231, %c8_232] : memref<8x25xf32, #tpu.memory_space<smem>>
    %643 = vector.extract_strided_slice %601 {offsets = [1, 0], sizes = [16, 16], strides = [1, 1]} : vector<20x16xf32> to vector<16x16xf32>
    %644 = vector.broadcast %642 : f32 to vector<16x16xf32>
    %645 = arith.mulf %644, %643 : vector<16x16xf32>
    %646 = arith.addf %641, %645 : vector<16x16xf32>
    %c3_233 = arith.constant 3 : index
    %c9_234 = arith.constant 9 : index
    %647 = memref.load %arg4[%c3_233, %c9_234] : memref<8x25xf32, #tpu.memory_space<smem>>
    %648 = vector.extract_strided_slice %602 {offsets = [1, 0], sizes = [16, 16], strides = [1, 1]} : vector<20x16xf32> to vector<16x16xf32>
    %649 = vector.broadcast %647 : f32 to vector<16x16xf32>
    %650 = arith.mulf %649, %648 : vector<16x16xf32>
    %651 = arith.addf %646, %650 : vector<16x16xf32>
    %c3_235 = arith.constant 3 : index
    %c10_236 = arith.constant 10 : index
    %652 = memref.load %arg4[%c3_235, %c10_236] : memref<8x25xf32, #tpu.memory_space<smem>>
    %653 = vector.extract_strided_slice %598 {offsets = [2, 0], sizes = [16, 16], strides = [1, 1]} : vector<20x16xf32> to vector<16x16xf32>
    %654 = vector.broadcast %652 : f32 to vector<16x16xf32>
    %655 = arith.mulf %654, %653 : vector<16x16xf32>
    %656 = arith.addf %651, %655 : vector<16x16xf32>
    %c3_237 = arith.constant 3 : index
    %c11_238 = arith.constant 11 : index
    %657 = memref.load %arg4[%c3_237, %c11_238] : memref<8x25xf32, #tpu.memory_space<smem>>
    %658 = vector.extract_strided_slice %599 {offsets = [2, 0], sizes = [16, 16], strides = [1, 1]} : vector<20x16xf32> to vector<16x16xf32>
    %659 = vector.broadcast %657 : f32 to vector<16x16xf32>
    %660 = arith.mulf %659, %658 : vector<16x16xf32>
    %661 = arith.addf %656, %660 : vector<16x16xf32>
    %c3_239 = arith.constant 3 : index
    %c12_240 = arith.constant 12 : index
    %662 = memref.load %arg4[%c3_239, %c12_240] : memref<8x25xf32, #tpu.memory_space<smem>>
    %663 = vector.extract_strided_slice %600 {offsets = [2, 0], sizes = [16, 16], strides = [1, 1]} : vector<20x16xf32> to vector<16x16xf32>
    %664 = vector.broadcast %662 : f32 to vector<16x16xf32>
    %665 = arith.mulf %664, %663 : vector<16x16xf32>
    %666 = arith.addf %661, %665 : vector<16x16xf32>
    %c3_241 = arith.constant 3 : index
    %c13_242 = arith.constant 13 : index
    %667 = memref.load %arg4[%c3_241, %c13_242] : memref<8x25xf32, #tpu.memory_space<smem>>
    %668 = vector.extract_strided_slice %601 {offsets = [2, 0], sizes = [16, 16], strides = [1, 1]} : vector<20x16xf32> to vector<16x16xf32>
    %669 = vector.broadcast %667 : f32 to vector<16x16xf32>
    %670 = arith.mulf %669, %668 : vector<16x16xf32>
    %671 = arith.addf %666, %670 : vector<16x16xf32>
    %c3_243 = arith.constant 3 : index
    %c14_244 = arith.constant 14 : index
    %672 = memref.load %arg4[%c3_243, %c14_244] : memref<8x25xf32, #tpu.memory_space<smem>>
    %673 = vector.extract_strided_slice %602 {offsets = [2, 0], sizes = [16, 16], strides = [1, 1]} : vector<20x16xf32> to vector<16x16xf32>
    %674 = vector.broadcast %672 : f32 to vector<16x16xf32>
    %675 = arith.mulf %674, %673 : vector<16x16xf32>
    %676 = arith.addf %671, %675 : vector<16x16xf32>
    %c3_245 = arith.constant 3 : index
    %c15_246 = arith.constant 15 : index
    %677 = memref.load %arg4[%c3_245, %c15_246] : memref<8x25xf32, #tpu.memory_space<smem>>
    %678 = vector.extract_strided_slice %598 {offsets = [3, 0], sizes = [16, 16], strides = [1, 1]} : vector<20x16xf32> to vector<16x16xf32>
    %679 = vector.broadcast %677 : f32 to vector<16x16xf32>
    %680 = arith.mulf %679, %678 : vector<16x16xf32>
    %681 = arith.addf %676, %680 : vector<16x16xf32>
    %c3_247 = arith.constant 3 : index
    %c16_248 = arith.constant 16 : index
    %682 = memref.load %arg4[%c3_247, %c16_248] : memref<8x25xf32, #tpu.memory_space<smem>>
    %683 = vector.extract_strided_slice %599 {offsets = [3, 0], sizes = [16, 16], strides = [1, 1]} : vector<20x16xf32> to vector<16x16xf32>
    %684 = vector.broadcast %682 : f32 to vector<16x16xf32>
    %685 = arith.mulf %684, %683 : vector<16x16xf32>
    %686 = arith.addf %681, %685 : vector<16x16xf32>
    %c3_249 = arith.constant 3 : index
    %c17_250 = arith.constant 17 : index
    %687 = memref.load %arg4[%c3_249, %c17_250] : memref<8x25xf32, #tpu.memory_space<smem>>
    %688 = vector.extract_strided_slice %600 {offsets = [3, 0], sizes = [16, 16], strides = [1, 1]} : vector<20x16xf32> to vector<16x16xf32>
    %689 = vector.broadcast %687 : f32 to vector<16x16xf32>
    %690 = arith.mulf %689, %688 : vector<16x16xf32>
    %691 = arith.addf %686, %690 : vector<16x16xf32>
    %c3_251 = arith.constant 3 : index
    %c18_252 = arith.constant 18 : index
    %692 = memref.load %arg4[%c3_251, %c18_252] : memref<8x25xf32, #tpu.memory_space<smem>>
    %693 = vector.extract_strided_slice %601 {offsets = [3, 0], sizes = [16, 16], strides = [1, 1]} : vector<20x16xf32> to vector<16x16xf32>
    %694 = vector.broadcast %692 : f32 to vector<16x16xf32>
    %695 = arith.mulf %694, %693 : vector<16x16xf32>
    %696 = arith.addf %691, %695 : vector<16x16xf32>
    %c3_253 = arith.constant 3 : index
    %c19_254 = arith.constant 19 : index
    %697 = memref.load %arg4[%c3_253, %c19_254] : memref<8x25xf32, #tpu.memory_space<smem>>
    %698 = vector.extract_strided_slice %602 {offsets = [3, 0], sizes = [16, 16], strides = [1, 1]} : vector<20x16xf32> to vector<16x16xf32>
    %699 = vector.broadcast %697 : f32 to vector<16x16xf32>
    %700 = arith.mulf %699, %698 : vector<16x16xf32>
    %701 = arith.addf %696, %700 : vector<16x16xf32>
    %c3_255 = arith.constant 3 : index
    %c20_256 = arith.constant 20 : index
    %702 = memref.load %arg4[%c3_255, %c20_256] : memref<8x25xf32, #tpu.memory_space<smem>>
    %703 = vector.extract_strided_slice %598 {offsets = [4, 0], sizes = [16, 16], strides = [1, 1]} : vector<20x16xf32> to vector<16x16xf32>
    %704 = vector.broadcast %702 : f32 to vector<16x16xf32>
    %705 = arith.mulf %704, %703 : vector<16x16xf32>
    %706 = arith.addf %701, %705 : vector<16x16xf32>
    %c3_257 = arith.constant 3 : index
    %c21_258 = arith.constant 21 : index
    %707 = memref.load %arg4[%c3_257, %c21_258] : memref<8x25xf32, #tpu.memory_space<smem>>
    %708 = vector.extract_strided_slice %599 {offsets = [4, 0], sizes = [16, 16], strides = [1, 1]} : vector<20x16xf32> to vector<16x16xf32>
    %709 = vector.broadcast %707 : f32 to vector<16x16xf32>
    %710 = arith.mulf %709, %708 : vector<16x16xf32>
    %711 = arith.addf %706, %710 : vector<16x16xf32>
    %c3_259 = arith.constant 3 : index
    %c22_260 = arith.constant 22 : index
    %712 = memref.load %arg4[%c3_259, %c22_260] : memref<8x25xf32, #tpu.memory_space<smem>>
    %713 = vector.extract_strided_slice %600 {offsets = [4, 0], sizes = [16, 16], strides = [1, 1]} : vector<20x16xf32> to vector<16x16xf32>
    %714 = vector.broadcast %712 : f32 to vector<16x16xf32>
    %715 = arith.mulf %714, %713 : vector<16x16xf32>
    %716 = arith.addf %711, %715 : vector<16x16xf32>
    %c3_261 = arith.constant 3 : index
    %c23_262 = arith.constant 23 : index
    %717 = memref.load %arg4[%c3_261, %c23_262] : memref<8x25xf32, #tpu.memory_space<smem>>
    %718 = vector.extract_strided_slice %601 {offsets = [4, 0], sizes = [16, 16], strides = [1, 1]} : vector<20x16xf32> to vector<16x16xf32>
    %719 = vector.broadcast %717 : f32 to vector<16x16xf32>
    %720 = arith.mulf %719, %718 : vector<16x16xf32>
    %721 = arith.addf %716, %720 : vector<16x16xf32>
    %c3_263 = arith.constant 3 : index
    %c24_264 = arith.constant 24 : index
    %722 = memref.load %arg4[%c3_263, %c24_264] : memref<8x25xf32, #tpu.memory_space<smem>>
    %723 = vector.extract_strided_slice %602 {offsets = [4, 0], sizes = [16, 16], strides = [1, 1]} : vector<20x16xf32> to vector<16x16xf32>
    %724 = vector.broadcast %722 : f32 to vector<16x16xf32>
    %725 = arith.mulf %724, %723 : vector<16x16xf32>
    %726 = arith.addf %721, %725 : vector<16x16xf32>
    %c3_265 = arith.constant 3 : index
    %727 = memref.load %arg5[%c3_265] : memref<8xf32, #tpu.memory_space<smem>>
    %728 = vector.broadcast %727 : f32 to vector<16x16xf32>
    %729 = arith.addf %726, %728 : vector<16x16xf32>
    %cst_266 = arith.constant 0.000000e+00 : f32
    %730 = vector.broadcast %cst_266 : f32 to vector<16x16xf32>
    %731 = arith.subf %730, %729 : vector<16x16xf32>
    %732 = math.exp %731 : vector<16x16xf32>
    %cst_267 = arith.constant 1.000000e+00 : f32
    %733 = vector.broadcast %cst_267 : f32 to vector<16x16xf32>
    %734 = arith.addf %733, %732 : vector<16x16xf32>
    %735 = tpu.reciprocal %734 {approx = true} : vector<16x16xf32> -> vector<16x16xf32>
    %736 = arith.mulf %729, %735 : vector<16x16xf32>
    %c0_268 = arith.constant 0 : index
    %c11_269 = arith.constant 11 : index
    %c0_270 = arith.constant 0 : index
    %c0_271 = arith.constant 0 : index
    %737 = vector.load %arg6[%c0_268, %c11_269, %c0_270, %c0_271] : memref<1x16x16x16xf32, #tpu.memory_space<vmem>>, vector<1x1x16x16xf32>
    %738 = vector.shape_cast %737 : vector<1x1x16x16xf32> to vector<16x16xf32>
    %739 = vector.shape_cast %736 : vector<16x16xf32> to vector<1x1x16x16xf32>
    tpu.vector_store %arg6[%c0_268, %c11_269, %c0_270, %c0_271], %739 {strides = array<i32>} : memref<1x16x16x16xf32, #tpu.memory_space<vmem>>, vector<1x1x16x16xf32>,
    %c4_272 = arith.constant 4 : index
    %c0_273 = arith.constant 0 : index
    %740 = memref.load %arg2[%c4_272, %c0_273] : memref<8x4xf32, #tpu.memory_space<smem>>
    %741 = vector.extract_strided_slice %2 {offsets = [0, 0, 0], sizes = [1, 20, 20], strides = [1, 1, 1]} : vector<4x20x20xf32> to vector<1x20x20xf32>
    %742 = vector.shape_cast %741 : vector<1x20x20xf32> to vector<20x20xf32>
    %743 = vector.broadcast %740 : f32 to vector<20x20xf32>
    %744 = arith.mulf %743, %742 : vector<20x20xf32>
    %c4_274 = arith.constant 4 : index
    %c1_275 = arith.constant 1 : index
    %745 = memref.load %arg2[%c4_274, %c1_275] : memref<8x4xf32, #tpu.memory_space<smem>>
    %746 = vector.extract_strided_slice %2 {offsets = [1, 0, 0], sizes = [1, 20, 20], strides = [1, 1, 1]} : vector<4x20x20xf32> to vector<1x20x20xf32>
    %747 = vector.shape_cast %746 : vector<1x20x20xf32> to vector<20x20xf32>
    %748 = vector.broadcast %745 : f32 to vector<20x20xf32>
    %749 = arith.mulf %748, %747 : vector<20x20xf32>
    %750 = arith.addf %744, %749 : vector<20x20xf32>
    %c4_276 = arith.constant 4 : index
    %c2_277 = arith.constant 2 : index
    %751 = memref.load %arg2[%c4_276, %c2_277] : memref<8x4xf32, #tpu.memory_space<smem>>
    %752 = vector.extract_strided_slice %2 {offsets = [2, 0, 0], sizes = [1, 20, 20], strides = [1, 1, 1]} : vector<4x20x20xf32> to vector<1x20x20xf32>
    %753 = vector.shape_cast %752 : vector<1x20x20xf32> to vector<20x20xf32>
    %754 = vector.broadcast %751 : f32 to vector<20x20xf32>
    %755 = arith.mulf %754, %753 : vector<20x20xf32>
    %756 = arith.addf %750, %755 : vector<20x20xf32>
    %c4_278 = arith.constant 4 : index
    %c3_279 = arith.constant 3 : index
    %757 = memref.load %arg2[%c4_278, %c3_279] : memref<8x4xf32, #tpu.memory_space<smem>>
    %758 = vector.extract_strided_slice %2 {offsets = [3, 0, 0], sizes = [1, 20, 20], strides = [1, 1, 1]} : vector<4x20x20xf32> to vector<1x20x20xf32>
    %759 = vector.shape_cast %758 : vector<1x20x20xf32> to vector<20x20xf32>
    %760 = vector.broadcast %757 : f32 to vector<20x20xf32>
    %761 = arith.mulf %760, %759 : vector<20x20xf32>
    %762 = arith.addf %756, %761 : vector<20x20xf32>
    %c4_280 = arith.constant 4 : index
    %763 = memref.load %arg3[%c4_280] : memref<8xf32, #tpu.memory_space<smem>>
    %764 = vector.broadcast %763 : f32 to vector<20x20xf32>
    %765 = arith.addf %762, %764 : vector<20x20xf32>
    %cst_281 = arith.constant 0.000000e+00 : f32
    %766 = vector.broadcast %cst_281 : f32 to vector<20x20xf32>
    %767 = arith.subf %766, %765 : vector<20x20xf32>
    %768 = math.exp %767 : vector<20x20xf32>
    %cst_282 = arith.constant 1.000000e+00 : f32
    %769 = vector.broadcast %cst_282 : f32 to vector<20x20xf32>
    %770 = arith.addf %769, %768 : vector<20x20xf32>
    %771 = tpu.reciprocal %770 {approx = true} : vector<20x20xf32> -> vector<20x20xf32>
    %772 = arith.mulf %765, %771 : vector<20x20xf32>
    %773 = vector.extract_strided_slice %772 {offsets = [2, 2], sizes = [16, 16], strides = [1, 1]} : vector<20x20xf32> to vector<16x16xf32>
    %c0_283 = arith.constant 0 : index
    %c4_284 = arith.constant 4 : index
    %c0_285 = arith.constant 0 : index
    %c0_286 = arith.constant 0 : index
    %774 = vector.load %arg6[%c0_283, %c4_284, %c0_285, %c0_286] : memref<1x16x16x16xf32, #tpu.memory_space<vmem>>, vector<1x1x16x16xf32>
    %775 = vector.shape_cast %774 : vector<1x1x16x16xf32> to vector<16x16xf32>
    %776 = vector.shape_cast %773 : vector<16x16xf32> to vector<1x1x16x16xf32>
    tpu.vector_store %arg6[%c0_283, %c4_284, %c0_285, %c0_286], %776 {strides = array<i32>} : memref<1x16x16x16xf32, #tpu.memory_space<vmem>>, vector<1x1x16x16xf32>,
    %cst_287 = arith.constant 0.000000e+00 : f32
    %777 = vector.broadcast %cst_287 : f32 to vector<20x20xf32>
    %778 = arith.select %15, %772, %777 : vector<20x20xi1>, vector<20x20xf32>
    %779 = vector.extract_strided_slice %778 {offsets = [0, 0], sizes = [20, 16], strides = [1, 1]} : vector<20x20xf32> to vector<20x16xf32>
    %780 = vector.extract_strided_slice %778 {offsets = [0, 1], sizes = [20, 16], strides = [1, 1]} : vector<20x20xf32> to vector<20x16xf32>
    %781 = vector.extract_strided_slice %778 {offsets = [0, 2], sizes = [20, 16], strides = [1, 1]} : vector<20x20xf32> to vector<20x16xf32>
    %782 = vector.extract_strided_slice %778 {offsets = [0, 3], sizes = [20, 16], strides = [1, 1]} : vector<20x20xf32> to vector<20x16xf32>
    %783 = vector.extract_strided_slice %778 {offsets = [0, 4], sizes = [20, 16], strides = [1, 1]} : vector<20x20xf32> to vector<20x16xf32>
    %c4_288 = arith.constant 4 : index
    %c0_289 = arith.constant 0 : index
    %784 = memref.load %arg4[%c4_288, %c0_289] : memref<8x25xf32, #tpu.memory_space<smem>>
    %785 = vector.extract_strided_slice %779 {offsets = [0, 0], sizes = [16, 16], strides = [1, 1]} : vector<20x16xf32> to vector<16x16xf32>
    %786 = vector.broadcast %784 : f32 to vector<16x16xf32>
    %787 = arith.mulf %786, %785 : vector<16x16xf32>
    %c4_290 = arith.constant 4 : index
    %c1_291 = arith.constant 1 : index
    %788 = memref.load %arg4[%c4_290, %c1_291] : memref<8x25xf32, #tpu.memory_space<smem>>
    %789 = vector.extract_strided_slice %780 {offsets = [0, 0], sizes = [16, 16], strides = [1, 1]} : vector<20x16xf32> to vector<16x16xf32>
    %790 = vector.broadcast %788 : f32 to vector<16x16xf32>
    %791 = arith.mulf %790, %789 : vector<16x16xf32>
    %792 = arith.addf %787, %791 : vector<16x16xf32>
    %c4_292 = arith.constant 4 : index
    %c2_293 = arith.constant 2 : index
    %793 = memref.load %arg4[%c4_292, %c2_293] : memref<8x25xf32, #tpu.memory_space<smem>>
    %794 = vector.extract_strided_slice %781 {offsets = [0, 0], sizes = [16, 16], strides = [1, 1]} : vector<20x16xf32> to vector<16x16xf32>
    %795 = vector.broadcast %793 : f32 to vector<16x16xf32>
    %796 = arith.mulf %795, %794 : vector<16x16xf32>
    %797 = arith.addf %792, %796 : vector<16x16xf32>
    %c4_294 = arith.constant 4 : index
    %c3_295 = arith.constant 3 : index
    %798 = memref.load %arg4[%c4_294, %c3_295] : memref<8x25xf32, #tpu.memory_space<smem>>
    %799 = vector.extract_strided_slice %782 {offsets = [0, 0], sizes = [16, 16], strides = [1, 1]} : vector<20x16xf32> to vector<16x16xf32>
    %800 = vector.broadcast %798 : f32 to vector<16x16xf32>
    %801 = arith.mulf %800, %799 : vector<16x16xf32>
    %802 = arith.addf %797, %801 : vector<16x16xf32>
    %c4_296 = arith.constant 4 : index
    %c4_297 = arith.constant 4 : index
    %803 = memref.load %arg4[%c4_296, %c4_297] : memref<8x25xf32, #tpu.memory_space<smem>>
    %804 = vector.extract_strided_slice %783 {offsets = [0, 0], sizes = [16, 16], strides = [1, 1]} : vector<20x16xf32> to vector<16x16xf32>
    %805 = vector.broadcast %803 : f32 to vector<16x16xf32>
    %806 = arith.mulf %805, %804 : vector<16x16xf32>
    %807 = arith.addf %802, %806 : vector<16x16xf32>
    %c4_298 = arith.constant 4 : index
    %c5_299 = arith.constant 5 : index
    %808 = memref.load %arg4[%c4_298, %c5_299] : memref<8x25xf32, #tpu.memory_space<smem>>
    %809 = vector.extract_strided_slice %779 {offsets = [1, 0], sizes = [16, 16], strides = [1, 1]} : vector<20x16xf32> to vector<16x16xf32>
    %810 = vector.broadcast %808 : f32 to vector<16x16xf32>
    %811 = arith.mulf %810, %809 : vector<16x16xf32>
    %812 = arith.addf %807, %811 : vector<16x16xf32>
    %c4_300 = arith.constant 4 : index
    %c6_301 = arith.constant 6 : index
    %813 = memref.load %arg4[%c4_300, %c6_301] : memref<8x25xf32, #tpu.memory_space<smem>>
    %814 = vector.extract_strided_slice %780 {offsets = [1, 0], sizes = [16, 16], strides = [1, 1]} : vector<20x16xf32> to vector<16x16xf32>
    %815 = vector.broadcast %813 : f32 to vector<16x16xf32>
    %816 = arith.mulf %815, %814 : vector<16x16xf32>
    %817 = arith.addf %812, %816 : vector<16x16xf32>
    %c4_302 = arith.constant 4 : index
    %c7_303 = arith.constant 7 : index
    %818 = memref.load %arg4[%c4_302, %c7_303] : memref<8x25xf32, #tpu.memory_space<smem>>
    %819 = vector.extract_strided_slice %781 {offsets = [1, 0], sizes = [16, 16], strides = [1, 1]} : vector<20x16xf32> to vector<16x16xf32>
    %820 = vector.broadcast %818 : f32 to vector<16x16xf32>
    %821 = arith.mulf %820, %819 : vector<16x16xf32>
    %822 = arith.addf %817, %821 : vector<16x16xf32>
    %c4_304 = arith.constant 4 : index
    %c8_305 = arith.constant 8 : index
    %823 = memref.load %arg4[%c4_304, %c8_305] : memref<8x25xf32, #tpu.memory_space<smem>>
    %824 = vector.extract_strided_slice %782 {offsets = [1, 0], sizes = [16, 16], strides = [1, 1]} : vector<20x16xf32> to vector<16x16xf32>
    %825 = vector.broadcast %823 : f32 to vector<16x16xf32>
    %826 = arith.mulf %825, %824 : vector<16x16xf32>
    %827 = arith.addf %822, %826 : vector<16x16xf32>
    %c4_306 = arith.constant 4 : index
    %c9_307 = arith.constant 9 : index
    %828 = memref.load %arg4[%c4_306, %c9_307] : memref<8x25xf32, #tpu.memory_space<smem>>
    %829 = vector.extract_strided_slice %783 {offsets = [1, 0], sizes = [16, 16], strides = [1, 1]} : vector<20x16xf32> to vector<16x16xf32>
    %830 = vector.broadcast %828 : f32 to vector<16x16xf32>
    %831 = arith.mulf %830, %829 : vector<16x16xf32>
    %832 = arith.addf %827, %831 : vector<16x16xf32>
    %c4_308 = arith.constant 4 : index
    %c10_309 = arith.constant 10 : index
    %833 = memref.load %arg4[%c4_308, %c10_309] : memref<8x25xf32, #tpu.memory_space<smem>>
    %834 = vector.extract_strided_slice %779 {offsets = [2, 0], sizes = [16, 16], strides = [1, 1]} : vector<20x16xf32> to vector<16x16xf32>
    %835 = vector.broadcast %833 : f32 to vector<16x16xf32>
    %836 = arith.mulf %835, %834 : vector<16x16xf32>
    %837 = arith.addf %832, %836 : vector<16x16xf32>
    %c4_310 = arith.constant 4 : index
    %c11_311 = arith.constant 11 : index
    %838 = memref.load %arg4[%c4_310, %c11_311] : memref<8x25xf32, #tpu.memory_space<smem>>
    %839 = vector.extract_strided_slice %780 {offsets = [2, 0], sizes = [16, 16], strides = [1, 1]} : vector<20x16xf32> to vector<16x16xf32>
    %840 = vector.broadcast %838 : f32 to vector<16x16xf32>
    %841 = arith.mulf %840, %839 : vector<16x16xf32>
    %842 = arith.addf %837, %841 : vector<16x16xf32>
    %c4_312 = arith.constant 4 : index
    %c12_313 = arith.constant 12 : index
    %843 = memref.load %arg4[%c4_312, %c12_313] : memref<8x25xf32, #tpu.memory_space<smem>>
    %844 = vector.extract_strided_slice %781 {offsets = [2, 0], sizes = [16, 16], strides = [1, 1]} : vector<20x16xf32> to vector<16x16xf32>
    %845 = vector.broadcast %843 : f32 to vector<16x16xf32>
    %846 = arith.mulf %845, %844 : vector<16x16xf32>
    %847 = arith.addf %842, %846 : vector<16x16xf32>
    %c4_314 = arith.constant 4 : index
    %c13_315 = arith.constant 13 : index
    %848 = memref.load %arg4[%c4_314, %c13_315] : memref<8x25xf32, #tpu.memory_space<smem>>
    %849 = vector.extract_strided_slice %782 {offsets = [2, 0], sizes = [16, 16], strides = [1, 1]} : vector<20x16xf32> to vector<16x16xf32>
    %850 = vector.broadcast %848 : f32 to vector<16x16xf32>
    %851 = arith.mulf %850, %849 : vector<16x16xf32>
    %852 = arith.addf %847, %851 : vector<16x16xf32>
    %c4_316 = arith.constant 4 : index
    %c14_317 = arith.constant 14 : index
    %853 = memref.load %arg4[%c4_316, %c14_317] : memref<8x25xf32, #tpu.memory_space<smem>>
    %854 = vector.extract_strided_slice %783 {offsets = [2, 0], sizes = [16, 16], strides = [1, 1]} : vector<20x16xf32> to vector<16x16xf32>
    %855 = vector.broadcast %853 : f32 to vector<16x16xf32>
    %856 = arith.mulf %855, %854 : vector<16x16xf32>
    %857 = arith.addf %852, %856 : vector<16x16xf32>
    %c4_318 = arith.constant 4 : index
    %c15_319 = arith.constant 15 : index
    %858 = memref.load %arg4[%c4_318, %c15_319] : memref<8x25xf32, #tpu.memory_space<smem>>
    %859 = vector.extract_strided_slice %779 {offsets = [3, 0], sizes = [16, 16], strides = [1, 1]} : vector<20x16xf32> to vector<16x16xf32>
    %860 = vector.broadcast %858 : f32 to vector<16x16xf32>
    %861 = arith.mulf %860, %859 : vector<16x16xf32>
    %862 = arith.addf %857, %861 : vector<16x16xf32>
    %c4_320 = arith.constant 4 : index
    %c16_321 = arith.constant 16 : index
    %863 = memref.load %arg4[%c4_320, %c16_321] : memref<8x25xf32, #tpu.memory_space<smem>>
    %864 = vector.extract_strided_slice %780 {offsets = [3, 0], sizes = [16, 16], strides = [1, 1]} : vector<20x16xf32> to vector<16x16xf32>
    %865 = vector.broadcast %863 : f32 to vector<16x16xf32>
    %866 = arith.mulf %865, %864 : vector<16x16xf32>
    %867 = arith.addf %862, %866 : vector<16x16xf32>
    %c4_322 = arith.constant 4 : index
    %c17_323 = arith.constant 17 : index
    %868 = memref.load %arg4[%c4_322, %c17_323] : memref<8x25xf32, #tpu.memory_space<smem>>
    %869 = vector.extract_strided_slice %781 {offsets = [3, 0], sizes = [16, 16], strides = [1, 1]} : vector<20x16xf32> to vector<16x16xf32>
    %870 = vector.broadcast %868 : f32 to vector<16x16xf32>
    %871 = arith.mulf %870, %869 : vector<16x16xf32>
    %872 = arith.addf %867, %871 : vector<16x16xf32>
    %c4_324 = arith.constant 4 : index
    %c18_325 = arith.constant 18 : index
    %873 = memref.load %arg4[%c4_324, %c18_325] : memref<8x25xf32, #tpu.memory_space<smem>>
    %874 = vector.extract_strided_slice %782 {offsets = [3, 0], sizes = [16, 16], strides = [1, 1]} : vector<20x16xf32> to vector<16x16xf32>
    %875 = vector.broadcast %873 : f32 to vector<16x16xf32>
    %876 = arith.mulf %875, %874 : vector<16x16xf32>
    %877 = arith.addf %872, %876 : vector<16x16xf32>
    %c4_326 = arith.constant 4 : index
    %c19_327 = arith.constant 19 : index
    %878 = memref.load %arg4[%c4_326, %c19_327] : memref<8x25xf32, #tpu.memory_space<smem>>
    %879 = vector.extract_strided_slice %783 {offsets = [3, 0], sizes = [16, 16], strides = [1, 1]} : vector<20x16xf32> to vector<16x16xf32>
    %880 = vector.broadcast %878 : f32 to vector<16x16xf32>
    %881 = arith.mulf %880, %879 : vector<16x16xf32>
    %882 = arith.addf %877, %881 : vector<16x16xf32>
    %c4_328 = arith.constant 4 : index
    %c20_329 = arith.constant 20 : index
    %883 = memref.load %arg4[%c4_328, %c20_329] : memref<8x25xf32, #tpu.memory_space<smem>>
    %884 = vector.extract_strided_slice %779 {offsets = [4, 0], sizes = [16, 16], strides = [1, 1]} : vector<20x16xf32> to vector<16x16xf32>
    %885 = vector.broadcast %883 : f32 to vector<16x16xf32>
    %886 = arith.mulf %885, %884 : vector<16x16xf32>
    %887 = arith.addf %882, %886 : vector<16x16xf32>
    %c4_330 = arith.constant 4 : index
    %c21_331 = arith.constant 21 : index
    %888 = memref.load %arg4[%c4_330, %c21_331] : memref<8x25xf32, #tpu.memory_space<smem>>
    %889 = vector.extract_strided_slice %780 {offsets = [4, 0], sizes = [16, 16], strides = [1, 1]} : vector<20x16xf32> to vector<16x16xf32>
    %890 = vector.broadcast %888 : f32 to vector<16x16xf32>
    %891 = arith.mulf %890, %889 : vector<16x16xf32>
    %892 = arith.addf %887, %891 : vector<16x16xf32>
    %c4_332 = arith.constant 4 : index
    %c22_333 = arith.constant 22 : index
    %893 = memref.load %arg4[%c4_332, %c22_333] : memref<8x25xf32, #tpu.memory_space<smem>>
    %894 = vector.extract_strided_slice %781 {offsets = [4, 0], sizes = [16, 16], strides = [1, 1]} : vector<20x16xf32> to vector<16x16xf32>
    %895 = vector.broadcast %893 : f32 to vector<16x16xf32>
    %896 = arith.mulf %895, %894 : vector<16x16xf32>
    %897 = arith.addf %892, %896 : vector<16x16xf32>
    %c4_334 = arith.constant 4 : index
    %c23_335 = arith.constant 23 : index
    %898 = memref.load %arg4[%c4_334, %c23_335] : memref<8x25xf32, #tpu.memory_space<smem>>
    %899 = vector.extract_strided_slice %782 {offsets = [4, 0], sizes = [16, 16], strides = [1, 1]} : vector<20x16xf32> to vector<16x16xf32>
    %900 = vector.broadcast %898 : f32 to vector<16x16xf32>
    %901 = arith.mulf %900, %899 : vector<16x16xf32>
    %902 = arith.addf %897, %901 : vector<16x16xf32>
    %c4_336 = arith.constant 4 : index
    %c24_337 = arith.constant 24 : index
    %903 = memref.load %arg4[%c4_336, %c24_337] : memref<8x25xf32, #tpu.memory_space<smem>>
    %904 = vector.extract_strided_slice %783 {offsets = [4, 0], sizes = [16, 16], strides = [1, 1]} : vector<20x16xf32> to vector<16x16xf32>
    %905 = vector.broadcast %903 : f32 to vector<16x16xf32>
    %906 = arith.mulf %905, %904 : vector<16x16xf32>
    %907 = arith.addf %902, %906 : vector<16x16xf32>
    %c4_338 = arith.constant 4 : index
    %908 = memref.load %arg5[%c4_338] : memref<8xf32, #tpu.memory_space<smem>>
    %909 = vector.broadcast %908 : f32 to vector<16x16xf32>
    %910 = arith.addf %907, %909 : vector<16x16xf32>
    %cst_339 = arith.constant 0.000000e+00 : f32
    %911 = vector.broadcast %cst_339 : f32 to vector<16x16xf32>
    %912 = arith.subf %911, %910 : vector<16x16xf32>
    %913 = math.exp %912 : vector<16x16xf32>
    %cst_340 = arith.constant 1.000000e+00 : f32
    %914 = vector.broadcast %cst_340 : f32 to vector<16x16xf32>
    %915 = arith.addf %914, %913 : vector<16x16xf32>
    %916 = tpu.reciprocal %915 {approx = true} : vector<16x16xf32> -> vector<16x16xf32>
    %917 = arith.mulf %910, %916 : vector<16x16xf32>
    %c0_341 = arith.constant 0 : index
    %c12_342 = arith.constant 12 : index
    %c0_343 = arith.constant 0 : index
    %c0_344 = arith.constant 0 : index
    %918 = vector.load %arg6[%c0_341, %c12_342, %c0_343, %c0_344] : memref<1x16x16x16xf32, #tpu.memory_space<vmem>>, vector<1x1x16x16xf32>
    %919 = vector.shape_cast %918 : vector<1x1x16x16xf32> to vector<16x16xf32>
    %920 = vector.shape_cast %917 : vector<16x16xf32> to vector<1x1x16x16xf32>
    tpu.vector_store %arg6[%c0_341, %c12_342, %c0_343, %c0_344], %920 {strides = array<i32>} : memref<1x16x16x16xf32, #tpu.memory_space<vmem>>, vector<1x1x16x16xf32>,
    %c5_345 = arith.constant 5 : index
    %c0_346 = arith.constant 0 : index
    %921 = memref.load %arg2[%c5_345, %c0_346] : memref<8x4xf32, #tpu.memory_space<smem>>
    %922 = vector.extract_strided_slice %2 {offsets = [0, 0, 0], sizes = [1, 20, 20], strides = [1, 1, 1]} : vector<4x20x20xf32> to vector<1x20x20xf32>
    %923 = vector.shape_cast %922 : vector<1x20x20xf32> to vector<20x20xf32>
    %924 = vector.broadcast %921 : f32 to vector<20x20xf32>
    %925 = arith.mulf %924, %923 : vector<20x20xf32>
    %c5_347 = arith.constant 5 : index
    %c1_348 = arith.constant 1 : index
    %926 = memref.load %arg2[%c5_347, %c1_348] : memref<8x4xf32, #tpu.memory_space<smem>>
    %927 = vector.extract_strided_slice %2 {offsets = [1, 0, 0], sizes = [1, 20, 20], strides = [1, 1, 1]} : vector<4x20x20xf32> to vector<1x20x20xf32>
    %928 = vector.shape_cast %927 : vector<1x20x20xf32> to vector<20x20xf32>
    %929 = vector.broadcast %926 : f32 to vector<20x20xf32>
    %930 = arith.mulf %929, %928 : vector<20x20xf32>
    %931 = arith.addf %925, %930 : vector<20x20xf32>
    %c5_349 = arith.constant 5 : index
    %c2_350 = arith.constant 2 : index
    %932 = memref.load %arg2[%c5_349, %c2_350] : memref<8x4xf32, #tpu.memory_space<smem>>
    %933 = vector.extract_strided_slice %2 {offsets = [2, 0, 0], sizes = [1, 20, 20], strides = [1, 1, 1]} : vector<4x20x20xf32> to vector<1x20x20xf32>
    %934 = vector.shape_cast %933 : vector<1x20x20xf32> to vector<20x20xf32>
    %935 = vector.broadcast %932 : f32 to vector<20x20xf32>
    %936 = arith.mulf %935, %934 : vector<20x20xf32>
    %937 = arith.addf %931, %936 : vector<20x20xf32>
    %c5_351 = arith.constant 5 : index
    %c3_352 = arith.constant 3 : index
    %938 = memref.load %arg2[%c5_351, %c3_352] : memref<8x4xf32, #tpu.memory_space<smem>>
    %939 = vector.extract_strided_slice %2 {offsets = [3, 0, 0], sizes = [1, 20, 20], strides = [1, 1, 1]} : vector<4x20x20xf32> to vector<1x20x20xf32>
    %940 = vector.shape_cast %939 : vector<1x20x20xf32> to vector<20x20xf32>
    %941 = vector.broadcast %938 : f32 to vector<20x20xf32>
    %942 = arith.mulf %941, %940 : vector<20x20xf32>
    %943 = arith.addf %937, %942 : vector<20x20xf32>
    %c5_353 = arith.constant 5 : index
    %944 = memref.load %arg3[%c5_353] : memref<8xf32, #tpu.memory_space<smem>>
    %945 = vector.broadcast %944 : f32 to vector<20x20xf32>
    %946 = arith.addf %943, %945 : vector<20x20xf32>
    %cst_354 = arith.constant 0.000000e+00 : f32
    %947 = vector.broadcast %cst_354 : f32 to vector<20x20xf32>
    %948 = arith.subf %947, %946 : vector<20x20xf32>
    %949 = math.exp %948 : vector<20x20xf32>
    %cst_355 = arith.constant 1.000000e+00 : f32
    %950 = vector.broadcast %cst_355 : f32 to vector<20x20xf32>
    %951 = arith.addf %950, %949 : vector<20x20xf32>
    %952 = tpu.reciprocal %951 {approx = true} : vector<20x20xf32> -> vector<20x20xf32>
    %953 = arith.mulf %946, %952 : vector<20x20xf32>
    %954 = vector.extract_strided_slice %953 {offsets = [2, 2], sizes = [16, 16], strides = [1, 1]} : vector<20x20xf32> to vector<16x16xf32>
    %c0_356 = arith.constant 0 : index
    %c5_357 = arith.constant 5 : index
    %c0_358 = arith.constant 0 : index
    %c0_359 = arith.constant 0 : index
    %955 = vector.load %arg6[%c0_356, %c5_357, %c0_358, %c0_359] : memref<1x16x16x16xf32, #tpu.memory_space<vmem>>, vector<1x1x16x16xf32>
    %956 = vector.shape_cast %955 : vector<1x1x16x16xf32> to vector<16x16xf32>
    %957 = vector.shape_cast %954 : vector<16x16xf32> to vector<1x1x16x16xf32>
    tpu.vector_store %arg6[%c0_356, %c5_357, %c0_358, %c0_359], %957 {strides = array<i32>} : memref<1x16x16x16xf32, #tpu.memory_space<vmem>>, vector<1x1x16x16xf32>,
    %cst_360 = arith.constant 0.000000e+00 : f32
    %958 = vector.broadcast %cst_360 : f32 to vector<20x20xf32>
    %959 = arith.select %15, %953, %958 : vector<20x20xi1>, vector<20x20xf32>
    %960 = vector.extract_strided_slice %959 {offsets = [0, 0], sizes = [20, 16], strides = [1, 1]} : vector<20x20xf32> to vector<20x16xf32>
    %961 = vector.extract_strided_slice %959 {offsets = [0, 1], sizes = [20, 16], strides = [1, 1]} : vector<20x20xf32> to vector<20x16xf32>
    %962 = vector.extract_strided_slice %959 {offsets = [0, 2], sizes = [20, 16], strides = [1, 1]} : vector<20x20xf32> to vector<20x16xf32>
    %963 = vector.extract_strided_slice %959 {offsets = [0, 3], sizes = [20, 16], strides = [1, 1]} : vector<20x20xf32> to vector<20x16xf32>
    %964 = vector.extract_strided_slice %959 {offsets = [0, 4], sizes = [20, 16], strides = [1, 1]} : vector<20x20xf32> to vector<20x16xf32>
    %c5_361 = arith.constant 5 : index
    %c0_362 = arith.constant 0 : index
    %965 = memref.load %arg4[%c5_361, %c0_362] : memref<8x25xf32, #tpu.memory_space<smem>>
    %966 = vector.extract_strided_slice %960 {offsets = [0, 0], sizes = [16, 16], strides = [1, 1]} : vector<20x16xf32> to vector<16x16xf32>
    %967 = vector.broadcast %965 : f32 to vector<16x16xf32>
    %968 = arith.mulf %967, %966 : vector<16x16xf32>
    %c5_363 = arith.constant 5 : index
    %c1_364 = arith.constant 1 : index
    %969 = memref.load %arg4[%c5_363, %c1_364] : memref<8x25xf32, #tpu.memory_space<smem>>
    %970 = vector.extract_strided_slice %961 {offsets = [0, 0], sizes = [16, 16], strides = [1, 1]} : vector<20x16xf32> to vector<16x16xf32>
    %971 = vector.broadcast %969 : f32 to vector<16x16xf32>
    %972 = arith.mulf %971, %970 : vector<16x16xf32>
    %973 = arith.addf %968, %972 : vector<16x16xf32>
    %c5_365 = arith.constant 5 : index
    %c2_366 = arith.constant 2 : index
    %974 = memref.load %arg4[%c5_365, %c2_366] : memref<8x25xf32, #tpu.memory_space<smem>>
    %975 = vector.extract_strided_slice %962 {offsets = [0, 0], sizes = [16, 16], strides = [1, 1]} : vector<20x16xf32> to vector<16x16xf32>
    %976 = vector.broadcast %974 : f32 to vector<16x16xf32>
    %977 = arith.mulf %976, %975 : vector<16x16xf32>
    %978 = arith.addf %973, %977 : vector<16x16xf32>
    %c5_367 = arith.constant 5 : index
    %c3_368 = arith.constant 3 : index
    %979 = memref.load %arg4[%c5_367, %c3_368] : memref<8x25xf32, #tpu.memory_space<smem>>
    %980 = vector.extract_strided_slice %963 {offsets = [0, 0], sizes = [16, 16], strides = [1, 1]} : vector<20x16xf32> to vector<16x16xf32>
    %981 = vector.broadcast %979 : f32 to vector<16x16xf32>
    %982 = arith.mulf %981, %980 : vector<16x16xf32>
    %983 = arith.addf %978, %982 : vector<16x16xf32>
    %c5_369 = arith.constant 5 : index
    %c4_370 = arith.constant 4 : index
    %984 = memref.load %arg4[%c5_369, %c4_370] : memref<8x25xf32, #tpu.memory_space<smem>>
    %985 = vector.extract_strided_slice %964 {offsets = [0, 0], sizes = [16, 16], strides = [1, 1]} : vector<20x16xf32> to vector<16x16xf32>
    %986 = vector.broadcast %984 : f32 to vector<16x16xf32>
    %987 = arith.mulf %986, %985 : vector<16x16xf32>
    %988 = arith.addf %983, %987 : vector<16x16xf32>
    %c5_371 = arith.constant 5 : index
    %c5_372 = arith.constant 5 : index
    %989 = memref.load %arg4[%c5_371, %c5_372] : memref<8x25xf32, #tpu.memory_space<smem>>
    %990 = vector.extract_strided_slice %960 {offsets = [1, 0], sizes = [16, 16], strides = [1, 1]} : vector<20x16xf32> to vector<16x16xf32>
    %991 = vector.broadcast %989 : f32 to vector<16x16xf32>
    %992 = arith.mulf %991, %990 : vector<16x16xf32>
    %993 = arith.addf %988, %992 : vector<16x16xf32>
    %c5_373 = arith.constant 5 : index
    %c6_374 = arith.constant 6 : index
    %994 = memref.load %arg4[%c5_373, %c6_374] : memref<8x25xf32, #tpu.memory_space<smem>>
    %995 = vector.extract_strided_slice %961 {offsets = [1, 0], sizes = [16, 16], strides = [1, 1]} : vector<20x16xf32> to vector<16x16xf32>
    %996 = vector.broadcast %994 : f32 to vector<16x16xf32>
    %997 = arith.mulf %996, %995 : vector<16x16xf32>
    %998 = arith.addf %993, %997 : vector<16x16xf32>
    %c5_375 = arith.constant 5 : index
    %c7_376 = arith.constant 7 : index
    %999 = memref.load %arg4[%c5_375, %c7_376] : memref<8x25xf32, #tpu.memory_space<smem>>
    %1000 = vector.extract_strided_slice %962 {offsets = [1, 0], sizes = [16, 16], strides = [1, 1]} : vector<20x16xf32> to vector<16x16xf32>
    %1001 = vector.broadcast %999 : f32 to vector<16x16xf32>
    %1002 = arith.mulf %1001, %1000 : vector<16x16xf32>
    %1003 = arith.addf %998, %1002 : vector<16x16xf32>
    %c5_377 = arith.constant 5 : index
    %c8_378 = arith.constant 8 : index
    %1004 = memref.load %arg4[%c5_377, %c8_378] : memref<8x25xf32, #tpu.memory_space<smem>>
    %1005 = vector.extract_strided_slice %963 {offsets = [1, 0], sizes = [16, 16], strides = [1, 1]} : vector<20x16xf32> to vector<16x16xf32>
    %1006 = vector.broadcast %1004 : f32 to vector<16x16xf32>
    %1007 = arith.mulf %1006, %1005 : vector<16x16xf32>
    %1008 = arith.addf %1003, %1007 : vector<16x16xf32>
    %c5_379 = arith.constant 5 : index
    %c9_380 = arith.constant 9 : index
    %1009 = memref.load %arg4[%c5_379, %c9_380] : memref<8x25xf32, #tpu.memory_space<smem>>
    %1010 = vector.extract_strided_slice %964 {offsets = [1, 0], sizes = [16, 16], strides = [1, 1]} : vector<20x16xf32> to vector<16x16xf32>
    %1011 = vector.broadcast %1009 : f32 to vector<16x16xf32>
    %1012 = arith.mulf %1011, %1010 : vector<16x16xf32>
    %1013 = arith.addf %1008, %1012 : vector<16x16xf32>
    %c5_381 = arith.constant 5 : index
    %c10_382 = arith.constant 10 : index
    %1014 = memref.load %arg4[%c5_381, %c10_382] : memref<8x25xf32, #tpu.memory_space<smem>>
    %1015 = vector.extract_strided_slice %960 {offsets = [2, 0], sizes = [16, 16], strides = [1, 1]} : vector<20x16xf32> to vector<16x16xf32>
    %1016 = vector.broadcast %1014 : f32 to vector<16x16xf32>
    %1017 = arith.mulf %1016, %1015 : vector<16x16xf32>
    %1018 = arith.addf %1013, %1017 : vector<16x16xf32>
    %c5_383 = arith.constant 5 : index
    %c11_384 = arith.constant 11 : index
    %1019 = memref.load %arg4[%c5_383, %c11_384] : memref<8x25xf32, #tpu.memory_space<smem>>
    %1020 = vector.extract_strided_slice %961 {offsets = [2, 0], sizes = [16, 16], strides = [1, 1]} : vector<20x16xf32> to vector<16x16xf32>
    %1021 = vector.broadcast %1019 : f32 to vector<16x16xf32>
    %1022 = arith.mulf %1021, %1020 : vector<16x16xf32>
    %1023 = arith.addf %1018, %1022 : vector<16x16xf32>
    %c5_385 = arith.constant 5 : index
    %c12_386 = arith.constant 12 : index
    %1024 = memref.load %arg4[%c5_385, %c12_386] : memref<8x25xf32, #tpu.memory_space<smem>>
    %1025 = vector.extract_strided_slice %962 {offsets = [2, 0], sizes = [16, 16], strides = [1, 1]} : vector<20x16xf32> to vector<16x16xf32>
    %1026 = vector.broadcast %1024 : f32 to vector<16x16xf32>
    %1027 = arith.mulf %1026, %1025 : vector<16x16xf32>
    %1028 = arith.addf %1023, %1027 : vector<16x16xf32>
    %c5_387 = arith.constant 5 : index
    %c13_388 = arith.constant 13 : index
    %1029 = memref.load %arg4[%c5_387, %c13_388] : memref<8x25xf32, #tpu.memory_space<smem>>
    %1030 = vector.extract_strided_slice %963 {offsets = [2, 0], sizes = [16, 16], strides = [1, 1]} : vector<20x16xf32> to vector<16x16xf32>
    %1031 = vector.broadcast %1029 : f32 to vector<16x16xf32>
    %1032 = arith.mulf %1031, %1030 : vector<16x16xf32>
    %1033 = arith.addf %1028, %1032 : vector<16x16xf32>
    %c5_389 = arith.constant 5 : index
    %c14_390 = arith.constant 14 : index
    %1034 = memref.load %arg4[%c5_389, %c14_390] : memref<8x25xf32, #tpu.memory_space<smem>>
    %1035 = vector.extract_strided_slice %964 {offsets = [2, 0], sizes = [16, 16], strides = [1, 1]} : vector<20x16xf32> to vector<16x16xf32>
    %1036 = vector.broadcast %1034 : f32 to vector<16x16xf32>
    %1037 = arith.mulf %1036, %1035 : vector<16x16xf32>
    %1038 = arith.addf %1033, %1037 : vector<16x16xf32>
    %c5_391 = arith.constant 5 : index
    %c15_392 = arith.constant 15 : index
    %1039 = memref.load %arg4[%c5_391, %c15_392] : memref<8x25xf32, #tpu.memory_space<smem>>
    %1040 = vector.extract_strided_slice %960 {offsets = [3, 0], sizes = [16, 16], strides = [1, 1]} : vector<20x16xf32> to vector<16x16xf32>
    %1041 = vector.broadcast %1039 : f32 to vector<16x16xf32>
    %1042 = arith.mulf %1041, %1040 : vector<16x16xf32>
    %1043 = arith.addf %1038, %1042 : vector<16x16xf32>
    %c5_393 = arith.constant 5 : index
    %c16_394 = arith.constant 16 : index
    %1044 = memref.load %arg4[%c5_393, %c16_394] : memref<8x25xf32, #tpu.memory_space<smem>>
    %1045 = vector.extract_strided_slice %961 {offsets = [3, 0], sizes = [16, 16], strides = [1, 1]} : vector<20x16xf32> to vector<16x16xf32>
    %1046 = vector.broadcast %1044 : f32 to vector<16x16xf32>
    %1047 = arith.mulf %1046, %1045 : vector<16x16xf32>
    %1048 = arith.addf %1043, %1047 : vector<16x16xf32>
    %c5_395 = arith.constant 5 : index
    %c17_396 = arith.constant 17 : index
    %1049 = memref.load %arg4[%c5_395, %c17_396] : memref<8x25xf32, #tpu.memory_space<smem>>
    %1050 = vector.extract_strided_slice %962 {offsets = [3, 0], sizes = [16, 16], strides = [1, 1]} : vector<20x16xf32> to vector<16x16xf32>
    %1051 = vector.broadcast %1049 : f32 to vector<16x16xf32>
    %1052 = arith.mulf %1051, %1050 : vector<16x16xf32>
    %1053 = arith.addf %1048, %1052 : vector<16x16xf32>
    %c5_397 = arith.constant 5 : index
    %c18_398 = arith.constant 18 : index
    %1054 = memref.load %arg4[%c5_397, %c18_398] : memref<8x25xf32, #tpu.memory_space<smem>>
    %1055 = vector.extract_strided_slice %963 {offsets = [3, 0], sizes = [16, 16], strides = [1, 1]} : vector<20x16xf32> to vector<16x16xf32>
    %1056 = vector.broadcast %1054 : f32 to vector<16x16xf32>
    %1057 = arith.mulf %1056, %1055 : vector<16x16xf32>
    %1058 = arith.addf %1053, %1057 : vector<16x16xf32>
    %c5_399 = arith.constant 5 : index
    %c19_400 = arith.constant 19 : index
    %1059 = memref.load %arg4[%c5_399, %c19_400] : memref<8x25xf32, #tpu.memory_space<smem>>
    %1060 = vector.extract_strided_slice %964 {offsets = [3, 0], sizes = [16, 16], strides = [1, 1]} : vector<20x16xf32> to vector<16x16xf32>
    %1061 = vector.broadcast %1059 : f32 to vector<16x16xf32>
    %1062 = arith.mulf %1061, %1060 : vector<16x16xf32>
    %1063 = arith.addf %1058, %1062 : vector<16x16xf32>
    %c5_401 = arith.constant 5 : index
    %c20_402 = arith.constant 20 : index
    %1064 = memref.load %arg4[%c5_401, %c20_402] : memref<8x25xf32, #tpu.memory_space<smem>>
    %1065 = vector.extract_strided_slice %960 {offsets = [4, 0], sizes = [16, 16], strides = [1, 1]} : vector<20x16xf32> to vector<16x16xf32>
    %1066 = vector.broadcast %1064 : f32 to vector<16x16xf32>
    %1067 = arith.mulf %1066, %1065 : vector<16x16xf32>
    %1068 = arith.addf %1063, %1067 : vector<16x16xf32>
    %c5_403 = arith.constant 5 : index
    %c21_404 = arith.constant 21 : index
    %1069 = memref.load %arg4[%c5_403, %c21_404] : memref<8x25xf32, #tpu.memory_space<smem>>
    %1070 = vector.extract_strided_slice %961 {offsets = [4, 0], sizes = [16, 16], strides = [1, 1]} : vector<20x16xf32> to vector<16x16xf32>
    %1071 = vector.broadcast %1069 : f32 to vector<16x16xf32>
    %1072 = arith.mulf %1071, %1070 : vector<16x16xf32>
    %1073 = arith.addf %1068, %1072 : vector<16x16xf32>
    %c5_405 = arith.constant 5 : index
    %c22_406 = arith.constant 22 : index
    %1074 = memref.load %arg4[%c5_405, %c22_406] : memref<8x25xf32, #tpu.memory_space<smem>>
    %1075 = vector.extract_strided_slice %962 {offsets = [4, 0], sizes = [16, 16], strides = [1, 1]} : vector<20x16xf32> to vector<16x16xf32>
    %1076 = vector.broadcast %1074 : f32 to vector<16x16xf32>
    %1077 = arith.mulf %1076, %1075 : vector<16x16xf32>
    %1078 = arith.addf %1073, %1077 : vector<16x16xf32>
    %c5_407 = arith.constant 5 : index
    %c23_408 = arith.constant 23 : index
    %1079 = memref.load %arg4[%c5_407, %c23_408] : memref<8x25xf32, #tpu.memory_space<smem>>
    %1080 = vector.extract_strided_slice %963 {offsets = [4, 0], sizes = [16, 16], strides = [1, 1]} : vector<20x16xf32> to vector<16x16xf32>
    %1081 = vector.broadcast %1079 : f32 to vector<16x16xf32>
    %1082 = arith.mulf %1081, %1080 : vector<16x16xf32>
    %1083 = arith.addf %1078, %1082 : vector<16x16xf32>
    %c5_409 = arith.constant 5 : index
    %c24_410 = arith.constant 24 : index
    %1084 = memref.load %arg4[%c5_409, %c24_410] : memref<8x25xf32, #tpu.memory_space<smem>>
    %1085 = vector.extract_strided_slice %964 {offsets = [4, 0], sizes = [16, 16], strides = [1, 1]} : vector<20x16xf32> to vector<16x16xf32>
    %1086 = vector.broadcast %1084 : f32 to vector<16x16xf32>
    %1087 = arith.mulf %1086, %1085 : vector<16x16xf32>
    %1088 = arith.addf %1083, %1087 : vector<16x16xf32>
    %c5_411 = arith.constant 5 : index
    %1089 = memref.load %arg5[%c5_411] : memref<8xf32, #tpu.memory_space<smem>>
    %1090 = vector.broadcast %1089 : f32 to vector<16x16xf32>
    %1091 = arith.addf %1088, %1090 : vector<16x16xf32>
    %cst_412 = arith.constant 0.000000e+00 : f32
    %1092 = vector.broadcast %cst_412 : f32 to vector<16x16xf32>
    %1093 = arith.subf %1092, %1091 : vector<16x16xf32>
    %1094 = math.exp %1093 : vector<16x16xf32>
    %cst_413 = arith.constant 1.000000e+00 : f32
    %1095 = vector.broadcast %cst_413 : f32 to vector<16x16xf32>
    %1096 = arith.addf %1095, %1094 : vector<16x16xf32>
    %1097 = tpu.reciprocal %1096 {approx = true} : vector<16x16xf32> -> vector<16x16xf32>
    %1098 = arith.mulf %1091, %1097 : vector<16x16xf32>
    %c0_414 = arith.constant 0 : index
    %c13_415 = arith.constant 13 : index
    %c0_416 = arith.constant 0 : index
    %c0_417 = arith.constant 0 : index
    %1099 = vector.load %arg6[%c0_414, %c13_415, %c0_416, %c0_417] : memref<1x16x16x16xf32, #tpu.memory_space<vmem>>, vector<1x1x16x16xf32>
    %1100 = vector.shape_cast %1099 : vector<1x1x16x16xf32> to vector<16x16xf32>
    %1101 = vector.shape_cast %1098 : vector<16x16xf32> to vector<1x1x16x16xf32>
    tpu.vector_store %arg6[%c0_414, %c13_415, %c0_416, %c0_417], %1101 {strides = array<i32>} : memref<1x16x16x16xf32, #tpu.memory_space<vmem>>, vector<1x1x16x16xf32>,
    %c6_418 = arith.constant 6 : index
    %c0_419 = arith.constant 0 : index
    %1102 = memref.load %arg2[%c6_418, %c0_419] : memref<8x4xf32, #tpu.memory_space<smem>>
    %1103 = vector.extract_strided_slice %2 {offsets = [0, 0, 0], sizes = [1, 20, 20], strides = [1, 1, 1]} : vector<4x20x20xf32> to vector<1x20x20xf32>
    %1104 = vector.shape_cast %1103 : vector<1x20x20xf32> to vector<20x20xf32>
    %1105 = vector.broadcast %1102 : f32 to vector<20x20xf32>
    %1106 = arith.mulf %1105, %1104 : vector<20x20xf32>
    %c6_420 = arith.constant 6 : index
    %c1_421 = arith.constant 1 : index
    %1107 = memref.load %arg2[%c6_420, %c1_421] : memref<8x4xf32, #tpu.memory_space<smem>>
    %1108 = vector.extract_strided_slice %2 {offsets = [1, 0, 0], sizes = [1, 20, 20], strides = [1, 1, 1]} : vector<4x20x20xf32> to vector<1x20x20xf32>
    %1109 = vector.shape_cast %1108 : vector<1x20x20xf32> to vector<20x20xf32>
    %1110 = vector.broadcast %1107 : f32 to vector<20x20xf32>
    %1111 = arith.mulf %1110, %1109 : vector<20x20xf32>
    %1112 = arith.addf %1106, %1111 : vector<20x20xf32>
    %c6_422 = arith.constant 6 : index
    %c2_423 = arith.constant 2 : index
    %1113 = memref.load %arg2[%c6_422, %c2_423] : memref<8x4xf32, #tpu.memory_space<smem>>
    %1114 = vector.extract_strided_slice %2 {offsets = [2, 0, 0], sizes = [1, 20, 20], strides = [1, 1, 1]} : vector<4x20x20xf32> to vector<1x20x20xf32>
    %1115 = vector.shape_cast %1114 : vector<1x20x20xf32> to vector<20x20xf32>
    %1116 = vector.broadcast %1113 : f32 to vector<20x20xf32>
    %1117 = arith.mulf %1116, %1115 : vector<20x20xf32>
    %1118 = arith.addf %1112, %1117 : vector<20x20xf32>
    %c6_424 = arith.constant 6 : index
    %c3_425 = arith.constant 3 : index
    %1119 = memref.load %arg2[%c6_424, %c3_425] : memref<8x4xf32, #tpu.memory_space<smem>>
    %1120 = vector.extract_strided_slice %2 {offsets = [3, 0, 0], sizes = [1, 20, 20], strides = [1, 1, 1]} : vector<4x20x20xf32> to vector<1x20x20xf32>
    %1121 = vector.shape_cast %1120 : vector<1x20x20xf32> to vector<20x20xf32>
    %1122 = vector.broadcast %1119 : f32 to vector<20x20xf32>
    %1123 = arith.mulf %1122, %1121 : vector<20x20xf32>
    %1124 = arith.addf %1118, %1123 : vector<20x20xf32>
    %c6_426 = arith.constant 6 : index
    %1125 = memref.load %arg3[%c6_426] : memref<8xf32, #tpu.memory_space<smem>>
    %1126 = vector.broadcast %1125 : f32 to vector<20x20xf32>
    %1127 = arith.addf %1124, %1126 : vector<20x20xf32>
    %cst_427 = arith.constant 0.000000e+00 : f32
    %1128 = vector.broadcast %cst_427 : f32 to vector<20x20xf32>
    %1129 = arith.subf %1128, %1127 : vector<20x20xf32>
    %1130 = math.exp %1129 : vector<20x20xf32>
    %cst_428 = arith.constant 1.000000e+00 : f32
    %1131 = vector.broadcast %cst_428 : f32 to vector<20x20xf32>
    %1132 = arith.addf %1131, %1130 : vector<20x20xf32>
    %1133 = tpu.reciprocal %1132 {approx = true} : vector<20x20xf32> -> vector<20x20xf32>
    %1134 = arith.mulf %1127, %1133 : vector<20x20xf32>
    %1135 = vector.extract_strided_slice %1134 {offsets = [2, 2], sizes = [16, 16], strides = [1, 1]} : vector<20x20xf32> to vector<16x16xf32>
    %c0_429 = arith.constant 0 : index
    %c6_430 = arith.constant 6 : index
    %c0_431 = arith.constant 0 : index
    %c0_432 = arith.constant 0 : index
    %1136 = vector.load %arg6[%c0_429, %c6_430, %c0_431, %c0_432] : memref<1x16x16x16xf32, #tpu.memory_space<vmem>>, vector<1x1x16x16xf32>
    %1137 = vector.shape_cast %1136 : vector<1x1x16x16xf32> to vector<16x16xf32>
    %1138 = vector.shape_cast %1135 : vector<16x16xf32> to vector<1x1x16x16xf32>
    tpu.vector_store %arg6[%c0_429, %c6_430, %c0_431, %c0_432], %1138 {strides = array<i32>} : memref<1x16x16x16xf32, #tpu.memory_space<vmem>>, vector<1x1x16x16xf32>,
    %cst_433 = arith.constant 0.000000e+00 : f32
    %1139 = vector.broadcast %cst_433 : f32 to vector<20x20xf32>
    %1140 = arith.select %15, %1134, %1139 : vector<20x20xi1>, vector<20x20xf32>
    %1141 = vector.extract_strided_slice %1140 {offsets = [0, 0], sizes = [20, 16], strides = [1, 1]} : vector<20x20xf32> to vector<20x16xf32>
    %1142 = vector.extract_strided_slice %1140 {offsets = [0, 1], sizes = [20, 16], strides = [1, 1]} : vector<20x20xf32> to vector<20x16xf32>
    %1143 = vector.extract_strided_slice %1140 {offsets = [0, 2], sizes = [20, 16], strides = [1, 1]} : vector<20x20xf32> to vector<20x16xf32>
    %1144 = vector.extract_strided_slice %1140 {offsets = [0, 3], sizes = [20, 16], strides = [1, 1]} : vector<20x20xf32> to vector<20x16xf32>
    %1145 = vector.extract_strided_slice %1140 {offsets = [0, 4], sizes = [20, 16], strides = [1, 1]} : vector<20x20xf32> to vector<20x16xf32>
    %c6_434 = arith.constant 6 : index
    %c0_435 = arith.constant 0 : index
    %1146 = memref.load %arg4[%c6_434, %c0_435] : memref<8x25xf32, #tpu.memory_space<smem>>
    %1147 = vector.extract_strided_slice %1141 {offsets = [0, 0], sizes = [16, 16], strides = [1, 1]} : vector<20x16xf32> to vector<16x16xf32>
    %1148 = vector.broadcast %1146 : f32 to vector<16x16xf32>
    %1149 = arith.mulf %1148, %1147 : vector<16x16xf32>
    %c6_436 = arith.constant 6 : index
    %c1_437 = arith.constant 1 : index
    %1150 = memref.load %arg4[%c6_436, %c1_437] : memref<8x25xf32, #tpu.memory_space<smem>>
    %1151 = vector.extract_strided_slice %1142 {offsets = [0, 0], sizes = [16, 16], strides = [1, 1]} : vector<20x16xf32> to vector<16x16xf32>
    %1152 = vector.broadcast %1150 : f32 to vector<16x16xf32>
    %1153 = arith.mulf %1152, %1151 : vector<16x16xf32>
    %1154 = arith.addf %1149, %1153 : vector<16x16xf32>
    %c6_438 = arith.constant 6 : index
    %c2_439 = arith.constant 2 : index
    %1155 = memref.load %arg4[%c6_438, %c2_439] : memref<8x25xf32, #tpu.memory_space<smem>>
    %1156 = vector.extract_strided_slice %1143 {offsets = [0, 0], sizes = [16, 16], strides = [1, 1]} : vector<20x16xf32> to vector<16x16xf32>
    %1157 = vector.broadcast %1155 : f32 to vector<16x16xf32>
    %1158 = arith.mulf %1157, %1156 : vector<16x16xf32>
    %1159 = arith.addf %1154, %1158 : vector<16x16xf32>
    %c6_440 = arith.constant 6 : index
    %c3_441 = arith.constant 3 : index
    %1160 = memref.load %arg4[%c6_440, %c3_441] : memref<8x25xf32, #tpu.memory_space<smem>>
    %1161 = vector.extract_strided_slice %1144 {offsets = [0, 0], sizes = [16, 16], strides = [1, 1]} : vector<20x16xf32> to vector<16x16xf32>
    %1162 = vector.broadcast %1160 : f32 to vector<16x16xf32>
    %1163 = arith.mulf %1162, %1161 : vector<16x16xf32>
    %1164 = arith.addf %1159, %1163 : vector<16x16xf32>
    %c6_442 = arith.constant 6 : index
    %c4_443 = arith.constant 4 : index
    %1165 = memref.load %arg4[%c6_442, %c4_443] : memref<8x25xf32, #tpu.memory_space<smem>>
    %1166 = vector.extract_strided_slice %1145 {offsets = [0, 0], sizes = [16, 16], strides = [1, 1]} : vector<20x16xf32> to vector<16x16xf32>
    %1167 = vector.broadcast %1165 : f32 to vector<16x16xf32>
    %1168 = arith.mulf %1167, %1166 : vector<16x16xf32>
    %1169 = arith.addf %1164, %1168 : vector<16x16xf32>
    %c6_444 = arith.constant 6 : index
    %c5_445 = arith.constant 5 : index
    %1170 = memref.load %arg4[%c6_444, %c5_445] : memref<8x25xf32, #tpu.memory_space<smem>>
    %1171 = vector.extract_strided_slice %1141 {offsets = [1, 0], sizes = [16, 16], strides = [1, 1]} : vector<20x16xf32> to vector<16x16xf32>
    %1172 = vector.broadcast %1170 : f32 to vector<16x16xf32>
    %1173 = arith.mulf %1172, %1171 : vector<16x16xf32>
    %1174 = arith.addf %1169, %1173 : vector<16x16xf32>
    %c6_446 = arith.constant 6 : index
    %c6_447 = arith.constant 6 : index
    %1175 = memref.load %arg4[%c6_446, %c6_447] : memref<8x25xf32, #tpu.memory_space<smem>>
    %1176 = vector.extract_strided_slice %1142 {offsets = [1, 0], sizes = [16, 16], strides = [1, 1]} : vector<20x16xf32> to vector<16x16xf32>
    %1177 = vector.broadcast %1175 : f32 to vector<16x16xf32>
    %1178 = arith.mulf %1177, %1176 : vector<16x16xf32>
    %1179 = arith.addf %1174, %1178 : vector<16x16xf32>
    %c6_448 = arith.constant 6 : index
    %c7_449 = arith.constant 7 : index
    %1180 = memref.load %arg4[%c6_448, %c7_449] : memref<8x25xf32, #tpu.memory_space<smem>>
    %1181 = vector.extract_strided_slice %1143 {offsets = [1, 0], sizes = [16, 16], strides = [1, 1]} : vector<20x16xf32> to vector<16x16xf32>
    %1182 = vector.broadcast %1180 : f32 to vector<16x16xf32>
    %1183 = arith.mulf %1182, %1181 : vector<16x16xf32>
    %1184 = arith.addf %1179, %1183 : vector<16x16xf32>
    %c6_450 = arith.constant 6 : index
    %c8_451 = arith.constant 8 : index
    %1185 = memref.load %arg4[%c6_450, %c8_451] : memref<8x25xf32, #tpu.memory_space<smem>>
    %1186 = vector.extract_strided_slice %1144 {offsets = [1, 0], sizes = [16, 16], strides = [1, 1]} : vector<20x16xf32> to vector<16x16xf32>
    %1187 = vector.broadcast %1185 : f32 to vector<16x16xf32>
    %1188 = arith.mulf %1187, %1186 : vector<16x16xf32>
    %1189 = arith.addf %1184, %1188 : vector<16x16xf32>
    %c6_452 = arith.constant 6 : index
    %c9_453 = arith.constant 9 : index
    %1190 = memref.load %arg4[%c6_452, %c9_453] : memref<8x25xf32, #tpu.memory_space<smem>>
    %1191 = vector.extract_strided_slice %1145 {offsets = [1, 0], sizes = [16, 16], strides = [1, 1]} : vector<20x16xf32> to vector<16x16xf32>
    %1192 = vector.broadcast %1190 : f32 to vector<16x16xf32>
    %1193 = arith.mulf %1192, %1191 : vector<16x16xf32>
    %1194 = arith.addf %1189, %1193 : vector<16x16xf32>
    %c6_454 = arith.constant 6 : index
    %c10_455 = arith.constant 10 : index
    %1195 = memref.load %arg4[%c6_454, %c10_455] : memref<8x25xf32, #tpu.memory_space<smem>>
    %1196 = vector.extract_strided_slice %1141 {offsets = [2, 0], sizes = [16, 16], strides = [1, 1]} : vector<20x16xf32> to vector<16x16xf32>
    %1197 = vector.broadcast %1195 : f32 to vector<16x16xf32>
    %1198 = arith.mulf %1197, %1196 : vector<16x16xf32>
    %1199 = arith.addf %1194, %1198 : vector<16x16xf32>
    %c6_456 = arith.constant 6 : index
    %c11_457 = arith.constant 11 : index
    %1200 = memref.load %arg4[%c6_456, %c11_457] : memref<8x25xf32, #tpu.memory_space<smem>>
    %1201 = vector.extract_strided_slice %1142 {offsets = [2, 0], sizes = [16, 16], strides = [1, 1]} : vector<20x16xf32> to vector<16x16xf32>
    %1202 = vector.broadcast %1200 : f32 to vector<16x16xf32>
    %1203 = arith.mulf %1202, %1201 : vector<16x16xf32>
    %1204 = arith.addf %1199, %1203 : vector<16x16xf32>
    %c6_458 = arith.constant 6 : index
    %c12_459 = arith.constant 12 : index
    %1205 = memref.load %arg4[%c6_458, %c12_459] : memref<8x25xf32, #tpu.memory_space<smem>>
    %1206 = vector.extract_strided_slice %1143 {offsets = [2, 0], sizes = [16, 16], strides = [1, 1]} : vector<20x16xf32> to vector<16x16xf32>
    %1207 = vector.broadcast %1205 : f32 to vector<16x16xf32>
    %1208 = arith.mulf %1207, %1206 : vector<16x16xf32>
    %1209 = arith.addf %1204, %1208 : vector<16x16xf32>
    %c6_460 = arith.constant 6 : index
    %c13_461 = arith.constant 13 : index
    %1210 = memref.load %arg4[%c6_460, %c13_461] : memref<8x25xf32, #tpu.memory_space<smem>>
    %1211 = vector.extract_strided_slice %1144 {offsets = [2, 0], sizes = [16, 16], strides = [1, 1]} : vector<20x16xf32> to vector<16x16xf32>
    %1212 = vector.broadcast %1210 : f32 to vector<16x16xf32>
    %1213 = arith.mulf %1212, %1211 : vector<16x16xf32>
    %1214 = arith.addf %1209, %1213 : vector<16x16xf32>
    %c6_462 = arith.constant 6 : index
    %c14_463 = arith.constant 14 : index
    %1215 = memref.load %arg4[%c6_462, %c14_463] : memref<8x25xf32, #tpu.memory_space<smem>>
    %1216 = vector.extract_strided_slice %1145 {offsets = [2, 0], sizes = [16, 16], strides = [1, 1]} : vector<20x16xf32> to vector<16x16xf32>
    %1217 = vector.broadcast %1215 : f32 to vector<16x16xf32>
    %1218 = arith.mulf %1217, %1216 : vector<16x16xf32>
    %1219 = arith.addf %1214, %1218 : vector<16x16xf32>
    %c6_464 = arith.constant 6 : index
    %c15_465 = arith.constant 15 : index
    %1220 = memref.load %arg4[%c6_464, %c15_465] : memref<8x25xf32, #tpu.memory_space<smem>>
    %1221 = vector.extract_strided_slice %1141 {offsets = [3, 0], sizes = [16, 16], strides = [1, 1]} : vector<20x16xf32> to vector<16x16xf32>
    %1222 = vector.broadcast %1220 : f32 to vector<16x16xf32>
    %1223 = arith.mulf %1222, %1221 : vector<16x16xf32>
    %1224 = arith.addf %1219, %1223 : vector<16x16xf32>
    %c6_466 = arith.constant 6 : index
    %c16_467 = arith.constant 16 : index
    %1225 = memref.load %arg4[%c6_466, %c16_467] : memref<8x25xf32, #tpu.memory_space<smem>>
    %1226 = vector.extract_strided_slice %1142 {offsets = [3, 0], sizes = [16, 16], strides = [1, 1]} : vector<20x16xf32> to vector<16x16xf32>
    %1227 = vector.broadcast %1225 : f32 to vector<16x16xf32>
    %1228 = arith.mulf %1227, %1226 : vector<16x16xf32>
    %1229 = arith.addf %1224, %1228 : vector<16x16xf32>
    %c6_468 = arith.constant 6 : index
    %c17_469 = arith.constant 17 : index
    %1230 = memref.load %arg4[%c6_468, %c17_469] : memref<8x25xf32, #tpu.memory_space<smem>>
    %1231 = vector.extract_strided_slice %1143 {offsets = [3, 0], sizes = [16, 16], strides = [1, 1]} : vector<20x16xf32> to vector<16x16xf32>
    %1232 = vector.broadcast %1230 : f32 to vector<16x16xf32>
    %1233 = arith.mulf %1232, %1231 : vector<16x16xf32>
    %1234 = arith.addf %1229, %1233 : vector<16x16xf32>
    %c6_470 = arith.constant 6 : index
    %c18_471 = arith.constant 18 : index
    %1235 = memref.load %arg4[%c6_470, %c18_471] : memref<8x25xf32, #tpu.memory_space<smem>>
    %1236 = vector.extract_strided_slice %1144 {offsets = [3, 0], sizes = [16, 16], strides = [1, 1]} : vector<20x16xf32> to vector<16x16xf32>
    %1237 = vector.broadcast %1235 : f32 to vector<16x16xf32>
    %1238 = arith.mulf %1237, %1236 : vector<16x16xf32>
    %1239 = arith.addf %1234, %1238 : vector<16x16xf32>
    %c6_472 = arith.constant 6 : index
    %c19_473 = arith.constant 19 : index
    %1240 = memref.load %arg4[%c6_472, %c19_473] : memref<8x25xf32, #tpu.memory_space<smem>>
    %1241 = vector.extract_strided_slice %1145 {offsets = [3, 0], sizes = [16, 16], strides = [1, 1]} : vector<20x16xf32> to vector<16x16xf32>
    %1242 = vector.broadcast %1240 : f32 to vector<16x16xf32>
    %1243 = arith.mulf %1242, %1241 : vector<16x16xf32>
    %1244 = arith.addf %1239, %1243 : vector<16x16xf32>
    %c6_474 = arith.constant 6 : index
    %c20_475 = arith.constant 20 : index
    %1245 = memref.load %arg4[%c6_474, %c20_475] : memref<8x25xf32, #tpu.memory_space<smem>>
    %1246 = vector.extract_strided_slice %1141 {offsets = [4, 0], sizes = [16, 16], strides = [1, 1]} : vector<20x16xf32> to vector<16x16xf32>
    %1247 = vector.broadcast %1245 : f32 to vector<16x16xf32>
    %1248 = arith.mulf %1247, %1246 : vector<16x16xf32>
    %1249 = arith.addf %1244, %1248 : vector<16x16xf32>
    %c6_476 = arith.constant 6 : index
    %c21_477 = arith.constant 21 : index
    %1250 = memref.load %arg4[%c6_476, %c21_477] : memref<8x25xf32, #tpu.memory_space<smem>>
    %1251 = vector.extract_strided_slice %1142 {offsets = [4, 0], sizes = [16, 16], strides = [1, 1]} : vector<20x16xf32> to vector<16x16xf32>
    %1252 = vector.broadcast %1250 : f32 to vector<16x16xf32>
    %1253 = arith.mulf %1252, %1251 : vector<16x16xf32>
    %1254 = arith.addf %1249, %1253 : vector<16x16xf32>
    %c6_478 = arith.constant 6 : index
    %c22_479 = arith.constant 22 : index
    %1255 = memref.load %arg4[%c6_478, %c22_479] : memref<8x25xf32, #tpu.memory_space<smem>>
    %1256 = vector.extract_strided_slice %1143 {offsets = [4, 0], sizes = [16, 16], strides = [1, 1]} : vector<20x16xf32> to vector<16x16xf32>
    %1257 = vector.broadcast %1255 : f32 to vector<16x16xf32>
    %1258 = arith.mulf %1257, %1256 : vector<16x16xf32>
    %1259 = arith.addf %1254, %1258 : vector<16x16xf32>
    %c6_480 = arith.constant 6 : index
    %c23_481 = arith.constant 23 : index
    %1260 = memref.load %arg4[%c6_480, %c23_481] : memref<8x25xf32, #tpu.memory_space<smem>>
    %1261 = vector.extract_strided_slice %1144 {offsets = [4, 0], sizes = [16, 16], strides = [1, 1]} : vector<20x16xf32> to vector<16x16xf32>
    %1262 = vector.broadcast %1260 : f32 to vector<16x16xf32>
    %1263 = arith.mulf %1262, %1261 : vector<16x16xf32>
    %1264 = arith.addf %1259, %1263 : vector<16x16xf32>
    %c6_482 = arith.constant 6 : index
    %c24_483 = arith.constant 24 : index
    %1265 = memref.load %arg4[%c6_482, %c24_483] : memref<8x25xf32, #tpu.memory_space<smem>>
    %1266 = vector.extract_strided_slice %1145 {offsets = [4, 0], sizes = [16, 16], strides = [1, 1]} : vector<20x16xf32> to vector<16x16xf32>
    %1267 = vector.broadcast %1265 : f32 to vector<16x16xf32>
    %1268 = arith.mulf %1267, %1266 : vector<16x16xf32>
    %1269 = arith.addf %1264, %1268 : vector<16x16xf32>
    %c6_484 = arith.constant 6 : index
    %1270 = memref.load %arg5[%c6_484] : memref<8xf32, #tpu.memory_space<smem>>
    %1271 = vector.broadcast %1270 : f32 to vector<16x16xf32>
    %1272 = arith.addf %1269, %1271 : vector<16x16xf32>
    %cst_485 = arith.constant 0.000000e+00 : f32
    %1273 = vector.broadcast %cst_485 : f32 to vector<16x16xf32>
    %1274 = arith.subf %1273, %1272 : vector<16x16xf32>
    %1275 = math.exp %1274 : vector<16x16xf32>
    %cst_486 = arith.constant 1.000000e+00 : f32
    %1276 = vector.broadcast %cst_486 : f32 to vector<16x16xf32>
    %1277 = arith.addf %1276, %1275 : vector<16x16xf32>
    %1278 = tpu.reciprocal %1277 {approx = true} : vector<16x16xf32> -> vector<16x16xf32>
    %1279 = arith.mulf %1272, %1278 : vector<16x16xf32>
    %c0_487 = arith.constant 0 : index
    %c14_488 = arith.constant 14 : index
    %c0_489 = arith.constant 0 : index
    %c0_490 = arith.constant 0 : index
    %1280 = vector.load %arg6[%c0_487, %c14_488, %c0_489, %c0_490] : memref<1x16x16x16xf32, #tpu.memory_space<vmem>>, vector<1x1x16x16xf32>
    %1281 = vector.shape_cast %1280 : vector<1x1x16x16xf32> to vector<16x16xf32>
    %1282 = vector.shape_cast %1279 : vector<16x16xf32> to vector<1x1x16x16xf32>
    tpu.vector_store %arg6[%c0_487, %c14_488, %c0_489, %c0_490], %1282 {strides = array<i32>} : memref<1x16x16x16xf32, #tpu.memory_space<vmem>>, vector<1x1x16x16xf32>,
    %c7_491 = arith.constant 7 : index
    %c0_492 = arith.constant 0 : index
    %1283 = memref.load %arg2[%c7_491, %c0_492] : memref<8x4xf32, #tpu.memory_space<smem>>
    %1284 = vector.extract_strided_slice %2 {offsets = [0, 0, 0], sizes = [1, 20, 20], strides = [1, 1, 1]} : vector<4x20x20xf32> to vector<1x20x20xf32>
    %1285 = vector.shape_cast %1284 : vector<1x20x20xf32> to vector<20x20xf32>
    %1286 = vector.broadcast %1283 : f32 to vector<20x20xf32>
    %1287 = arith.mulf %1286, %1285 : vector<20x20xf32>
    %c7_493 = arith.constant 7 : index
    %c1_494 = arith.constant 1 : index
    %1288 = memref.load %arg2[%c7_493, %c1_494] : memref<8x4xf32, #tpu.memory_space<smem>>
    %1289 = vector.extract_strided_slice %2 {offsets = [1, 0, 0], sizes = [1, 20, 20], strides = [1, 1, 1]} : vector<4x20x20xf32> to vector<1x20x20xf32>
    %1290 = vector.shape_cast %1289 : vector<1x20x20xf32> to vector<20x20xf32>
    %1291 = vector.broadcast %1288 : f32 to vector<20x20xf32>
    %1292 = arith.mulf %1291, %1290 : vector<20x20xf32>
    %1293 = arith.addf %1287, %1292 : vector<20x20xf32>
    %c7_495 = arith.constant 7 : index
    %c2_496 = arith.constant 2 : index
    %1294 = memref.load %arg2[%c7_495, %c2_496] : memref<8x4xf32, #tpu.memory_space<smem>>
    %1295 = vector.extract_strided_slice %2 {offsets = [2, 0, 0], sizes = [1, 20, 20], strides = [1, 1, 1]} : vector<4x20x20xf32> to vector<1x20x20xf32>
    %1296 = vector.shape_cast %1295 : vector<1x20x20xf32> to vector<20x20xf32>
    %1297 = vector.broadcast %1294 : f32 to vector<20x20xf32>
    %1298 = arith.mulf %1297, %1296 : vector<20x20xf32>
    %1299 = arith.addf %1293, %1298 : vector<20x20xf32>
    %c7_497 = arith.constant 7 : index
    %c3_498 = arith.constant 3 : index
    %1300 = memref.load %arg2[%c7_497, %c3_498] : memref<8x4xf32, #tpu.memory_space<smem>>
    %1301 = vector.extract_strided_slice %2 {offsets = [3, 0, 0], sizes = [1, 20, 20], strides = [1, 1, 1]} : vector<4x20x20xf32> to vector<1x20x20xf32>
    %1302 = vector.shape_cast %1301 : vector<1x20x20xf32> to vector<20x20xf32>
    %1303 = vector.broadcast %1300 : f32 to vector<20x20xf32>
    %1304 = arith.mulf %1303, %1302 : vector<20x20xf32>
    %1305 = arith.addf %1299, %1304 : vector<20x20xf32>
    %c7_499 = arith.constant 7 : index
    %1306 = memref.load %arg3[%c7_499] : memref<8xf32, #tpu.memory_space<smem>>
    %1307 = vector.broadcast %1306 : f32 to vector<20x20xf32>
    %1308 = arith.addf %1305, %1307 : vector<20x20xf32>
    %cst_500 = arith.constant 0.000000e+00 : f32
    %1309 = vector.broadcast %cst_500 : f32 to vector<20x20xf32>
    %1310 = arith.subf %1309, %1308 : vector<20x20xf32>
    %1311 = math.exp %1310 : vector<20x20xf32>
    %cst_501 = arith.constant 1.000000e+00 : f32
    %1312 = vector.broadcast %cst_501 : f32 to vector<20x20xf32>
    %1313 = arith.addf %1312, %1311 : vector<20x20xf32>
    %1314 = tpu.reciprocal %1313 {approx = true} : vector<20x20xf32> -> vector<20x20xf32>
    %1315 = arith.mulf %1308, %1314 : vector<20x20xf32>
    %1316 = vector.extract_strided_slice %1315 {offsets = [2, 2], sizes = [16, 16], strides = [1, 1]} : vector<20x20xf32> to vector<16x16xf32>
    %c0_502 = arith.constant 0 : index
    %c7_503 = arith.constant 7 : index
    %c0_504 = arith.constant 0 : index
    %c0_505 = arith.constant 0 : index
    %1317 = vector.load %arg6[%c0_502, %c7_503, %c0_504, %c0_505] : memref<1x16x16x16xf32, #tpu.memory_space<vmem>>, vector<1x1x16x16xf32>
    %1318 = vector.shape_cast %1317 : vector<1x1x16x16xf32> to vector<16x16xf32>
    %1319 = vector.shape_cast %1316 : vector<16x16xf32> to vector<1x1x16x16xf32>
    tpu.vector_store %arg6[%c0_502, %c7_503, %c0_504, %c0_505], %1319 {strides = array<i32>} : memref<1x16x16x16xf32, #tpu.memory_space<vmem>>, vector<1x1x16x16xf32>,
    %cst_506 = arith.constant 0.000000e+00 : f32
    %1320 = vector.broadcast %cst_506 : f32 to vector<20x20xf32>
    %1321 = arith.select %15, %1315, %1320 : vector<20x20xi1>, vector<20x20xf32>
    %1322 = vector.extract_strided_slice %1321 {offsets = [0, 0], sizes = [20, 16], strides = [1, 1]} : vector<20x20xf32> to vector<20x16xf32>
    %1323 = vector.extract_strided_slice %1321 {offsets = [0, 1], sizes = [20, 16], strides = [1, 1]} : vector<20x20xf32> to vector<20x16xf32>
    %1324 = vector.extract_strided_slice %1321 {offsets = [0, 2], sizes = [20, 16], strides = [1, 1]} : vector<20x20xf32> to vector<20x16xf32>
    %1325 = vector.extract_strided_slice %1321 {offsets = [0, 3], sizes = [20, 16], strides = [1, 1]} : vector<20x20xf32> to vector<20x16xf32>
    %1326 = vector.extract_strided_slice %1321 {offsets = [0, 4], sizes = [20, 16], strides = [1, 1]} : vector<20x20xf32> to vector<20x16xf32>
    %c7_507 = arith.constant 7 : index
    %c0_508 = arith.constant 0 : index
    %1327 = memref.load %arg4[%c7_507, %c0_508] : memref<8x25xf32, #tpu.memory_space<smem>>
    %1328 = vector.extract_strided_slice %1322 {offsets = [0, 0], sizes = [16, 16], strides = [1, 1]} : vector<20x16xf32> to vector<16x16xf32>
    %1329 = vector.broadcast %1327 : f32 to vector<16x16xf32>
    %1330 = arith.mulf %1329, %1328 : vector<16x16xf32>
    %c7_509 = arith.constant 7 : index
    %c1_510 = arith.constant 1 : index
    %1331 = memref.load %arg4[%c7_509, %c1_510] : memref<8x25xf32, #tpu.memory_space<smem>>
    %1332 = vector.extract_strided_slice %1323 {offsets = [0, 0], sizes = [16, 16], strides = [1, 1]} : vector<20x16xf32> to vector<16x16xf32>
    %1333 = vector.broadcast %1331 : f32 to vector<16x16xf32>
    %1334 = arith.mulf %1333, %1332 : vector<16x16xf32>
    %1335 = arith.addf %1330, %1334 : vector<16x16xf32>
    %c7_511 = arith.constant 7 : index
    %c2_512 = arith.constant 2 : index
    %1336 = memref.load %arg4[%c7_511, %c2_512] : memref<8x25xf32, #tpu.memory_space<smem>>
    %1337 = vector.extract_strided_slice %1324 {offsets = [0, 0], sizes = [16, 16], strides = [1, 1]} : vector<20x16xf32> to vector<16x16xf32>
    %1338 = vector.broadcast %1336 : f32 to vector<16x16xf32>
    %1339 = arith.mulf %1338, %1337 : vector<16x16xf32>
    %1340 = arith.addf %1335, %1339 : vector<16x16xf32>
    %c7_513 = arith.constant 7 : index
    %c3_514 = arith.constant 3 : index
    %1341 = memref.load %arg4[%c7_513, %c3_514] : memref<8x25xf32, #tpu.memory_space<smem>>
    %1342 = vector.extract_strided_slice %1325 {offsets = [0, 0], sizes = [16, 16], strides = [1, 1]} : vector<20x16xf32> to vector<16x16xf32>
    %1343 = vector.broadcast %1341 : f32 to vector<16x16xf32>
    %1344 = arith.mulf %1343, %1342 : vector<16x16xf32>
    %1345 = arith.addf %1340, %1344 : vector<16x16xf32>
    %c7_515 = arith.constant 7 : index
    %c4_516 = arith.constant 4 : index
    %1346 = memref.load %arg4[%c7_515, %c4_516] : memref<8x25xf32, #tpu.memory_space<smem>>
    %1347 = vector.extract_strided_slice %1326 {offsets = [0, 0], sizes = [16, 16], strides = [1, 1]} : vector<20x16xf32> to vector<16x16xf32>
    %1348 = vector.broadcast %1346 : f32 to vector<16x16xf32>
    %1349 = arith.mulf %1348, %1347 : vector<16x16xf32>
    %1350 = arith.addf %1345, %1349 : vector<16x16xf32>
    %c7_517 = arith.constant 7 : index
    %c5_518 = arith.constant 5 : index
    %1351 = memref.load %arg4[%c7_517, %c5_518] : memref<8x25xf32, #tpu.memory_space<smem>>
    %1352 = vector.extract_strided_slice %1322 {offsets = [1, 0], sizes = [16, 16], strides = [1, 1]} : vector<20x16xf32> to vector<16x16xf32>
    %1353 = vector.broadcast %1351 : f32 to vector<16x16xf32>
    %1354 = arith.mulf %1353, %1352 : vector<16x16xf32>
    %1355 = arith.addf %1350, %1354 : vector<16x16xf32>
    %c7_519 = arith.constant 7 : index
    %c6_520 = arith.constant 6 : index
    %1356 = memref.load %arg4[%c7_519, %c6_520] : memref<8x25xf32, #tpu.memory_space<smem>>
    %1357 = vector.extract_strided_slice %1323 {offsets = [1, 0], sizes = [16, 16], strides = [1, 1]} : vector<20x16xf32> to vector<16x16xf32>
    %1358 = vector.broadcast %1356 : f32 to vector<16x16xf32>
    %1359 = arith.mulf %1358, %1357 : vector<16x16xf32>
    %1360 = arith.addf %1355, %1359 : vector<16x16xf32>
    %c7_521 = arith.constant 7 : index
    %c7_522 = arith.constant 7 : index
    %1361 = memref.load %arg4[%c7_521, %c7_522] : memref<8x25xf32, #tpu.memory_space<smem>>
    %1362 = vector.extract_strided_slice %1324 {offsets = [1, 0], sizes = [16, 16], strides = [1, 1]} : vector<20x16xf32> to vector<16x16xf32>
    %1363 = vector.broadcast %1361 : f32 to vector<16x16xf32>
    %1364 = arith.mulf %1363, %1362 : vector<16x16xf32>
    %1365 = arith.addf %1360, %1364 : vector<16x16xf32>
    %c7_523 = arith.constant 7 : index
    %c8_524 = arith.constant 8 : index
    %1366 = memref.load %arg4[%c7_523, %c8_524] : memref<8x25xf32, #tpu.memory_space<smem>>
    %1367 = vector.extract_strided_slice %1325 {offsets = [1, 0], sizes = [16, 16], strides = [1, 1]} : vector<20x16xf32> to vector<16x16xf32>
    %1368 = vector.broadcast %1366 : f32 to vector<16x16xf32>
    %1369 = arith.mulf %1368, %1367 : vector<16x16xf32>
    %1370 = arith.addf %1365, %1369 : vector<16x16xf32>
    %c7_525 = arith.constant 7 : index
    %c9_526 = arith.constant 9 : index
    %1371 = memref.load %arg4[%c7_525, %c9_526] : memref<8x25xf32, #tpu.memory_space<smem>>
    %1372 = vector.extract_strided_slice %1326 {offsets = [1, 0], sizes = [16, 16], strides = [1, 1]} : vector<20x16xf32> to vector<16x16xf32>
    %1373 = vector.broadcast %1371 : f32 to vector<16x16xf32>
    %1374 = arith.mulf %1373, %1372 : vector<16x16xf32>
    %1375 = arith.addf %1370, %1374 : vector<16x16xf32>
    %c7_527 = arith.constant 7 : index
    %c10_528 = arith.constant 10 : index
    %1376 = memref.load %arg4[%c7_527, %c10_528] : memref<8x25xf32, #tpu.memory_space<smem>>
    %1377 = vector.extract_strided_slice %1322 {offsets = [2, 0], sizes = [16, 16], strides = [1, 1]} : vector<20x16xf32> to vector<16x16xf32>
    %1378 = vector.broadcast %1376 : f32 to vector<16x16xf32>
    %1379 = arith.mulf %1378, %1377 : vector<16x16xf32>
    %1380 = arith.addf %1375, %1379 : vector<16x16xf32>
    %c7_529 = arith.constant 7 : index
    %c11_530 = arith.constant 11 : index
    %1381 = memref.load %arg4[%c7_529, %c11_530] : memref<8x25xf32, #tpu.memory_space<smem>>
    %1382 = vector.extract_strided_slice %1323 {offsets = [2, 0], sizes = [16, 16], strides = [1, 1]} : vector<20x16xf32> to vector<16x16xf32>
    %1383 = vector.broadcast %1381 : f32 to vector<16x16xf32>
    %1384 = arith.mulf %1383, %1382 : vector<16x16xf32>
    %1385 = arith.addf %1380, %1384 : vector<16x16xf32>
    %c7_531 = arith.constant 7 : index
    %c12_532 = arith.constant 12 : index
    %1386 = memref.load %arg4[%c7_531, %c12_532] : memref<8x25xf32, #tpu.memory_space<smem>>
    %1387 = vector.extract_strided_slice %1324 {offsets = [2, 0], sizes = [16, 16], strides = [1, 1]} : vector<20x16xf32> to vector<16x16xf32>
    %1388 = vector.broadcast %1386 : f32 to vector<16x16xf32>
    %1389 = arith.mulf %1388, %1387 : vector<16x16xf32>
    %1390 = arith.addf %1385, %1389 : vector<16x16xf32>
    %c7_533 = arith.constant 7 : index
    %c13_534 = arith.constant 13 : index
    %1391 = memref.load %arg4[%c7_533, %c13_534] : memref<8x25xf32, #tpu.memory_space<smem>>
    %1392 = vector.extract_strided_slice %1325 {offsets = [2, 0], sizes = [16, 16], strides = [1, 1]} : vector<20x16xf32> to vector<16x16xf32>
    %1393 = vector.broadcast %1391 : f32 to vector<16x16xf32>
    %1394 = arith.mulf %1393, %1392 : vector<16x16xf32>
    %1395 = arith.addf %1390, %1394 : vector<16x16xf32>
    %c7_535 = arith.constant 7 : index
    %c14_536 = arith.constant 14 : index
    %1396 = memref.load %arg4[%c7_535, %c14_536] : memref<8x25xf32, #tpu.memory_space<smem>>
    %1397 = vector.extract_strided_slice %1326 {offsets = [2, 0], sizes = [16, 16], strides = [1, 1]} : vector<20x16xf32> to vector<16x16xf32>
    %1398 = vector.broadcast %1396 : f32 to vector<16x16xf32>
    %1399 = arith.mulf %1398, %1397 : vector<16x16xf32>
    %1400 = arith.addf %1395, %1399 : vector<16x16xf32>
    %c7_537 = arith.constant 7 : index
    %c15_538 = arith.constant 15 : index
    %1401 = memref.load %arg4[%c7_537, %c15_538] : memref<8x25xf32, #tpu.memory_space<smem>>
    %1402 = vector.extract_strided_slice %1322 {offsets = [3, 0], sizes = [16, 16], strides = [1, 1]} : vector<20x16xf32> to vector<16x16xf32>
    %1403 = vector.broadcast %1401 : f32 to vector<16x16xf32>
    %1404 = arith.mulf %1403, %1402 : vector<16x16xf32>
    %1405 = arith.addf %1400, %1404 : vector<16x16xf32>
    %c7_539 = arith.constant 7 : index
    %c16_540 = arith.constant 16 : index
    %1406 = memref.load %arg4[%c7_539, %c16_540] : memref<8x25xf32, #tpu.memory_space<smem>>
    %1407 = vector.extract_strided_slice %1323 {offsets = [3, 0], sizes = [16, 16], strides = [1, 1]} : vector<20x16xf32> to vector<16x16xf32>
    %1408 = vector.broadcast %1406 : f32 to vector<16x16xf32>
    %1409 = arith.mulf %1408, %1407 : vector<16x16xf32>
    %1410 = arith.addf %1405, %1409 : vector<16x16xf32>
    %c7_541 = arith.constant 7 : index
    %c17_542 = arith.constant 17 : index
    %1411 = memref.load %arg4[%c7_541, %c17_542] : memref<8x25xf32, #tpu.memory_space<smem>>
    %1412 = vector.extract_strided_slice %1324 {offsets = [3, 0], sizes = [16, 16], strides = [1, 1]} : vector<20x16xf32> to vector<16x16xf32>
    %1413 = vector.broadcast %1411 : f32 to vector<16x16xf32>
    %1414 = arith.mulf %1413, %1412 : vector<16x16xf32>
    %1415 = arith.addf %1410, %1414 : vector<16x16xf32>
    %c7_543 = arith.constant 7 : index
    %c18_544 = arith.constant 18 : index
    %1416 = memref.load %arg4[%c7_543, %c18_544] : memref<8x25xf32, #tpu.memory_space<smem>>
    %1417 = vector.extract_strided_slice %1325 {offsets = [3, 0], sizes = [16, 16], strides = [1, 1]} : vector<20x16xf32> to vector<16x16xf32>
    %1418 = vector.broadcast %1416 : f32 to vector<16x16xf32>
    %1419 = arith.mulf %1418, %1417 : vector<16x16xf32>
    %1420 = arith.addf %1415, %1419 : vector<16x16xf32>
    %c7_545 = arith.constant 7 : index
    %c19_546 = arith.constant 19 : index
    %1421 = memref.load %arg4[%c7_545, %c19_546] : memref<8x25xf32, #tpu.memory_space<smem>>
    %1422 = vector.extract_strided_slice %1326 {offsets = [3, 0], sizes = [16, 16], strides = [1, 1]} : vector<20x16xf32> to vector<16x16xf32>
    %1423 = vector.broadcast %1421 : f32 to vector<16x16xf32>
    %1424 = arith.mulf %1423, %1422 : vector<16x16xf32>
    %1425 = arith.addf %1420, %1424 : vector<16x16xf32>
    %c7_547 = arith.constant 7 : index
    %c20_548 = arith.constant 20 : index
    %1426 = memref.load %arg4[%c7_547, %c20_548] : memref<8x25xf32, #tpu.memory_space<smem>>
    %1427 = vector.extract_strided_slice %1322 {offsets = [4, 0], sizes = [16, 16], strides = [1, 1]} : vector<20x16xf32> to vector<16x16xf32>
    %1428 = vector.broadcast %1426 : f32 to vector<16x16xf32>
    %1429 = arith.mulf %1428, %1427 : vector<16x16xf32>
    %1430 = arith.addf %1425, %1429 : vector<16x16xf32>
    %c7_549 = arith.constant 7 : index
    %c21_550 = arith.constant 21 : index
    %1431 = memref.load %arg4[%c7_549, %c21_550] : memref<8x25xf32, #tpu.memory_space<smem>>
    %1432 = vector.extract_strided_slice %1323 {offsets = [4, 0], sizes = [16, 16], strides = [1, 1]} : vector<20x16xf32> to vector<16x16xf32>
    %1433 = vector.broadcast %1431 : f32 to vector<16x16xf32>
    %1434 = arith.mulf %1433, %1432 : vector<16x16xf32>
    %1435 = arith.addf %1430, %1434 : vector<16x16xf32>
    %c7_551 = arith.constant 7 : index
    %c22_552 = arith.constant 22 : index
    %1436 = memref.load %arg4[%c7_551, %c22_552] : memref<8x25xf32, #tpu.memory_space<smem>>
    %1437 = vector.extract_strided_slice %1324 {offsets = [4, 0], sizes = [16, 16], strides = [1, 1]} : vector<20x16xf32> to vector<16x16xf32>
    %1438 = vector.broadcast %1436 : f32 to vector<16x16xf32>
    %1439 = arith.mulf %1438, %1437 : vector<16x16xf32>
    %1440 = arith.addf %1435, %1439 : vector<16x16xf32>
    %c7_553 = arith.constant 7 : index
    %c23_554 = arith.constant 23 : index
    %1441 = memref.load %arg4[%c7_553, %c23_554] : memref<8x25xf32, #tpu.memory_space<smem>>
    %1442 = vector.extract_strided_slice %1325 {offsets = [4, 0], sizes = [16, 16], strides = [1, 1]} : vector<20x16xf32> to vector<16x16xf32>
    %1443 = vector.broadcast %1441 : f32 to vector<16x16xf32>
    %1444 = arith.mulf %1443, %1442 : vector<16x16xf32>
    %1445 = arith.addf %1440, %1444 : vector<16x16xf32>
    %c7_555 = arith.constant 7 : index
    %c24_556 = arith.constant 24 : index
    %1446 = memref.load %arg4[%c7_555, %c24_556] : memref<8x25xf32, #tpu.memory_space<smem>>
    %1447 = vector.extract_strided_slice %1326 {offsets = [4, 0], sizes = [16, 16], strides = [1, 1]} : vector<20x16xf32> to vector<16x16xf32>
    %1448 = vector.broadcast %1446 : f32 to vector<16x16xf32>
    %1449 = arith.mulf %1448, %1447 : vector<16x16xf32>
    %1450 = arith.addf %1445, %1449 : vector<16x16xf32>
    %c7_557 = arith.constant 7 : index
    %1451 = memref.load %arg5[%c7_557] : memref<8xf32, #tpu.memory_space<smem>>
    %1452 = vector.broadcast %1451 : f32 to vector<16x16xf32>
    %1453 = arith.addf %1450, %1452 : vector<16x16xf32>
    %cst_558 = arith.constant 0.000000e+00 : f32
    %1454 = vector.broadcast %cst_558 : f32 to vector<16x16xf32>
    %1455 = arith.subf %1454, %1453 : vector<16x16xf32>
    %1456 = math.exp %1455 : vector<16x16xf32>
    %cst_559 = arith.constant 1.000000e+00 : f32
    %1457 = vector.broadcast %cst_559 : f32 to vector<16x16xf32>
    %1458 = arith.addf %1457, %1456 : vector<16x16xf32>
    %1459 = tpu.reciprocal %1458 {approx = true} : vector<16x16xf32> -> vector<16x16xf32>
    %1460 = arith.mulf %1453, %1459 : vector<16x16xf32>
    %c0_560 = arith.constant 0 : index
    %c15_561 = arith.constant 15 : index
    %c0_562 = arith.constant 0 : index
    %c0_563 = arith.constant 0 : index
    %1461 = vector.load %arg6[%c0_560, %c15_561, %c0_562, %c0_563] : memref<1x16x16x16xf32, #tpu.memory_space<vmem>>, vector<1x1x16x16xf32>
    %1462 = vector.shape_cast %1461 : vector<1x1x16x16xf32> to vector<16x16xf32>
    %1463 = vector.shape_cast %1460 : vector<16x16xf32> to vector<1x1x16x16xf32>
    tpu.vector_store %arg6[%c0_560, %c15_561, %c0_562, %c0_563], %1463 {strides = array<i32>} : memref<1x16x16x16xf32, #tpu.memory_space<vmem>>, vector<1x1x16x16xf32>,
    return
  }
  func.func @transform_0(%arg0: i32) -> (i32, i32, i32, i32) {
    %c0_i32 = arith.constant 0 : i32
    %c0_i32_0 = arith.constant 0 : i32
    %c0_i32_1 = arith.constant 0 : i32
    %c0_i32_2 = arith.constant 0 : i32
    return %arg0, %c0_i32, %c0_i32_0, %c0_i32_1 : i32, i32, i32, i32
  }
  func.func @transform_1(%arg0: i32) -> (i32, i32) {
    %c0_i32 = arith.constant 0 : i32
    %c0_i32_0 = arith.constant 0 : i32
    %c0_i32_1 = arith.constant 0 : i32
    return %c0_i32, %c0_i32_0 : i32, i32
  }
  func.func @transform_2(%arg0: i32) -> i32 {
    %c0_i32 = arith.constant 0 : i32
    %c0_i32_0 = arith.constant 0 : i32
    return %c0_i32 : i32
  }
  func.func @transform_3(%arg0: i32) -> (i32, i32) {
    %c0_i32 = arith.constant 0 : i32
    %c0_i32_0 = arith.constant 0 : i32
    %c0_i32_1 = arith.constant 0 : i32
    return %c0_i32, %c0_i32_0 : i32, i32
  }
  func.func @transform_4(%arg0: i32) -> i32 {
    %c0_i32 = arith.constant 0 : i32
    %c0_i32_0 = arith.constant 0 : i32
    return %c0_i32 : i32
  }
  func.func @transform_5(%arg0: i32) -> (i32, i32, i32, i32) {
    %c0_i32 = arith.constant 0 : i32
    %c0_i32_0 = arith.constant 0 : i32
    %c0_i32_1 = arith.constant 0 : i32
    %c0_i32_2 = arith.constant 0 : i32
    return %arg0, %c0_i32, %c0_i32_0, %c0_i32_1 : i32, i32, i32, i32
  }
}

</mosaic_0001>

<bundles_post_ra>
// kernel: tpu_custom_call.1
= control target key start
LH: loop header
LB: loop body
LE: loop exit
PB: predicated region body
PF: predicated region fallthrough
CT: control target
= control target key end

     0   :  { %s9049_s0 = inlined_call_operand.vmem [shape: bf16[2,4,20,20], index: 0, kind: input, shape index: {}]   ;;  %s9050_s1 = inlined_call_operand.vmem [shape: f32[8,4], index: 1, kind: input, shape index: {}]   ;;  %s9051_s2 = inlined_call_operand.vmem [shape: f32[8], index: 2, kind: input, shape index: {}]   ;;  %s9052_s3 = inlined_call_operand.vmem [shape: f32[8,25], index: 3, kind: input, shape index: {}]   ;;  %s9053_s4 = inlined_call_operand.vmem [shape: f32[8], index: 4, kind: input, shape index: {}]   ;;  %s9054_s5 = inlined_call_operand.hbm [shape: f32[2,16,16,16], index: 5, kind: output, shape index: {}]  }
   0x1   :  { %9082 = sst [smem:[#allocation23_spill]] %s9049_s0 }
   0x2   :  { %9083 = sst [smem:[#allocation24_spill]] %s9050_s1 }
   0x3   :  { %9084 = sst [smem:[#allocation25_spill]] %s9051_s2 }
   0x4   :  { %10 = vsyncpa [#allocation4], 0 }
   0x5   :  { %11 = vsyncpa [#allocation6], 0 }
   0x6   :  { %12 = vsyncpa [#allocation9], 0 }
   0x7   :  { %13 = vsyncpa [#allocation3], 0 }
   0x8   :  { %15 = vsyncpa [#allocation3 + $0x1], 0  ;;  %s5609_s18 = smov 0   ;;  %s5611_s19 = smov 0  }
   0x9   :  { %s5613_s20 = smov 0   ;;  %s5615_s21 = smov 0  }
   0xa LB: > { %s5630_s22 = sadd.s32 4294967295, %s5566_s21   ;;  %s4877_s23 = sadd.s32 4294967294, %s5566_s21   ;;  %s5566_s21 = sphi %s5615_s21, %s9139_s21   ;;  %s5562_s20 = sphi %s5613_s20, %s9138_s20   ;;  %s5558_s19 = sphi %s5611_s19, %s9137_s19   ;;  %s5554_s18 = sphi %s5609_s18, %s9136_s18  }
   0xb   : > { %s5634_s24 = sadd.s32 1, %s5566_s21   ;;  %s138_s25 = sadd.s32 1, %s5562_s20 }
   0xc   : > { %s135_s26 = ssub.s32 %s5566_s21, %s5634_s24  ;;  %p148_p0 = scmp.ne.s32.totalorder %s5562_s20, %s5558_s19 }
   0xd   : > { %p136_p1 = scmp.eq.s32.totalorder %s135_s26, 0  ;;  %p149_p2 = scmp.eq.s32.totalorder %s5630_s22, 1 }
   0xe   : > { %p154_p3 = scmp.ne.s32.totalorder %s5558_s19, %s5554_s18  ;;  %p155_p4 = scmp.eq.s32.totalorder %s4877_s23, 1 }
   0xf   : > { %s5645_s27 = scalar_select %p136_p1, %s5562_s20, %s138_s25  }
  0x10   : > { %p5647_p5 = por %p149_p2, %p148_p0  ;;  %p5651_p6 = por %p155_p4, %p154_p3 }
  0x11   : > { %p4878_p7 = scmp.ge.s32.totalorder %s5566_s21, 1  ;;  %p162_p8 = scmp.lt.s32.totalorder %s5566_s21, 3 }
  0x12   : > { %s9085_s28 = scalar_select %p5647_p5, 1, 0 }
  0x13   : > { %s9086_s29 = scalar_select %p5651_p6, 1, 0 }
  0x14   : > { %p9055_p9 = scmp.eq.s32.totalorder %s5630_s22, 0  ;;  %p5658_p10 = pnand %p4878_p7, %p162_p8 }
  0x15   : > { %s9088_s2 = sld [smem:[#allocation25_spill]]  ;;  %s197_s15 = sshll.u32 %s9052_s3, 4  ;;  %s5679_s15 = int_to_ptr.vmem [resolvable:$true] %s197_s15 }
  0x16   : > { %s9087_s30 = scalar_select %p5658_p10, 1, 0 }
  0x17   : > { %p5206_p11 = pneg %p5658_p10  ;;  %s9089_s1 = sld [smem:[#allocation24_spill]] }
  0x18   : > { %s208_s23 = sshll.u32 %s9053_s4, 4  ;;  %s209_s23 = int_to_ptr.vmem [resolvable:$true] %s208_s23 }
  0x19   : > { %p5672_p12 = pnand %p9055_p9, %p5206_p11 }
  0x1b   : > { %s186_s8 = sshll.u32 %s9088_s2, 4  ;;  %p5436_p0 = pneg %p5672_p12  ;;  %s187_s8 = int_to_ptr.vmem [resolvable:$true] %s186_s8 }
  0x1c   : > { %s5434_s25 = scalar_lea.vmem %s187_s8, 16  ;;  %p5442_p3 = scmp.lt.s32.totalorder %s187_s8, %s187_s8 }
  0x1d   : > { %s175_s11 = sshll.u32 %s9089_s1, 4  ;;  %p5435_p13 = scmp.ne.s32.totalorder %s187_s8, %s5434_s25  ;;  %s176_s11 = int_to_ptr.vmem [resolvable:$true] %s175_s11 }
  0x1e   : > { %p5443_p4 = scmp.lt.s32.totalorder %s5434_s25, %s5434_s25 }
  0x1f   : > { %p5437_p1 = pnand %p5436_p0, %p5435_p13 }
  0x20   : > { %p5444_p7 = por %p5443_p4, %p5442_p3 }
  0x21   : > { %p5438_p2 = pneg %p5437_p1 }
  0x23   : > { %p5445_p8 = pnand %p5444_p7, %p5438_p2 }
  0x25   : > { %5448 = shalt.err (!%p5445_p8)
}
  0x26   : > { %s5568_s26 = smov [#allocation5]   ;;  %s5449_s6 = scalar_lea.vmem %s176_s11, 128 }
  0x27   : > { %5212 = dma.vmem_to_smem (!%p5672_p12), %s187_s8, 16, %s5568_s26, [#allocation6]  }
  0x28   : > { %p5450_p11 = scmp.ne.s32.totalorder %s176_s11, %s5449_s6  ;;  %p5457_p5 = scmp.lt.s32.totalorder %s176_s11, %s176_s11 }
  0x29   : > { %p5458_p10 = scmp.lt.s32.totalorder %s5449_s6, %s5449_s6 }
  0x2a   : > { %p5452_p9 = pnand %p5450_p11, %p5436_p0 }
  0x2b   : > { %p5459_p13 = por %p5458_p10, %p5457_p5 }
  0x2c   : > { %p5453_p6 = pneg %p5452_p9 }
  0x2e   : > { %p5460_p1 = pnand %p5459_p13, %p5453_p6 }
  0x30   : > { %5463 = shalt.err (!%p5460_p1)
}
  0x31   : > { %s5569_s7 = smov [#allocation2]   ;;  %s5464_s8 = scalar_lea.vmem %s5679_s15, 128 }
  0x32   : > { %5209 = dma.vmem_to_smem (!%p5672_p12), %s176_s11, 128, %s5569_s7, [#allocation4]  }
  0x33   : > { %p5465_p2 = scmp.ne.s32.totalorder %s5679_s15, %s5464_s8  ;;  %p5472_p9 = scmp.lt.s32.totalorder %s5679_s15, %s5679_s15 }
  0x34   : > { %p5473_p7 = scmp.lt.s32.totalorder %s5464_s8, %s5464_s8 }
  0x35   : > { %p5467_p3 = pnand %p5465_p2, %p5436_p0 }
  0x36   : > { %p5474_p5 = por %p5473_p7, %p5472_p9 }
  0x37   : > { %p5468_p4 = pneg %p5467_p3 }
  0x39   : > { %p5475_p6 = pnand %p5474_p5, %p5468_p4 }
  0x3b   : > { %5478 = shalt.err (!%p5475_p6)
}
  0x3c   : > { %s5570_s9 = smov [#allocation7]   ;;  %s5479_s13 = scalar_lea.vmem %s209_s23, 16 }
  0x3d   : > { %5215 = dma.vmem_to_smem (!%p5672_p12), %s5679_s15, 128, %s5570_s9, [#allocation6]  }
  0x3e   : > { %p5480_p10 = scmp.ne.s32.totalorder %s209_s23, %s5479_s13  ;;  %p5487_p13 = scmp.lt.s32.totalorder %s209_s23, %s209_s23 }
  0x3f   : > { %p5488_p1 = scmp.lt.s32.totalorder %s5479_s13, %s5479_s13 }
  0x40   : > { %p5482_p8 = pnand %p5480_p10, %p5436_p0 }
  0x41   : > { %p5489_p2 = por %p5488_p1, %p5487_p13 }
  0x42   : > { %p5483_p11 = pneg %p5482_p8 }
  0x44   : > { %p5490_p3 = pnand %p5489_p2, %p5483_p11 }
  0x46   : > { %5493 = shalt.err (!%p5490_p3)
}
  0x47   : > { %s5571_s14 = smov [#allocation8]   ;;  %p9091_p4 = scmp.ne.s32.totalorder %s9087_s30, 0 }
  0x48   : > { %5218 = dma.vmem_to_smem (!%p5672_p12), %s209_s23, 16, %s5571_s14, [#allocation9]  }
  0x49   : > { %229 = sbr.rel (%p9091_p4) target bundleno = 1004 (0x3ec), region = 40 }
  0x4e   : > { %p9092_p9 = scmp.eq.s32.totalorder %s5630_s22, 0 }
  0x50   : > { %5537 = dma.done.wait (%p9092_p9), [#allocation4], 128   ;;  %p9093_p7 = pmov %p9092_p9 }
  0x52   : > { %5539 = vsyncadd (%p9093_p7), [#allocation4], 4294967168  ;;  %p9094_p0 = pmov %p9093_p7 }
  0x54   : > { %5541 = dma.done.wait (%p9094_p0), [#allocation6], 144   ;;  %p9095_p5 = pmov %p9094_p0 }
  0x55   : > { %p9096_p6 = pmov %p9094_p0 }
  0x56   : > { %5543 = vsyncadd (%p9095_p5), [#allocation6], 4294967152 }
  0x57   : > { %5545 = dma.done.wait (%p9096_p6), [#allocation9], 16   ;;  %p9097_p12 = pmov %p9094_p0 }
  0x59   : > { %5547 = vsyncadd (%p9097_p12), [#allocation9], 4294967280 }
  0x5a   : > { %247 = sfence }
  0x5b   : > { %p270_p10 = scmp.lt.s32.totalorder %s5630_s22, 1  ;;  %s322_s30 = sld [smem:[#allocation2]]  ;;  %v299_v59 = vlaneseq  ;;  %vm463_vm9 = vcmask 1046528   ;;  %vm565_vm10 = vcmask 1045504   ;;  %vm667_vm11 = vcmask 1044480  }
  0x5c   : > { %s4891_s12 = sld [smem:[#allocation2 + $0x1]]  ;;  %s9065_s10 = smov 126   ;;  %vm769_vm12 = vcmask 1043456   ;;  %vm390_vm13 = vcmask 123904   ;;  %vm386_vm14 = vcmask 130050   ;;  %vm388_vm15 = vcmask 130048  }
  0x5d   : > { %s271_s15 = scalar_select %p270_p10, %s5630_s22, 1  ;;  %v300_v60 = vshrl.u32 %v299_v59, 7  ;;  %v304_v61 = vand.u32 127, %v299_v59 }
  0x5e   : > { %s4892_s16 = sld [smem:[#allocation2 + $0x2]]  ;;  %p9134_p11 = scmp.ne.s32.totalorder %s9085_s28, 0 }
  0x5f   : > { %s5187_s17 = smul.u32 48, %s271_s15  ;;  %s4893_s23 = sld [smem:[#allocation2 + $0x3]]  ;;  %vm314_vm0 = vcmp.ge.s32.totalorder %v304_v61, 2  ;;  %vm305_vm1 = vcmp.ge.s32.totalorder %v300_v60, 2  ;;  %vm318_vm2 = vcmp.lt.s32.totalorder %v304_v61, 18 }
  0x60   : > { %s9098_s0 = sld [smem:[#allocation23_spill]]  ;;  %vm315_vm3 = vmand %vm305_vm1, %vm314_vm0 }
  0x61   : > { %v323_v0 = vstv %s322_s30  ;;  %s351_s7 = sld [smem:[#allocation5]]  ;;  %vm5779_vm4 = vmand %vm315_vm3, %vm318_vm2 }
  0x62   : > { %v328_v4 = vstv %s4891_s12  ;;  %s5770_s8 = sld [smem:[#allocation7 + $0x1]]  ;;  %vm5797_vm6 = vmand %vm314_vm0, %vm318_vm2 }
  0x63   : > { %s5772_s9 = sld [smem:[#allocation7 + $0x2]] }
  0x64   : > { %v336_v11 = vstv %s4892_s16  ;;  %s5776_s11 = sld [smem:[#allocation7 + $0x3]]  ;;  %s9063_s16 = smov 127  }
  0x65   : > { %v344_v18 = vstv %s4893_s23  ;;  %s4899_s13 = sld [smem:[#allocation7 + $0x6]] }
  0x66   : > { %s274_s6 = scalar_lea.vmem %s9098_s0, %s5187_s17  ;;  %s5784_s14 = sld [smem:[#allocation7 + $0x4]] }
  0x67   : > { %v277_v1 = vld [vmem:[%s274_s6 + $0x8] sm:$0x3]  ;;  %v280_v2 = vld [vmem:[%s274_s6 + $0x14] sm:$0x3]  ;;  %v283_v3 = vld [vmem:[%s274_s6 + $0x20] sm:$0x3]  ;;  %v352_v29 = vstv %s351_s7 }
  0x68   : > { %v286_v5 = vld [vmem:[%s274_s6 + $0x2c] sm:$0x3]  ;;  %v5734_v6 = vunpack.c.l.bf16 %v277_v1  ;;  %v5736_v7 = vunpack.c.l.bf16 %v280_v2  ;;  %v5738_v8 = vunpack.c.l.bf16 %v283_v3  ;;  %v5179_v9 = vld [vmem:[%s274_s6] sm:$0xff]   ;;  %v5186_v14 = vld [vmem:[%s274_s6 + $0x18] sm:$0xff]   ;;  %v9105_v3 = vmov 0  ;;  %s4900_s30 = sld [smem:[#allocation7 + $0x7]] }
  0x69   : > { %v5740_v10 = vunpack.c.l.bf16 %v286_v5  ;;  %v5742_v12 = vunpack.c.l.bf16 %v5179_v9  ;;  %v278_v13 = vld [vmem:[%s274_s6 + $0xc] sm:$0xff]   ;;  %v284_v19 = vld [vmem:[%s274_s6 + $0x24] sm:$0xff]   ;;  %v5747_v20 = vunpack.c.l.bf16 %v5186_v14  ;;  %v5757_v31 = vunpack.c.h.bf16 %v5179_v9  ;;  %s4920_s12 = sld [smem:[#allocation2 + $0x80]]  ;;  %s9059_s7 = smov 125  }
  0x6a   : > { %9099 = vst [vmem:[#allocation15_spill] sm:$0xff] %v5734_v6  ;;  %9100 = vst [vmem:[#allocation16_spill] sm:$0xff] %v5738_v8  ;;  %v326_v15 = vmul.f32 %v323_v0, %v5734_v6  ;;  %v331_v16 = vmul.f32 %v328_v4, %v5736_v7  ;;  %v339_v17 = vmul.f32 %v336_v11, %v5738_v8  ;;  %v5750_v23 = vunpack.c.l.bf16 %v278_v13  ;;  %s4921_s15 = sld [smem:[#allocation2 + $0x81]] }
  0x6b   : > { %9101 = vst [vmem:[#allocation17_spill] sm:$0xff] %v5740_v10  ;;  %9102 = vst [vmem:[#allocation18_spill] sm:$0xff] %v5742_v12  ;;  %v347_v22 = vmul.f32 %v344_v18, %v5740_v10  ;;  %v5752_v24 = vunpack.c.l.bf16 %v284_v19  ;;  %v324_v25 = vmul.f32 %v5742_v12, %v323_v0  ;;  %v337_v28 = vmul.f32 %v5747_v20, %v336_v11  ;;  %s4901_s17 = sld [smem:[#allocation7 + $0x8]] }
  0x6c   : > { %v334_v21 = vadd.f32 %v331_v16, %v326_v15  ;;  %9103 = vst [vmem:[#allocation19_spill] sm:$0xff] %v5750_v23  ;;  %v329_v27 = vmul.f32 %v328_v4, %v5750_v23  ;;  %v5760_v34 = vunpack.c.h.bf16 %v5186_v14  ;;  %v5762_v37 = vunpack.c.h.bf16 %v278_v13  ;;  %s5803_s23 = sld [smem:[#allocation2 + $0x82]] }
  0x6d   : > { %v345_v33 = vmul.f32 %v344_v18, %v5752_v24  ;;  %v5764_v38 = vunpack.c.h.bf16 %v284_v19  ;;  %v325_v41 = vmul.f32 %v5757_v31, %v323_v0  ;;  %v9106_v3 = vsel %vm5779_vm4, 4294967295, %v9105_v3  ;;  %s5812_s25 = sld [smem:[#allocation7 + $0x9]] }
  0x6e   : > { %v342_v26 = vadd.f32 %v339_v17, %v334_v21  ;;  %v332_v32 = vadd.f32 %v329_v27, %v324_v25  ;;  %v330_v42 = vmul.f32 %v328_v4, %v5762_v37  ;;  %v338_v43 = vmul.f32 %v5760_v34, %v336_v11  ;;  %9107 = vst [vmem:[#allocation21_spill] sm:$0xff] %v9106_v3  ;;  %s5825_s26 = sld [smem:[#allocation7 + $0xb]] }
  0x6f   : > { %9104 = vst [vmem:[#allocation20_spill] sm:$0xff] %v5764_v38  ;;  %v346_v47 = vmul.f32 %v344_v18, %v5764_v38  ;;  %v302_v4 = vadd.s32 16, %v300_v60  ;;  %v400_v9 = vstv %s5770_s8  ;;  %v414_v13 = vstv %s5772_s9  ;;  %s5827_s6 = sld [smem:[#allocation2 + $0x83]]  ;;  %s9061_s9 = smov 124  }
  0x70   : > { %v350_v30 = vadd.f32 %v347_v22, %v342_v26  ;;  %v340_v36 = vadd.f32 %v337_v28, %v332_v32  ;;  %v333_v46 = vadd.f32 %v330_v42, %v325_v41  ;;  %v428_v18 = vstv %s5776_s11  ;;  %s5842_s8 = sld [smem:[#allocation7 + $0xc]] }
  0x71   : > { %vm310_vm5 = vcmp.lt.s32.totalorder %v302_v4, 18  ;;  %v474_v21 = vstv %s4899_s13  ;;  %v9110_v26 = vmov 0  ;;  %v442_v28 = vstv %s5784_s14  ;;  %s5863_s11 = sld [smem:[#allocation7 + $0xd]] }
  0x72   : > { %v355_v35 = vadd.f32 %v352_v29, %v350_v30  ;;  %v348_v40 = vadd.f32 %v345_v33, %v340_v36  ;;  %v341_v49 = vadd.f32 %v338_v43, %v333_v46  ;;  %vm317_vm7 = vmand %vm310_vm5, %vm314_vm0  ;;  %v495_v32 = vstv %s4900_s30  ;;  %s5868_s13 = sld [smem:[#allocation5 + $0x1]] }
  0x73   : > { %vm5815_vm8 = vmand %vm317_vm7, %vm318_vm2  ;;  %v883_v33 = vstv %s4920_s12  ;;  %v516_v41 = vstv %s4901_s17  ;;  %s5884_s14 = sld [smem:[#allocation7 + $0xe]] }
  0x74   : > { %v358_v39 = vsub.f32 0.0, %v355_v35  ;;  %v353_v45 = vadd.f32 %v352_v29, %v348_v40  ;;  %v349_v51 = vadd.f32 %v346_v47, %v341_v49  ;;  %v9111_v26 = vsel %vm5815_vm8, 4294967295, %v9110_v26  ;;  %s5899_s30 = sld [smem:[#allocation7 + $0x10]] }
  0x75   : > { %9112 = vst [vmem:[#allocation22_spill] sm:$0xff] %v9111_v26  ;;  %v884_v46 = vmul.f32 %v5742_v12, %v883_v33  ;;  %v885_v49 = vmul.f32 %v5757_v31, %v883_v33  ;;  %v5861_v59 = vstv %s5825_s26  ;;  %s4910_s12 = sld [smem:[#allocation7 + $0x11]] }
  0x76   : > { %v363_v44 = vmul.f32 1.442695, %v358_v39  ;;  %v356_v48 = vsub.f32 0.0, %v353_v45  ;;  %v354_v52 = vadd.f32 %v352_v29, %v349_v51  ;;  %s4912_s17 = sld [smem:[#allocation7 + $0x13]] }
  0x77   : > { %s4916_s26 = sld [smem:[#allocation7 + $0x17]] }
  0x78   : > { %5274 = vpow2.f32 %v363_v44  ;;  %v359_v50 = vmul.f32 1.442695, %v356_v48  ;;  %v357_v53 = vsub.f32 0.0, %v354_v52  ;;  %v896_v48 = vstv %s5803_s23  ;;  %s4914_s23 = sld [smem:[#allocation7 + $0x15]] }
  0x79   : > { %v897_v61 = vmul.f32 %v5747_v20, %v896_v48  ;;  %s6841_s0 = sld [smem:[#allocation2 + $0x202]] }
  0x7a   : > { %5276 = vpow2.f32 %v359_v50  ;;  %v361_v54 = vmul.f32 1.442695, %v357_v53  ;;  %s6845_s1 = sld [smem:[#allocation2 + $0x203]] }
  0x7b   : > { %s7241_s2 = sld [smem:[#allocation2 + $0x283]] }
  0x7c   : > { %5278 = vpow2.f32 %v361_v54  ;;  %v537_v54 = vstv %s5812_s25  ;;  %s4915_s25 = sld [smem:[#allocation7 + $0x16]] }
  0x85   : > { %v5275_v55 = vpop.eup %5274 }
  0x86   : > { %v367_v56 = vadd.f32 1.0, %v5275_v55 }
  0x87   : > { %v5277_v57 = vpop.eup %5276 }
  0x88   : > { %5280 = vrcp.f32 %v367_v56  ;;  %v365_v58 = vadd.f32 1.0, %v5277_v57 }
  0x89   : > { %v5279_v62 = vpop.eup %5278 }
  0x8a   : > { %5282 = vrcp.f32 %v365_v58  ;;  %v366_v63 = vadd.f32 1.0, %v5279_v62  ;;  %v886_v62 = vmul.f32 %v883_v33, %v5734_v6 }
  0x8c   : > { %5284 = vrcp.f32 %v366_v63  ;;  %v904_v63 = vstv %s5827_s6  ;;  %s4917_s6 = sld [smem:[#allocation7 + $0x18]] }
  0x95   : > { %v5281_v0 = vpop.eup %5280 }
  0x96   : > { %v373_v1 = vmul.f32 %v5281_v0, %v355_v35  ;;  %v888_v35 = vstv %s4921_s15  ;;  %s4911_s15 = sld [smem:[#allocation7 + $0x12]] }
  0x97   : > { %v5283_v2 = vpop.eup %5282  ;;  %v889_v47 = vmul.f32 %v888_v35, %v5750_v23  ;;  %v890_v50 = vmul.f32 %v888_v35, %v5762_v37 }
  0x98   : > { %381 = vrot.lane.b32.xlu1 %v373_v1, %s9065_s10  ;;  %v371_v5 = vmul.f32 %v5283_v2, %v353_v45  ;;  %v5831_v36 = vsel %vm5815_vm8, %v373_v1, 0.0  ;;  %v898_v1 = vmul.f32 %v5760_v34, %v896_v48  ;;  %v891_v2 = vmul.f32 %v888_v35, %v5736_v7 }
  0x99   : > { %v5285_v16 = vpop.eup %5284  ;;  %v892_v60 = vadd.f32 %v889_v47, %v884_v46  ;;  %v893_v0 = vadd.f32 %v890_v50, %v885_v49  ;;  %v519_v33 = vmul.f32 %v516_v41, %v5831_v36  ;;  %v618_v46 = vstv %s5863_s11  ;;  %s6007_s11 = sld [smem:[#allocation7 + $0x82]] }
  0x9a   : > { %377 = vrot.lane.b32.xlu0 %v371_v5, %s9065_s10  ;;  %v5789_v11 = vsel %vm5779_vm4, %v371_v5, 0.0  ;;  %v372_v19 = vmul.f32 %v5285_v16, %v354_v52  ;;  %v477_v52 = vmul.f32 %v474_v21, %v5831_v36  ;;  %v907_v50 = vmul.f32 %v904_v63, %v5740_v10 }
  0x9b   : > { %v401_v14 = vmul.f32 %v400_v9, %v5789_v11  ;;  %v415_v15 = vmul.f32 %v414_v13, %v5789_v11  ;;  %v429_v25 = vmul.f32 %v428_v18, %v5789_v11  ;;  %v475_v29 = vmul.f32 %v474_v21, %v5789_v11 }
  0x9c   : > { %v5807_v22 = vsel %vm5797_vm6, %v372_v19, 0.0  ;;  %v443_v40 = vmul.f32 %v442_v28, %v5789_v11  ;;  %v496_v44 = vmul.f32 %v495_v32, %v5789_v11  ;;  %v517_v53 = vmul.f32 %v516_v41, %v5789_v11 }
  0x9d   : > { %405 = vrot.lane.b32.xlu1 %v401_v14, %s9063_s16  ;;  %v402_v27 = vmul.f32 %v400_v9, %v5807_v22  ;;  %v5823_v30 = vmul.f32 %v474_v21, %v5807_v22  ;;  %v416_v39 = vmul.f32 %v414_v13, %v5807_v22  ;;  %v481_v42 = vrot.slane %v475_v29, 1 }
  0x9e   : > { %379 = vrot.lane.b32.xlu0 %v372_v19, %s9065_s10  ;;  %v5840_v45 = vmul.f32 %v495_v32, %v5807_v22  ;;  %v430_v51 = vmul.f32 %v428_v18, %v5807_v22  ;;  %v502_v56 = vrot.slane %v496_v44, 1  ;;  %v5858_v58 = vmul.f32 %v516_v41, %v5807_v22 }
  0x9f   : > { %v482_v43 = vrot.slane %v5823_v30, 1  ;;  %v444_v4 = vmul.f32 %v442_v28, %v5807_v22  ;;  %v484_v5 = vrot.slane %v477_v52, 1  ;;  %v498_v9 = vmul.f32 %v495_v32, %v5831_v36 }
  0xa0   : > { %v503_v57 = vrot.slane %v5840_v45, 1  ;;  %v538_v13 = vmul.f32 %v537_v54, %v5789_v11  ;;  %v524_v16 = vrot.slane %v5858_v58, 1  ;;  %v5880_v18 = vmul.f32 %v537_v54, %v5807_v22 }
  0xa1   : > { %419 = vrot.lane.b32.xlu1 %v415_v15, %s9065_s10  ;;  %v483_v55 = vsel %vm463_vm9, %v481_v42, %v482_v43  ;;  %v523_v15 = vrot.slane %v517_v53, 1  ;;  %v597_v19 = vstv %s5842_s8  ;;  %v900_v21 = vadd.f32 %v897_v61, %v892_v60  ;;  %s4929_s8 = sld [smem:[#allocation7 + $0x81]] }
  0xa2   : > { %407 = vrot.lane.b32.xlu0 %v402_v27, %s9063_s16  ;;  %v504_v14 = vsel %vm463_vm9, %v502_v56, %v503_v57  ;;  %v901_v27 = vadd.f32 %v898_v1, %v893_v0  ;;  %v906_v28 = vmul.f32 %v904_v63, %v5764_v38  ;;  %v894_v29 = vadd.f32 %v891_v2, %v886_v62 }
  0xa3   : > { %v899_v30 = vmul.f32 %v896_v48, %v5738_v8  ;;  %v505_v32 = vrot.slane %v498_v9, 1  ;;  %v544_v35 = vrot.slane %v538_v13, 1  ;;  %v525_v42 = vsel %vm463_vm9, %v523_v15, %v524_v16 }
  0xa4   : > { %v545_v44 = vrot.slane %v5880_v18, 1  ;;  %v578_v45 = vmul.f32 %v5861_v59, %v5807_v22  ;;  %v912_v48 = vstv %s5868_s13  ;;  %v909_v41 = vadd.f32 %v906_v28, %v901_v27  ;;  %s6017_s13 = sld [smem:[#allocation7 + $0x83]] }
  0xa5   : > { %433 = vrot.lane.b32.xlu1 %v429_v25, %s9059_s7  ;;  %v905_v25 = vmul.f32 %v904_v63, %v5752_v24  ;;  %v902_v49 = vadd.f32 %v899_v30, %v894_v29  ;;  %v598_v53 = vmul.f32 %v597_v19, %v5789_v11  ;;  %v599_v60 = vmul.f32 %v597_v19, %v5807_v22 }
  0xa6   : > { %421 = vrot.lane.b32.xlu0 %v416_v39, %s9065_s10  ;;  %v577_v39 = vmul.f32 %v5861_v59, %v5789_v11  ;;  %v546_v56 = vsel %vm463_vm9, %v544_v35, %v545_v44  ;;  %v584_v58 = vrot.slane %v578_v45, 2  ;;  %v639_v62 = vstv %s5884_s14  ;;  %s4934_s14 = sld [smem:[#allocation7 + $0x86]] }
  0xa7   : > { %v908_v47 = vadd.f32 %v905_v25, %v900_v21  ;;  %v5913_v63 = vadd.f32 %v912_v48, %v909_v41  ;;  %v910_v0 = vadd.f32 %v907_v50, %v902_v49  ;;  %v604_v1 = vrot.slane %v598_v53, 2 }
  0xa8   : > { %v583_v52 = vrot.slane %v577_v39, 2  ;;  %v619_v2 = vmul.f32 %v618_v46, %v5789_v11  ;;  %v605_v9 = vrot.slane %v599_v60, 2  ;;  %v620_v13 = vmul.f32 %v618_v46, %v5807_v22 }
  0xa9   : > { %447 = vrot.lane.b32.xlu1 %v443_v40, %s9061_s9  ;;  %v485_v40 = vsel %vm463_vm9, %v482_v43, %v484_v5  ;;  %v526_v43 = vrot.slane %v519_v33, 1  ;;  %v5910_v61 = vadd.f32 %v912_v48, %v908_v47  ;;  %v678_v15 = vstv %s5899_s30  ;;  %s4956_s30 = sld [smem:[#allocation2 + $0x100]] }
  0xaa   : > { %435 = vrot.lane.b32.xlu0 %v430_v51, %s9059_s7  ;;  %v540_v51 = vmul.f32 %v537_v54, %v5831_v36  ;;  %v585_v5 = vsel %vm565_vm10, %v583_v52, %v584_v58  ;;  %v917_v18 = vsub.f32 0.0, %v5913_v63  ;;  %v5926_v21 = vadd.f32 %v912_v48, %v910_v0 }
  0xab   : > { %v625_v25 = vrot.slane %v619_v2, 2  ;;  %v640_v27 = vmul.f32 %v639_v62, %v5789_v11  ;;  %v606_v29 = vsel %vm565_vm10, %v604_v1, %v605_v9  ;;  %v626_v30 = vrot.slane %v620_v13, 2 }
  0xac   : > { %v547_v54 = vrot.slane %v540_v51, 1  ;;  %v921_v35 = vmul.f32 1.442695, %v917_v18  ;;  %v918_v39 = vsub.f32 0.0, %v5926_v21  ;;  %v680_v41 = vmul.f32 %v678_v15, %v5807_v22 }
  0xad   : > { %486 = vrot.lane.b32.xlu1 %v483_v55, %s9063_s16  ;;  %v506_v55 = vsel %vm463_vm9, %v503_v57, %v505_v32  ;;  %v579_v57 = vmul.f32 %v5861_v59, %v5831_v36  ;;  %v641_v32 = vmul.f32 %v639_v62, %v5807_v22  ;;  %v627_v45 = vsel %vm565_vm10, %v625_v25, %v626_v30 }
  0xae   : > { %449 = vrot.lane.b32.xlu0 %v444_v4, %s9061_s9  ;;  %v527_v4 = vsel %vm463_vm9, %v524_v16, %v526_v43  ;;  %v600_v16 = vmul.f32 %v597_v19, %v5831_v36  ;;  %v548_v28 = vsel %vm463_vm9, %v545_v44, %v547_v54  ;;  %v679_v44 = vmul.f32 %v678_v15, %v5789_v11 }
  0xaf   : > { %v586_v59 = vrot.slane %v579_v57, 2  ;;  %v646_v47 = vrot.slane %v640_v27, 2  ;;  %v647_v48 = vrot.slane %v641_v32, 2  ;;  %v699_v49 = vstv %s4910_s12  ;;  %s4957_s12 = sld [smem:[#allocation2 + $0x101]] }
  0xb0   : > { %v607_v19 = vrot.slane %v600_v16, 2  ;;  %v720_v50 = vstv %s4911_s15  ;;  %v923_v43 = vmul.f32 1.442695, %v918_v39  ;;  %v642_v52 = vmul.f32 %v639_v62, %v5831_v36  ;;  %s6027_s15 = sld [smem:[#allocation7 + $0x84]] }
  0xb1   : > { %507 = vrot.lane.b32.xlu1 %v504_v14, %s9065_s10  ;;  %v916_v14 = vsub.f32 0.0, %v5910_v61  ;;  %v685_v53 = vrot.slane %v679_v44, 3  ;;  %v701_v60 = vmul.f32 %v699_v49, %v5807_v22  ;;  %v681_v57 = vmul.f32 %v678_v15, %v5831_v36 }
  0xb2   : > { %488 = vrot.lane.b32.xlu0 %v485_v40, %s9063_s16  ;;  %v587_v40 = vsel %vm565_vm10, %v584_v58, %v586_v59  ;;  %v608_v51 = vsel %vm565_vm10, %v605_v9, %v607_v19  ;;  %v700_v58 = vmul.f32 %v699_v49, %v5789_v11  ;;  %v649_v54 = vrot.slane %v642_v52, 2 }
  0xb3   : > { %v919_v33 = vmul.f32 1.442695, %v916_v14  ;;  %v721_v62 = vmul.f32 %v720_v50, %v5789_v11  ;;  %v741_v9 = vstv %s4912_s17  ;;  %v780_v13 = vstv %s4914_s23  ;;  %s4935_s17 = sld [smem:[#allocation7 + $0x87]] }
  0xb4   : > { %v706_v2 = vrot.slane %v700_v58, 3  ;;  %v650_v14 = vsel %vm565_vm10, %v647_v48, %v649_v54  ;;  %v688_v18 = vrot.slane %v681_v57, 3  ;;  %v702_v15 = vmul.f32 %v699_v49, %v5831_v36  ;;  %s4958_s23 = sld [smem:[#allocation2 + $0x102]] }
  0xb5   : > { %528 = vrot.lane.b32.xlu1 %v525_v42, %s9059_s7  ;;  %v621_v42 = vmul.f32 %v618_v46, %v5831_v36  ;;  %5286 = vpow2.f32 %v919_v33  ;;  %v727_v59 = vrot.slane %v721_v62, 3  ;;  %v742_v27 = vmul.f32 %v741_v9, %v5789_v11 }
  0xb6   : > { %509 = vrot.lane.b32.xlu0 %v506_v55, %s9065_s10  ;;  %5288 = vpow2.f32 %v921_v35  ;;  %v648_v55 = vsel %vm565_vm10, %v646_v47, %v647_v48  ;;  %v709_v35 = vrot.slane %v702_v15, 3  ;;  %v781_v39 = vmul.f32 %v780_v13, %v5789_v11 }
  0xb7   : > { %v628_v46 = vrot.slane %v621_v42, 2  ;;  %5290 = vpow2.f32 %v923_v43  ;;  %v748_v42 = vrot.slane %v742_v27, 3  ;;  %v744_v48 = vmul.f32 %v741_v9, %v5831_v36 }
  0xb8   : > { %v787_v52 = vrot.slane %v781_v39, 4 }
  0xb9   : > { %549 = vrot.lane.b32.xlu1 %v546_v56, %s9061_s9  ;;  %v686_v56 = vrot.slane %v680_v41, 3  ;;  %v629_v0 = vsel %vm565_vm10, %v626_v30, %v628_v46  ;;  %v723_v30 = vmul.f32 %v720_v50, %v5831_v36 }
  0xba   : > { %530 = vrot.lane.b32.xlu0 %v527_v4, %s9059_s7  ;;  %v707_v4 = vrot.slane %v701_v60, 3  ;;  %v751_v60 = vrot.slane %v744_v48, 3 }
  0xbb   : > { %v687_v1 = vsel %vm667_vm11, %v685_v53, %v686_v56  ;;  %v689_v33 = vsel %vm667_vm11, %v686_v56, %v688_v18  ;;  %v730_v47 = vrot.slane %v723_v30, 3  ;;  %v822_v56 = vstv %s4916_s26  ;;  %s4937_s26 = sld [smem:[#allocation7 + $0x89]] }
  0xbc   : > { %v708_v16 = vsel %vm667_vm11, %v706_v2, %v707_v4  ;;  %v710_v49 = vsel %vm667_vm11, %v707_v4, %v709_v35  ;;  %v823_v2 = vmul.f32 %v822_v56, %v5789_v11  ;;  %v824_v4 = vmul.f32 %v822_v56, %v5807_v22 }
  0xbd   : > { %588 = vrot.lane.b32.xlu1 %v585_v5, %s9063_s16  ;;  %v722_v5 = vmul.f32 %v720_v50, %v5807_v22  ;;  %v825_v30 = vmul.f32 %v822_v56, %v5831_v36 }
  0xbe   : > { %551 = vrot.lane.b32.xlu0 %v548_v28, %s9061_s9  ;;  %v743_v28 = vmul.f32 %v741_v9, %v5807_v22  ;;  %v829_v15 = vrot.slane %v823_v2, 4 }
  0xbf   : > { %v728_v25 = vrot.slane %v722_v5, 3  ;;  %v843_v5 = vstv %s4917_s6  ;;  %s4959_s6 = sld [smem:[#allocation2 + $0x103]] }
  0xc0   : > { %v749_v44 = vrot.slane %v743_v28, 3 }
  0xc1   : > { %609 = vrot.lane.b32.xlu1 %v606_v29, %s9065_s10  ;;  %v729_v19 = vsel %vm667_vm11, %v727_v59, %v728_v25  ;;  %v731_v58 = vsel %vm667_vm11, %v728_v25, %v730_v47  ;;  %v830_v59 = vrot.slane %v824_v4, 4  ;;  %v845_v25 = vmul.f32 %v843_v5, %v5807_v22 }
  0xc2   : > { %590 = vrot.lane.b32.xlu0 %v587_v40, %s9063_s16  ;;  %v5287_v29 = vpop.eup %5286  ;;  %v801_v40 = vstv %s4915_s25  ;;  %v750_v46 = vsel %vm667_vm11, %v748_v42, %v749_v44  ;;  %v846_v42 = vmul.f32 %v843_v5, %v5831_v36  ;;  %s4936_s25 = sld [smem:[#allocation7 + $0x88]]  ;;  %v1052_v4 = vstv %s4935_s17 }
  0xc3   : > { %v5289_v32 = vpop.eup %5288  ;;  %v802_v50 = vmul.f32 %v801_v40, %v5789_v11  ;;  %v803_v43 = vmul.f32 %v801_v40, %v5807_v22  ;;  %v804_v18 = vmul.f32 %v801_v40, %v5831_v36  ;;  %v832_v40 = vrot.slane %v825_v30, 4  ;;  %s6104_s17 = sld [smem:[#allocation7 + $0x8e]] }
  0xc4   : > { %v5291_v41 = vpop.eup %5290 }
  0xc5   : > { %630 = vrot.lane.b32.xlu1 %v627_v45, %s9059_s7  ;;  %v782_v45 = vmul.f32 %v780_v13, %v5807_v22  ;;  %v808_v54 = vrot.slane %v802_v50, 4  ;;  %v809_v57 = vrot.slane %v803_v43, 4  ;;  %v927_v62 = vadd.f32 1.0, %v5291_v41 }
  0xc6   : > { %611 = vrot.lane.b32.xlu0 %v608_v51, %s9065_s10  ;;  %v925_v51 = vadd.f32 1.0, %v5287_v29  ;;  %v811_v28 = vrot.slane %v804_v18, 4  ;;  %v831_v29 = vsel %vm769_vm12, %v829_v15, %v830_v59  ;;  %v833_v48 = vsel %vm769_vm12, %v830_v59, %v832_v40 }
  0xc7   : > { %v788_v53 = vrot.slane %v782_v45, 4  ;;  %v853_v41 = vrot.slane %v846_v42, 4 }
  0xc8   : > { %5292 = vrcp.f32 %v925_v51  ;;  %v812_v39 = vsel %vm769_vm12, %v809_v57, %v811_v28  ;;  %v958_v51 = vstv %s4929_s8  ;;  %s6049_s8 = sld [smem:[#allocation7 + $0x8b]]  ;;  %v1073_v59 = vstv %s4936_s25 }
  0xc9   : > { %651 = vrot.lane.b32.xlu1 %v648_v55, %s9061_s9  ;;  %v926_v55 = vadd.f32 1.0, %v5289_v32  ;;  %s6129_s25 = sld [smem:[#allocation7 + $0x90]] }
  0xca   : > { %632 = vrot.lane.b32.xlu0 %v629_v0, %s9059_s7  ;;  %v783_v0 = vmul.f32 %v780_v13, %v5831_v36  ;;  %v752_v13 = vsel %vm667_vm11, %v749_v44, %v751_v60 }
  0xcb   : > { %5294 = vrcp.f32 %v926_v55  ;;  %v986_v55 = vstv %s6017_s13  ;;  %s9058_s13 = sand.u32 1, %s5558_s19  }
  0xcc   : > { %v790_v9 = vrot.slane %v783_v0, 4  ;;  %5296 = vrcp.f32 %v927_v62  ;;  %v1000_v62 = vstv %s6027_s15  ;;  %s6099_s15 = sld [smem:[#allocation7]] }
  0xcd   : > { %690 = vrot.lane.b32.xlu1 %v687_v1, %s9063_s16  ;;  %v789_v1 = vsel %vm769_vm12, %v787_v52, %v788_v53 }
  0xce   : > { %653 = vrot.lane.b32.xlu0 %v650_v14, %s9061_s9  ;;  %v810_v14 = vsel %vm769_vm12, %v808_v54, %v809_v57  ;;  %v791_v27 = vsel %vm769_vm12, %v788_v53, %v790_v9  ;;  %v6042_v54 = vstv %s4956_s30  ;;  %v6044_v57 = vstv %s4957_s12  ;;  %s6085_s30 = sld [smem:[#allocation5 + $0x2]]  ;;  %s4889_s12 = sshll.u32 %s9058_s13, 8 }
  0xcf   : > { %v1443_v9 = vmul.f32 %v6044_v57, %v5750_v23  ;;  %s6359_s13 = sld [smem:[#allocation2 + $0x180]] }
  0xd1   : > { %711 = vrot.lane.b32.xlu1 %v708_v16, %s9065_s10  ;;  %v844_v16 = vmul.f32 %v843_v5, %v5789_v11  ;;  %v1438_v5 = vmul.f32 %v5742_v12, %v6042_v54 }
  0xd2   : > { %692 = vrot.lane.b32.xlu0 %v689_v33, %s9063_s16  ;;  %v851_v33 = vrot.slane %v845_v25, 4 }
  0xd3   : > { %v850_v32 = vrot.slane %v844_v16, 4 }
  0xd4   : > { %v854_v43 = vsel %vm769_vm12, %v851_v33, %v853_v41 }
  0xd5   : > { %732 = vrot.lane.b32.xlu1 %v729_v19, %s9059_s7  ;;  %v5293_v35 = vpop.eup %5292  ;;  %v852_v19 = vsel %vm769_vm12, %v850_v32, %v851_v33  ;;  %v1446_v33 = vadd.f32 %v1443_v9, %v1438_v5 }
  0xd6   : > { %713 = vrot.lane.b32.xlu0 %v710_v49, %s9065_s10  ;;  %v931_v45 = vmul.f32 %v5293_v35, %v5910_v61  ;;  %v6069_v35 = vstv %s4959_s6  ;;  %s6162_s6 = sld [smem:[#allocation7 + $0x91]] }
  0xd8   : > { %v5295_v44 = vpop.eup %5294 }
  0xd9   : > { %753 = vrot.lane.b32.xlu1 %v750_v46, %s9061_s9  ;;  %v5297_v47 = vpop.eup %5296  ;;  %v932_v49 = vmul.f32 %v5295_v44, %v5913_v63  ;;  %v972_v46 = vstv %s6007_s11  ;;  %s6064_s11 = sld [smem:[#allocation7 + $0x8c]]  ;;  %v1444_v44 = vmul.f32 %v6044_v57, %v5762_v37 }
  0xda   : > { %734 = vrot.lane.b32.xlu0 %v731_v58, %s9059_s7  ;;  %v933_v50 = vmul.f32 %v5297_v47, %v5926_v21  ;;  %v6024_v21 = vsel %vm5779_vm4, %v931_v45, 0.0  ;;  %v1031_v58 = vstv %s4934_s14  ;;  %s6082_s14 = sld [smem:[#allocation7 + $0x8d]] }
  0xdb   : > { %v6015_v61 = vsel %vm5797_vm6, %v932_v49, 0.0  ;;  %v959_v52 = vmul.f32 %v958_v51, %v6024_v21  ;;  %v973_v60 = vmul.f32 %v972_v46, %v6024_v21  ;;  %v1032_v15 = vmul.f32 %v1031_v58, %v6024_v21 }
  0xdc   : > { %v960_v63 = vmul.f32 %v958_v51, %v6015_v61  ;;  %v974_v53 = vmul.f32 %v972_v46, %v6015_v61  ;;  %v6036_v56 = vsel %vm5815_vm8, %v933_v50, 0.0  ;;  %v988_v0 = vmul.f32 %v986_v55, %v6015_v61 }
  0xdd   : > { %792 = vrot.lane.b32.xlu1 %v789_v1, %s9063_s16  ;;  %v1033_v1 = vmul.f32 %v1031_v58, %v6015_v61  ;;  %v1034_v2 = vmul.f32 %v1031_v58, %v6036_v56  ;;  %v1002_v18 = vmul.f32 %v1000_v62, %v6015_v61  ;;  %v1055_v28 = vmul.f32 %v1052_v4, %v6036_v56 }
  0xde   : > { %755 = vrot.lane.b32.xlu0 %v752_v13, %s9061_s9  ;;  %v6055_v13 = vstv %s4958_s23  ;;  %v1053_v32 = vmul.f32 %v1052_v4, %v6024_v21  ;;  %v1001_v40 = vmul.f32 %v1000_v62, %v6024_v21  ;;  %v1075_v42 = vmul.f32 %v1073_v59, %v6015_v61  ;;  %s6112_s23 = scalar_lea.vmem [#allocation10], %s4889_s12  ;;  %s6218_s12 = sld [smem:[#allocation7 + $0x96]] }
  0xdf   : > { %v1039_v16 = vrot.slane %v1033_v1, 1  ;;  %v1041_v25 = vrot.slane %v1034_v2, 1  ;;  %v1451_v30 = vmul.f32 %v5747_v20, %v6055_v13  ;;  %v1076_v41 = vmul.f32 %v1073_v59, %v6036_v56 }
  0xe0   : > { %v1153_v2 = vstv %s6064_s11  ;;  %s6185_s11 = sld [smem:[#allocation7 + $0x93]] }
  0xe1   : > { %813 = vrot.lane.b32.xlu1 %v810_v14, %s9065_s10  ;;  %v987_v14 = vmul.f32 %v986_v55, %v6024_v21  ;;  %v1452_v55 = vmul.f32 %v5760_v34, %v6055_v13  ;;  %v1454_v62 = vadd.f32 %v1451_v30, %v1446_v33  ;;  %v6124_v33 = vstv %s6085_s30  ;;  %s6213_s30 = sld [smem:[#allocation7 + $0x95]] }
  0xe2   : > { %794 = vrot.lane.b32.xlu0 %v791_v27, %s9063_s16  ;;  %v1054_v27 = vmul.f32 %v1052_v4, %v6015_v61 }
  0xe4   : > { %v1060_v47 = vrot.slane %v1054_v27, 1 }
  0xe5   : > { %834 = vrot.lane.b32.xlu1 %v831_v29, %s9059_s7  ;;  %v1094_v29 = vstv %s4937_s26  ;;  %s6143_s26 = sld [smem:[#allocation7 + $0x5]] }
  0xe6   : > { %815 = vrot.lane.b32.xlu0 %v812_v39, %s9065_s10  ;;  %v1439_v39 = vmul.f32 %v5757_v31, %v6042_v54  ;;  %v1096_v51 = vmul.f32 %v1094_v29, %v6015_v61  ;;  %v1095_v1 = vmul.f32 %v1094_v29, %v6024_v21 }
  0xe9   : > { %855 = vrot.lane.b32.xlu1 %v852_v19, %s9061_s9  ;;  %v1038_v19 = vrot.slane %v1032_v15, 1  ;;  %v1102_v15 = vrot.slane %v1096_v51, 1 }
  0xea   : > { %836 = vrot.lane.b32.xlu0 %v833_v48, %s9059_s7  ;;  %v1062_v48 = vrot.slane %v1055_v28, 1 }
  0xeb   : > { %v1040_v46 = vsel %vm463_vm9, %v1038_v19, %v1039_v16  ;;  %v1101_v19 = vrot.slane %v1095_v1, 1 }
  0xec   : > { %v1063_v58 = vsel %vm463_vm9, %v1060_v47, %v1062_v48 }
  0xed   : > { %937 = vrot.lane.b32.xlu1 %v931_v45, %s9065_s10  ;;  %v1042_v45 = vsel %vm463_vm9, %v1039_v16, %v1041_v25  ;;  %v1440_v16 = vmul.f32 %v6042_v54, %v5734_v6  ;;  %v1445_v25 = vmul.f32 %v6044_v57, %v5736_v7  ;;  %v1155_v54 = vmul.f32 %v1153_v2, %v6015_v61 }
  0xee   : > { %857 = vrot.lane.b32.xlu0 %v854_v43, %s9061_s9  ;;  %v1074_v43 = vmul.f32 %v1073_v59, %v6024_v21 }
  0xf0   : > { %v1080_v9 = vrot.slane %v1074_v43, 1  ;;  %v396_v43 = vstv %s6099_s15  ;;  %s6236_s15 = sld [smem:[#allocation7 + $0x97]] }
  0xf1   : > { %941 = vrot.lane.b32.xlu1 %v933_v50, %s9065_s10  ;;  %v1059_v50 = vrot.slane %v1053_v32, 1  ;;  %v1174_v32 = vstv %s6082_s14  ;;  %s6201_s14 = sld [smem:[#allocation7 + $0xa]] }
  0xf2   : > { %939 = vrot.lane.b32.xlu0 %v932_v49, %s9065_s10  ;;  %v1132_v49 = vstv %s6049_s8  ;;  %s6169_s8 = sld [smem:[#allocation7 + $0x92]] }
  0xf3   : > { %v1061_v4 = vsel %vm463_vm9, %v1059_v50, %v1060_v47  ;;  %v1453_v47 = vmul.f32 %v6055_v13, %v5738_v8  ;;  %v1154_v13 = vmul.f32 %v1153_v2, %v6024_v21 }
  0xf5   : > { %965 = vrot.lane.b32.xlu1 %v960_v63, %s9063_s16  ;;  %v1459_v63 = vmul.f32 %v6069_v35, %v5752_v24 }
  0xf6   : > { %963 = vrot.lane.b32.xlu0 %v959_v52, %s9063_s16  ;;  %v1081_v52 = vrot.slane %v1075_v42, 1  ;;  %v1133_v42 = vmul.f32 %v1132_v49, %v6024_v21 }
  0xf7   : > { %v1462_v30 = vadd.f32 %v1459_v63, %v1454_v62  ;;  %v1195_v63 = vstv %s6104_s17  ;;  %s6263_s17 = sld [smem:[#allocation7 + $0xf]] }
  0xf9   : > { %979 = vrot.lane.b32.xlu1 %v974_v53, %s9065_s10  ;;  %v1447_v53 = vadd.f32 %v1444_v44, %v1439_v39  ;;  %v6140_v50 = vadd.f32 %v6124_v33, %v1462_v30 }
  0xfa   : > { %977 = vrot.lane.b32.xlu0 %v973_v60, %s9065_s10  ;;  %v1083_v60 = vrot.slane %v1076_v41, 1 }
  0xfb   : > { %v1455_v59 = vadd.f32 %v1452_v55, %v1447_v53  ;;  %v1176_v53 = vmul.f32 %v1174_v32, %v6015_v61  ;;  %v1161_v55 = vrot.slane %v1155_v54, 2 }
  0xfc   : > { %v1084_v27 = vsel %vm463_vm9, %v1081_v52, %v1083_v60 }
  0xfd   : > { %993 = vrot.lane.b32.xlu1 %v988_v0, %s9059_s7  ;;  %v1097_v0 = vmul.f32 %v1094_v29, %v6036_v56  ;;  %v1135_v29 = vmul.f32 %v1132_v49, %v6036_v56  ;;  %v1182_v30 = vrot.slane %v1176_v53, 2 }
  0xfe   : > { %991 = vrot.lane.b32.xlu0 %v987_v14, %s9059_s7  ;;  %v1134_v14 = vmul.f32 %v1132_v49, %v6015_v61  ;;  %v1156_v49 = vmul.f32 %v1153_v2, %v6036_v56  ;;  %v1177_v2 = vmul.f32 %v1174_v32, %v6036_v56 }
  0xff   : > { %v1104_v28 = vrot.slane %v1097_v0, 1  ;;  %v1142_v41 = vrot.slane %v1135_v29, 2  ;;  %v1461_v0 = vmul.f32 %v6069_v35, %v5740_v10 }
 0x100   : > { %v1140_v57 = vrot.slane %v1134_v14, 2  ;;  %v1163_v1 = vrot.slane %v1156_v49, 2 }
 0x101   : > { %1007 = vrot.lane.b32.xlu1 %v1002_v18, %s9061_s9  ;;  %v1460_v18 = vmul.f32 %v6069_v35, %v5764_v38  ;;  %v1105_v48 = vsel %vm463_vm9, %v1102_v15, %v1104_v28  ;;  %v1175_v35 = vmul.f32 %v1174_v32, %v6024_v21 }
 0x102   : > { %1005 = vrot.lane.b32.xlu0 %v1001_v40, %s9061_s9  ;;  %v1082_v40 = vsel %vm463_vm9, %v1080_v9, %v1081_v52  ;;  %v1139_v52 = vrot.slane %v1133_v42, 2  ;;  %v1143_v62 = vsel %vm565_vm10, %v1140_v57, %v1142_v41  ;;  %v397_v9 = vmul.f32 %v396_v43, %v5789_v11 }
 0x103   : > { %v1463_v44 = vadd.f32 %v1460_v18, %v1455_v59  ;;  %v1233_v59 = vstv %s6129_s25  ;;  %v1164_v29 = vsel %vm565_vm10, %v1161_v55, %v1163_v1  ;;  %v456_v42 = vstv %s6143_s26  ;;  %s6272_s25 = sld [smem:[#allocation7 + $0x98]] }
 0x104   : > { %v1141_v18 = vsel %vm565_vm10, %v1139_v52, %v1140_v57  ;;  %v1181_v57 = vrot.slane %v1175_v35, 2  ;;  %v1236_v52 = vmul.f32 %v1233_v59, %v6036_v56  ;;  %v1275_v1 = vstv %s6169_s8  ;;  %s6310_s26 = sld [smem:[#allocation7 + $0x14]] }
 0x105   : > { %1045 = vrot.lane.b32.xlu1 %v1042_v45, %s9063_s16  ;;  %v1448_v45 = vadd.f32 %v1445_v25, %v1440_v16  ;;  %v1197_v16 = vmul.f32 %v1195_v63, %v6015_v61  ;;  %v1198_v25 = vmul.f32 %v1195_v63, %v6036_v56  ;;  %s6320_s8 = sld [smem:[#allocation7 + $0x102]] }
 0x106   : > { %1043 = vrot.lane.b32.xlu0 %v1040_v46, %s9063_s16  ;;  %v1103_v46 = vsel %vm463_vm9, %v1101_v19, %v1102_v15  ;;  %v1160_v15 = vrot.slane %v1154_v13, 2 }
 0x107   : > { %v1456_v60 = vadd.f32 %v1453_v47, %v1448_v45  ;;  %v6183_v45 = vmul.f32 %v1233_v59, %v6015_v61  ;;  %v1203_v47 = vrot.slane %v1197_v16, 2 }
 0x108   : > { %v1162_v54 = vsel %vm565_vm10, %v1160_v15, %v1161_v55  ;;  %v457_v55 = vmul.f32 %v456_v42, %v5789_v11 }
 0x109   : > { %1066 = vrot.lane.b32.xlu1 %v1063_v58, %s9065_s10  ;;  %v6152_v58 = vadd.f32 %v6124_v33, %v1463_v44  ;;  %v1464_v28 = vadd.f32 %v1461_v0, %v1456_v60  ;;  %v1196_v44 = vmul.f32 %v1195_v63, %v6024_v21  ;;  %v6198_v60 = vmul.f32 %v456_v42, %v5807_v22 }
 0x10a   : > { %v382_v5 = vpop.permute.xlu1 %381  ;;  %1064 = vrot.lane.b32.xlu0 %v1061_v4, %s9065_s10  ;;  %v1470_v4 = vsub.f32 0.0, %v6140_v50  ;;  %v1254_v0 = vstv %s6162_s6  ;;  %v464_v16 = vrot.slane %v457_v55, 1  ;;  %v6234_v55 = vstv %s6201_s14  ;;  %s6317_s6 = sld [smem:[#allocation7 + $0x101]] }
 0x10b   : > { %391 = vst.msk [vmem:[%s6112_s23 + $0xe] sm:$0x3] %vm390_vm13, %v382_v5  ;;  %v6190_v49 = vadd.f32 %v6124_v33, %v1464_v28  ;;  %v1183_v33 = vsel %vm565_vm10, %v1181_v57, %v1182_v30  ;;  %v1256_v15 = vmul.f32 %v1254_v0, %v6015_v61  ;;  %v1257_v35 = vmul.f32 %v1254_v0, %v6036_v56  ;;  %s6328_s14 = sld [smem:[#allocation7 + $0x104]] }
 0x10c   : > { %v378_v39 = vpop.permute.xlu0 %377  ;;  %v398_v28 = vmul.f32 %v396_v43, %v5807_v22 }
 0x10d   : > { %387 = vst.msk [vmem:[%s6112_s23 - $0x2] sm:$0xfc] %vm386_vm14, %v378_v39  ;;  %1087 = vrot.lane.b32.xlu1 %v1084_v27, %s9059_s7  ;;  %v1471_v27 = vsub.f32 0.0, %v6152_v58  ;;  %v1184_v39 = vrot.slane %v1177_v2, 2  ;;  %v1262_v43 = vrot.slane %v1256_v15, 3  ;;  %v559_v15 = vmul.f32 %v6234_v55, %v5789_v11 }
 0x10e   : > { %1085 = vrot.lane.b32.xlu0 %v1082_v40, %s9059_s7  ;;  %v1473_v40 = vmul.f32 1.442695, %v1470_v4  ;;  %v1241_v4 = vrot.slane %v6183_v45, 3 }
 0x10f   : > { %v406_v51 = vpop.permute.xlu1 %405  ;;  %v1475_v41 = vmul.f32 1.442695, %v1471_v27  ;;  %v1185_v63 = vsel %vm565_vm10, %v1182_v30, %v1184_v39  ;;  %v1296_v30 = vstv %s6185_s11  ;;  %s6322_s11 = sld [smem:[#allocation7 + $0x103]] }
 0x110   : > { %v380_v5 = vpop.permute.xlu0 %379  ;;  %5298 = vpow2.f32 %v1473_v40  ;;  %v1277_v40 = vmul.f32 %v1275_v1, %v6015_v61 }
 0x111   : > { %1108 = vrot.lane.b32.xlu1 %v1105_v48, %s9061_s9  ;;  %389 = vst.msk [vmem:[%s6112_s23 + $0x6] sm:$0xff] %vm388_vm15, %v380_v5  ;;  %v1205_v48 = vrot.slane %v1198_v25, 2  ;;  %5300 = vpow2.f32 %v1475_v41  ;;  %v1472_v5 = vsub.f32 0.0, %v6190_v49  ;;  %v465_v25 = vrot.slane %v6198_v60, 1 }
 0x112   : > { %1106 = vrot.lane.b32.xlu0 %v1103_v46, %s9061_s9  ;;  %v411_v46 = vadd.f32 %v406_v51, %v397_v9  ;;  %v1234_v51 = vmul.f32 %v1233_v59, %v6024_v21 }
 0x113   : > { %v420_v14 = vpop.permute.xlu1 %419  ;;  %v1206_v2 = vsel %vm565_vm10, %v1203_v47, %v1205_v48  ;;  %v1477_v57 = vmul.f32 1.442695, %v1472_v5  ;;  %v1264_v48 = vrot.slane %v1257_v35, 3  ;;  %v1334_v35 = vstv %s6213_s30  ;;  %s6332_s30 = sld [smem:[#allocation7 + $0x106]] }
 0x114   : > { %v6177_v32 = vpop.permute.xlu0 %407  ;;  %v425_v9 = vadd.f32 %v420_v14, %v411_v46  ;;  %v1255_v14 = vmul.f32 %v1254_v0, %v6024_v21  ;;  %v466_v46 = vsel %vm463_vm9, %v464_v16, %v465_v25  ;;  %v1276_v0 = vmul.f32 %v1275_v1, %v6024_v21 }
 0x115   : > { %1146 = vrot.lane.b32.xlu1 %v1143_v62, %s9063_s16  ;;  %v1202_v62 = vrot.slane %v1196_v44, 2  ;;  %5302 = vpow2.f32 %v1477_v57  ;;  %v1355_v16 = vstv %s6218_s12  ;;  %s6334_s12 = sld [smem:[#allocation7 + $0x107]] }
 0x116   : > { %1144 = vrot.lane.b32.xlu0 %v1141_v18, %s9063_s16  ;;  %v1243_v18 = vrot.slane %v1236_v52, 3  ;;  %v1261_v60 = vrot.slane %v1255_v14, 3 }
 0x117   : > { %v434_v19 = vpop.permute.xlu1 %433  ;;  %v1204_v39 = vsel %vm565_vm10, %v1202_v62, %v1203_v47  ;;  %v1299_v62 = vmul.f32 %v1296_v30, %v6036_v56 }
 0x118   : > { %v6194_v13 = vpop.permute.xlu0 %421  ;;  %v439_v44 = vadd.f32 %v434_v19, %v425_v9  ;;  %v1244_v45 = vsel %vm667_vm11, %v1241_v4, %v1243_v18  ;;  %v6240_v19 = vmul.f32 %v1296_v30, %v6015_v61 }
 0x119   : > { %1167 = vrot.lane.b32.xlu1 %v1164_v29, %s9065_s10  ;;  %v1240_v29 = vrot.slane %v1234_v51, 3  ;;  %v412_v51 = vadd.f32 %v6177_v32, %v398_v28  ;;  %v1297_v32 = vmul.f32 %v1296_v30, %v6024_v21 }
 0x11a   : > { %1165 = vrot.lane.b32.xlu0 %v1162_v54, %s9065_s10  ;;  %v1278_v54 = vmul.f32 %v1275_v1, %v6036_v56  ;;  %v1265_v1 = vsel %vm667_vm11, %v1262_v43, %v1264_v48 }
 0x11b   : > { %v448_v53 = vpop.permute.xlu1 %447  ;;  %v426_v14 = vadd.f32 %v6194_v13, %v412_v51  ;;  %v1336_v13 = vmul.f32 %v1334_v35, %v6015_v61  ;;  %v1358_v51 = vmul.f32 %v1355_v16, %v6036_v56 }
 0x11c   : > { %v436_v59 = vpop.permute.xlu0 %435  ;;  %v453_v47 = vadd.f32 %v448_v53, %v439_v44  ;;  %v1242_v53 = vsel %vm667_vm11, %v1240_v29, %v1241_v4  ;;  %v1263_v4 = vsel %vm667_vm11, %v1261_v60, %v1262_v43  ;;  %v1304_v29 = vrot.slane %v6240_v19, 3 }
 0x11d   : > { %1188 = vrot.lane.b32.xlu1 %v1185_v63, %s9059_s7  ;;  %v459_v63 = vmul.f32 %v456_v42, %v5831_v36  ;;  %v1285_v42 = vrot.slane %v1278_v54, 3  ;;  %v1306_v54 = vrot.slane %v1299_v62, 3  ;;  %v440_v44 = vadd.f32 %v436_v59, %v426_v14 }
 0x11e   : > { %1186 = vrot.lane.b32.xlu0 %v1183_v33, %s9059_s7  ;;  %v1283_v33 = vrot.slane %v1277_v40, 3  ;;  %v1282_v40 = vrot.slane %v1276_v0, 3  ;;  %v1376_v60 = vstv %s6236_s15  ;;  %v1357_v62 = vmul.f32 %v1355_v16, %v6015_v61  ;;  %s6337_s15 = sld [smem:[#allocation7 + $0x108]] }
 0x11f   : > { %v6216_v27 = vpop.permute.xlu1 %486  ;;  %v467_v5 = vrot.slane %v459_v63, 1  ;;  %v6268_v63 = vmul.f32 %v6234_v55, %v5807_v22 }
 0x120   : > { %v450_v41 = vpop.permute.xlu0 %449  ;;  %v1286_v28 = vsel %vm667_vm11, %v1283_v33, %v1285_v42  ;;  %v1284_v19 = vsel %vm667_vm11, %v1282_v40, %v1283_v33  ;;  %v1303_v42 = vrot.slane %v1297_v32, 3  ;;  %v1356_v32 = vmul.f32 %v1355_v16, %v6024_v21 }
 0x121   : > { %1209 = vrot.lane.b32.xlu1 %v1206_v2, %s9061_s9  ;;  %v5299_v2 = vpop.eup %5298  ;;  %v468_v48 = vsel %vm463_vm9, %v465_v25, %v467_v5  ;;  %v454_v59 = vadd.f32 %v450_v41, %v440_v44  ;;  %v1307_v25 = vsel %vm667_vm11, %v1304_v29, %v1306_v54  ;;  %v567_v33 = vrot.slane %v6268_v63, 2 }
 0x122   : > { %1207 = vrot.lane.b32.xlu0 %v1204_v39, %s9061_s9  ;;  %v471_v39 = vadd.f32 %v466_v46, %v453_v47  ;;  %v5301_v57 = vpop.eup %5300  ;;  %v1479_v30 = vadd.f32 1.0, %v5299_v2  ;;  %v1335_v47 = vmul.f32 %v1334_v35, %v6024_v21  ;;  %v1342_v2 = vrot.slane %v1336_v13, 4 }
 0x123   : > { %v508_v52 = vpop.permute.xlu1 %507  ;;  %v5303_v54 = vpop.eup %5302  ;;  %v1305_v44 = vsel %vm667_vm11, %v1303_v42, %v1304_v29  ;;  %v1397_v63 = vstv %s6272_s25  ;;  %s6353_s25 = sld [smem:[#allocation7 + $0x109]] }
 0x124   : > { %v6248_v9 = vpop.permute.xlu0 %488  ;;  %v492_v0 = vadd.f32 %v6216_v27, %v471_v39  ;;  %5304 = vrcp.f32 %v1479_v30  ;;  %v566_v27 = vrot.slane %v559_v15, 2  ;;  %v1341_v14 = vrot.slane %v1335_v47, 4 }
 0x125   : > { %1247 = vrot.lane.b32.xlu1 %v1244_v45, %s9063_s16  ;;  %v1337_v45 = vmul.f32 %v1334_v35, %v6036_v56  ;;  %v472_v39 = vadd.f32 %v468_v48, %v454_v59  ;;  %v1379_v15 = vmul.f32 %v1376_v60, %v6036_v56  ;;  %v6293_v48 = vstv %s6263_s17  ;;  %s6345_s17 = sld [smem:[#allocation8]] }
 0x126   : > { %1245 = vrot.lane.b32.xlu0 %v1242_v53, %s9063_s16  ;;  %v1480_v53 = vadd.f32 1.0, %v5301_v57  ;;  %v568_v13 = vsel %vm565_vm10, %v566_v27, %v567_v33  ;;  %v1343_v59 = vsel %vm769_vm12, %v1341_v14, %v1342_v2  ;;  %v661_v27 = vmul.f32 %v6293_v48, %v5789_v11 }
 0x127   : > { %v529_v18 = vpop.permute.xlu1 %528  ;;  %v1344_v5 = vrot.slane %v1337_v45, 4  ;;  %v561_v45 = vmul.f32 %v6234_v55, %v5831_v36  ;;  %v493_v47 = vadd.f32 %v6248_v9, %v472_v39  ;;  %v1386_v42 = vrot.slane %v1379_v15, 4 }
 0x128   : > { %v510_v43 = vpop.permute.xlu0 %509  ;;  %5306 = vrcp.f32 %v1480_v53  ;;  %v1481_v55 = vadd.f32 1.0, %v5303_v54  ;;  %v1400_v9 = vmul.f32 %v1397_v63, %v6036_v56  ;;  %v6308_v14 = vmul.f32 %v6293_v48, %v5807_v22 }
 0x129   : > { %1268 = vrot.lane.b32.xlu1 %v1265_v1, %s9065_s10  ;;  %v513_v1 = vadd.f32 %v508_v52, %v492_v0  ;;  %v1363_v52 = vrot.slane %v1357_v62, 4  ;;  %v1362_v0 = vrot.slane %v1356_v32, 4  ;;  %v569_v53 = vrot.slane %v561_v45, 2 }
 0x12a   : > { %1266 = vrot.lane.b32.xlu0 %v1263_v4, %s9065_s10  ;;  %v1378_v4 = vmul.f32 %v1376_v60, %v6015_v61  ;;  %5308 = vrcp.f32 %v1481_v55 }
 0x12b   : > { %v550_v46 = vpop.permute.xlu1 %549  ;;  %v534_v40 = vadd.f32 %v529_v18, %v513_v1  ;;  %v1345_v18 = vsel %vm769_vm12, %v1342_v2, %v1344_v5  ;;  %v570_v54 = vsel %vm565_vm10, %v567_v33, %v569_v53 }
 0x12c   : > { %v531_v41 = vpop.permute.xlu0 %530 }
 0x12d   : > { %1289 = vrot.lane.b32.xlu1 %v1286_v28, %s9059_s7  ;;  %v1365_v28 = vrot.slane %v1358_v51, 4  ;;  %v555_v57 = vadd.f32 %v550_v46, %v534_v40  ;;  %v1377_v46 = vmul.f32 %v1376_v60, %v6024_v21  ;;  %v1399_v51 = vmul.f32 %v1397_v63, %v6015_v61 }
 0x12e   : > { %1287 = vrot.lane.b32.xlu0 %v1284_v19, %s9059_s7  ;;  %v1384_v19 = vrot.slane %v1378_v4, 4 }
 0x12f   : > { %v589_v35 = vpop.permute.xlu1 %588  ;;  %v1366_v29 = vsel %vm769_vm12, %v1363_v52, %v1365_v28  ;;  %v573_v62 = vadd.f32 %v568_v13, %v555_v57  ;;  %v1383_v60 = vrot.slane %v1377_v46, 4  ;;  %v1405_v4 = vrot.slane %v1399_v51, 4 }
 0x130   : > { %v552_v16 = vpop.permute.xlu0 %551  ;;  %v1387_v39 = vsel %vm769_vm12, %v1384_v19, %v1386_v42  ;;  %v1407_v28 = vrot.slane %v1400_v9, 4  ;;  %v1512_v51 = vstv %s6317_s6  ;;  %s6364_s6 = sld [smem:[#allocation2 + $0x181]] }
 0x131   : > { %1310 = vrot.lane.b32.xlu1 %v1307_v25, %s9061_s9  ;;  %v514_v25 = vadd.f32 %v510_v43, %v493_v47  ;;  %v1364_v43 = vsel %vm769_vm12, %v1362_v0, %v1363_v52  ;;  %v594_v32 = vadd.f32 %v589_v35, %v573_v62  ;;  %v5305_v15 = vpop.eup %5304  ;;  %v668_v35 = vrot.slane %v661_v27, 3 }
 0x132   : > { %1308 = vrot.lane.b32.xlu0 %v1305_v44, %s9061_s9  ;;  %v1485_v47 = vmul.f32 %v5305_v15, %v6140_v50  ;;  %v663_v50 = vmul.f32 %v6293_v48, %v5831_v36 }
 0x133   : > { %v610_v30 = vpop.permute.xlu1 %609  ;;  %v535_v5 = vadd.f32 %v531_v41, %v514_v25  ;;  %v1398_v41 = vmul.f32 %v1397_v63, %v6024_v21 }
 0x134   : > { %v591_v1 = vpop.permute.xlu0 %590  ;;  %v615_v52 = vadd.f32 %v610_v30, %v594_v32  ;;  %v1408_v30 = vsel %vm769_vm12, %v1405_v4, %v1407_v28  ;;  %v6350_v62 = vsel %vm5779_vm4, %v1485_v47, 0.0 }
 0x135   : > { %1348 = vrot.lane.b32.xlu1 %v1345_v18, %s9063_s16  ;;  %v556_v40 = vadd.f32 %v552_v16, %v535_v5  ;;  %v1385_v18 = vsel %vm769_vm12, %v1383_v60, %v1384_v19  ;;  %v669_v16 = vrot.slane %v6308_v14, 3  ;;  %v1404_v13 = vrot.slane %v1398_v41, 4  ;;  %v5307_v33 = vpop.eup %5306 }
 0x136   : > { %1346 = vrot.lane.b32.xlu0 %v1343_v59, %s9063_s16  ;;  %v1486_v42 = vmul.f32 %v5307_v33, %v6152_v58  ;;  %v671_v5 = vrot.slane %v663_v50, 3  ;;  %v1513_v60 = vmul.f32 %v1512_v51, %v6350_v62  ;;  %s6372_s16 = sld [smem:[#allocation2 + $0x183]] }
 0x137   : > { %v631_v2 = vpop.permute.xlu1 %630  ;;  %v574_v45 = vadd.f32 %v570_v54, %v556_v40  ;;  %v670_v19 = vsel %vm667_vm11, %v668_v35, %v669_v16  ;;  %v1406_v25 = vsel %vm769_vm12, %v1404_v13, %v1405_v4  ;;  %v5309_v27 = vpop.eup %5308  ;;  %v1540_v54 = vstv %s6322_s11  ;;  %s9114_s11 = smov 126  }
 0x138   : > { %v612_v57 = vpop.permute.xlu0 %611  ;;  %v636_v63 = vadd.f32 %v631_v2, %v615_v52  ;;  %v672_v28 = vsel %vm667_vm11, %v669_v16, %v671_v5 }
 0x139   : > { %1369 = vrot.lane.b32.xlu1 %v1366_v29, %s9065_s10  ;;  %v762_v29 = vstv %s6310_s26  ;;  %v595_v55 = vadd.f32 %v591_v1, %v574_v45  ;;  %s6357_s26 = sld [smem:[#allocation7 + $0x10b]]  ;;  %v6389_v45 = vstv %s6334_s12 }
 0x13a   : > { %1367 = vrot.lane.b32.xlu0 %v1364_v43, %s9065_s10  ;;  %v763_v2 = vmul.f32 %v762_v29, %v5789_v11  ;;  %v764_v48 = vmul.f32 %v762_v29, %v5807_v22  ;;  %v1526_v11 = vstv %s6320_s8  ;;  %v765_v22 = vmul.f32 %v762_v29, %v5831_v36  ;;  %s9113_s8 = smov 127   ;;  %s6547_s12 = sld [smem:[#allocation7 + $0x111]] }
 0x13b   : > { %v652_v44 = vpop.permute.xlu1 %651  ;;  %v616_v58 = vadd.f32 %v612_v57, %v595_v55  ;;  %v1487_v36 = vmul.f32 %v5309_v27, %v6190_v49  ;;  %v1527_v15 = vmul.f32 %v1526_v11, %v6350_v62  ;;  %v1554_v49 = vstv %s6328_s14  ;;  %s6508_s14 = sld [smem:[#allocation7 + $0x110]] }
 0x13c   : > { %v633_v59 = vpop.permute.xlu0 %632  ;;  %v657_v46 = vadd.f32 %v652_v44, %v636_v63  ;;  %v770_v41 = vrot.slane %v763_v2, 4  ;;  %v771_v40 = vrot.slane %v764_v48, 4  ;;  %v6382_v44 = vsel %vm5797_vm6, %v1486_v42, 0.0 }
 0x13d   : > { %1390 = vrot.lane.b32.xlu1 %v1387_v39, %s9059_s7  ;;  %v637_v14 = vadd.f32 %v633_v59, %v616_v58  ;;  %v773_v52 = vrot.slane %v765_v22, 4  ;;  %v1991_v59 = vstv %s6359_s13  ;;  %v1555_v5 = vmul.f32 %v1554_v49, %v6350_v62  ;;  %s9115_s13 = smov 125  }
 0x13e   : > { %1388 = vrot.lane.b32.xlu0 %v1385_v18, %s9059_s7  ;;  %v675_v1 = vadd.f32 %v670_v19, %v657_v46  ;;  %s6368_s7 = sld [smem:[#allocation7 + $0x10c]]  ;;  %v1585_v18 = vstv %s6332_s30  ;;  %v772_v13 = vsel %vm769_vm12, %v770_v41, %v771_v40  ;;  %v1541_v46 = vmul.f32 %v1540_v54, %v6350_v62 }
 0x13f   : > { %v691_v0 = vpop.permute.xlu1 %690  ;;  %v1586_v29 = vmul.f32 %v1585_v18, %v6350_v62  ;;  %v1996_v19 = vstv %s6364_s6  ;;  %v6405_v55 = vmul.f32 %v1585_v18, %v6382_v44  ;;  %v1992_v48 = vmul.f32 %v5742_v12, %v1991_v59  ;;  %s6530_s30 = sld [smem:[#allocation7 + $0x85]] }
 0x140   : > { %v654_v9 = vpop.permute.xlu0 %653  ;;  %v696_v4 = vadd.f32 %v691_v0, %v675_v1  ;;  %v1514_v0 = vmul.f32 %v1512_v51, %v6382_v44  ;;  %v6411_v51 = vstv %s6357_s26  ;;  %v6423_v27 = vstv %s6372_s16  ;;  %s6449_s16 = sld [smem:[#allocation5 + $0x3]] }
 0x141   : > { %1411 = vrot.lane.b32.xlu1 %v1408_v30, %s9061_s9  ;;  %v658_v32 = vadd.f32 %v654_v9, %v637_v14  ;;  %v1528_v14 = vmul.f32 %v1526_v11, %v6382_v44  ;;  %v1592_v22 = vrot.slane %v1586_v29, 1  ;;  %s6635_s26 = sld [smem:[#allocation7 + $0x115]] }
 0x142   : > { %1409 = vrot.lane.b32.xlu0 %v1406_v25, %s9061_s9  ;;  %s6370_s9 = sld [smem:[#allocation2 + $0x182]]  ;;  %v6408_v25 = vstv %s6353_s25 }
 0x143   : > { %v712_v53 = vpop.permute.xlu1 %711  ;;  %v676_v63 = vadd.f32 %v672_v28, %v658_v32  ;;  %s6631_s25 = sld [smem:[#allocation7 + $0x8a]] }
 0x144   : > { %v693_v43 = vpop.permute.xlu0 %692  ;;  %v717_v57 = vadd.f32 %v712_v53, %v696_v4  ;;  %v6414_v2 = vstv %s6368_s7  ;;  %v1593_v4 = vrot.slane %v6405_v55, 1  ;;  %s6494_s7 = sld [smem:[#allocation7 + $0x80]] }
 0x145   : > { %1493 = vrot.lane.b32.xlu1 %v1486_v42, %s9065_s10  ;;  %v774_v42 = vsel %vm769_vm12, %v771_v40, %v773_v52  ;;  %v697_v1 = vadd.f32 %v693_v43, %v676_v63  ;;  %v6432_v43 = vmul.f32 %v6389_v45, %v6382_v44  ;;  %v6436_v40 = vsel %vm5815_vm8, %v1487_v36, 0.0  ;;  %s6642_s6 = sld [smem:[#allocation7 + $0x116]] }
 0x146   : > { %1491 = vrot.lane.b32.xlu0 %v1485_v47, %s9065_s10  ;;  %s6391_s10 = sld [smem:[#allocation7 + $0x10d]]  ;;  %v6394_v47 = vstv %s6337_s15  ;;  %v1993_v52 = vmul.f32 %v5757_v31, %v1991_v59 }
 0x147   : > { %v733_v39 = vpop.permute.xlu1 %732  ;;  %v6457_v29 = vmul.f32 %v6394_v47, %v6382_v44  ;;  %v1630_v33 = vmul.f32 %v6394_v47, %v6436_v40  ;;  %s6566_s15 = sld [smem:[#allocation7 + $0x112]] }
 0x148   : > { %v714_v35 = vpop.permute.xlu0 %713  ;;  %v738_v30 = vadd.f32 %v733_v39, %v717_v57  ;;  %v2004_v58 = vstv %s6370_s9  ;;  %v1607_v39 = vmul.f32 %v6389_v45, %v6350_v62  ;;  %s6506_s9 = sld [smem:[#allocation7 + $0x10e]] }
 0x149   : > { %1517 = vrot.lane.b32.xlu1 %v1513_v60, %s9113_s8  ;;  %v1997_v60 = vmul.f32 %v1996_v19, %v5750_v23  ;;  %v718_v41 = vadd.f32 %v714_v35, %v697_v1  ;;  %v2005_v57 = vmul.f32 %v5747_v20, %v2004_v58  ;;  %v1628_v35 = vmul.f32 %v6394_v47, %v6350_v62 }
 0x14a   : > { %1495 = vrot.lane.b32.xlu0 %v1487_v36, %s9114_s11  ;;  %v2013_v36 = vmul.f32 %v6423_v27, %v5752_v24  ;;  %v9117_v47 = vstv %s6345_s17  ;;  %s6595_s17 = sld [smem:[#allocation7 + $0x113]] }
 0x14b   : > { %v754_v16 = vpop.permute.xlu1 %753 }
 0x14c   : > { %v759_v50 = vadd.f32 %v754_v16, %v738_v30  ;;  %v735_v9 = vpop.permute.xlu0 %734  ;;  %v1998_v16 = vmul.f32 %v1996_v19, %v5762_v37  ;;  %v2000_v30 = vadd.f32 %v1997_v60, %v1992_v48  ;;  %v1614_v48 = vrot.slane %v6432_v43, 1 }
 0x14d   : > { %1531 = vrot.lane.b32.xlu1 %v1527_v15, %s9114_s11  ;;  %v6440_v15 = vstv %s6391_s10  ;;  %v739_v63 = vadd.f32 %v735_v9, %v718_v41  ;;  %s9116_s10 = smov 124   ;;  %v1594_v9 = vsel %vm463_vm9, %v1592_v22, %v1593_v4  ;;  %v1556_v41 = vmul.f32 %v1554_v49, %v6382_v44 }
 0x14e   : > { %1519 = vrot.lane.b32.xlu0 %v1514_v0, %s9113_s8  ;;  %v777_v32 = vadd.f32 %v772_v13, %v759_v50  ;;  %v1542_v13 = vmul.f32 %v1540_v54, %v6382_v44  ;;  %v1588_v0 = vmul.f32 %v1585_v18, %v6436_v40  ;;  %v2006_v54 = vmul.f32 %v5760_v34, %v2004_v58 }
 0x14f   : > { %v793_v53 = vpop.permute.xlu1 %792  ;;  %v1999_v18 = vmul.f32 %v1996_v19, %v5736_v7  ;;  %v1649_v22 = vmul.f32 %v6408_v25, %v6350_v62  ;;  %v6476_v19 = vmul.f32 %v6408_v25, %v6382_v44 }
 0x150   : > { %v756_v28 = vpop.permute.xlu0 %755  ;;  %v798_v55 = vadd.f32 %v793_v53, %v777_v32  ;;  %v1609_v53 = vmul.f32 %v6389_v45, %v6436_v40  ;;  %v1595_v43 = vrot.slane %v1588_v0, 1  ;;  %v1634_v32 = vrot.slane %v1628_v35, 1 }
 0x151   : > { %1545 = vrot.lane.b32.xlu1 %v1541_v46, %s9115_s13  ;;  %v1613_v46 = vrot.slane %v1607_v39, 1  ;;  %v760_v50 = vadd.f32 %v756_v28, %v739_v63  ;;  %v2008_v63 = vadd.f32 %v2005_v57, %v2000_v30  ;;  %v2007_v0 = vmul.f32 %v2004_v58, %v5738_v8 }
 0x152   : > { %1533 = vrot.lane.b32.xlu0 %v1528_v14, %s9114_s11  ;;  %v2001_v14 = vadd.f32 %v1998_v16, %v1993_v52  ;;  %v1655_v30 = vrot.slane %v1649_v22, 1  ;;  %v1656_v58 = vrot.slane %v6476_v19, 1 }
 0x153   : > { %v814_v11 = vpop.permute.xlu1 %813  ;;  %v778_v49 = vadd.f32 %v774_v42, %v760_v50  ;;  %v1615_v45 = vsel %vm463_vm9, %v1613_v46, %v1614_v48  ;;  %v6485_v42 = vstv %s6449_s16  ;;  %v1596_v46 = vsel %vm463_vm9, %v1593_v4, %v1595_v43  ;;  %s6662_s16 = sld [smem:[#allocation7 + $0x117]] }
 0x154   : > { %v795_v1 = vpop.permute.xlu0 %794  ;;  %v819_v39 = vadd.f32 %v814_v11, %v798_v55  ;;  %v2014_v11 = vmul.f32 %v6423_v27, %v5764_v38  ;;  %v6504_v4 = vmul.f32 %v6411_v51, %v6382_v44 }
 0x155   : > { %1559 = vrot.lane.b32.xlu1 %v1555_v5, %s9116_s10  ;;  %v1994_v5 = vmul.f32 %v1991_v59, %v5734_v6  ;;  %v1635_v59 = vrot.slane %v6457_v29, 1  ;;  %v799_v50 = vadd.f32 %v795_v1, %v778_v49  ;;  %v2015_v1 = vmul.f32 %v6423_v27, %v5740_v10 }
 0x156   : > { %1547 = vrot.lane.b32.xlu0 %v1542_v13, %s9115_s13  ;;  %v2009_v13 = vadd.f32 %v2006_v54, %v2001_v14  ;;  %v1687_v14 = vmul.f32 %v6411_v51, %v6350_v62  ;;  %v1657_v27 = vsel %vm463_vm9, %v1655_v30, %v1656_v58  ;;  %v1708_v49 = vmul.f32 %v6414_v2, %v6350_v62 }
 0x157   : > { %v835_v60 = vpop.permute.xlu1 %834  ;;  %v2002_v35 = vadd.f32 %v1999_v18, %v1994_v5  ;;  %v1636_v57 = vsel %vm463_vm9, %v1634_v32, %v1635_v59  ;;  %v2016_v18 = vadd.f32 %v2013_v36, %v2008_v63  ;;  %v1651_v32 = vmul.f32 %v6408_v25, %v6436_v40 }
 0x158   : > { %v840_v28 = vadd.f32 %v835_v60, %v819_v39  ;;  %v816_v52 = vpop.permute.xlu0 %815  ;;  %v2017_v39 = vadd.f32 %v2014_v11, %v2009_v13  ;;  %v1637_v36 = vrot.slane %v1630_v33, 1  ;;  %v1693_v25 = vrot.slane %v1687_v14, 2 }
 0x159   : > { %1597 = vrot.lane.b32.xlu1 %v1594_v9, %s9113_s8  ;;  %v1616_v9 = vrot.slane %v1609_v53, 1  ;;  %v820_v53 = vadd.f32 %v816_v52, %v799_v50  ;;  %v1694_v11 = vrot.slane %v6504_v4, 2  ;;  %v6533_v33 = vadd.f32 %v6485_v42, %v2016_v18 }
 0x15a   : > { %1561 = vrot.lane.b32.xlu0 %v1556_v41, %s9116_s10  ;;  %v2010_v41 = vadd.f32 %v2007_v0, %v2002_v35  ;;  %v6536_v63 = vadd.f32 %v6485_v42, %v2017_v39  ;;  %v1689_v35 = vmul.f32 %v6411_v51, %v6436_v40  ;;  %v9118_v30 = vmov %v9117_v47 }
 0x15b   : > { %v856_v16 = vpop.permute.xlu1 %855  ;;  %v1617_v43 = vsel %vm463_vm9, %v1614_v48, %v1616_v9  ;;  %v1714_v9 = vrot.slane %v1708_v49, 2  ;;  %v1638_v51 = vsel %vm463_vm9, %v1635_v59, %v1637_v36  ;;  %v6559_v14 = vmul.f32 %v6440_v15, %v6382_v44 }
 0x15c   : > { %v861_v55 = vadd.f32 %v856_v16, %v840_v28  ;;  %v837_v54 = vpop.permute.xlu0 %836  ;;  %v6527_v28 = vmul.f32 %v6414_v2, %v6382_v44  ;;  %v2018_v0 = vadd.f32 %v2015_v1, %v2010_v41  ;;  %v1749_v18 = vstv %s6506_s9  ;;  %s6735_s9 = sld [smem:[#allocation7 + $0x8f]] }
 0x15d   : > { %1618 = vrot.lane.b32.xlu1 %v1615_v45, %s9114_s11  ;;  %v841_v48 = vadd.f32 %v837_v54, %v820_v53  ;;  %v954_v54 = vstv %s6494_s7  ;;  %v6564_v39 = vstv %s6508_s14  ;;  %v2024_v41 = vsub.f32 0.0, %v6533_v33  ;;  %s6686_s7 = sld [smem:[#allocation7 + $0x118]] }
 0x15e   : > { %v6498_v60 = vadd.f32 %v9117_v47, %v861_v55  ;;  %1599 = vrot.lane.b32.xlu0 %v1596_v46, %s9113_s8  ;;  %v1658_v55 = vrot.slane %v1651_v32, 1  ;;  %v1715_v46 = vrot.slane %v6527_v28, 2  ;;  %v1695_v47 = vsel %vm565_vm10, %v1693_v25, %v1694_v11  ;;  %s6782_s14 = sld [smem:[#allocation7 + $0x94]] }
 0x15f   : > { %v938_v5 = vpop.permute.xlu1 %937  ;;  %v1710_v59 = vmul.f32 %v6414_v2, %v6436_v40  ;;  %v2025_v1 = vsub.f32 0.0, %v6536_v63  ;;  %v6576_v53 = vadd.f32 %v6485_v42, %v2018_v0  ;;  %v1736_v2 = vrot.slane %v6559_v14, 2 }
 0x160   : > { %v867_v22 = vsub.f32 0.0, %v6498_v60  ;;  %4925 = vst.msk [vmem:[%s6112_s23 + $0xe] sm:$0xfc] %vm386_vm14, %v938_v5  ;;  %v858_v52 = vpop.permute.xlu0 %857  ;;  %v1716_v32 = vsel %vm565_vm10, %v1714_v9, %v1715_v46  ;;  %v1750_v49 = vmul.f32 %v1749_v18, %v6350_v62  ;;  %v6587_v42 = vmul.f32 %v1749_v18, %v6382_v44 }
 0x161   : > { %1639 = vrot.lane.b32.xlu1 %v1636_v57, %s9115_s13  ;;  %v862_v13 = vadd.f32 %v858_v52, %v841_v48  ;;  %v1729_v57 = vmul.f32 %v6440_v15, %v6350_v62  ;;  %v956_v19 = vmul.f32 %v954_v54, %v6015_v61  ;;  %v1014_v48 = vstv %s6530_s30  ;;  %s6787_s30 = sld [smem:[#allocation7 + $0x181]] }
 0x162   : > { %v869_v45 = vmul.f32 1.442695, %v867_v22  ;;  %1620 = vrot.lane.b32.xlu0 %v1617_v43, %s9114_s11  ;;  %v1659_v22 = vsel %vm463_vm9, %v1656_v58, %v1658_v55  ;;  %v1696_v43 = vrot.slane %v1689_v35, 2  ;;  %v1717_v25 = vrot.slane %v1710_v59, 2 }
 0x163   : > { %v942_v16 = vpop.permute.xlu1 %941  ;;  %v6551_v50 = vadd.f32 %v9118_v30, %v862_v13  ;;  %v1735_v36 = vrot.slane %v1729_v57, 2  ;;  %v2029_v52 = vmul.f32 1.442695, %v2025_v1  ;;  %v1731_v35 = vmul.f32 %v6440_v15, %v6436_v40 }
 0x164   : > { %5310 = vpow2.f32 %v869_v45  ;;  %4927 = vst.msk [vmem:[%s6112_s23 + $0x1e] sm:$0x3] %vm390_vm13, %v942_v16  ;;  %v940_v4 = vpop.permute.xlu0 %939  ;;  %v2027_v45 = vmul.f32 1.442695, %v2024_v41  ;;  %v2026_v16 = vsub.f32 0.0, %v6576_v53  ;;  %v1697_v13 = vsel %vm565_vm10, %v1694_v11, %v1696_v43 }
 0x165   : > { %1660 = vrot.lane.b32.xlu1 %v1657_v27, %s9116_s10  ;;  %v868_v29 = vsub.f32 0.0, %v6551_v50  ;;  %4926 = vst.msk [vmem:[%s6112_s23 + $0x16] sm:$0xff] %vm388_vm15, %v940_v4  ;;  %v1788_v0 = vmul.f32 %v6564_v39, %v6350_v62  ;;  %v1808_v55 = vstv %s6547_s12  ;;  %v1737_v9 = vsel %vm565_vm10, %v1735_v36, %v1736_v2  ;;  %s6789_s12 = sld [smem:[#allocation7 + $0x182]] }
 0x166   : > { %1641 = vrot.lane.b32.xlu0 %v1638_v51, %s9115_s13  ;;  %v1756_v57 = vrot.slane %v1750_v49, 2  ;;  %v1757_v30 = vrot.slane %v6587_v42, 2  ;;  %v6612_v51 = vmul.f32 %v6564_v39, %v6382_v44  ;;  %v1015_v15 = vmul.f32 %v1014_v48, %v6024_v21 }
 0x167   : > { %v966_v5 = vpop.permute.xlu1 %965  ;;  %v871_v27 = vmul.f32 1.442695, %v868_v29  ;;  %v6618_v4 = vmul.f32 %v1014_v48, %v6015_v61  ;;  %v6621_v41 = vstv %s6566_s15  ;;  %v1718_v29 = vsel %vm565_vm10, %v1715_v46, %v1717_v25  ;;  %s6792_s15 = sld [smem:[#allocation7 + $0x183]] }
 0x168   : > { %v6589_v28 = vpop.permute.xlu0 %963  ;;  %v1752_v59 = vmul.f32 %v1749_v18, %v6436_v40  ;;  %v2031_v1 = vmul.f32 1.442695, %v2026_v16  ;;  %v1738_v43 = vrot.slane %v1731_v35, 2  ;;  %v1809_v36 = vmul.f32 %v1808_v55, %v6350_v62 }
 0x169   : > { %1698 = vrot.lane.b32.xlu1 %v1695_v47, %s9113_s8  ;;  %5312 = vpow2.f32 %v871_v27  ;;  %v6629_v27 = vmul.f32 %v1808_v55, %v6382_v44  ;;  %v970_v18 = vadd.f32 %v966_v5, %v956_v19  ;;  %v1758_v49 = vsel %vm565_vm10, %v1756_v57, %v1757_v30 }
 0x16a   : > { %1662 = vrot.lane.b32.xlu0 %v1659_v22, %s9116_s10  ;;  %5314 = vpow2.f32 %v2027_v45  ;;  %v1795_v42 = vrot.slane %v6612_v51, 3  ;;  %v955_v45 = vmul.f32 %v954_v54, %v6024_v21  ;;  %v1021_v16 = vrot.slane %v1015_v15, 1 }
 0x16b   : > { %v980_v58 = vpop.permute.xlu1 %979  ;;  %5316 = vpow2.f32 %v2029_v52  ;;  %v1017_v35 = vmul.f32 %v1014_v48, %v6036_v56  ;;  %v1759_v5 = vrot.slane %v1752_v59, 2  ;;  %v1790_v19 = vmul.f32 %v6564_v39, %v6436_v40 }
 0x16c   : > { %v6614_v11 = vpop.permute.xlu0 %977  ;;  %v1815_v54 = vrot.slane %v1809_v36, 3  ;;  %v1830_v57 = vmul.f32 %v6621_v41, %v6350_v62  ;;  %v984_v48 = vadd.f32 %v980_v58, %v970_v18  ;;  %v1739_v51 = vsel %vm565_vm10, %v1736_v2, %v1738_v43 }
 0x16d   : > { %1719 = vrot.lane.b32.xlu1 %v1716_v32, %s9114_s11  ;;  %v1794_v32 = vrot.slane %v1788_v0, 3  ;;  %v1850_v0 = vstv %s6595_s17  ;;  %v6658_v39 = vmul.f32 %v6621_v41, %v6382_v44  ;;  %v1760_v58 = vsel %vm565_vm10, %v1757_v30, %v1759_v5  ;;  %s6798_s17 = sld [smem:[#allocation7 + $0x184]] }
 0x16e   : > { %1700 = vrot.lane.b32.xlu0 %v1697_v13, %s9113_s8  ;;  %v1022_v13 = vrot.slane %v6618_v4, 1  ;;  %v1797_v14 = vrot.slane %v1790_v19, 3  ;;  %v1811_v2 = vmul.f32 %v1808_v55, %v6436_v40  ;;  %v1851_v36 = vmul.f32 %v1850_v0, %v6350_v62 }
 0x16f   : > { %v994_v47 = vpop.permute.xlu1 %993  ;;  %v1796_v15 = vsel %vm667_vm11, %v1794_v32, %v1795_v42  ;;  %v1836_v32 = vrot.slane %v1830_v57, 3  ;;  %v9067_v55 = vrot.slane %v6658_v39, 3  ;;  %v1115_v5 = vstv %s6631_s25  ;;  %s6801_s25 = sld [smem:[#allocation7 + $0x186]] }
 0x170   : > { %v992_v25 = vpop.permute.xlu0 %991  ;;  %v998_v18 = vadd.f32 %v994_v47, %v984_v48  ;;  %v1888_v19 = vstv %s6635_s26  ;;  %v1857_v48 = vrot.slane %v1851_v36, 3  ;;  %s6803_s26 = sld [smem:[#allocation7 + $0x187]] }
 0x171   : > { %v5311_v22 = vpop.eup %5310  ;;  %1740 = vrot.lane.b32.xlu1 %v1737_v9, %s9115_s13  ;;  %v1816_v9 = vrot.slane %v6629_v27, 3  ;;  %v6674_v27 = vmul.f32 %v1850_v0, %v6382_v44 }
 0x172   : > { %v873_v46 = vadd.f32 1.0, %v5311_v22  ;;  %1721 = vrot.lane.b32.xlu0 %v1718_v29, %s9114_s11  ;;  %v1024_v29 = vrot.slane %v1017_v35, 1  ;;  %v6665_v22 = vsel %vm463_vm9, %v1021_v16, %v1022_v13 }
 0x173   : > { %v1008_v52 = vpop.permute.xlu1 %1007  ;;  %v1817_v43 = vsel %vm667_vm11, %v1815_v54, %v1816_v9  ;;  %v6684_v54 = vstv %s6642_s6  ;;  %s6805_s6 = sld [smem:[#allocation7 + $0x188]] }
 0x174   : > { %5318 = vrcp.f32 %v873_v46  ;;  %v1006_v4 = vpop.permute.xlu0 %1005  ;;  %v969_v46 = vadd.f32 %v6589_v28, %v955_v45  ;;  %v1025_v16 = vsel %vm463_vm9, %v1022_v13, %v1024_v29  ;;  %v1818_v28 = vrot.slane %v1811_v2, 3 }
 0x175   : > { %1761 = vrot.lane.b32.xlu1 %v1758_v49, %s9116_s10  ;;  %5320 = vpow2.f32 %v2031_v1  ;;  %v1798_v45 = vsel %vm667_vm11, %v1795_v42, %v1797_v14  ;;  %v1832_v13 = vmul.f32 %v6621_v41, %v6436_v40  ;;  %v1858_v29 = vrot.slane %v6674_v27, 3 }
 0x176   : > { %v5313_v1 = vpop.eup %5312  ;;  %1742 = vrot.lane.b32.xlu0 %v1739_v51, %s9115_s13  ;;  %v983_v51 = vadd.f32 %v6614_v11, %v969_v46  ;;  %v1838_v11 = vsel %vm667_vm11, %v1836_v32, %v9067_v55  ;;  %v6700_v2 = vmul.f32 %v1888_v19, %v6382_v44  ;;  %v6703_v14 = vmul.f32 %v1115_v5, %v6024_v21 }
 0x177   : > { %v6660_v59 = vpop.permute.xlu1 %1045  ;;  %v874_v30 = vadd.f32 1.0, %v5313_v1  ;;  %v5315_v57 = vpop.eup %5314  ;;  %v6706_v41 = vmul.f32 %v1115_v5, %v6015_v61  ;;  %v1819_v32 = vsel %vm667_vm11, %v1816_v9, %v1818_v28 }
 0x178   : > { %v6678_v49 = vpop.permute.xlu0 %1043  ;;  %v5317_v47 = vpop.eup %5316  ;;  %v997_v1 = vadd.f32 %v992_v25, %v983_v51  ;;  %v6710_v25 = vstv %s6662_s16  ;;  %v1859_v51 = vsel %vm667_vm11, %v1857_v48, %v1858_v29  ;;  %v1896_v28 = vrot.slane %v6700_v2, 4  ;;  %s6812_s16 = sld [smem:[#allocation8 + $0x1]] }
 0x179   : > { %1799 = vrot.lane.b32.xlu1 %v1796_v15, %s9113_s8  ;;  %5322 = vrcp.f32 %v874_v30  ;;  %v1012_v15 = vadd.f32 %v1008_v52, %v998_v18  ;;  %v1889_v52 = vmul.f32 %v1888_v19, %v6350_v62  ;;  %v1910_v30 = vmul.f32 %v6684_v54, %v6350_v62 }
 0x17a   : > { %1763 = vrot.lane.b32.xlu0 %v1760_v58, %s9116_s10  ;;  %v1011_v36 = vadd.f32 %v1006_v4, %v997_v1  ;;  %v1839_v18 = vrot.slane %v1832_v13, 3  ;;  %v2033_v4 = vadd.f32 1.0, %v5315_v57  ;;  %v2034_v1 = vadd.f32 1.0, %v5317_v47 }
 0x17b   : > { %v1067_v35 = vpop.permute.xlu1 %1066  ;;  %v1029_v27 = vadd.f32 %v1025_v16, %v1012_v15  ;;  %v1895_v15 = vrot.slane %v1889_v52, 4  ;;  %v1891_v13 = vmul.f32 %v1888_v19, %v6436_v40  ;;  %v6727_v48 = vstv %s6686_s7  ;;  %s6820_s7 = sld [smem:[#allocation2 + $0x200]] }
 0x17c   : > { %v1065_v58 = vpop.permute.xlu0 %1064  ;;  %v1028_v57 = vadd.f32 %v6665_v22, %v1011_v36  ;;  %v1931_v52 = vmul.f32 %v6710_v25, %v6350_v62  ;;  %v6742_v19 = vmul.f32 %v6710_v25, %v6382_v44  ;;  %5324 = vrcp.f32 %v2033_v4 }
 0x17d   : > { %1820 = vrot.lane.b32.xlu1 %v1817_v43, %s9114_s11  ;;  %v1853_v43 = vmul.f32 %v1850_v0, %v6436_v40  ;;  %v6720_v0 = vmul.f32 %v6684_v54, %v6382_v44  ;;  %v1050_v8 = vadd.f32 %v6660_v59, %v1029_v27  ;;  %v9119_v59 = vrot.slane %v6658_v39, 3 }
 0x17e   : > { %1801 = vrot.lane.b32.xlu0 %v1798_v45, %s9113_s8  ;;  %5326 = vrcp.f32 %v2034_v1  ;;  %v1123_v27 = vrot.slane %v6706_v41, 2  ;;  %v1952_v39 = vmul.f32 %v6727_v48, %v6350_v62 }
 0x17f   : > { %v1088_v42 = vpop.permute.xlu1 %1087  ;;  %v1860_v10 = vrot.slane %v1853_v43, 3  ;;  %v1071_v47 = vadd.f32 %v1067_v35, %v1050_v8  ;;  %v1840_v2 = vsel %vm667_vm11, %v9119_v59, %v1839_v18  ;;  %v1897_v43 = vsel %vm769_vm12, %v1895_v15, %v1896_v28 }
 0x180   : > { %v1086_v45 = vpop.permute.xlu0 %1085  ;;  %v1912_v8 = vmul.f32 %v6684_v54, %v6436_v40  ;;  %v6762_v18 = vmul.f32 %v6727_v48, %v6382_v44 }
 0x181   : > { %v5319_v46 = vpop.eup %5318  ;;  %1841 = vrot.lane.b32.xlu1 %v1838_v11, %s9115_s13  ;;  %v1118_v11 = vmul.f32 %v1115_v5, %v6036_v56  ;;  %v1917_v5 = vrot.slane %v6720_v0, 4  ;;  %v1049_v0 = vadd.f32 %v6678_v49, %v1028_v57  ;;  %v1092_v4 = vadd.f32 %v1088_v42, %v1071_v47 }
 0x182   : > { %v5321_v16 = vpop.eup %5320  ;;  %v877_v9 = vmul.f32 %v5319_v46, %v6498_v60  ;;  %v1916_v60 = vrot.slane %v1910_v30, 4  ;;  %1822 = vrot.lane.b32.xlu0 %v1819_v32, %s9114_s11  ;;  %v1861_v46 = vsel %vm667_vm11, %v1858_v29, %v1860_v10  ;;  %v1937_v10 = vrot.slane %v1931_v52, 4 }
 0x183   : > { %v1109_v55 = vpop.permute.xlu1 %1108  ;;  %v2035_v22 = vadd.f32 1.0, %v5321_v16  ;;  %v1125_v32 = vrot.slane %v1118_v11, 2  ;;  %v1938_v29 = vrot.slane %v6742_v19, 4  ;;  %v1070_v42 = vadd.f32 %v1065_v58, %v1049_v0 }
 0x184   : > { %4918 = vst.msk [vmem:[%s6112_s23 + $0x80] sm:$0xff] %vm388_vm15, %v877_v9  ;;  %v1107_v36 = vpop.permute.xlu0 %1106  ;;  %v1918_v41 = vsel %vm769_vm12, %v1916_v60, %v1917_v5  ;;  %v1113_v54 = vadd.f32 %v1109_v55, %v1092_v4  ;;  %v1122_v16 = vrot.slane %v6703_v14, 2  ;;  %v1919_v55 = vrot.slane %v1912_v8, 4 }
 0x185   : > { %1862 = vrot.lane.b32.xlu1 %v1859_v51, %s9116_s10  ;;  %v1898_v51 = vrot.slane %v1891_v13, 4  ;;  %5328 = vrcp.f32 %v2035_v22  ;;  %v1126_v15 = vsel %vm565_vm10, %v1123_v27, %v1125_v32  ;;  %v1091_v11 = vadd.f32 %v1086_v45, %v1070_v42 }
 0x186   : > { %v5323_v35 = vpop.eup %5322  ;;  %1843 = vrot.lane.b32.xlu0 %v1840_v2, %s9115_s13  ;;  %v1216_v13 = vstv %s6735_s9  ;;  %v1939_v58 = vsel %vm769_vm12, %v1937_v10, %v1938_v29  ;;  %v1933_v14 = vmul.f32 %v6710_v25, %v6436_v40  ;;  %v1130_v60 = vadd.f32 %v1126_v15, %v1113_v54  ;;  %s6822_s9 = sld [smem:[#allocation7 + $0x100]] }
 0x187   : > { %v1147_v30 = vpop.permute.xlu1 %1146  ;;  %v878_v49 = vmul.f32 %v5323_v35, %v6551_v50  ;;  %v1899_v50 = vsel %vm769_vm12, %v1896_v28, %v1898_v51  ;;  %v1112_v57 = vadd.f32 %v1107_v36, %v1091_v11  ;;  %v1958_v52 = vrot.slane %v1952_v39, 4 }
 0x188   : > { %v1145_v9 = vpop.permute.xlu0 %1144  ;;  %v1959_v19 = vrot.slane %v6762_v18, 4  ;;  %v1124_v45 = vsel %vm565_vm10, %v1122_v16, %v1123_v27  ;;  %v1920_v28 = vsel %vm769_vm12, %v1917_v5, %v1919_v55  ;;  %v1940_v59 = vrot.slane %v1933_v14, 4 }
 0x189   : > { %1900 = vrot.lane.b32.xlu1 %v1897_v43, %s9113_s8  ;;  %4919 = vst.msk [vmem:[%s6112_s23 + $0x88] sm:$0xff] %vm388_vm15, %v878_v49  ;;  %v1218_v2 = vmul.f32 %v1216_v13, %v6015_v61  ;;  %v1219_v25 = vmul.f32 %v1216_v13, %v6036_v56  ;;  %v5325_v43 = vpop.eup %5324  ;;  %v1129_v36 = vadd.f32 %v1124_v45, %v1112_v57  ;;  %v2066_v55 = vstv %s6787_s30  ;;  %s6834_s30 = sld [smem:[#allocation7 + $0x189]] }
 0x18a   : > { %1864 = vrot.lane.b32.xlu0 %v1861_v46, %s9116_s10  ;;  %v1151_v32 = vadd.f32 %v1147_v30, %v1130_v60  ;;  %v1960_v27 = vsel %vm769_vm12, %v1958_v52, %v1959_v19  ;;  %v1954_v46 = vmul.f32 %v6727_v48, %v6436_v40  ;;  %v1217_v8 = vmul.f32 %v1216_v13, %v6024_v21 }
 0x18b   : > { %v1168_v1 = vpop.permute.xlu1 %1167  ;;  %v5327_v5 = vpop.eup %5326  ;;  %v1941_v30 = vsel %vm769_vm12, %v1938_v29, %v1940_v59  ;;  %v1224_v39 = vrot.slane %v1218_v2, 3  ;;  %v1226_v48 = vrot.slane %v1219_v25, 3  ;;  %v2039_v35 = vmul.f32 %v5325_v43, %v6533_v33 }
 0x18c   : > { %v1166_v22 = vpop.permute.xlu0 %1165  ;;  %v1172_v4 = vadd.f32 %v1168_v1, %v1151_v32  ;;  %v1150_v10 = vadd.f32 %v1145_v9, %v1129_v36  ;;  %v1961_v42 = vrot.slane %v1954_v46, 4  ;;  %v2040_v54 = vmul.f32 %v5327_v5, %v6536_v63 }
 0x18d   : > { %1921 = vrot.lane.b32.xlu1 %v1918_v41, %s9114_s11  ;;  %v1223_v33 = vrot.slane %v1217_v8, 3  ;;  %v1227_v9 = vsel %vm667_vm11, %v1224_v39, %v1226_v48  ;;  %v1317_v1 = vstv %s6782_s14  ;;  %s6828_s14 = sld [smem:[#allocation2 + $0x201]]  ;;  %v2094_v59 = vstv %s6792_s15 }
 0x18e   : > { %1902 = vrot.lane.b32.xlu0 %v1899_v50, %s9113_s8  ;;  %v1171_v16 = vadd.f32 %v1166_v22, %v1150_v10  ;;  %v1962_v13 = vsel %vm769_vm12, %v1959_v19, %v1961_v42  ;;  %v6817_v50 = vsel %vm5797_vm6, %v2040_v54, 0.0  ;;  %v6825_v60 = vmul.f32 %v1317_v1, %v6015_v61  ;;  %s6876_s15 = sld [smem:[#allocation7 + $0x18c]] }
 0x18f   : > { %v1189_v47 = vpop.permute.xlu1 %1188  ;;  %v1320_v52 = vmul.f32 %v1317_v1, %v6036_v56  ;;  %v1225_v19 = vsel %vm667_vm11, %v1223_v33, %v1224_v39  ;;  %v2068_v45 = vmul.f32 %v2066_v55, %v6817_v50  ;;  %v6838_v22 = vsel %vm5779_vm4, %v2039_v35, 0.0 }
 0x190   : > { %v1187_v51 = vpop.permute.xlu0 %1186  ;;  %v1193_v49 = vadd.f32 %v1189_v47, %v1172_v4  ;;  %v2080_v61 = vstv %s6789_s12  ;;  %v1325_v43 = vrot.slane %v6825_v60, 4  ;;  %v2067_v32 = vmul.f32 %v2066_v55, %v6838_v22  ;;  %s6854_s12 = sld [smem:[#allocation7 + $0x18b]] }
 0x191   : > { %1942 = vrot.lane.b32.xlu1 %v1939_v58, %s9115_s13  ;;  %v1192_v11 = vadd.f32 %v1187_v51, %v1171_v16  ;;  %v1327_v36 = vrot.slane %v1320_v52, 4  ;;  %v2139_v46 = vstv %s6801_s25  ;;  %v1418_v51 = vstv %s6812_s16  ;;  %s6961_s25 = sld [smem:[#allocation7 + $0x105]] }
 0x192   : > { %1923 = vrot.lane.b32.xlu0 %v1920_v28, %s9114_s11  ;;  %v5329_v41 = vpop.eup %5328  ;;  %v1318_v28 = vmul.f32 %v1317_v1, %v6024_v21  ;;  %v2082_v21 = vmul.f32 %v2080_v61, %v6817_v50  ;;  %v6859_v4 = vstv %s6820_s7  ;;  %v2202_v16 = vstv %s6834_s30  ;;  %s7039_s16 = sld [smem:[#allocation7 + $0x192]] }
 0x193   : > { %v1210_v0 = vpop.permute.xlu1 %1209  ;;  %v2041_v63 = vmul.f32 %v5329_v41, %v6576_v53  ;;  %v1508_v41 = vstv %s6822_s9  ;;  %v1328_v42 = vsel %vm769_vm12, %v1325_v43, %v1327_v36  ;;  %v2140_v55 = vmul.f32 %v2139_v46, %v6838_v22  ;;  %s7049_s7 = sld [smem:[#allocation7 + $0x193]] }
 0x194   : > { %v1208_v18 = vpop.permute.xlu0 %1207  ;;  %v1214_v15 = vadd.f32 %v1210_v0, %v1193_v49  ;;  %v2160_v0 = vstv %s6803_s26  ;;  %v1324_v48 = vrot.slane %v1318_v28, 4  ;;  %s6968_s26 = sld [smem:[#allocation7 + $0x190]] }
 0x195   : > { %1963 = vrot.lane.b32.xlu1 %v1960_v27, %s9116_s10  ;;  %v1213_v57 = vadd.f32 %v1208_v18, %v1192_v11  ;;  %v2108_v27 = vstv %s6798_s17  ;;  %v6863_v8 = vsel %vm5815_vm8, %v2041_v63, 0.0  ;;  %v2081_v18 = vmul.f32 %v2080_v61, %v6838_v22  ;;  %s6944_s17 = sld [smem:[#allocation7 + $0x18e]] }
 0x196   : > { %1944 = vrot.lane.b32.xlu0 %v1941_v30, %s9115_s13  ;;  %v1231_v53 = vadd.f32 %v1227_v9, %v1214_v15  ;;  %v2546_v15 = vmul.f32 %v5742_v12, %v6859_v4  ;;  %v2142_v1 = vmul.f32 %v2139_v46, %v6863_v8  ;;  %v2161_v60 = vmul.f32 %v2160_v0, %v6838_v22  ;;  %s7073_s9 = sld [smem:[#allocation7 + $0x195]] }
 0x197   : > { %v1248_v29 = vpop.permute.xlu1 %1247  ;;  %v1230_v2 = vadd.f32 %v1225_v19, %v1213_v57  ;;  %v6889_v57 = vstv %s6845_s1  ;;  %v2162_v52 = vmul.f32 %v2160_v0, %v6817_v50  ;;  %v2163_v19 = vmul.f32 %v2160_v0, %v6863_v8  ;;  %s6932_s1 = sld [smem:[#allocation7 + $0x18d]] }
 0x198   : > { %v1246_v58 = vpop.permute.xlu0 %1245  ;;  %v1252_v25 = vadd.f32 %v1248_v29, %v1231_v53  ;;  %v2096_v29 = vmul.f32 %v2094_v59, %v6817_v50  ;;  %v2095_v61 = vmul.f32 %v2094_v59, %v6838_v22  ;;  %v2149_v36 = vrot.slane %v2142_v1, 1  ;;  %s7093_s30 = sld [smem:[#allocation7 + $0x196]] }
 0x199   : > { %2045 = vrot.lane.b32.xlu1 %v2039_v35, %s9114_s11  ;;  %v2181_v35 = vstv %s6805_s6  ;;  %v1251_v10 = vadd.f32 %v1246_v58, %v1230_v2  ;;  %v2567_v59 = vmul.f32 %v6889_v57, %v5752_v24  ;;  %v2146_v0 = vrot.slane %v2140_v55, 1  ;;  %s7002_s6 = sld [smem:[#allocation7 + $0x191]] }
 0x19a   : > { %1965 = vrot.lane.b32.xlu0 %v1962_v13, %s9116_s10  ;;  %v2205_v55 = vmul.f32 %v2202_v16, %v6863_v8 }
 0x19b   : > { %v1269_v14 = vpop.permute.xlu1 %1268 }
 0x19c   : > { %v1267_v56 = vpop.permute.xlu0 %1266  ;;  %v1273_v5 = vadd.f32 %v1269_v14, %v1252_v25  ;;  %v6886_v14 = vstv %s6841_s0  ;;  %s6902_s0 = sld [smem:[#allocation5 + $0x4]] }
 0x19d   : > { %2049 = vrot.lane.b32.xlu1 %v2041_v63, %s9114_s11  ;;  %v1272_v33 = vadd.f32 %v1267_v56, %v1251_v10  ;;  %v2141_v63 = vmul.f32 %v2139_v46, %v6817_v50  ;;  %v2110_v56 = vmul.f32 %v2108_v27, %v6817_v50  ;;  %v2109_v10 = vmul.f32 %v2108_v27, %v6838_v22 }
 0x19e   : > { %2047 = vrot.lane.b32.xlu0 %v2040_v54, %s9114_s11  ;;  %v6869_v54 = vstv %s6828_s14  ;;  %v2182_v27 = vmul.f32 %v2181_v35, %v6838_v22  ;;  %s7085_s14 = sld [smem:[#allocation7 + $0x10a]] }
 0x19f   : > { %v1290_v47 = vpop.permute.xlu1 %1289  ;;  %v2551_v58 = vmul.f32 %v6869_v54, %v5750_v23  ;;  %v2147_v25 = vrot.slane %v2141_v63, 1 }
 0x1a0   : > { %v1288_v30 = vpop.permute.xlu0 %1287  ;;  %v1294_v49 = vadd.f32 %v1290_v47, %v1273_v5  ;;  %v6900_v47 = vstv %s6854_s12  ;;  %v2547_v5 = vmul.f32 %v5757_v31, %v6859_v4  ;;  %s7109_s12 = sld [smem:[#allocation7 + $0x197]] }
 0x1a1   : > { %2073 = vrot.lane.b32.xlu1 %v2068_v45, %s9113_s8  ;;  %v1293_v53 = vadd.f32 %v1288_v30, %v1272_v33  ;;  %v1326_v45 = vsel %vm769_vm12, %v1324_v48, %v1325_v43  ;;  %v2554_v46 = vadd.f32 %v2551_v58, %v2546_v15  ;;  %v2559_v43 = vmul.f32 %v5747_v20, %v6886_v14 }
 0x1a2   : > { %2071 = vrot.lane.b32.xlu0 %v2067_v32, %s9113_s8  ;;  %v2167_v30 = vrot.slane %v2161_v60, 1  ;;  %v2170_v48 = vrot.slane %v2163_v19, 1  ;;  %v2150_v33 = vsel %vm463_vm9, %v2147_v25, %v2149_v36  ;;  %v2148_v60 = vsel %vm463_vm9, %v2146_v0, %v2147_v25 }
 0x1a3   : > { %v1311_v39 = vpop.permute.xlu1 %1310  ;;  %v2562_v58 = vadd.f32 %v2559_v43, %v2554_v46  ;;  %v2203_v19 = vmul.f32 %v2202_v16, %v6838_v22  ;;  %v2188_v46 = vrot.slane %v2182_v27, 1  ;;  %v2212_v0 = vrot.slane %v2205_v55, 1 }
 0x1a4   : > { %v1315_v9 = vadd.f32 %v1311_v39, %v1294_v49  ;;  %v1309_v11 = vpop.permute.xlu0 %1308  ;;  %v2168_v39 = vrot.slane %v2162_v52, 1  ;;  %v2183_v49 = vmul.f32 %v2181_v35, %v6817_v50 }
 0x1a5   : > { %2087 = vrot.lane.b32.xlu1 %v2082_v21, %s9114_s11  ;;  %v1314_v28 = vadd.f32 %v1309_v11, %v1293_v53  ;;  %v6923_v11 = vmul.f32 %v2202_v16, %v6817_v50  ;;  %v6942_v16 = vmul.f32 %v6900_v47, %v6817_v50 }
 0x1a6   : > { %2085 = vrot.lane.b32.xlu0 %v2081_v18, %s9114_s11  ;;  %v1332_v2 = vadd.f32 %v1328_v42, %v1315_v9  ;;  %v6915_v42 = vstv %s6876_s15  ;;  %v2552_v18 = vmul.f32 %v6869_v54, %v5762_v37  ;;  %v2184_v9 = vmul.f32 %v2181_v35, %v6863_v8  ;;  %s7135_s15 = sld [smem:[#allocation7 + $0x198]] }
 0x1a7   : > { %v1349_v13 = vpop.permute.xlu1 %1348  ;;  %v2171_v52 = vsel %vm463_vm9, %v2168_v39, %v2170_v48  ;;  %v6935_v35 = vstv %s6902_s0  ;;  %v2210_v43 = vrot.slane %v6923_v11, 1  ;;  %v2209_v48 = vrot.slane %v2203_v19, 1  ;;  %v9120_v19 = vld [vmem:[#allocation16_spill] sm:$0xff]  ;;  %s7142_s0 = sld [smem:[#allocation7 + $0x10f]] }
 0x1a8   : > { %v1347_v32 = vpop.permute.xlu0 %1346  ;;  %v1353_v15 = vadd.f32 %v1349_v13, %v1332_v2  ;;  %v2169_v13 = vsel %vm463_vm9, %v2167_v30, %v2168_v39  ;;  %v2189_v2 = vrot.slane %v2183_v49, 1  ;;  %v2191_v25 = vrot.slane %v2184_v9, 1 }
 0x1a9   : > { %2101 = vrot.lane.b32.xlu1 %v2096_v29, %s9115_s13  ;;  %v1331_v29 = vadd.f32 %v1326_v45, %v1314_v28  ;;  %v2555_v45 = vadd.f32 %v2552_v18, %v2547_v5  ;;  %v2568_v39 = vmul.f32 %v6889_v57, %v5764_v38  ;;  %v2548_v49 = vmul.f32 %v6859_v4, %v5734_v6 }
 0x1aa   : > { %2099 = vrot.lane.b32.xlu0 %v2095_v61, %s9115_s13  ;;  %v2560_v61 = vmul.f32 %v5760_v34, %v6886_v14  ;;  %v2553_v18 = vmul.f32 %v6869_v54, %v5736_v7  ;;  %v2570_v9 = vadd.f32 %v2567_v59, %v2562_v58  ;;  %v2190_v27 = vsel %vm463_vm9, %v2188_v46, %v2189_v2 }
 0x1ab   : > { %v1370_v21 = vpop.permute.xlu1 %1369  ;;  %v2213_v4 = vsel %vm463_vm9, %v2210_v43, %v2212_v0  ;;  %v2241_v54 = vmul.f32 %v6900_v47, %v6838_v22  ;;  %v2248_v11 = vrot.slane %v6942_v16, 2  ;;  %v6975_v58 = vmul.f32 %v6915_v42, %v6817_v50 }
 0x1ac   : > { %v1368_v63 = vpop.permute.xlu0 %1367  ;;  %v1374_v53 = vadd.f32 %v1370_v21, %v1353_v15  ;;  %v2262_v46 = vmul.f32 %v6915_v42, %v6838_v22  ;;  %v2303_v0 = vstv %s6944_s17  ;;  %s7187_s17 = sld [smem:[#allocation7 + $0x201]] }
 0x1ad   : > { %2115 = vrot.lane.b32.xlu1 %v2110_v56, %s9116_s10  ;;  %v1352_v56 = vadd.f32 %v1347_v32, %v1331_v29  ;;  %v2243_v32 = vmul.f32 %v6900_v47, %v6863_v8  ;;  %v2282_v47 = vstv %s6932_s1  ;;  %s7181_s1 = sld [smem:[#allocation7 + $0x114]] }
 0x1ae   : > { %2113 = vrot.lane.b32.xlu0 %v2109_v10, %s9116_s10  ;;  %v2563_v10 = vadd.f32 %v2560_v61, %v2555_v45  ;;  %v2561_v45 = vmul.f32 %v6886_v14, %v9120_v19  ;;  %v7000_v16 = vmul.f32 %v2282_v47, %v6817_v50 }
 0x1af   : > { %v1391_v1 = vpop.permute.xlu1 %1390  ;;  %v1373_v5 = vadd.f32 %v1368_v63, %v1352_v56  ;;  %v2250_v59 = vrot.slane %v2243_v32, 2 }
 0x1b0   : > { %v1395_v28 = vadd.f32 %v1391_v1, %v1374_v53  ;;  %v1389_v36 = vpop.permute.xlu0 %1388 }
 0x1b1   : > { %2153 = vrot.lane.b32.xlu1 %v2150_v33, %s9113_s8  ;;  %v1394_v29 = vadd.f32 %v1389_v36, %v1373_v5  ;;  %v2192_v33 = vsel %vm463_vm9, %v2189_v2, %v2191_v25  ;;  %v6989_v2 = vadd.f32 %v6935_v35, %v2570_v9  ;;  %v2211_v36 = vsel %vm463_vm9, %v2209_v48, %v2210_v43 }
 0x1b2   : > { %2151 = vrot.lane.b32.xlu0 %v2148_v60, %s9113_s8  ;;  %v2571_v60 = vadd.f32 %v2568_v39, %v2563_v10  ;;  %v2285_v10 = vmul.f32 %v2282_v47, %v6863_v8  ;;  %v7018_v9 = vstv %s6961_s25  ;;  %s7190_s25 = sld [smem:[#allocation7 + $0x202]] }
 0x1b3   : > { %v1412_v21 = vpop.permute.xlu1 %1411 }
 0x1b4   : > { %v1416_v30 = vadd.f32 %v1412_v21, %v1395_v28  ;;  %v1410_v63 = vpop.permute.xlu0 %1409  ;;  %v2264_v28 = vmul.f32 %v6915_v42, %v6863_v8  ;;  %v2247_v21 = vrot.slane %v2241_v54, 2  ;;  %v2269_v42 = vrot.slane %v6975_v58, 2 }
 0x1b5   : > { %2174 = vrot.lane.b32.xlu1 %v2171_v52, %s9114_s11  ;;  %v1415_v55 = vadd.f32 %v1410_v63, %v1394_v29  ;;  %v2556_v52 = vadd.f32 %v2553_v18, %v2548_v49  ;;  %v7008_v43 = vadd.f32 %v6935_v35, %v2571_v60  ;;  %v2578_v49 = vsub.f32 0.0, %v6989_v2 }
 0x1b6   : > { %v6958_v15 = vadd.f32 %v1418_v51, %v1416_v30  ;;  %2172 = vrot.lane.b32.xlu0 %v2169_v13, %s9114_s11  ;;  %v9121_v30 = vld [vmem:[#allocation17_spill] sm:$0xff]  ;;  %v2271_v48 = vrot.slane %v2264_v28, 2  ;;  %v1509_v29 = vmul.f32 %v1508_v41, %v6350_v62  ;;  %v2341_v63 = vstv %s6968_s26  ;;  %s7192_s26 = sld [smem:[#allocation7 + $0x203]] }
 0x1b7   : > { %v1494_v1 = vpop.permute.xlu1 %1493  ;;  %v6984_v61 = vadd.f32 %v1418_v51, %v1415_v55  ;;  %v2251_v51 = vsel %vm565_vm10, %v2248_v11, %v2250_v59  ;;  %v2564_v5 = vadd.f32 %v2561_v45, %v2556_v52  ;;  %v2569_v32 = vmul.f32 %v6889_v57, %v9121_v30 }
 0x1b8   : > { %v1422_v53 = vsub.f32 0.0, %v6958_v15  ;;  %4962 = vst.msk [vmem:[%s6112_s23 + $0x26] sm:$0xff] %vm388_vm15, %v1494_v1  ;;  %v1492_v13 = vpop.permute.xlu0 %1491  ;;  %v2249_v1 = vsel %vm565_vm10, %v2247_v21, %v2248_v11  ;;  %v2268_v57 = vrot.slane %v2262_v46, 2  ;;  %v2305_v54 = vmul.f32 %v2303_v0, %v6817_v50 }
 0x1b9   : > { %2195 = vrot.lane.b32.xlu1 %v2192_v33, %s9115_s13  ;;  %v1421_v14 = vsub.f32 0.0, %v6984_v61  ;;  %4961 = vst.msk [vmem:[%s6112_s23 + $0x1e] sm:$0xfc] %vm386_vm14, %v1492_v13  ;;  %v2579_v55 = vsub.f32 0.0, %v7008_v43  ;;  %v2272_v59 = vsel %vm565_vm10, %v2269_v42, %v2271_v48  ;;  %v2292_v58 = vrot.slane %v2285_v10, 2 }
 0x1ba   : > { %v1425_v56 = vmul.f32 1.442695, %v1422_v53  ;;  %2193 = vrot.lane.b32.xlu0 %v2190_v27, %s9115_s13  ;;  %v2283_v27 = vmul.f32 %v2282_v47, %v6838_v22  ;;  %v2572_v53 = vadd.f32 %v2569_v32, %v2564_v5  ;;  %v2306_v11 = vmul.f32 %v2303_v0, %v6863_v8 }
 0x1bb   : > { %v1518_v25 = vpop.permute.xlu1 %1517  ;;  %v1423_v39 = vmul.f32 1.442695, %v1421_v14  ;;  %v2581_v60 = vmul.f32 1.442695, %v2578_v49  ;;  %v7036_v45 = vmul.f32 %v7018_v9, %v6350_v62  ;;  %v7042_v13 = vmul.f32 %v2341_v63, %v6817_v50 }
 0x1bc   : > { %5330 = vpow2.f32 %v1425_v56  ;;  %v1496_v18 = vpop.permute.xlu0 %1495  ;;  %v2304_v56 = vmul.f32 %v2303_v0, %v6838_v22  ;;  %v2289_v28 = vrot.slane %v2283_v27, 2  ;;  %v2362_v21 = vstv %s7002_s6  ;;  %s7198_s6 = sld [smem:[#allocation7 + $0x204]] }
 0x1bd   : > { %2216 = vrot.lane.b32.xlu1 %v2213_v4, %s9116_s10  ;;  %5332 = vpow2.f32 %v1423_v39  ;;  %4963 = vst.msk [vmem:[%s6112_s23 + $0x2e] sm:$0x3] %vm390_vm13, %v1496_v18  ;;  %v2290_v4 = vrot.slane %v7000_v16, 2  ;;  %v2270_v46 = vsel %vm565_vm10, %v2268_v57, %v2269_v42  ;;  %v2311_v14 = vrot.slane %v2305_v54, 2 }
 0x1be   : > { %2214 = vrot.lane.b32.xlu0 %v2211_v36, %s9116_s10  ;;  %v2344_v36 = vmul.f32 %v2341_v63, %v6863_v8  ;;  %v2583_v0 = vmul.f32 1.442695, %v2579_v55  ;;  %v1523_v16 = vadd.f32 %v1518_v25, %v1509_v29  ;;  %v2313_v32 = vrot.slane %v2306_v11, 2 }
 0x1bf   : > { %v1532_v33 = vpop.permute.xlu1 %1531  ;;  %v2293_v5 = vsel %vm565_vm10, %v2290_v4, %v2292_v58  ;;  %5334 = vpow2.f32 %v2581_v60  ;;  %v1510_v39 = vmul.f32 %v1508_v41, %v6382_v44  ;;  %v7062_v10 = vmul.f32 %v7018_v9, %v6382_v44 }
 0x1c0   : > { %v7032_v52 = vpop.permute.xlu0 %1519  ;;  %v2310_v49 = vrot.slane %v2304_v56, 2  ;;  %v1575_v18 = vrot.slane %v7036_v45, 1  ;;  %v2349_v25 = vrot.slane %v7042_v13, 3  ;;  %v2351_v29 = vrot.slane %v2344_v36, 3 }
 0x1c1   : > { %2254 = vrot.lane.b32.xlu1 %v2251_v51, %s9113_s8  ;;  %v7052_v51 = vadd.f32 %v6935_v35, %v2572_v53  ;;  %v2342_v35 = vmul.f32 %v2341_v63, %v6838_v22  ;;  %v7070_v41 = vmul.f32 %v2362_v21, %v6817_v50  ;;  %v2365_v57 = vmul.f32 %v2362_v21, %v6863_v8 }
 0x1c2   : > { %2252 = vrot.lane.b32.xlu0 %v2249_v1, %s9113_s8  ;;  %5336 = vpow2.f32 %v2583_v0  ;;  %v1537_v54 = vadd.f32 %v1532_v33, %v1523_v16  ;;  %v2291_v55 = vsel %vm565_vm10, %v2289_v28, %v2290_v4  ;;  %v2314_v53 = vsel %vm565_vm10, %v2311_v14, %v2313_v32 }
 0x1c3   : > { %v1546_v47 = vpop.permute.xlu1 %1545  ;;  %v2580_v27 = vsub.f32 0.0, %v7052_v51  ;;  %v1576_v58 = vrot.slane %v7062_v10, 1  ;;  %v2312_v60 = vsel %vm565_vm10, %v2310_v49, %v2311_v14  ;;  %v1571_v45 = vmul.f32 %v7018_v9, %v6436_v40 }
 0x1c4   : > { %v7058_v48 = vpop.permute.xlu0 %1533  ;;  %v2383_v56 = vstv %s7039_s16  ;;  %v2348_v33 = vrot.slane %v2342_v35, 3  ;;  %v2352_v4 = vsel %vm667_vm11, %v2349_v25, %v2351_v29  ;;  %v2363_v28 = vmul.f32 %v2362_v21, %v6838_v22  ;;  %s7202_s16 = sld [smem:[#allocation7 + $0x206]] }
 0x1c5   : > { %2275 = vrot.lane.b32.xlu1 %v2272_v59, %s9114_s11  ;;  %v2370_v36 = vrot.slane %v7070_v41, 3  ;;  %v2404_v14 = vstv %s7049_s7  ;;  %v2585_v9 = vmul.f32 1.442695, %v2580_v27  ;;  %v1551_v16 = vadd.f32 %v1546_v47, %v1537_v54  ;;  %s7204_s7 = sld [smem:[#allocation7 + $0x207]] }
 0x1c6   : > { %2273 = vrot.lane.b32.xlu0 %v2270_v46, %s9114_s11  ;;  %v2372_v46 = vrot.slane %v2365_v57, 3  ;;  %v2386_v32 = vmul.f32 %v2383_v56, %v6863_v8  ;;  %v1577_v10 = vsel %vm463_vm9, %v1575_v18, %v1576_v58  ;;  %v1578_v49 = vrot.slane %v1571_v45, 1 }
 0x1c7   : > { %v1560_v42 = vpop.permute.xlu1 %1559  ;;  %v2384_v29 = vmul.f32 %v2383_v56, %v6838_v22  ;;  %v2369_v41 = vrot.slane %v2363_v28, 3  ;;  %v7100_v57 = vmul.f32 %v2404_v14, %v6817_v50  ;;  %v2350_v47 = vsel %vm667_vm11, %v2348_v33, %v2349_v25 }
 0x1c8   : > { %v1548_v59 = vpop.permute.xlu0 %1547  ;;  %v2407_v27 = vmul.f32 %v2404_v14, %v6863_v8  ;;  %v2442_v18 = vstv %s7073_s9  ;;  %v2373_v54 = vsel %vm667_vm11, %v2370_v36, %v2372_v46  ;;  %v7115_v33 = vstv %s7085_s14  ;;  %s7207_s9 = sld [smem:[#allocation7 + $0x208]] }
 0x1c9   : > { %v5331_v1 = vpop.eup %5330  ;;  %2296 = vrot.lane.b32.xlu1 %v2293_v5, %s9115_s13  ;;  %v2385_v5 = vmul.f32 %v2383_v56, %v6817_v50  ;;  %v2390_v56 = vrot.slane %v2384_v29, 3  ;;  %v2371_v28 = vsel %vm667_vm11, %v2369_v41, %v2370_v36  ;;  %v2444_v46 = vmul.f32 %v2442_v18, %v6817_v50  ;;  %s7214_s14 = sld [smem:[#allocation8 + $0x2]] }
 0x1ca   : > { %v1428_v63 = vadd.f32 1.0, %v5331_v1  ;;  %v5333_v13 = vpop.eup %5332  ;;  %2294 = vrot.lane.b32.xlu0 %v2291_v55, %s9115_s13  ;;  %v1565_v1 = vadd.f32 %v1560_v42, %v1551_v16  ;;  %v2393_v55 = vrot.slane %v2386_v32, 3  ;;  %v7132_v29 = vmul.f32 %v7115_v33, %v6382_v44 }
 0x1cb   : > { %v7079_v11 = vpop.permute.xlu1 %1597  ;;  %v1427_v0 = vadd.f32 1.0, %v5333_v13  ;;  %v2391_v42 = vrot.slane %v2385_v5, 3  ;;  %v2412_v13 = vrot.slane %v7100_v57, 3  ;;  %v2443_v41 = vmul.f32 %v2442_v18, %v6838_v22 }
 0x1cc   : > { %5338 = vrcp.f32 %v1428_v63  ;;  %v1562_v21 = vpop.permute.xlu0 %1561  ;;  %v1524_v63 = vadd.f32 %v7032_v52, %v1510_v39  ;;  %v1582_v39 = vadd.f32 %v1577_v10, %v1565_v1 }
 0x1cd   : > { %2317 = vrot.lane.b32.xlu1 %v2314_v53, %s9116_s10  ;;  %5340 = vrcp.f32 %v1427_v0  ;;  %v5335_v53 = vpop.eup %5334  ;;  %v2463_v0 = vstv %s7093_s30  ;;  %s7222_s30 = sld [smem:[#allocation7 + $0x209]] }
 0x1ce   : > { %2315 = vrot.lane.b32.xlu0 %v2312_v60, %s9116_s10  ;;  %5342 = vpow2.f32 %v2585_v9  ;;  %v1579_v60 = vsel %vm463_vm9, %v1576_v58, %v1578_v49  ;;  %v1538_v52 = vadd.f32 %v7058_v48, %v1524_v63  ;;  %v2414_v58 = vrot.slane %v2407_v27, 3 }
 0x1cf   : > { %v1619_v35 = vpop.permute.xlu1 %1618  ;;  %v2445_v9 = vmul.f32 %v2442_v18, %v6863_v8  ;;  %v5337_v16 = vpop.eup %5336  ;;  %v1670_v48 = vmul.f32 %v7115_v33, %v6350_v62  ;;  %v2587_v36 = vadd.f32 1.0, %v5335_v53  ;;  %v2392_v49 = vsel %vm667_vm11, %v2390_v56, %v2391_v42 }
 0x1d0   : > { %v7112_v45 = vpop.permute.xlu0 %1599  ;;  %v1552_v5 = vadd.f32 %v1548_v59, %v1538_v52  ;;  %v1603_v57 = vadd.f32 %v7079_v11, %v1582_v39  ;;  %v2466_v27 = vmul.f32 %v2463_v0, %v6863_v8  ;;  %v2415_v18 = vsel %vm667_vm11, %v2412_v13, %v2414_v58 }
 0x1d1   : > { %2355 = vrot.lane.b32.xlu1 %v2352_v4, %s9113_s8  ;;  %v2405_v4 = vmul.f32 %v2404_v14, %v6838_v22  ;;  %v2394_v14 = vsel %vm667_vm11, %v2391_v42, %v2393_v55  ;;  %v2452_v42 = vrot.slane %v2445_v9, 4  ;;  %v2484_v53 = vstv %s7109_s12  ;;  %s7226_s12 = sld [smem:[#allocation2 + $0x280]] }
 0x1d2   : > { %2353 = vrot.lane.b32.xlu0 %v2350_v47, %s9113_s8  ;;  %v1566_v59 = vadd.f32 %v1562_v21, %v1552_v5  ;;  %v7139_v47 = vmul.f32 %v2463_v0, %v6817_v50  ;;  %v2588_v21 = vadd.f32 1.0, %v5337_v16  ;;  %v1624_v55 = vadd.f32 %v1619_v35, %v1603_v57 }
 0x1d3   : > { %v1640_v25 = vpop.permute.xlu1 %1639  ;;  %v2411_v1 = vrot.slane %v2405_v4, 3  ;;  %5344 = vrcp.f32 %v2587_v36  ;;  %v1676_v4 = vrot.slane %v1670_v48, 2  ;;  %v1677_v52 = vrot.slane %v7132_v29, 2 }
 0x1d4   : > { %v1621_v32 = vpop.permute.xlu0 %1620  ;;  %v2449_v5 = vrot.slane %v2443_v41, 4  ;;  %v1645_v58 = vadd.f32 %v1640_v25, %v1624_v55  ;;  %v2473_v9 = vrot.slane %v2466_v27, 4  ;;  %v2487_v35 = vmul.f32 %v2484_v53, %v6863_v8 }
 0x1d5   : > { %2376 = vrot.lane.b32.xlu1 %v2373_v54, %s9114_s11  ;;  %v2450_v54 = vrot.slane %v2444_v46, 4  ;;  %v2471_v46 = vrot.slane %v7139_v47, 4  ;;  %5346 = vrcp.f32 %v2588_v21  ;;  %v2413_v48 = vsel %vm667_vm11, %v2411_v1, %v2412_v13 }
 0x1d6   : > { %2374 = vrot.lane.b32.xlu0 %v2371_v28, %s9114_s11  ;;  %v2464_v28 = vmul.f32 %v2463_v0, %v6838_v22  ;;  %v1672_v41 = vmul.f32 %v7115_v33, %v6436_v40  ;;  %v2505_v47 = vstv %s7135_s15  ;;  %v1770_v13 = vstv %s7142_s0  ;;  %s7228_s15 = sld [smem:[#allocation2 + $0x281]] }
 0x1d7   : > { %v1661_v10 = vpop.permute.xlu1 %1660  ;;  %v2453_v36 = vsel %vm769_vm12, %v2450_v54, %v2452_v42  ;;  %v2451_v57 = vsel %vm769_vm12, %v2449_v5, %v2450_v54  ;;  %v2485_v1 = vmul.f32 %v2484_v53, %v6838_v22  ;;  %v2494_v33 = vrot.slane %v2487_v35, 4  ;;  %s7233_s0 = sld [smem:[#allocation7 + $0x20b]] }
 0x1d8   : > { %v1642_v56 = vpop.permute.xlu0 %1641  ;;  %v1666_v25 = vadd.f32 %v1661_v10, %v1645_v58  ;;  %v2474_v10 = vsel %vm769_vm12, %v2471_v46, %v2473_v9  ;;  %v2507_v21 = vmul.f32 %v2505_v47, %v6817_v50  ;;  %v7179_v58 = vmul.f32 %v1770_v13, %v6382_v44 }
 0x1d9   : > { %v5339_v63 = vpop.eup %5338  ;;  %2397 = vrot.lane.b32.xlu1 %v2394_v14, %s9115_s13  ;;  %v1583_v14 = vadd.f32 %v1579_v60, %v1566_v59  ;;  %v2506_v9 = vmul.f32 %v2505_v47, %v6838_v22 }
 0x1da   : > { %v1432_v11 = vmul.f32 %v5339_v63, %v6958_v15  ;;  %v5341_v16 = vpop.eup %5340  ;;  %2395 = vrot.lane.b32.xlu0 %v2392_v49, %s9115_s13  ;;  %v2486_v15 = vmul.f32 %v2484_v53, %v6817_v50  ;;  %v1678_v49 = vsel %vm565_vm10, %v1676_v4, %v1677_v52 }
 0x1db   : > { %v1699_v39 = vpop.permute.xlu1 %1698  ;;  %v5343_v0 = vpop.eup %5342  ;;  %v1431_v60 = vmul.f32 %v5341_v16, %v6984_v61  ;;  %v1604_v27 = vadd.f32 %v7112_v45, %v1583_v14  ;;  %v2470_v61 = vrot.slane %v2464_v28, 4  ;;  %v1683_v54 = vadd.f32 %v1678_v49, %v1666_v25 }
 0x1dc   : > { %4955 = vst.msk [vmem:[%s6112_s23 + $0x98] sm:$0xff] %vm388_vm15, %v1432_v11  ;;  %v1663_v29 = vpop.permute.xlu0 %1662  ;;  %v2492_v63 = vrot.slane %v2486_v15, 4  ;;  %v2508_v11 = vmul.f32 %v2505_v47, %v6863_v8  ;;  %v1679_v45 = vrot.slane %v1672_v41, 2  ;;  %v1771_v14 = vmul.f32 %v1770_v13, %v6350_v62 }
 0x1dd   : > { %2418 = vrot.lane.b32.xlu1 %v2415_v18, %s9116_s10  ;;  %4954 = vst.msk [vmem:[%s6112_s23 + $0x90] sm:$0xff] %vm388_vm15, %v1431_v60  ;;  %v2589_v18 = vadd.f32 1.0, %v5343_v0  ;;  %v1625_v42 = vadd.f32 %v1621_v32, %v1604_v27  ;;  %v2472_v28 = vsel %vm769_vm12, %v2470_v61, %v2471_v46  ;;  %v2491_v32 = vrot.slane %v2485_v1, 4 }
 0x1de   : > { %2416 = vrot.lane.b32.xlu0 %v2413_v48, %s9116_s10  ;;  %v2495_v53 = vsel %vm769_vm12, %v2492_v63, %v2494_v33  ;;  %v1704_v16 = vadd.f32 %v1699_v39, %v1683_v54  ;;  %v2513_v46 = vrot.slane %v2507_v21, 4  ;;  %v2515_v15 = vrot.slane %v2508_v11, 4 }
 0x1df   : > { %v1720_v59 = vpop.permute.xlu1 %1719  ;;  %v1646_v5 = vadd.f32 %v1642_v56, %v1625_v42  ;;  %5348 = vrcp.f32 %v2589_v18  ;;  %v1680_v0 = vsel %vm565_vm10, %v1677_v52, %v1679_v45  ;;  %v1777_v39 = vrot.slane %v1771_v14, 3 }
 0x1e0   : > { %v1701_v55 = vpop.permute.xlu0 %1700  ;;  %v5345_v35 = vpop.eup %5344  ;;  %v1725_v48 = vadd.f32 %v1720_v59, %v1704_v16  ;;  %v2512_v49 = vrot.slane %v2506_v9, 4  ;;  %v2516_v59 = vsel %vm769_vm12, %v2513_v46, %v2515_v15  ;;  %v1871_v1 = vstv %s7181_s1  ;;  %s7237_s1 = sld [smem:[#allocation7 + $0x20c]] }
 0x1e1   : > { %2456 = vrot.lane.b32.xlu1 %v2453_v36, %s9113_s8  ;;  %v1667_v56 = vadd.f32 %v1663_v29, %v1646_v5  ;;  %v2493_v36 = vsel %vm769_vm12, %v2491_v32, %v2492_v63  ;;  %v1778_v29 = vrot.slane %v7179_v58, 3  ;;  %v2593_v47 = vmul.f32 %v5345_v35, %v6989_v2 }
 0x1e2   : > { %2454 = vrot.lane.b32.xlu0 %v2451_v57, %s9113_s8  ;;  %v5347_v52 = vpop.eup %5346  ;;  %v1773_v33 = vmul.f32 %v1770_v13, %v6436_v40  ;;  %v2514_v42 = vsel %vm769_vm12, %v2512_v49, %v2513_v46  ;;  %v2620_v21 = vstv %s7187_s17  ;;  %v1873_v13 = vmul.f32 %v1871_v1, %v6382_v44  ;;  %s7239_s17 = sld [smem:[#allocation2 + $0x282]] }
 0x1e3   : > { %v1741_v4 = vpop.permute.xlu1 %1740  ;;  %v1684_v41 = vadd.f32 %v1680_v0, %v1667_v56  ;;  %v1779_v63 = vsel %vm667_vm11, %v1777_v39, %v1778_v29  ;;  %v2594_v2 = vmul.f32 %v5347_v52, %v7008_v43  ;;  %v7219_v54 = vsel %vm5779_vm4, %v2593_v47, 0.0 }
 0x1e4   : > { %v1722_v60 = vpop.permute.xlu0 %1721  ;;  %v1746_v57 = vadd.f32 %v1741_v4, %v1725_v48  ;;  %v1872_v4 = vmul.f32 %v1871_v1, %v6350_v62  ;;  %v1780_v5 = vrot.slane %v1773_v33, 3  ;;  %v2634_v62 = vstv %s7190_s25  ;;  %s7260_s25 = sld [smem:[#allocation7 + $0x20d]] }
 0x1e5   : > { %2477 = vrot.lane.b32.xlu1 %v2474_v10, %s9114_s11  ;;  %v1705_v18 = vadd.f32 %v1701_v55, %v1684_v41  ;;  %v1874_v44 = vmul.f32 %v1871_v1, %v6436_v40  ;;  %v1879_v56 = vrot.slane %v1873_v13, 4  ;;  %v2635_v35 = vmul.f32 %v2634_v62, %v7219_v54 }
 0x1e6   : > { %2475 = vrot.lane.b32.xlu0 %v2472_v28, %s9114_s11  ;;  %v2621_v28 = vmul.f32 %v2620_v21, %v7219_v54  ;;  %v1878_v9 = vrot.slane %v1872_v4, 4  ;;  %v1781_v15 = vsel %vm667_vm11, %v1778_v29, %v1780_v5  ;;  %v2648_v0 = vstv %s7192_s26  ;;  %s7343_s26 = sld [smem:[#allocation2 + $0x380]] }
 0x1e7   : > { %v1762_v25 = vpop.permute.xlu1 %1761  ;;  %v1726_v43 = vadd.f32 %v1722_v60, %v1705_v18  ;;  %v1881_v48 = vrot.slane %v1874_v44, 4  ;;  %v7258_v41 = vstv %s7204_s7  ;;  %v7283_v4 = vstv %s7237_s1  ;;  %s7379_s7 = sld [smem:[#allocation7 + $0x210]] }
 0x1e8   : > { %v1743_v27 = vpop.permute.xlu0 %1742  ;;  %v1767_v10 = vadd.f32 %v1762_v25, %v1746_v57  ;;  %v7251_v25 = vsel %vm5797_vm6, %v2594_v2, 0.0  ;;  %v1880_v49 = vsel %vm769_vm12, %v1878_v9, %v1879_v56  ;;  %s7528_s1 = sld [smem:[#allocation7 + $0x215]] }
 0x1e9   : > { %2498 = vrot.lane.b32.xlu1 %v2495_v53, %s9115_s13  ;;  %v1747_v58 = vadd.f32 %v1743_v27, %v1726_v43  ;;  %v3104_v27 = vstv %s7228_s15  ;;  %v2636_v44 = vmul.f32 %v2634_v62, %v7251_v25  ;;  %s7442_s15 = sld [smem:[#allocation7 + $0x185]] }
 0x1ea   : > { %2496 = vrot.lane.b32.xlu0 %v2493_v36, %s9115_s13  ;;  %v1784_v55 = vadd.f32 %v1779_v63, %v1767_v10  ;;  %v2693_v36 = vstv %s7202_s16  ;;  %v2649_v10 = vmul.f32 %v2648_v0, %v7219_v54  ;;  %v7270_v63 = vstv %s7207_s9  ;;  %s7373_s16 = sld [smem:[#allocation7 + $0x180]] }
 0x1eb   : > { %v1800_v61 = vpop.permute.xlu1 %1799  ;;  %v2694_v1 = vmul.f32 %v2693_v36, %v7219_v54  ;;  %v7274_v18 = vmul.f32 %v2693_v36, %v7251_v25  ;;  %v3105_v43 = vmul.f32 %v3104_v27, %v5750_v23  ;;  %s7404_s9 = sld [smem:[#allocation2 + $0x381]] }
 0x1ec   : > { %v1764_v11 = vpop.permute.xlu0 %1763  ;;  %v5349_v14 = vpop.eup %5348  ;;  %v1805_v46 = vadd.f32 %v1800_v61, %v1784_v55  ;;  %v2622_v61 = vmul.f32 %v2620_v21, %v7251_v25 }
 0x1ed   : > { %2519 = vrot.lane.b32.xlu1 %v2516_v59, %s9116_s10  ;;  %v1768_v16 = vadd.f32 %v1764_v11, %v1747_v58  ;;  %v2595_v40 = vmul.f32 %v5349_v14, %v7052_v51  ;;  %v2662_v51 = vstv %s7198_s6  ;;  %v7292_v14 = vstv %s7241_s2  ;;  %s7318_s2 = sld [smem:[#allocation5 + $0x5]] }
 0x1ee   : > { %2517 = vrot.lane.b32.xlu0 %v2514_v42, %s9116_s10  ;;  %v7277_v42 = vstv %s7222_s30  ;;  %v2663_v5 = vmul.f32 %v2662_v51, %v7219_v54  ;;  %s7350_s6 = sld [smem:[#allocation7 + $0x20e]] }
 0x1ef   : > { %v1821_v45 = vpop.permute.xlu1 %1820  ;;  %v1785_v57 = vadd.f32 %v1781_v15, %v1768_v16  ;;  %v7296_v58 = vsel %vm5815_vm8, %v2595_v40, 0.0  ;;  %v2701_v16 = vrot.slane %v7274_v18, 1  ;;  %v2757_v52 = vmul.f32 %v7277_v42, %v7219_v54  ;;  %s7419_s30 = sld [smem:[#allocation7 + $0x211]] }
 0x1f0   : > { %v1802_v32 = vpop.permute.xlu0 %1801  ;;  %v1826_v60 = vadd.f32 %v1821_v45, %v1805_v46  ;;  %v7280_v45 = vstv %s7233_s0  ;;  %v7306_v46 = vmul.f32 %v7258_v41, %v7251_v25  ;;  %s7508_s0 = sld [smem:[#allocation7 + $0x213]] }
 0x1f1   : > { %2601 = vrot.lane.b32.xlu1 %v2594_v2, %s9114_s11  ;;  %v1882_v2 = vsel %vm769_vm12, %v1879_v56, %v1881_v48  ;;  %v1806_v55 = vadd.f32 %v1802_v32, %v1785_v57  ;;  %v2715_v32 = vmul.f32 %v7258_v41, %v7219_v54  ;;  %v3106_v48 = vmul.f32 %v3104_v27, %v5762_v37 }
 0x1f2   : > { %2599 = vrot.lane.b32.xlu0 %v2593_v47, %s9114_s11  ;;  %v3099_v47 = vstv %s7226_s12  ;;  %v3121_v57 = vmul.f32 %v7292_v14, %v5752_v24  ;;  %s7421_s12 = sld [smem:[#allocation2 + $0x382]] }
 0x1f3   : > { %v1842_v53 = vpop.permute.xlu1 %1841  ;;  %v3100_v13 = vmul.f32 %v5742_v12, %v3099_v47 }
 0x1f4   : > { %v1823_v39 = vpop.permute.xlu0 %1822  ;;  %v1847_v59 = vadd.f32 %v1842_v53, %v1826_v60  ;;  %v2700_v53 = vrot.slane %v2694_v1, 1  ;;  %v3101_v60 = vmul.f32 %v5757_v31, %v3099_v47  ;;  %v7326_v1 = vmul.f32 %v7270_v63, %v7251_v25 }
 0x1f5   : > { %2625 = vrot.lane.b32.xlu1 %v2621_v28, %s9113_s8  ;;  %v3112_v28 = vstv %s7239_s17  ;;  %v1827_v9 = vadd.f32 %v1823_v39, %v1806_v55  ;;  %v2736_v39 = vmul.f32 %v7270_v63, %v7219_v54  ;;  %s7541_s17 = sld [smem:[#allocation7 + $0x18a]] }
 0x1f6   : > { %2603 = vrot.lane.b32.xlu0 %v2595_v40, %s9114_s11  ;;  %v3113_v62 = vmul.f32 %v5747_v20, %v3112_v28 }
 0x1f7   : > { %v1863_v29 = vpop.permute.xlu1 %1862 }
 0x1f8   : > { %v1868_v33 = vadd.f32 %v1863_v29, %v1847_v59  ;;  %v1844_v21 = vpop.permute.xlu0 %1843  ;;  %v2650_v59 = vmul.f32 %v2648_v0, %v7251_v25  ;;  %v3114_v0 = vmul.f32 %v5760_v34, %v3112_v28 }
 0x1f9   : > { %2639 = vrot.lane.b32.xlu1 %v2635_v35, %s9114_s11  ;;  %v7309_v35 = vstv %s7260_s25  ;;  %v1848_v29 = vadd.f32 %v1844_v21, %v1827_v9  ;;  %v2702_v21 = vsel %vm463_vm9, %v2700_v53, %v2701_v16  ;;  %v2742_v9 = vrot.slane %v2736_v39, 1  ;;  %s7552_s25 = sld [smem:[#allocation7 + $0x216]] }
 0x1fa   : > { %2627 = vrot.lane.b32.xlu0 %v2622_v61, %s9113_s8  ;;  %v1885_v56 = vadd.f32 %v1880_v49, %v1868_v33  ;;  %v3108_v49 = vadd.f32 %v3105_v43, %v3100_v13  ;;  %v2696_v61 = vmul.f32 %v2693_v36, %v7296_v58  ;;  %v2722_v13 = vrot.slane %v7306_v46, 1 }
 0x1fb   : > { %v1901_v11 = vpop.permute.xlu1 %1900  ;;  %v3107_v36 = vmul.f32 %v3104_v27, %v5736_v7  ;;  %v3115_v39 = vmul.f32 %v3112_v28, %v9120_v19 }
 0x1fc   : > { %v1865_v15 = vpop.permute.xlu0 %1864  ;;  %v1906_v18 = vadd.f32 %v1901_v11, %v1885_v56  ;;  %v2664_v11 = vmul.f32 %v2662_v51, %v7251_v25  ;;  %v2703_v53 = vrot.slane %v2696_v61, 1  ;;  %v2717_v56 = vmul.f32 %v7258_v41, %v7296_v58 }
 0x1fd   : > { %2653 = vrot.lane.b32.xlu1 %v2649_v10, %s9115_s13  ;;  %v2721_v10 = vrot.slane %v2715_v32, 1  ;;  %v1869_v33 = vadd.f32 %v1865_v15, %v1848_v29  ;;  %v3116_v15 = vadd.f32 %v3113_v62, %v3108_v49  ;;  %v7348_v62 = vmul.f32 %v7277_v42, %v7251_v25 }
 0x1fe   : > { %2641 = vrot.lane.b32.xlu0 %v2636_v44, %s9114_s11  ;;  %v3109_v44 = vadd.f32 %v3106_v48, %v3101_v60  ;;  %v3122_v41 = vmul.f32 %v7292_v14, %v5764_v38  ;;  %v2763_v49 = vrot.slane %v2757_v52, 1  ;;  %v7358_v61 = vstv %s7318_s2  ;;  %s7578_s2 = sld [smem:[#allocation7 + $0x217]] }
 0x1ff   : > { %v1922_v40 = vpop.permute.xlu1 %1921  ;;  %v1886_v27 = vadd.f32 %v1882_v2, %v1869_v33  ;;  %v2724_v33 = vrot.slane %v2717_v56, 1  ;;  %v2738_v52 = vmul.f32 %v7270_v63, %v7296_v58  ;;  %v3123_v63 = vmul.f32 %v7292_v14, %v9121_v30 }
 0x200   : > { %v1903_v43 = vpop.permute.xlu0 %1902  ;;  %v1927_v32 = vadd.f32 %v1922_v40, %v1906_v18  ;;  %v2723_v40 = vsel %vm463_vm9, %v2721_v10, %v2722_v13  ;;  %v3117_v48 = vadd.f32 %v3114_v0, %v3109_v44  ;;  %v2704_v10 = vsel %vm463_vm9, %v2701_v16, %v2703_v53 }
 0x201   : > { %2667 = vrot.lane.b32.xlu1 %v2663_v5, %s9116_s10  ;;  %v3102_v5 = vmul.f32 %v3099_v47, %v5734_v6  ;;  %v2743_v47 = vrot.slane %v7326_v1, 1  ;;  %v1907_v28 = vadd.f32 %v1903_v43, %v1886_v27  ;;  %v2764_v44 = vrot.slane %v7348_v62, 1 }
 0x202   : > { %2655 = vrot.lane.b32.xlu0 %v2650_v59, %s9115_s13  ;;  %v2795_v59 = vmul.f32 %v7280_v45, %v7219_v54  ;;  %v7377_v16 = vmul.f32 %v7280_v45, %v7251_v25  ;;  %v2816_v56 = vmul.f32 %v7283_v4, %v7219_v54  ;;  %v2759_v14 = vmul.f32 %v7277_v42, %v7296_v58 }
 0x203   : > { %v1943_v55 = vpop.permute.xlu1 %1942  ;;  %v3110_v29 = vadd.f32 %v3107_v36, %v3102_v5  ;;  %v2744_v18 = vsel %vm463_vm9, %v2742_v9, %v2743_v47  ;;  %v3124_v36 = vadd.f32 %v3121_v57, %v3116_v15  ;;  %v2725_v57 = vsel %vm463_vm9, %v2722_v13, %v2724_v33 }
 0x204   : > { %v1948_v46 = vadd.f32 %v1943_v55, %v1927_v32  ;;  %v1924_v51 = vpop.permute.xlu0 %1923  ;;  %v3125_v32 = vadd.f32 %v3122_v41, %v3117_v48  ;;  %v2801_v53 = vrot.slane %v2795_v59, 2  ;;  %v2745_v15 = vrot.slane %v2738_v52, 1 }
 0x205   : > { %2705 = vrot.lane.b32.xlu1 %v2702_v21, %s9113_s8  ;;  %v9122_v21 = vstv %s7214_s14  ;;  %v3118_v9 = vadd.f32 %v3115_v39, %v3110_v29  ;;  %v1928_v43 = vadd.f32 %v1924_v51, %v1907_v28  ;;  %v7395_v27 = vmul.f32 %v7283_v4, %v7251_v25  ;;  %s7452_s14 = sld [smem:[#allocation7 + $0x212]] }
 0x206   : > { %2669 = vrot.lane.b32.xlu0 %v2664_v11, %s9116_s10  ;;  %v2765_v51 = vsel %vm463_vm9, %v2763_v49, %v2764_v44  ;;  %v7402_v13 = vstv %s7343_s26  ;;  %v7407_v29 = vstv %s7350_s6  ;;  %v7410_v42 = vadd.f32 %v7358_v61, %v3124_v36  ;;  %s7597_s26 = sld [smem:[#allocation7 + $0x218]] }
 0x207   : > { %v1964_v60 = vpop.permute.xlu1 %1963  ;;  %v7413_v39 = vadd.f32 %v7358_v61, %v3125_v32  ;;  %v2822_v49 = vrot.slane %v2816_v56, 2  ;;  %v2837_v59 = vmul.f32 %v7309_v35, %v7219_v54  ;;  %v2797_v33 = vmul.f32 %v7280_v45, %v7296_v58  ;;  %s7618_s6 = sld [smem:[#allocation2 + $0x383]] }
 0x208   : > { %v1969_v2 = vadd.f32 %v1964_v60, %v1948_v46  ;;  %v1945_v0 = vpop.permute.xlu0 %1944  ;;  %v2802_v60 = vrot.slane %v7377_v16, 2  ;;  %v3126_v52 = vadd.f32 %v3123_v63, %v3118_v9  ;;  %v9123_v28 = vmov %v9122_v21 }
 0x209   : > { %2726 = vrot.lane.b32.xlu1 %v2723_v40, %s9114_s11  ;;  %v1949_v46 = vadd.f32 %v1945_v0, %v1928_v43  ;;  %v2746_v0 = vsel %vm463_vm9, %v2743_v47, %v2745_v15  ;;  %v7440_v36 = vmul.f32 %v7309_v35, %v7251_v25  ;;  %v7446_v45 = vmul.f32 %v7402_v13, %v5734_v6 }
 0x20a   : > { %v7370_v55 = vadd.f32 %v9122_v21, %v1969_v2  ;;  %2707 = vrot.lane.b32.xlu0 %v2704_v10, %s9113_s8  ;;  %v2766_v10 = vrot.slane %v2759_v14, 1  ;;  %v2062_v9 = vstv %s7373_s16  ;;  %v7450_v1 = vstv %s7379_s7  ;;  %s7637_s16 = sld [smem:[#allocation7 + $0x18f]] }
 0x20b   : > { %v2046_v5 = vpop.permute.xlu1 %2045  ;;  %v3132_v47 = vsub.f32 0.0, %v7410_v42  ;;  %v2858_v56 = vmul.f32 %v7407_v29, %v7219_v54  ;;  %v2804_v15 = vrot.slane %v2797_v33, 2  ;;  %v3133_v62 = vsub.f32 0.0, %v7413_v39  ;;  %s7667_s7 = sld [smem:[#allocation5 + $0x7]] }
 0x20c   : > { %v1975_v11 = vsub.f32 0.0, %v7370_v55  ;;  %4997 = vst.msk [vmem:[%s6112_s23 + $0x2e] sm:$0xfc] %vm386_vm14, %v2046_v5  ;;  %v1966_v48 = vpop.permute.xlu0 %1965  ;;  %v2803_v5 = vsel %vm565_vm10, %v2801_v53, %v2802_v60  ;;  %v2843_v53 = vrot.slane %v2837_v59, 2  ;;  %v2896_v59 = vmul.f32 %v7450_v1, %v7219_v54 }
 0x20d   : > { %2747 = vrot.lane.b32.xlu1 %v2744_v18, %s9115_s13  ;;  %v1970_v2 = vadd.f32 %v1966_v48, %v1949_v46  ;;  %v2823_v18 = vrot.slane %v7395_v27, 2  ;;  %v7469_v27 = vadd.f32 %v7358_v61, %v3126_v52  ;;  %v9072_v46 = vrot.slane %v7440_v36, 2 }
 0x20e   : > { %v1977_v40 = vmul.f32 1.442695, %v1975_v11  ;;  %2728 = vrot.lane.b32.xlu0 %v2725_v57, %s9114_s11  ;;  %v2818_v11 = vmul.f32 %v7283_v4, %v7296_v58  ;;  %v2767_v57 = vsel %vm463_vm9, %v2764_v44, %v2766_v10  ;;  %v7482_v44 = vmul.f32 %v5742_v12, %v7402_v13 }
 0x20f   : > { %v2050_v41 = vpop.permute.xlu1 %2049  ;;  %v7430_v21 = vadd.f32 %v9123_v28, %v1970_v2  ;;  %v2824_v14 = vsel %vm565_vm10, %v2822_v49, %v2823_v18  ;;  %v2064_v61 = vmul.f32 %v2062_v9, %v6817_v50  ;;  %v3135_v2 = vmul.f32 1.442695, %v3132_v47 }
 0x210   : > { %5350 = vpow2.f32 %v1977_v40  ;;  %4999 = vst.msk [vmem:[%s6112_s23 + $0x3e] sm:$0x3] %vm390_vm13, %v2050_v41  ;;  %v2048_v32 = vpop.permute.xlu0 %2047  ;;  %v7474_v40 = vmul.f32 %v7407_v29, %v7251_v25  ;;  %v2825_v49 = vrot.slane %v2818_v11, 2  ;;  %v2916_v10 = vstv %s7419_s30  ;;  %s7705_s30 = sld [smem:[#allocation7 + $0x281]] }
 0x211   : > { %2768 = vrot.lane.b32.xlu1 %v2765_v51, %s9116_s10  ;;  %v1976_v43 = vsub.f32 0.0, %v7430_v21  ;;  %4998 = vst.msk [vmem:[%s6112_s23 + $0x36] sm:$0xff] %vm388_vm15, %v2048_v32  ;;  %v7478_v51 = vstv %s7404_s9  ;;  %v2839_v33 = vmul.f32 %v7309_v35, %v7296_v58  ;;  %v2864_v52 = vrot.slane %v2858_v56, 2  ;;  %s7689_s9 = sld [smem:[#allocation7 + $0x194]] }
 0x212   : > { %2749 = vrot.lane.b32.xlu0 %v2746_v0, %s9115_s13  ;;  %v7498_v28 = vmul.f32 %v7450_v1, %v7251_v25  ;;  %v3134_v0 = vsub.f32 0.0, %v7469_v27  ;;  %v2845_v32 = vsel %vm565_vm10, %v2843_v53, %v9072_v46  ;;  %v2865_v47 = vrot.slane %v7474_v40, 2 }
 0x213   : > { %v2074_v63 = vpop.permute.xlu1 %2073  ;;  %v1979_v4 = vmul.f32 1.442695, %v1976_v43  ;;  %v3137_v35 = vmul.f32 1.442695, %v3133_v62  ;;  %v7511_v43 = vstv %s7421_s12  ;;  %v2826_v16 = vsel %vm565_vm10, %v2823_v18, %v2825_v49  ;;  %s7709_s12 = sld [smem:[#allocation7 + $0x282]] }
 0x214   : > { %v7484_v48 = vpop.permute.xlu0 %2071  ;;  %v2902_v53 = vrot.slane %v2896_v59, 3  ;;  %v2846_v40 = vrot.slane %v2839_v33, 2  ;;  %v7525_v46 = vmul.f32 %v2916_v10, %v7251_v25  ;;  %v2078_v49 = vadd.f32 %v2074_v63, %v2064_v61 }
 0x215   : > { %2806 = vrot.lane.b32.xlu1 %v2803_v5, %s9113_s8  ;;  %5352 = vpow2.f32 %v1979_v4  ;;  %v2805_v5 = vsel %vm565_vm10, %v2802_v60, %v2804_v15  ;;  %v2860_v60 = vmul.f32 %v7407_v29, %v7296_v58  ;;  %v2917_v15 = vmul.f32 %v2916_v10, %v7219_v54 }
 0x216   : > { %2770 = vrot.lane.b32.xlu0 %v2767_v57, %s9116_s10  ;;  %v2122_v57 = vstv %s7442_s15  ;;  %5354 = vpow2.f32 %v3135_v2  ;;  %v3139_v2 = vmul.f32 1.442695, %v3134_v0  ;;  %v2866_v29 = vsel %vm565_vm10, %v2864_v52, %v2865_v47  ;;  %s7715_s15 = sld [smem:[#allocation7 + $0x283]] }
 0x217   : > { %v2088_v41 = vpop.permute.xlu1 %2087  ;;  %5356 = vpow2.f32 %v3137_v35  ;;  %v7532_v59 = vmul.f32 %v7478_v51, %v5750_v23  ;;  %v2063_v33 = vmul.f32 %v2062_v9, %v6838_v22  ;;  %v7538_v62 = vmul.f32 %v2122_v57, %v6817_v50 }
 0x218   : > { %v7513_v11 = vpop.permute.xlu0 %2085  ;;  %v2125_v0 = vmul.f32 %v2122_v57, %v6863_v8  ;;  %v2867_v63 = vrot.slane %v2860_v60, 2  ;;  %v2898_v61 = vmul.f32 %v7450_v1, %v7296_v58  ;;  %v2923_v9 = vrot.slane %v2917_v15, 3 }
 0x219   : > { %2827 = vrot.lane.b32.xlu1 %v2824_v14, %s9114_s11  ;;  %v2937_v14 = vstv %s7452_s14  ;;  %v2924_v35 = vrot.slane %v7525_v46, 3  ;;  %v9124_v60 = vrot.slane %v7440_v36, 2  ;;  %v9125_v6 = vrot.slane %v7498_v28, 3  ;;  %s7722_s14 = sld [smem:[#allocation7 + $0x284]] }
 0x21a   : > { %2808 = vrot.lane.b32.xlu0 %v2805_v5, %s9113_s8  ;;  %v2938_v52 = vmul.f32 %v2937_v14, %v7219_v54  ;;  %v2958_v23 = vstv %s7508_s0  ;;  %v2123_v15 = vmul.f32 %v2122_v57, %v6838_v22  ;;  %v2130_v46 = vrot.slane %v7538_v62, 1  ;;  %s7725_s0 = sld [smem:[#allocation7 + $0x286]] }
 0x21b   : > { %v2102_v56 = vpop.permute.xlu1 %2101  ;;  %v2847_v1 = vsel %vm565_vm10, %v9124_v60, %v2846_v40  ;;  %v2132_v12 = vrot.slane %v2125_v0, 1  ;;  %v2868_v36 = vsel %vm565_vm10, %v2865_v47, %v2867_v63  ;;  %v2077_v62 = vadd.f32 %v7484_v48, %v2063_v33 }
 0x21c   : > { %v2100_v5 = vpop.permute.xlu0 %2099  ;;  %v2944_v40 = vrot.slane %v2938_v52, 3  ;;  %v2129_v63 = vrot.slane %v2123_v15, 1  ;;  %v9126_v15 = vrot.slane %v7498_v28, 3  ;;  %v2961_v28 = vmul.f32 %v2958_v23, %v7296_v58 }
 0x21d   : > { %v5351_v4 = vpop.eup %5350  ;;  %2848 = vrot.lane.b32.xlu1 %v2845_v32, %s9115_s13  ;;  %v2133_v52 = vsel %vm463_vm9, %v2130_v46, %v2132_v12  ;;  %v2091_v3 = vadd.f32 %v7513_v11, %v2077_v62 }
 0x21e   : > { %v1981_v18 = vadd.f32 1.0, %v5351_v4  ;;  %2829 = vrot.lane.b32.xlu0 %v2826_v16, %s9114_s11  ;;  %v7550_v4 = vmul.f32 %v2937_v14, %v7251_v25  ;;  %v2904_v16 = vsel %vm667_vm11, %v2902_v53, %v9125_v6  ;;  %v2925_v6 = vsel %vm667_vm11, %v2923_v9, %v2924_v35 }
 0x21f   : > { %v2116_v32 = vpop.permute.xlu1 %2115  ;;  %v2959_v53 = vmul.f32 %v2958_v23, %v7219_v54  ;;  %v2105_v12 = vadd.f32 %v2100_v5, %v2091_v3 }
 0x220   : > { %5358 = vrcp.f32 %v1981_v18  ;;  %v2092_v18 = vadd.f32 %v2088_v41, %v2078_v49  ;;  %v2919_v41 = vmul.f32 %v2916_v10, %v7296_v58  ;;  %v2940_v49 = vmul.f32 %v2937_v14, %v7296_v58 }
 0x221   : > { %2869 = vrot.lane.b32.xlu1 %v2866_v29, %s9116_s10  ;;  %5360 = vpow2.f32 %v3139_v2  ;;  %v2114_v29 = vpop.permute.xlu0 %2113  ;;  %v2905_v2 = vrot.slane %v2898_v61, 3  ;;  %v2945_v57 = vrot.slane %v7550_v4, 3  ;;  %v7574_v10 = vmul.f32 %v2958_v23, %v7251_v25 }
 0x222   : > { %v5353_v60 = vpop.eup %5352  ;;  %2850 = vrot.lane.b32.xlu0 %v2847_v1, %s9115_s13  ;;  %v2106_v0 = vadd.f32 %v2102_v56, %v2092_v18  ;;  %v2996_v14 = vstv %s7528_s1  ;;  %v2926_v4 = vrot.slane %v2919_v41, 3  ;;  %v2223_v1 = vstv %s7541_s17  ;;  %s7731_s1 = sld [smem:[#allocation7 + $0x287]] }
 0x223   : > { %v7563_v26 = vpop.permute.xlu1 %2153  ;;  %v1982_v47 = vadd.f32 1.0, %v5353_v60  ;;  %v2947_v38 = vrot.slane %v2940_v49, 3  ;;  %v2965_v48 = vrot.slane %v2959_v53, 3  ;;  %v2966_v56 = vrot.slane %v7574_v10, 3  ;;  %s7737_s17 = sld [smem:[#allocation7 + $0x288]] }
 0x224   : > { %v2120_v60 = vadd.f32 %v2116_v32, %v2106_v0  ;;  %v2997_v33 = vmul.f32 %v2996_v14, %v7219_v54  ;;  %v3017_v18 = vstv %s7552_s25  ;;  %v2906_v41 = vsel %vm667_vm11, %v9126_v15, %v2905_v2  ;;  %s7745_s25 = sld [smem:[#allocation8 + $0x3]] }
 0x225   : > { %2907 = vrot.lane.b32.xlu1 %v2904_v16, %s9113_s8  ;;  %v7580_v61 = vpop.permute.xlu0 %2151  ;;  %v5355_v16 = vpop.eup %5354  ;;  %5362 = vrcp.f32 %v1982_v47  ;;  %v2946_v47 = vsel %vm667_vm11, %v2944_v40, %v2945_v57  ;;  %v7595_v11 = vmul.f32 %v2996_v14, %v7251_v25  ;;  %v2927_v53 = vsel %vm667_vm11, %v2924_v35, %v2926_v4 }
 0x226   : > { %2871 = vrot.lane.b32.xlu0 %v2868_v36, %s9116_s10  ;;  %v5357_v32 = vpop.eup %5356  ;;  %v2131_v36 = vsel %vm463_vm9, %v2129_v63, %v2130_v46  ;;  %v7602_v3 = vmul.f32 %v2223_v1, %v6838_v22  ;;  %v2119_v5 = vadd.f32 %v2114_v29, %v2105_v12  ;;  %v2137_v2 = vadd.f32 %v2133_v52, %v2120_v60 }
 0x227   : > { %v2175_v9 = vpop.permute.xlu1 %2174  ;;  %v3018_v40 = vmul.f32 %v3017_v18, %v7219_v54  ;;  %v7607_v10 = vmul.f32 %v3017_v18, %v7251_v25  ;;  %v2948_v35 = vsel %vm667_vm11, %v2945_v57, %v2947_v38  ;;  %v2967_v46 = vsel %vm667_vm11, %v2965_v48, %v2966_v56 }
 0x228   : > { %v3003_v0 = vrot.slane %v2997_v33, 4  ;;  %v3141_v63 = vadd.f32 1.0, %v5355_v16  ;;  %v3004_v52 = vrot.slane %v7595_v11, 4  ;;  %v7616_v4 = vstv %s7578_s2  ;;  %s7755_s2 = sld [smem:[#allocation7 + $0x289]] }
 0x229   : > { %2928 = vrot.lane.b32.xlu1 %v2925_v6, %s9114_s11  ;;  %v2173_v49 = vpop.permute.xlu0 %2172  ;;  %v3142_v60 = vadd.f32 1.0, %v5357_v32  ;;  %v2226_v38 = vmul.f32 %v2223_v1, %v6863_v8  ;;  %v2968_v57 = vrot.slane %v2961_v28, 3  ;;  %v2999_v16 = vmul.f32 %v2996_v14, %v7296_v58 }
 0x22a   : > { %2909 = vrot.lane.b32.xlu0 %v2906_v41, %s9113_s8  ;;  %v7621_v41 = vmul.f32 %v2223_v1, %v6817_v50  ;;  %v2158_v48 = vadd.f32 %v7563_v26, %v2137_v2  ;;  %v3024_v33 = vrot.slane %v3018_v40, 4  ;;  %v3039_v11 = vmul.f32 %v7616_v4, %v7219_v54 }
 0x22b   : > { %v2196_v6 = vpop.permute.xlu1 %2195  ;;  %v7635_v1 = vmul.f32 %v7616_v4, %v7251_v25  ;;  %5364 = vrcp.f32 %v3141_v63  ;;  %v3005_v26 = vsel %vm769_vm12, %v3003_v0, %v3004_v52  ;;  %v2969_v40 = vsel %vm667_vm11, %v2966_v56, %v2968_v57 }
 0x22c   : > { %v2179_v32 = vadd.f32 %v2175_v9, %v2158_v48  ;;  %5366 = vrcp.f32 %v3142_v60  ;;  %v2231_v28 = vrot.slane %v7621_v41, 2  ;;  %v2230_v57 = vrot.slane %v7602_v3, 2 }
 0x22d   : > { %v5359_v62 = vpop.eup %5358  ;;  %2949 = vrot.lane.b32.xlu1 %v2946_v47, %s9115_s13  ;;  %v2194_v12 = vpop.permute.xlu0 %2193  ;;  %v3025_v47 = vrot.slane %v7607_v10, 4  ;;  %v3046_v60 = vrot.slane %v7635_v1, 4  ;;  %v3041_v1 = vmul.f32 %v7616_v4, %v7296_v58 }
 0x22e   : > { %v5361_v23 = vpop.eup %5360  ;;  %v1985_v29 = vmul.f32 %v5359_v62, %v7370_v55  ;;  %v2136_v55 = vadd.f32 %v2131_v36, %v2119_v5  ;;  %2930 = vrot.lane.b32.xlu0 %v2927_v53, %s9114_s11  ;;  %v7641_v36 = vstv %s7597_s26  ;;  %v2233_v5 = vrot.slane %v2226_v38, 2  ;;  %s7763_s26 = sld [smem:[#allocation2 + $0x300]] }
 0x22f   : > { %v2217_v15 = vpop.permute.xlu1 %2216  ;;  %v3143_v14 = vadd.f32 1.0, %v5361_v23  ;;  %v3020_v62 = vmul.f32 %v3017_v18, %v7296_v58  ;;  %v2200_v63 = vadd.f32 %v2196_v6, %v2179_v32  ;;  %v3006_v23 = vrot.slane %v2999_v16, 4 }
 0x230   : > { %4990 = vst.msk [vmem:[%s6112_s23 + $0xa0] sm:$0xff] %vm388_vm15, %v1985_v29  ;;  %v3026_v9 = vsel %vm769_vm12, %v3024_v33, %v3025_v47  ;;  %v3045_v29 = vrot.slane %v3039_v11, 4  ;;  %v3060_v56 = vmul.f32 %v7641_v36, %v7219_v54  ;;  %v7658_v41 = vmul.f32 %v7641_v36, %v7251_v25 }
 0x231   : > { %2970 = vrot.lane.b32.xlu1 %v2967_v46, %s9116_s10  ;;  %v2215_v53 = vpop.permute.xlu0 %2214  ;;  %v2157_v46 = vadd.f32 %v7580_v61, %v2136_v55  ;;  %5368 = vrcp.f32 %v3143_v14  ;;  %v2221_v6 = vadd.f32 %v2217_v15, %v2200_v63  ;;  %v7663_v38 = vstv %s7618_s6  ;;  %s7766_s6 = sld [smem:[#allocation2 + $0x301]] }
 0x232   : > { %v5363_v0 = vpop.eup %5362  ;;  %2951 = vrot.lane.b32.xlu0 %v2948_v35, %s9115_s13  ;;  %v4215_v35 = vmul.f32 %v7478_v51, %v5736_v7  ;;  %v2234_v55 = vsel %vm565_vm10, %v2231_v28, %v2233_v5  ;;  %v3027_v33 = vrot.slane %v3020_v62, 4  ;;  %v3007_v3 = vsel %vm769_vm12, %v3004_v52, %v3006_v23 }
 0x233   : > { %v2255_v2 = vpop.permute.xlu1 %2254  ;;  %v1986_v61 = vmul.f32 %v5363_v0, %v7430_v21  ;;  %v2178_v18 = vadd.f32 %v2173_v49, %v2157_v46  ;;  %v4216_v21 = vadd.f32 %v7532_v59, %v7482_v44  ;;  %v4221_v49 = vmul.f32 %v5747_v20, %v7511_v43 }
 0x234   : > { %v3047_v11 = vsel %vm769_vm12, %v3045_v29, %v3046_v60  ;;  %v2324_v14 = vstv %s7637_s16  ;;  %v2238_v59 = vadd.f32 %v2234_v55, %v2221_v6  ;;  %v3066_v32 = vrot.slane %v3060_v56, 4  ;;  %s7772_s16 = sld [smem:[#allocation7 + $0x28b]] }
 0x235   : > { %3008 = vrot.lane.b32.xlu1 %v3005_v26, %s9113_s8  ;;  %v2253_v16 = vpop.permute.xlu0 %2252  ;;  %4991 = vst.msk [vmem:[%s6112_s23 + $0xa8] sm:$0xff] %vm388_vm15, %v1986_v61  ;;  %v2199_v15 = vadd.f32 %v2194_v12, %v2178_v18  ;;  %v3067_v26 = vrot.slane %v7658_v41, 4  ;;  %v4218_v12 = vadd.f32 %v4215_v35, %v7446_v45  ;;  %v4223_v5 = vmul.f32 %v7511_v43, %v9120_v19 }
 0x236   : > { %2972 = vrot.lane.b32.xlu0 %v2969_v40, %s9116_s10  ;;  %v2232_v52 = vsel %vm565_vm10, %v2230_v57, %v2231_v28  ;;  %v4224_v46 = vadd.f32 %v4221_v49, %v4216_v21  ;;  %v4229_v63 = vmul.f32 %v7663_v38, %v5752_v24  ;;  %v3028_v4 = vsel %vm769_vm12, %v3025_v47, %v3027_v33 }
 0x237   : > { %v2276_v48 = vpop.permute.xlu1 %2275  ;;  %v2220_v44 = vadd.f32 %v2215_v53, %v2199_v15  ;;  %v3048_v45 = vrot.slane %v3041_v1, 4  ;;  %v7697_v53 = vmul.f32 %v2324_v14, %v6817_v50  ;;  %v2327_v28 = vmul.f32 %v2324_v14, %v6863_v8 }
 0x238   : > { %v5365_v23 = vpop.eup %5364  ;;  %v2259_v0 = vadd.f32 %v2255_v2, %v2238_v59  ;;  %v3068_v29 = vsel %vm769_vm12, %v3066_v32, %v3067_v26  ;;  %v3062_v10 = vmul.f32 %v7641_v36, %v7296_v58  ;;  %v4226_v56 = vadd.f32 %v4223_v5, %v4218_v12 }
 0x239   : > { %3029 = vrot.lane.b32.xlu1 %v3026_v9, %s9114_s11  ;;  %v2274_v40 = vpop.permute.xlu0 %2273  ;;  %v2237_v9 = vadd.f32 %v2232_v52, %v2220_v44  ;;  %v5367_v47 = vpop.eup %5366  ;;  %v4231_v61 = vmul.f32 %v7663_v38, %v9121_v30  ;;  %v7712_v35 = vstv %s7667_s7  ;;  %v4232_v2 = vadd.f32 %v4229_v63, %v4224_v46  ;;  %s7783_s7 = sld [smem:[#allocation7 + $0x200]] }
 0x23a   : > { %3010 = vrot.lane.b32.xlu0 %v3007_v3, %s9113_s8  ;;  %v2280_v57 = vadd.f32 %v2276_v48, %v2259_v0  ;;  %v2325_v55 = vmul.f32 %v2324_v14, %v6838_v22  ;;  %v3049_v36 = vsel %vm769_vm12, %v3046_v60, %v3048_v45  ;;  %v2332_v21 = vrot.slane %v7697_v53, 3 }
 0x23b   : > { %v2297_v62 = vpop.permute.xlu1 %2296  ;;  %v2334_v49 = vrot.slane %v2327_v28, 3  ;;  %v3147_v15 = vmul.f32 %v5365_v23, %v7410_v42  ;;  %v2258_v48 = vadd.f32 %v2253_v16, %v2237_v9  ;;  %v3148_v1 = vmul.f32 %v5367_v47, %v7413_v39 }
 0x23c   : > { %v2301_v3 = vadd.f32 %v2297_v62, %v2280_v57  ;;  %v4234_v14 = vadd.f32 %v4231_v61, %v4226_v56  ;;  %v4209_v60 = vmul.f32 %v5757_v31, %v7402_v13  ;;  %v4214_v44 = vmul.f32 %v7478_v51, %v5762_v37 }
 0x23d   : > { %3050 = vrot.lane.b32.xlu1 %v3047_v11, %s9115_s13  ;;  %v2295_v18 = vpop.permute.xlu0 %2294  ;;  %v3069_v11 = vrot.slane %v3062_v10, 4  ;;  %v7734_v16 = vadd.f32 %v7712_v35, %v4232_v2  ;;  %v2279_v32 = vadd.f32 %v2274_v40, %v2258_v48  ;;  %v2425_v39 = vstv %s7689_s9  ;;  %s7786_s9 = sld [smem:[#allocation7 + $0x28c]] }
 0x23e   : > { %3031 = vrot.lane.b32.xlu0 %v3028_v4, %s9114_s11  ;;  %v5369_v33 = vpop.eup %5368  ;;  %v4222_v5 = vmul.f32 %v5760_v34, %v7511_v43  ;;  %v2331_v13 = vrot.slane %v2325_v55, 3  ;;  %v2335_v51 = vsel %vm667_vm11, %v2332_v21, %v2334_v49  ;;  %v7752_v46 = vsel %vm5797_vm6, %v3148_v1, 0.0 }
 0x23f   : > { %v2318_v6 = vpop.permute.xlu1 %2317  ;;  %v3149_v52 = vmul.f32 %v5369_v33, %v7469_v27  ;;  %v2300_v62 = vadd.f32 %v2295_v18, %v2279_v32  ;;  %v3070_v40 = vsel %vm769_vm12, %v3067_v26, %v3069_v11  ;;  %v3174_v43 = vstv %s7705_s30  ;;  %s7792_s30 = sld [smem:[#allocation2 + $0x302]] }
 0x240   : > { %v2322_v12 = vadd.f32 %v2318_v6, %v2301_v3  ;;  %v7758_v63 = vadd.f32 %v7712_v35, %v4234_v14  ;;  %v2426_v27 = vmul.f32 %v2425_v39, %v6838_v22  ;;  %v2427_v53 = vmul.f32 %v2425_v39, %v6817_v50  ;;  %v9127_v50 = vld [vmem:[#allocation20_spill] sm:$0xff] }
 0x241   : > { %3071 = vrot.lane.b32.xlu1 %v3068_v29, %s9116_s10  ;;  %v2316_v59 = vpop.permute.xlu0 %2315  ;;  %v2428_v41 = vmul.f32 %v2425_v39, %v6863_v8  ;;  %v4240_v26 = vsub.f32 0.0, %v7734_v16  ;;  %v4217_v28 = vadd.f32 %v4214_v44, %v4209_v60  ;;  %v2333_v0 = vsel %vm667_vm11, %v2331_v13, %v2332_v21 }
 0x242   : > { %3052 = vrot.lane.b32.xlu0 %v3049_v36, %s9115_s13  ;;  %v2321_v23 = vadd.f32 %v2316_v59, %v2300_v62  ;;  %v2339_v9 = vadd.f32 %v2335_v51, %v2322_v12  ;;  %v3176_v22 = vmul.f32 %v3174_v43, %v7752_v46  ;;  %v7776_v8 = vmul.f32 %v7663_v38, %v9127_v50 }
 0x243   : > { %v2356_v42 = vpop.permute.xlu1 %2355  ;;  %v7780_v10 = vsel %vm5779_vm4, %v3147_v15, 0.0  ;;  %v3188_v47 = vstv %s7709_s12  ;;  %v4242_v56 = vsub.f32 0.0, %v7758_v63  ;;  %v2432_v6 = vrot.slane %v2426_v27, 4  ;;  %s7816_s12 = sld [smem:[#allocation2 + $0x303]] }
 0x244   : > { %v2433_v2 = vrot.slane %v2427_v53, 4  ;;  %v2435_v57 = vrot.slane %v2428_v41, 4  ;;  %v7788_v38 = vmul.f32 1.442695, %v4240_v26  ;;  %v7790_v55 = vadd.f32 %v4222_v5, %v4217_v28 }
 0x245   : > { %3153 = vrot.lane.b32.xlu1 %v3147_v15, %s9114_s11  ;;  %v2354_v4 = vpop.permute.xlu0 %2353  ;;  %v2338_v36 = vadd.f32 %v2333_v0, %v2321_v23  ;;  %v2360_v21 = vadd.f32 %v2356_v42, %v2339_v9  ;;  %v3175_v49 = vmul.f32 %v3174_v43, %v7780_v10  ;;  %v3190_v15 = vmul.f32 %v3188_v47, %v7752_v46  ;;  %v9130_v0 = vld [vmem:[#allocation18_spill] sm:$0xff] }
 0x246   : > { %3073 = vrot.lane.b32.xlu0 %v3070_v40, %s9116_s10  ;;  %v3202_v33 = vstv %s7715_s15  ;;  %v3216_v48 = vstv %s7722_s14  ;;  %v3247_v11 = vstv %s7725_s0  ;;  %v7805_v59 = vsel %vm5815_vm8, %v3149_v52, 0.0  ;;  %s7868_s15 = sld [smem:[#allocation7 + $0x28d]] }
 0x247   : > { %v2377_v45 = vpop.permute.xlu1 %2376  ;;  %v2526_v14 = vstv %s7745_s25  ;;  %v3268_v60 = vstv %s7731_s1  ;;  %v2434_v32 = vsel %vm769_vm12, %v2432_v6, %v2433_v2  ;;  %v2436_v12 = vsel %vm769_vm12, %v2433_v2, %v2435_v57  ;;  %s7879_s14 = sld [smem:[#allocation5 + $0x6]] }
 0x248   : > { %v2381_v3 = vadd.f32 %v2377_v45, %v2360_v21  ;;  %v3289_v39 = vstv %s7737_s17  ;;  %v2359_v5 = vadd.f32 %v2354_v4, %v2338_v36  ;;  %v7811_v51 = vstv %s7763_s26  ;;  %s7896_s0 = sld [smem:[#allocation7 + $0x28e]] }
 0x249   : > { %3157 = vrot.lane.b32.xlu1 %v3149_v52, %s9114_s11  ;;  %v2375_v61 = vpop.permute.xlu0 %2374  ;;  %v7814_v62 = vstv %s7766_s6  ;;  %v3189_v52 = vmul.f32 %v3188_v47, %v7780_v10  ;;  %v3204_v40 = vmul.f32 %v3202_v33, %v7752_v46  ;;  %v3249_v43 = vmul.f32 %v3247_v11, %v7752_v46  ;;  %v9131_v47 = vld [vmem:[#allocation19_spill] sm:$0xff]  ;;  %s7922_s1 = sld [smem:[#allocation7 + $0x205]] }
 0x24a   : > { %3155 = vrot.lane.b32.xlu0 %v3148_v1, %s9114_s11  ;;  %v3310_v4 = vstv %s7755_s2  ;;  %v2380_v45 = vadd.f32 %v2375_v61, %v2359_v5  ;;  %v3250_v53 = vmul.f32 %v3247_v11, %v7805_v59  ;;  %v7826_v41 = vstv %s7772_s16  ;;  %s7932_s17 = sld [smem:[#allocation7 + $0x290]] }
 0x24b   : > { %v2398_v18 = vpop.permute.xlu1 %2397  ;;  %v2616_v23 = vstv %s7783_s7  ;;  %v7830_v9 = vstv %s7786_s9  ;;  %v3203_v2 = vmul.f32 %v3202_v33, %v7780_v10  ;;  %v3248_v61 = vmul.f32 %v3247_v11, %v7780_v10  ;;  %s7959_s25 = sld [smem:[#allocation7 + $0x291]] }
 0x24c   : > { %v2402_v13 = vadd.f32 %v2398_v18, %v2381_v3  ;;  %v3659_v18 = vmul.f32 %v7814_v62, %v9131_v47  ;;  %v7839_v57 = vstv %s7792_s30  ;;  %v3217_v36 = vmul.f32 %v3216_v48, %v7780_v10  ;;  %s7998_s2 = sld [smem:[#allocation7 + $0x292]] }
 0x24d   : > { %3181 = vrot.lane.b32.xlu1 %v3176_v22, %s9113_s8  ;;  %v2396_v1 = vpop.permute.xlu0 %2395  ;;  %v3654_v22 = vmul.f32 %v9130_v0, %v7811_v51  ;;  %v3218_v21 = vmul.f32 %v3216_v48, %v7752_v46  ;;  %v3257_v33 = vrot.slane %v3250_v53, 1  ;;  %v3271_v11 = vmul.f32 %v3268_v60, %v7805_v59  ;;  %s8009_s26 = sld [smem:[#allocation7 + $0x293]] }
 0x24e   : > { %3179 = vrot.lane.b32.xlu0 %v3175_v49, %s9113_s8  ;;  %v2401_v6 = vadd.f32 %v2396_v1, %v2380_v45  ;;  %v3255_v49 = vrot.slane %v3249_v43, 1  ;;  %v3667_v48 = vmul.f32 %v5747_v20, %v7839_v57  ;;  %v3254_v43 = vrot.slane %v3248_v61, 1  ;;  %s8036_s6 = sld [smem:[#allocation7 + $0x295]] }
 0x24f   : > { %v2419_v42 = vpop.permute.xlu1 %2418  ;;  %v7856_v45 = vmul.f32 %v3310_v4, %v7780_v10  ;;  %v3292_v53 = vmul.f32 %v3289_v39, %v7805_v59  ;;  %v3660_v20 = vmul.f32 %v7814_v62, %v5762_v37  ;;  %v7875_v61 = vmul.f32 %v7826_v41, %v7780_v10  ;;  %s8045_s16 = sld [smem:[#allocation7 + $0x20a]] }
 0x250   : > { %v2423_v27 = vadd.f32 %v2419_v42, %v2402_v13  ;;  %v3269_v13 = vmul.f32 %v3268_v60, %v7780_v10  ;;  %v3258_v47 = vsel %vm463_vm9, %v3255_v49, %v3257_v33  ;;  %s8054_s7 = sld [smem:[#allocation7 + $0x296]] }
 0x251   : > { %3195 = vrot.lane.b32.xlu1 %v3190_v15, %s9114_s11  ;;  %v2417_v26 = vpop.permute.xlu0 %2416  ;;  %v7846_v15 = vmul.f32 %v3268_v60, %v7752_v46  ;;  %s8074_s9 = sld [smem:[#allocation7 + $0x297]] }
 0x252   : > { %3193 = vrot.lane.b32.xlu0 %v3189_v52, %s9114_s11  ;;  %v2422_v3 = vadd.f32 %v2417_v26, %v2401_v6  ;;  %v2440_v1 = vadd.f32 %v2436_v12, %v2423_v27  ;;  %v7851_v52 = vmul.f32 %v3289_v39, %v7780_v10  ;;  %v7859_v26 = vstv %s7816_s12  ;;  %s8103_s30 = sld [smem:[#allocation7 + $0x298]] }
 0x253   : > { %v2457_v28 = vpop.permute.xlu1 %2456  ;;  %v3655_v12 = vmul.f32 %v5757_v31, %v7811_v51  ;;  %v3276_v60 = vrot.slane %v7846_v15, 1  ;;  %v3291_v27 = vmul.f32 %v3289_v39, %v7752_v46  ;;  %v3278_v31 = vrot.slane %v3271_v11, 1  ;;  %s8110_s12 = sld [smem:[#allocation7 + $0x20f]] }
 0x254   : > { %v2439_v0 = vadd.f32 %v2434_v32, %v2422_v3  ;;  %v3675_v39 = vmul.f32 %v7859_v26, %v5752_v24  ;;  %v3296_v37 = vrot.slane %v7851_v52, 1  ;;  %v7883_v32 = vmul.f32 %v3310_v4, %v7752_v46 }
 0x255   : > { %3209 = vrot.lane.b32.xlu1 %v3204_v40, %s9115_s13  ;;  %v2455_v42 = vpop.permute.xlu0 %2454  ;;  %v3662_v40 = vadd.f32 %v3659_v18, %v3654_v22  ;;  %v2461_v22 = vadd.f32 %v2457_v28, %v2440_v1  ;;  %v3313_v28 = vmul.f32 %v3310_v4, %v7805_v59  ;;  %v3256_v3 = vsel %vm463_vm9, %v3254_v43, %v3255_v49 }
 0x256   : > { %3207 = vrot.lane.b32.xlu0 %v3203_v2, %s9115_s13  ;;  %v3275_v2 = vrot.slane %v3269_v13, 1  ;;  %v3297_v1 = vrot.slane %v3291_v27, 1  ;;  %v3663_v33 = vadd.f32 %v3660_v20, %v3655_v12  ;;  %v3668_v24 = vmul.f32 %v5760_v34, %v7839_v57  ;;  %v9132_v34 = vld [vmem:[#allocation15_spill] sm:$0xff] }
 0x257   : > { %v2478_v5 = vpop.permute.xlu1 %2477  ;;  %v2460_v11 = vadd.f32 %v2455_v42, %v2439_v0  ;;  %v3279_v13 = vsel %vm463_vm9, %v3276_v60, %v3278_v31  ;;  %v3299_v52 = vrot.slane %v3292_v53, 1  ;;  %v7894_v4 = vmul.f32 %v7826_v41, %v7752_v46 }
 0x258   : > { %v2482_v15 = vadd.f32 %v2478_v5, %v2461_v22  ;;  %v3676_v49 = vmul.f32 %v7859_v26, %v9127_v50  ;;  %v3656_v42 = vmul.f32 %v7811_v51, %v9132_v34  ;;  %v3318_v27 = vrot.slane %v7883_v32, 1 }
 0x259   : > { %3223 = vrot.lane.b32.xlu1 %v3218_v21, %s9116_s10  ;;  %v2476_v18 = vpop.permute.xlu0 %2475  ;;  %v3670_v21 = vadd.f32 %v3667_v48, %v3662_v40  ;;  %v3320_v53 = vrot.slane %v3313_v28, 1  ;;  %v3351_v20 = vmul.f32 %v7826_v41, %v7805_v59  ;;  %v3390_v0 = vstv %s7868_s15  ;;  %s8159_s15 = sld [smem:[#allocation7 + $0x301]] }
 0x25a   : > { %3221 = vrot.lane.b32.xlu0 %v3217_v36, %s9116_s10  ;;  %v2481_v43 = vadd.f32 %v2476_v18, %v2460_v11  ;;  %v3671_v22 = vadd.f32 %v3668_v24, %v3663_v33  ;;  %v3661_v50 = vmul.f32 %v7814_v62, %v5736_v7  ;;  %v3277_v31 = vsel %vm463_vm9, %v3275_v2, %v3276_v60 }
 0x25b   : > { %v2499_v6 = vpop.permute.xlu1 %2498  ;;  %v3678_v36 = vadd.f32 %v3675_v39, %v3670_v21  ;;  %v3300_v18 = vsel %vm463_vm9, %v3297_v1, %v3299_v52  ;;  %v3298_v39 = vsel %vm463_vm9, %v3296_v37, %v3297_v1  ;;  %v3317_v41 = vrot.slane %v7856_v45, 1 }
 0x25c   : > { %v2503_v5 = vadd.f32 %v2499_v6, %v2482_v15  ;;  %v7920_v15 = vmul.f32 %v7830_v9, %v7752_v46  ;;  %v7925_v7 = vstv %s7879_s14  ;;  %v3321_v2 = vsel %vm463_vm9, %v3318_v27, %v3320_v53  ;;  %s8164_s14 = sld [smem:[#allocation7 + $0x214]] }
 0x25d   : > { %3261 = vrot.lane.b32.xlu1 %v3258_v47, %s9113_s8  ;;  %v2497_v40 = vpop.permute.xlu0 %2496  ;;  %v3356_v37 = vrot.slane %v7894_v4, 2  ;;  %v3358_v45 = vrot.slane %v3351_v20, 2  ;;  %v3679_v32 = vadd.f32 %v3676_v49, %v3671_v22  ;;  %v3664_v28 = vadd.f32 %v3661_v50, %v3656_v42 }
 0x25e   : > { %3259 = vrot.lane.b32.xlu0 %v3256_v3, %s9113_s8  ;;  %v2502_v51 = vadd.f32 %v2497_v40, %v2481_v43  ;;  %v3669_v3 = vmul.f32 %v7839_v57, %v9120_v19  ;;  %v3372_v24 = vmul.f32 %v7830_v9, %v7805_v59  ;;  %v7945_v11 = vadd.f32 %v7925_v7, %v3678_v36 }
 0x25f   : > { %v2520_v48 = vpop.permute.xlu1 %2519  ;;  %v3355_v52 = vrot.slane %v7875_v61, 2  ;;  %v3370_v40 = vmul.f32 %v7830_v9, %v7780_v10  ;;  %v3411_v19 = vstv %s7896_s0  ;;  %v3319_v57 = vsel %vm463_vm9, %v3317_v41, %v3318_v27  ;;  %s8172_s0 = sld [smem:[#allocation7 + $0x302]] }
 0x260   : > { %v2524_v12 = vadd.f32 %v2520_v48, %v2503_v5  ;;  %v7951_v48 = vmul.f32 %v3390_v0, %v7752_v46  ;;  %v3393_v4 = vmul.f32 %v3390_v0, %v7805_v59  ;;  %v3377_v9 = vrot.slane %v7920_v15, 2 }
 0x261   : > { %3282 = vrot.lane.b32.xlu1 %v3279_v13, %s9114_s11  ;;  %v2518_v6 = vpop.permute.xlu0 %2517  ;;  %v7965_v61 = vadd.f32 %v7925_v7, %v3679_v32  ;;  %v3672_v36 = vadd.f32 %v3669_v3, %v3664_v28  ;;  %v3677_v49 = vmul.f32 %v7859_v26, %v9121_v30  ;;  %v3359_v42 = vsel %vm565_vm10, %v3356_v37, %v3358_v45 }
 0x262   : > { %v7912_v47 = vadd.f32 %v2526_v14, %v2524_v12  ;;  %v2523_v62 = vadd.f32 %v2518_v6, %v2502_v51  ;;  %3280 = vrot.lane.b32.xlu0 %v3277_v31, %s9114_s11  ;;  %v3379_v43 = vrot.slane %v3372_v24, 2  ;;  %v3686_v12 = vsub.f32 0.0, %v7945_v11 }
 0x263   : > { %v2602_v21 = vpop.permute.xlu1 %2601  ;;  %v4233_v27 = vadd.f32 %v7776_v8, %v7790_v55  ;;  %v2617_v20 = vmul.f32 %v2616_v23, %v7219_v54  ;;  %v3376_v50 = vrot.slane %v3370_v40, 2  ;;  %v3391_v51 = vmul.f32 %v3390_v0, %v7780_v10 }
 0x264   : > { %v2530_v60 = vsub.f32 0.0, %v7912_v47  ;;  %5034 = vst.msk [vmem:[%s6112_s23 + $0x46] sm:$0xff] %vm388_vm15, %v2602_v21  ;;  %v7940_v1 = vadd.f32 %v2526_v14, %v2523_v62  ;;  %v3357_v30 = vsel %vm565_vm10, %v3355_v52, %v3356_v37  ;;  %v2676_v26 = vstv %s7922_s1  ;;  %s8185_s1 = sld [smem:[#allocation7 + $0x303]] }
 0x265   : > { %3303 = vrot.lane.b32.xlu1 %v3300_v18, %s9115_s13  ;;  %v2600_v5 = vpop.permute.xlu0 %2599  ;;  %v3449_v31 = vstv %s7932_s17  ;;  %v3398_v8 = vrot.slane %v7951_v48, 2  ;;  %v3413_v55 = vmul.f32 %v3411_v19, %v7752_v46  ;;  %v3687_v18 = vsub.f32 0.0, %v7965_v61  ;;  %s8187_s17 = sld [smem:[#allocation7 + $0x306]] }
 0x266   : > { %v2533_v33 = vmul.f32 1.442695, %v2530_v60  ;;  %v2529_v14 = vsub.f32 0.0, %v7940_v1  ;;  %5033 = vst.msk [vmem:[%s6112_s23 + $0x3e] sm:$0xfc] %vm386_vm14, %v2600_v5  ;;  %3301 = vrot.lane.b32.xlu0 %v3298_v39, %s9115_s13  ;;  %v3680_v6 = vadd.f32 %v3677_v49, %v3672_v36  ;;  %v3380_v0 = vsel %vm565_vm10, %v3377_v9, %v3379_v43 }
 0x267   : > { %v2626_v13 = vpop.permute.xlu1 %2625  ;;  %v3400_v21 = vrot.slane %v3393_v4, 2  ;;  %v3414_v39 = vmul.f32 %v3411_v19, %v7805_v59  ;;  %v3689_v41 = vmul.f32 1.442695, %v3686_v12  ;;  %v7991_v15 = vadd.f32 %v7712_v35, %v4233_v27 }
 0x268   : > { %5370 = vpow2.f32 %v2533_v33  ;;  %v2531_v34 = vmul.f32 1.442695, %v2529_v14  ;;  %v7996_v37 = vmul.f32 %v2676_v26, %v7219_v54  ;;  %v3378_v45 = vsel %vm565_vm10, %v3376_v50, %v3377_v9 }
 0x269   : > { %3324 = vrot.lane.b32.xlu1 %v3321_v2, %s9116_s10  ;;  %v2604_v53 = vpop.permute.xlu0 %2603  ;;  %v3397_v2 = vrot.slane %v3391_v51, 2  ;;  %v3412_v32 = vmul.f32 %v3411_v19, %v7780_v10  ;;  %v8003_v28 = vmul.f32 %v3449_v31, %v7752_v46  ;;  %v3419_v35 = vrot.slane %v3413_v55, 2 }
 0x26a   : > { %5372 = vpow2.f32 %v2531_v34  ;;  %5035 = vst.msk [vmem:[%s6112_s23 + $0x4e] sm:$0x3] %vm390_vm13, %v2604_v53  ;;  %3322 = vrot.lane.b32.xlu0 %v3319_v57, %s9116_s10  ;;  %v3452_v3 = vmul.f32 %v3449_v31, %v7805_v59  ;;  %v3691_v33 = vmul.f32 1.442695, %v3687_v18  ;;  %v8012_v24 = vadd.f32 %v7925_v7, %v3680_v6 }
 0x26b   : > { %v2640_v22 = vpop.permute.xlu1 %2639  ;;  %5374 = vpow2.f32 %v7788_v38  ;;  %v3470_v38 = vstv %s7959_s25  ;;  %v2631_v5 = vadd.f32 %v2626_v13, %v2617_v20  ;;  %v3401_v52 = vsel %vm565_vm10, %v3398_v8, %v3400_v21  ;;  %s8194_s25 = sld [smem:[#allocation7 + $0x304]] }
 0x26c   : > { %v3421_v40 = vrot.slane %v3414_v39, 2  ;;  %5376 = vpow2.f32 %v3689_v41  ;;  %v4241_v48 = vsub.f32 0.0, %v7991_v15  ;;  %v2618_v19 = vmul.f32 %v2616_v23, %v7251_v25 }
 0x26d   : > { %3362 = vrot.lane.b32.xlu1 %v3359_v42, %s9113_s8  ;;  %v7993_v62 = vpop.permute.xlu0 %2627  ;;  %v8022_v4 = vmul.f32 %v2676_v26, %v7251_v25  ;;  %v3450_v9 = vmul.f32 %v3449_v31, %v7780_v10  ;;  %v2683_v7 = vrot.slane %v7996_v37, 1  ;;  %v3418_v13 = vrot.slane %v3412_v32, 2 }
 0x26e   : > { %3360 = vrot.lane.b32.xlu0 %v3357_v30, %s9113_s8  ;;  %v3457_v36 = vrot.slane %v8003_v28, 3  ;;  %v8028_v49 = vmul.f32 %v3470_v38, %v7752_v46  ;;  %v3459_v23 = vrot.slane %v3452_v3, 3  ;;  %v3473_v42 = vmul.f32 %v3470_v38, %v7805_v59 }
 0x26f   : > { %v2654_v60 = vpop.permute.xlu1 %2653  ;;  %5378 = vpow2.f32 %v3691_v33  ;;  %v3688_v43 = vsub.f32 0.0, %v8012_v24  ;;  %v2645_v27 = vadd.f32 %v2640_v22, %v2631_v5  ;;  %v3399_v53 = vsel %vm565_vm10, %v3397_v2, %v3398_v8 }
 0x270   : > { %v3422_v20 = vsel %vm565_vm10, %v3419_v35, %v3421_v40  ;;  %v2684_v51 = vrot.slane %v8022_v4, 1  ;;  %v2679_v31 = vmul.f32 %v2676_v26, %v7296_v58  ;;  %v3456_v55 = vrot.slane %v3450_v9, 3 }
 0x271   : > { %3383 = vrot.lane.b32.xlu1 %v3380_v0, %s9114_s11  ;;  %v8019_v14 = vpop.permute.xlu0 %2641  ;;  %v3491_v18 = vstv %s7998_s2  ;;  %v3420_v22 = vsel %vm565_vm10, %v3418_v13, %v3419_v35  ;;  %v3471_v8 = vmul.f32 %v3470_v38, %v7780_v10  ;;  %v3478_v6 = vrot.slane %v8028_v49, 3  ;;  %s8197_s2 = sld [smem:[#allocation7 + $0x307]] }
 0x272   : > { %3381 = vrot.lane.b32.xlu0 %v3378_v45, %s9114_s11  ;;  %v3460_v21 = vsel %vm667_vm11, %v3457_v36, %v3459_v23  ;;  %v3480_v39 = vrot.slane %v3473_v42, 3  ;;  %v3512_v26 = vstv %s8009_s26  ;;  %v3693_v41 = vmul.f32 1.442695, %v3688_v43  ;;  %s8239_s26 = sld [smem:[#allocation7 + $0x381]] }
 0x273   : > { %v2668_v57 = vpop.permute.xlu1 %2667  ;;  %v2659_v37 = vadd.f32 %v2654_v60, %v2645_v27  ;;  %v3493_v45 = vmul.f32 %v3491_v18, %v7752_v46  ;;  %v3494_v32 = vmul.f32 %v3491_v18, %v7805_v59  ;;  %v8058_v28 = vmul.f32 1.442695, %v4241_v48 }
 0x274   : > { %v2685_v35 = vsel %vm463_vm9, %v2683_v7, %v2684_v51  ;;  %v2686_v3 = vrot.slane %v2679_v31, 1  ;;  %v3492_v5 = vmul.f32 %v3491_v18, %v7780_v10  ;;  %v8065_v60 = vmul.f32 %v3512_v26, %v7752_v46 }
 0x275   : > { %v5371_v34 = vpop.eup %5370  ;;  %3404 = vrot.lane.b32.xlu1 %v3401_v52, %s9115_s13  ;;  %v8038_v50 = vpop.permute.xlu0 %2655  ;;  %v2673_v40 = vadd.f32 %v2668_v57, %v2659_v37  ;;  %v3515_v4 = vmul.f32 %v3512_v26, %v7805_v59  ;;  %v3458_v48 = vsel %vm667_vm11, %v3456_v55, %v3457_v36  ;;  %v3477_v9 = vrot.slane %v3471_v8, 3 }
 0x276   : > { %v2536_v12 = vadd.f32 1.0, %v5371_v34  ;;  %3402 = vrot.lane.b32.xlu0 %v3399_v53, %s9115_s13  ;;  %v3481_v7 = vsel %vm667_vm11, %v3478_v6, %v3480_v39  ;;  %v2632_v13 = vadd.f32 %v7993_v62, %v2618_v19  ;;  %v3499_v49 = vrot.slane %v3493_v45, 3 }
 0x277   : > { %v8041_v30 = vpop.permute.xlu1 %2705  ;;  %v5373_v0 = vpop.eup %5372  ;;  %v3501_v57 = vrot.slane %v3494_v32, 3  ;;  %v3550_v34 = vstv %s8036_s6  ;;  %v2687_v42 = vsel %vm463_vm9, %v2684_v51, %v2686_v3  ;;  %v8080_v27 = vstv %s8045_s16  ;;  %s8246_s6 = sld [smem:[#allocation8 + $0x4]] }
 0x278   : > { %5380 = vrcp.f32 %v2536_v12  ;;  %v2535_v2 = vadd.f32 1.0, %v5373_v0  ;;  %v8062_v52 = vpop.eup %5374  ;;  %v3498_v12 = vrot.slane %v3492_v5, 3  ;;  %v3513_v53 = vmul.f32 %v3512_v26, %v7780_v10  ;;  %s8257_s16 = sld [smem:[#allocation7 + $0x382]] }
 0x279   : > { %3425 = vrot.lane.b32.xlu1 %v3422_v20, %s9116_s10  ;;  %v2670_v38 = vpop.permute.xlu0 %2669  ;;  %v5377_v23 = vpop.eup %5376  ;;  %v2646_v20 = vadd.f32 %v8019_v14, %v2632_v13  ;;  %v2690_v62 = vadd.f32 %v2685_v35, %v2673_v40  ;;  %v3520_v19 = vrot.slane %v8065_v60, 3  ;;  %v3522_v31 = vrot.slane %v3515_v4, 3 }
 0x27a   : > { %5382 = vrcp.f32 %v2535_v2  ;;  %3423 = vrot.lane.b32.xlu0 %v3420_v22, %s9116_s10  ;;  %v3479_v55 = vsel %vm667_vm11, %v3477_v9, %v3478_v6  ;;  %v3552_v51 = vmul.f32 %v3550_v34, %v7752_v46  ;;  %v3553_v18 = vmul.f32 %v3550_v34, %v7805_v59 }
 0x27b   : > { %v2727_v33 = vpop.permute.xlu1 %2726  ;;  %5384 = vpow2.f32 %v3693_v41  ;;  %v3571_v22 = vstv %s8054_s7  ;;  %v2660_v0 = vadd.f32 %v8038_v50, %v2646_v20  ;;  %v3502_v14 = vsel %vm667_vm11, %v3499_v49, %v3501_v57  ;;  %s8275_s7 = sld [smem:[#allocation7 + $0x383]] }
 0x27c   : > { %v5379_v8 = vpop.eup %5378  ;;  %v3695_v39 = vadd.f32 1.0, %v5377_v23  ;;  %v3500_v6 = vsel %vm667_vm11, %v3498_v12, %v3499_v49  ;;  %v8100_v2 = vmul.f32 %v8080_v27, %v7251_v25  ;;  %v3519_v37 = vrot.slane %v3513_v53, 3 }
 0x27d   : > { %3463 = vrot.lane.b32.xlu1 %v3460_v21, %s9113_s8  ;;  %v8077_v43 = vpop.permute.xlu0 %2707  ;;  %v2778_v21 = vmul.f32 %v8080_v27, %v7219_v54  ;;  %v3551_v45 = vmul.f32 %v3550_v34, %v7780_v10  ;;  %v2674_v50 = vadd.f32 %v2670_v38, %v2660_v0  ;;  %v2711_v32 = vadd.f32 %v8041_v30, %v2690_v62 }
 0x27e   : > { %3461 = vrot.lane.b32.xlu0 %v3458_v48, %s9113_s8  ;;  %v3523_v35 = vsel %vm667_vm11, %v3520_v19, %v3522_v31  ;;  %v8108_v3 = vmul.f32 %v3571_v22, %v7752_v46  ;;  %v3558_v40 = vrot.slane %v3552_v51, 4  ;;  %v3560_v60 = vrot.slane %v3553_v18, 4 }
 0x27f   : > { %v2748_v36 = vpop.permute.xlu1 %2747  ;;  %v3574_v4 = vmul.f32 %v3571_v22, %v7805_v59  ;;  %v3696_v38 = vadd.f32 1.0, %v5379_v8  ;;  %v2732_v48 = vadd.f32 %v2727_v33, %v2711_v32  ;;  %v3592_v9 = vstv %s8074_s9  ;;  %s5150_s9 = sld [smem:[#allocation7 + $0x386]] }
 0x280   : > { %5386 = vrcp.f32 %v3695_v39  ;;  %v2784_v13 = vrot.slane %v2778_v21, 2  ;;  %v2785_v49 = vrot.slane %v8100_v2, 2  ;;  %v3557_v34 = vrot.slane %v3551_v45, 4 }
 0x281   : > { %3484 = vrot.lane.b32.xlu1 %v3481_v7, %s9114_s11  ;;  %v8095_v26 = vpop.permute.xlu0 %2728  ;;  %5388 = vpow2.f32 %v8058_v28  ;;  %v2691_v23 = vadd.f32 %v2687_v42, %v2674_v50  ;;  %v2753_v12 = vadd.f32 %v2748_v36, %v2732_v48  ;;  %v3572_v53 = vmul.f32 %v3571_v22, %v7780_v10 }
 0x282   : > { %3482 = vrot.lane.b32.xlu0 %v3479_v55, %s9114_s11  ;;  %v3579_v20 = vrot.slane %v8108_v3, 4  ;;  %v3581_v28 = vrot.slane %v3574_v4, 4  ;;  %v3594_v33 = vmul.f32 %v3592_v9, %v7752_v46  ;;  %v3595_v62 = vmul.f32 %v3592_v9, %v7805_v59 }
 0x283   : > { %v2769_v41 = vpop.permute.xlu1 %2768  ;;  %5390 = vrcp.f32 %v3696_v38  ;;  %v3521_v55 = vsel %vm667_vm11, %v3519_v37, %v3520_v19  ;;  %v3561_v51 = vsel %vm769_vm12, %v3558_v40, %v3560_v60  ;;  %v2786_v22 = vsel %vm565_vm10, %v2784_v13, %v2785_v49 }
 0x284   : > { %v2774_v31 = vadd.f32 %v2769_v41, %v2753_v12  ;;  %v2780_v8 = vmul.f32 %v8080_v27, %v7296_v58  ;;  %v3613_v21 = vstv %s8103_s30  ;;  %v3578_v39 = vrot.slane %v3572_v53, 4  ;;  %s8286_s30 = sld [smem:[#allocation7 + $0x387]] }
 0x285   : > { %v5381_v5 = vpop.eup %5380  ;;  %3505 = vrot.lane.b32.xlu1 %v3502_v14, %s9115_s13  ;;  %v2750_v7 = vpop.permute.xlu0 %2749  ;;  %v3559_v14 = vsel %vm769_vm12, %v3557_v34, %v3558_v40  ;;  %v3593_v19 = vmul.f32 %v3592_v9, %v7780_v10  ;;  %v2878_v41 = vstv %s8110_s12  ;;  %v3600_v37 = vrot.slane %v3594_v33, 4  ;;  %s8292_s12 = sld [smem:[#allocation7 + $0x384]] }
 0x286   : > { %v2540_v30 = vmul.f32 %v5381_v5, %v7912_v47  ;;  %3503 = vrot.lane.b32.xlu0 %v3500_v6, %s9115_s13  ;;  %v3582_v6 = vsel %vm769_vm12, %v3579_v20, %v3581_v28  ;;  %v3602_v27 = vrot.slane %v3595_v62, 4  ;;  %v2791_v32 = vadd.f32 %v2786_v22, %v2774_v31 }
 0x287   : > { %v2807_v57 = vpop.permute.xlu1 %2806  ;;  %v5383_v47 = vpop.eup %5382  ;;  %v4247_v3 = vmul.f32 1.442695, %v4242_v56  ;;  %v2787_v5 = vrot.slane %v2780_v8, 2  ;;  %v3580_v38 = vsel %vm769_vm12, %v3578_v39, %v3579_v20  ;;  %v2879_v48 = vmul.f32 %v2878_v41, %v7219_v54 }
 0x288   : > { %5027 = vst.msk [vmem:[%s6112_s23 + $0xb8] sm:$0xff] %vm388_vm15, %v2540_v30  ;;  %v5385_v42 = vpop.eup %5384  ;;  %v2539_v36 = vmul.f32 %v5383_v47, %v7940_v1  ;;  %v2712_v1 = vadd.f32 %v8077_v43, %v2691_v23  ;;  %v3616_v43 = vmul.f32 %v3613_v21, %v7805_v59  ;;  %v3599_v30 = vrot.slane %v3593_v19, 4 }
 0x289   : > { %3526 = vrot.lane.b32.xlu1 %v3523_v35, %s9116_s10  ;;  %v2771_v18 = vpop.permute.xlu0 %2770  ;;  %v3697_v45 = vadd.f32 1.0, %v5385_v42  ;;  %v3615_v35 = vmul.f32 %v3613_v21, %v7752_v46  ;;  %v8156_v9 = vmul.f32 %v2878_v41, %v7251_v25  ;;  %v3614_v56 = vmul.f32 %v3613_v21, %v7780_v10 }
 0x28a   : > { %5026 = vst.msk [vmem:[%s6112_s23 + $0xb0] sm:$0xff] %vm388_vm15, %v2539_v36  ;;  %3524 = vrot.lane.b32.xlu0 %v3521_v55, %s9116_s10  ;;  %v2733_v50 = vadd.f32 %v8095_v26, %v2712_v1  ;;  %v3603_v26 = vsel %vm769_vm12, %v3600_v37, %v3602_v27  ;;  %v2812_v34 = vadd.f32 %v2807_v57, %v2791_v32  ;;  %v3623_v23 = vrot.slane %v3616_v43, 4 }
 0x28b   : > { %v2828_v0 = vpop.permute.xlu1 %2827  ;;  %5392 = vrcp.f32 %v3697_v45  ;;  %v2788_v53 = vsel %vm565_vm10, %v2785_v49, %v2787_v5  ;;  %v3601_v57 = vsel %vm769_vm12, %v3599_v30, %v3600_v37  ;;  %v2885_v62 = vrot.slane %v2879_v48, 3 }
 0x28c   : > { %v2754_v4 = vadd.f32 %v2750_v7, %v2733_v50  ;;  %v3621_v7 = vrot.slane %v3615_v35, 4  ;;  %5394 = vpow2.f32 %v4247_v3  ;;  %v2833_v33 = vadd.f32 %v2828_v0, %v2812_v34 }
 0x28d   : > { %3564 = vrot.lane.b32.xlu1 %v3561_v51, %s9113_s8  ;;  %v2809_v40 = vpop.permute.xlu0 %2808  ;;  %v5387_v12 = vpop.eup %5386  ;;  %v2886_v42 = vrot.slane %v8156_v9, 3  ;;  %v3620_v36 = vrot.slane %v3614_v56, 4  ;;  %v2881_v21 = vmul.f32 %v2878_v41, %v7296_v58  ;;  %v2979_v41 = vstv %s8164_s14  ;;  %s8317_s14 = sld [smem:[#allocation7 + $0x280]] }
 0x28e   : > { %3562 = vrot.lane.b32.xlu0 %v3559_v14, %s9113_s8  ;;  %v2775_v13 = vadd.f32 %v2771_v18, %v2754_v4  ;;  %v5389_v28 = vpop.eup %5388  ;;  %v3624_v49 = vsel %vm769_vm12, %v3621_v7, %v3623_v23  ;;  %v3701_v51 = vmul.f32 %v5387_v12, %v7945_v11  ;;  %v3742_v5 = vstv %s8172_s0  ;;  %s8326_s0 = sld [smem:[#allocation7 + $0x388]] }
 0x28f   : > { %v2849_v60 = vpop.permute.xlu1 %2848  ;;  %v4250_v0 = vadd.f32 1.0, %v5389_v28  ;;  %v2887_v14 = vsel %vm667_vm11, %v2885_v62, %v2886_v42  ;;  %v3622_v11 = vsel %vm769_vm12, %v3620_v36, %v3621_v7  ;;  %v2888_v32 = vrot.slane %v2881_v21, 3 }
 0x290   : > { %v5391_v31 = vpop.eup %5390  ;;  %v2792_v2 = vadd.f32 %v2788_v53, %v2775_v13  ;;  %v2854_v55 = vadd.f32 %v2849_v60, %v2833_v33  ;;  %v8182_v19 = vsel %vm5779_vm4, %v3701_v51, 0.0  ;;  %v8201_v4 = vmul.f32 %v2979_v41, %v7251_v25 }
 0x291   : > { %3585 = vrot.lane.b32.xlu1 %v3582_v6, %s9114_s11  ;;  %v2830_v20 = vpop.permute.xlu0 %2829  ;;  %v3702_v1 = vmul.f32 %v5391_v31, %v7965_v61  ;;  %v3728_v6 = vstv %s8159_s15  ;;  %v4249_v61 = vadd.f32 1.0, %v8062_v52  ;;  %5396 = vrcp.f32 %v4250_v0  ;;  %s8305_s15 = sld [smem:[#allocation7 + $0x308]] }
 0x292   : > { %3583 = vrot.lane.b32.xlu0 %v3580_v38, %s9114_s11  ;;  %v2813_v39 = vadd.f32 %v2809_v40, %v2792_v2  ;;  %v3729_v35 = vmul.f32 %v3728_v6, %v8182_v19  ;;  %v2980_v52 = vmul.f32 %v2979_v41, %v7219_v54  ;;  %v3743_v56 = vmul.f32 %v3742_v5, %v8182_v19 }
 0x293   : > { %v2870_v47 = vpop.permute.xlu1 %2869  ;;  %5398 = vrcp.f32 %v4249_v61  ;;  %v8210_v25 = vsel %vm5797_vm6, %v3702_v1, 0.0  ;;  %v3756_v13 = vstv %s8185_s1  ;;  %v2987_v53 = vrot.slane %v8201_v4, 4  ;;  %s8336_s1 = sld [smem:[#allocation7 + $0x285]] }
 0x294   : > { %v2875_v8 = vadd.f32 %v2870_v47, %v2854_v55  ;;  %v2834_v45 = vadd.f32 %v2830_v20, %v2813_v39  ;;  %v2986_v12 = vrot.slane %v2980_v52, 4  ;;  %v3801_v20 = vstv %s8187_s17  ;;  %s8343_s17 = sld [smem:[#allocation7 + $0x309]] }
 0x295   : > { %3606 = vrot.lane.b32.xlu1 %v3603_v26, %s9115_s13  ;;  %v2851_v18 = vpop.permute.xlu0 %2850  ;;  %v2889_v26 = vsel %vm667_vm11, %v2886_v42, %v2888_v32  ;;  %v3730_v28 = vmul.f32 %v3728_v6, %v8210_v25  ;;  %v3757_v33 = vmul.f32 %v3756_v13, %v8182_v19  ;;  %v3802_v42 = vmul.f32 %v3801_v20, %v8182_v19 }
 0x296   : > { %3604 = vrot.lane.b32.xlu0 %v3601_v57, %s9115_s13  ;;  %v2892_v50 = vadd.f32 %v2887_v14, %v2875_v8  ;;  %v2855_v3 = vadd.f32 %v2851_v18, %v2834_v45  ;;  %v3770_v57 = vstv %s8194_s25  ;;  %v8222_v36 = vmul.f32 %v3801_v20, %v8210_v25  ;;  %s8361_s25 = sld [smem:[#allocation7 + $0x389]] }
 0x297   : > { %v2908_v22 = vpop.permute.xlu1 %2907  ;;  %v8225_v31 = vstv %s8197_s2  ;;  %v2988_v55 = vsel %vm769_vm12, %v2986_v12, %v2987_v53  ;;  %v3744_v8 = vmul.f32 %v3742_v5, %v8210_v25  ;;  %v3808_v39 = vrot.slane %v3802_v42, 1  ;;  %s8382_s2 = sld [smem:[#allocation7 + $0x30b]] }
 0x298   : > { %v5393_v43 = vpop.eup %5392  ;;  %v2913_v48 = vadd.f32 %v2908_v22, %v2892_v50  ;;  %v3771_v22 = vmul.f32 %v3770_v57, %v8182_v19  ;;  %v3823_v0 = vmul.f32 %v8225_v31, %v8182_v19  ;;  %v8237_v14 = vmul.f32 %v8225_v31, %v8210_v25 }
 0x299   : > { %3627 = vrot.lane.b32.xlu1 %v3624_v49, %s9116_s10  ;;  %v2872_v37 = vpop.permute.xlu0 %2871  ;;  %v5395_v38 = vpop.eup %5394  ;;  %v3703_v9 = vmul.f32 %v5393_v43, %v8012_v24  ;;  %v3758_v61 = vmul.f32 %v3756_v13, %v8210_v25 }
 0x29a   : > { %3625 = vrot.lane.b32.xlu0 %v3622_v11, %s9116_s10  ;;  %v2876_v30 = vadd.f32 %v2872_v37, %v2855_v3  ;;  %v4251_v34 = vadd.f32 1.0, %v5395_v38  ;;  %v3809_v11 = vrot.slane %v8222_v36, 1  ;;  %v3829_v32 = vrot.slane %v3823_v0, 1 }
 0x29b   : > { %v2929_v27 = vpop.permute.xlu1 %2928  ;;  %v8244_v6 = vsel %vm5815_vm8, %v3703_v9, 0.0  ;;  %v4355_v0 = vstv %s5150_s9  ;;  %s8450_s9 = sld [smem:[#allocation7 + $0x30d]] }
 0x29c   : > { %v2934_v54 = vadd.f32 %v2929_v27, %v2913_v48  ;;  %v2893_v24 = vadd.f32 %v2889_v26, %v2876_v30  ;;  %5400 = vrcp.f32 %v4251_v34  ;;  %v3772_v26 = vmul.f32 %v3770_v57, %v8210_v25 }
 0x29d   : > { %3709 = vrot.lane.b32.xlu1 %v3702_v1, %s9114_s11  ;;  %v2910_v40 = vpop.permute.xlu0 %2909  ;;  %v3080_v34 = vstv %s8246_s6  ;;  %s8403_s6 = sld [smem:[#allocation7 + $0x28a]] }
 0x29e   : > { %3707 = vrot.lane.b32.xlu0 %v3701_v51, %s9114_s11  ;;  %v2982_v51 = vmul.f32 %v2979_v41, %v7296_v58  ;;  %v2914_v18 = vadd.f32 %v2910_v40, %v2893_v24  ;;  %v5397_v21 = vpop.eup %5396  ;;  %v3810_v40 = vsel %vm463_vm9, %v3808_v39, %v3809_v11 }
 0x29f   : > { %v2950_v60 = vpop.permute.xlu1 %2949  ;;  %v8249_v41 = vmul.f32 %v5397_v21, %v7991_v15 }
 0x2a0   : > { %v2955_v47 = vadd.f32 %v2950_v60, %v2934_v54  ;;  %v2989_v27 = vrot.slane %v2982_v51, 4  ;;  %v5399_v43 = vpop.eup %5398  ;;  %v3804_v60 = vmul.f32 %v3801_v20, %v8244_v6  ;;  %v4310_v51 = vstv %s8275_s7  ;;  %s8434_s7 = sld [smem:[#allocation7 + $0x38c]] }
 0x2a1   : > { %3733 = vrot.lane.b32.xlu1 %v3729_v35, %s9113_s8  ;;  %v2931_v7 = vpop.permute.xlu0 %2930  ;;  %v3830_v35 = vrot.slane %v8237_v14, 1  ;;  %v8261_v30 = vmul.f32 %v5399_v43, %v7734_v16  ;;  %v8266_v48 = vsel %vm5797_vm6, %v8249_v41, 0.0 }
 0x2a2   : > { %3711 = vrot.lane.b32.xlu0 %v3703_v9, %s9114_s11  ;;  %v2935_v58 = vadd.f32 %v2931_v7, %v2914_v18  ;;  %v2990_v15 = vsel %vm769_vm12, %v2987_v53, %v2989_v27  ;;  %v4282_v9 = vstv %s8239_s26  ;;  %v3811_v13 = vrot.slane %v3804_v60, 1  ;;  %s8390_s26 = sld [smem:[#allocation7 + $0x38b]] }
 0x2a3   : > { %v2971_v23 = vpop.permute.xlu1 %2970  ;;  %v3831_v16 = vsel %vm463_vm9, %v3829_v32, %v3830_v35  ;;  %v8281_v53 = vsel %vm5779_vm4, %v8261_v30, 0.0  ;;  %v4284_v20 = vmul.f32 %v4282_v9, %v8266_v48  ;;  %v4312_v44 = vmul.f32 %v4310_v51, %v8266_v48 }
 0x2a4   : > { %v2976_v62 = vadd.f32 %v2971_v23, %v2955_v47  ;;  %v4356_v32 = vmul.f32 %v4355_v0, %v8281_v53 }
 0x2a5   : > { %3747 = vrot.lane.b32.xlu1 %v3743_v56, %s9114_s11  ;;  %v2952_v2 = vpop.permute.xlu0 %2951 }
 0x2a6   : > { %3735 = vrot.lane.b32.xlu0 %v3730_v28, %s9113_s8  ;;  %v2993_v1 = vadd.f32 %v2988_v55, %v2976_v62  ;;  %v2956_v50 = vadd.f32 %v2952_v2, %v2935_v58  ;;  %v3812_v28 = vsel %vm463_vm9, %v3809_v11, %v3811_v13  ;;  %v4283_v2 = vmul.f32 %v4282_v9, %v8281_v53 }
 0x2a7   : > { %v3009_v49 = vpop.permute.xlu1 %3008  ;;  %v4324_v11 = vstv %s8292_s12  ;;  %v4362_v9 = vrot.slane %v4356_v32, 1  ;;  %v3170_v13 = vstv %s8317_s14  ;;  %s8473_s12 = sld [smem:[#allocation7 + $0x38d]] }
 0x2a8   : > { %v3014_v5 = vadd.f32 %v3009_v49, %v2993_v1  ;;  %v4376_v1 = vstv %s8286_s30  ;;  %s8461_s30 = sld [smem:[#allocation7 + $0x28f]] }
 0x2a9   : > { %3761 = vrot.lane.b32.xlu1 %v3757_v33, %s9115_s13  ;;  %v2973_v37 = vpop.permute.xlu0 %2972  ;;  %v5401_v23 = vpop.eup %5400  ;;  %v4296_v33 = vstv %s8257_s16  ;;  %v4377_v43 = vmul.f32 %v4376_v1, %v8281_v53  ;;  %s8416_s16 = sld [smem:[#allocation7 + $0x30c]] }
 0x2aa   : > { %3749 = vrot.lane.b32.xlu0 %v3744_v8, %s9114_s11  ;;  %v2977_v3 = vadd.f32 %v2973_v37, %v2956_v50  ;;  %v8295_v29 = vmul.f32 %v5401_v23, %v7758_v63  ;;  %v4298_v55 = vmul.f32 %v4296_v33, %v8266_v48  ;;  %v4297_v58 = vmul.f32 %v4296_v33, %v8281_v53  ;;  %s8513_s14 = sld [smem:[#allocation7 + $0x38e]] }
 0x2ab   : > { %v3030_v45 = vpop.permute.xlu1 %3029  ;;  %v4357_v37 = vmul.f32 %v4355_v0, %v8266_v48 }
 0x2ac   : > { %v3035_v38 = vadd.f32 %v3030_v45, %v3014_v5  ;;  %v2994_v56 = vadd.f32 %v2990_v15, %v2977_v3  ;;  %v8310_v18 = vsel %vm5815_vm8, %v8295_v29, 0.0  ;;  %v8334_v3 = vmul.f32 %v4376_v1, %v8266_v48 }
 0x2ad   : > { %3775 = vrot.lane.b32.xlu1 %v3771_v22, %s9116_s10  ;;  %v3011_v52 = vpop.permute.xlu0 %3010  ;;  %v4358_v27 = vmul.f32 %v4355_v0, %v8310_v18  ;;  %v4311_v5 = vmul.f32 %v4310_v51, %v8281_v53  ;;  %v4363_v15 = vrot.slane %v4357_v37, 1 }
 0x2ae   : > { %3763 = vrot.lane.b32.xlu0 %v3758_v61, %s9115_s13  ;;  %v3015_v24 = vadd.f32 %v3011_v52, %v2994_v56  ;;  %v4383_v56 = vrot.slane %v4377_v43, 1 }
 0x2af   : > { %v3051_v4 = vpop.permute.xlu1 %3050  ;;  %v4365_v52 = vrot.slane %v4358_v27, 1  ;;  %v4364_v33 = vsel %vm463_vm9, %v4362_v9, %v4363_v15 }
 0x2b0   : > { %v3056_v54 = vadd.f32 %v3051_v4, %v3035_v38  ;;  %v3843_v4 = vstv %s8305_s15  ;;  %s8489_s15 = sld [smem:[#allocation7 + $0x30e]] }
 0x2b1   : > { %3813 = vrot.lane.b32.xlu1 %v3810_v40, %s9113_s8  ;;  %v3032_v17 = vpop.permute.xlu0 %3031  ;;  %v4326_v40 = vmul.f32 %v4324_v11, %v8266_v48  ;;  %v4366_v23 = vsel %vm463_vm9, %v4363_v15, %v4365_v52 }
 0x2b2   : > { %3777 = vrot.lane.b32.xlu0 %v3772_v26, %s9116_s10  ;;  %v3036_v42 = vadd.f32 %v3032_v17, %v3015_v24  ;;  %v3844_v17 = vmul.f32 %v3843_v4, %v8182_v19 }
 0x2b3   : > { %v3072_v7 = vpop.permute.xlu1 %3071 }
 0x2b4   : > { %v3077_v12 = vadd.f32 %v3072_v7, %v3056_v54  ;;  %v4384_v54 = vrot.slane %v8334_v3, 1  ;;  %v3172_v7 = vmul.f32 %v3170_v13, %v7752_v46 }
 0x2b5   : > { %3834 = vrot.lane.b32.xlu1 %v3831_v16, %s9114_s11  ;;  %v3053_v57 = vpop.permute.xlu0 %3052  ;;  %v4325_v16 = vmul.f32 %v4324_v11, %v8281_v53  ;;  %v3171_v11 = vmul.f32 %v3170_v13, %v7780_v10 }
 0x2b6   : > { %v8288_v47 = vadd.f32 %v3080_v34, %v3077_v12  ;;  %3815 = vrot.lane.b32.xlu0 %v3812_v28, %s9113_s8  ;;  %v3057_v49 = vadd.f32 %v3053_v57, %v3036_v42  ;;  %v3825_v12 = vmul.f32 %v8225_v31, %v8244_v6  ;;  %v4385_v57 = vsel %vm463_vm9, %v4383_v56, %v4384_v54 }
 0x2b7   : > { %v3154_v62 = vpop.permute.xlu1 %3153  ;;  %v4379_v42 = vmul.f32 %v4376_v1, %v8310_v18  ;;  %v3850_v31 = vrot.slane %v3844_v17, 1  ;;  %v3846_v1 = vmul.f32 %v3843_v4, %v8244_v6 }
 0x2b8   : > { %v3083_v36 = vsub.f32 0.0, %v8288_v47  ;;  %5069 = vst.msk [vmem:[%s6112_s23 + $0x4e] sm:$0xfc] %vm386_vm14, %v3154_v62  ;;  %v3230_v62 = vstv %s8336_s1  ;;  %s8531_s1 = sld [smem:[#allocation7 + $0x294]] }
 0x2b9   : > { %4289 = vrot.lane.b32.xlu1 %v4284_v20, %s9113_s8  ;;  %v3074_v22 = vpop.permute.xlu0 %3073  ;;  %v4397_v20 = vstv %s8326_s0  ;;  %v4386_v37 = vrot.slane %v4379_v42, 1  ;;  %v3853_v9 = vrot.slane %v3846_v1, 1  ;;  %v3902_v42 = vstv %s8382_s2  ;;  %s8526_s0 = sld [smem:[#allocation7 + $0x310]] }
 0x2ba   : > { %v3085_v63 = vmul.f32 1.442695, %v3083_v36  ;;  %v3078_v21 = vadd.f32 %v3074_v22, %v3057_v49  ;;  %4287 = vrot.lane.b32.xlu0 %v4283_v2, %s9113_s8  ;;  %v8374_v49 = vmul.f32 %v4397_v20, %v8266_v48  ;;  %v3832_v22 = vrot.slane %v3825_v12, 1  ;;  %s8574_s2 = sld [smem:[#allocation7 + $0x391]] }
 0x2bb   : > { %v3158_v8 = vpop.permute.xlu1 %3157  ;;  %v4400_v14 = vmul.f32 %v4397_v20, %v8310_v18 }
 0x2bc   : > { %5402 = vpow2.f32 %v3085_v63  ;;  %5071 = vst.msk [vmem:[%s6112_s23 + $0x5e] sm:$0x3] %vm390_vm13, %v3158_v8  ;;  %v8321_v39 = vadd.f32 %v3080_v34, %v3078_v21  ;;  %v8354_v34 = vmul.f32 %v3843_v4, %v8210_v25  ;;  %v3864_v8 = vstv %s8343_s17  ;;  %s8544_s17 = sld [smem:[#allocation7 + $0x390]] }
 0x2bd   : > { %4303 = vrot.lane.b32.xlu1 %v4298_v55, %s9114_s11  ;;  %v3156_v45 = vpop.permute.xlu0 %3155  ;;  %v4398_v55 = vmul.f32 %v4397_v20, %v8281_v53  ;;  %v3833_v43 = vsel %vm463_vm9, %v3830_v35, %v3832_v22  ;;  %v8396_v3 = vmul.f32 %v3864_v8, %v8210_v25  ;;  %v3903_v22 = vmul.f32 %v3902_v42, %v8182_v19 }
 0x2be   : > { %v3084_v61 = vsub.f32 0.0, %v8321_v39  ;;  %5070 = vst.msk [vmem:[%s6112_s23 + $0x56] sm:$0xff] %vm388_vm15, %v3156_v45  ;;  %4301 = vrot.lane.b32.xlu0 %v4297_v58, %s9114_s11  ;;  %v3851_v2 = vrot.slane %v8354_v34, 1  ;;  %v8378_v58 = vmul.f32 %v3230_v62, %v7752_v46 }
 0x2bf   : > { %v3182_v50 = vpop.permute.xlu1 %3181  ;;  %v4404_v45 = vrot.slane %v4398_v55, 1 }
 0x2c0   : > { %v3087_v60 = vmul.f32 1.442695, %v3084_v61  ;;  %v3186_v51 = vadd.f32 %v3182_v50, %v3172_v7  ;;  %v3852_v27 = vsel %vm463_vm9, %v3850_v31, %v3851_v2  ;;  %v4405_v50 = vrot.slane %v8374_v49, 1 }
 0x2c1   : > { %4317 = vrot.lane.b32.xlu1 %v4312_v44, %s9115_s13  ;;  %v8345_v38 = vpop.permute.xlu0 %3179  ;;  %v3233_v44 = vmul.f32 %v3230_v62, %v7805_v59  ;;  %v3865_v61 = vmul.f32 %v3864_v8, %v8182_v19  ;;  %v3238_v15 = vrot.slane %v8378_v58, 1  ;;  %v3867_v31 = vmul.f32 %v3864_v8, %v8244_v6 }
 0x2c2   : > { %5404 = vpow2.f32 %v3087_v60  ;;  %4315 = vrot.lane.b32.xlu0 %v4311_v5, %s9115_s13  ;;  %v4418_v5 = vstv %s8361_s25  ;;  %v3231_v60 = vmul.f32 %v3230_v62, %v7780_v10  ;;  %v4406_v56 = vsel %vm463_vm9, %v4404_v45, %v4405_v50  ;;  %s8559_s25 = sld [smem:[#allocation7 + $0x311]] }
 0x2c3   : > { %v3196_v26 = vpop.permute.xlu1 %3195  ;;  %v3240_v52 = vrot.slane %v3233_v44, 1  ;;  %v3871_v13 = vrot.slane %v3865_v61, 1  ;;  %v8412_v17 = vmul.f32 %v4418_v5, %v8266_v48  ;;  %v3185_v7 = vadd.f32 %v8345_v38, %v3171_v11 }
 0x2c4   : > { %v3200_v32 = vadd.f32 %v3196_v26, %v3186_v51  ;;  %v4387_v26 = vsel %vm463_vm9, %v4384_v54, %v4386_v37  ;;  %v3237_v12 = vrot.slane %v3231_v60, 1  ;;  %v3854_v62 = vsel %vm463_vm9, %v3851_v2, %v3853_v9 }
 0x2c5   : > { %4331 = vrot.lane.b32.xlu1 %v4326_v40, %s9116_s10  ;;  %v8363_v24 = vpop.permute.xlu0 %3193  ;;  %v4426_v49 = vrot.slane %v8412_v17, 1  ;;  %v3331_v44 = vstv %s8403_s6  ;;  %v4421_v8 = vmul.f32 %v4418_v5, %v8310_v18  ;;  %v3923_v60 = vstv %s8416_s16  ;;  %s8599_s6 = sld [smem:[#allocation7 + $0x392]] }
 0x2c6   : > { %4329 = vrot.lane.b32.xlu0 %v4325_v16, %s9116_s10  ;;  %v4419_v16 = vmul.f32 %v4418_v5, %v8281_v53  ;;  %v3239_v45 = vsel %vm463_vm9, %v3237_v12, %v3238_v15  ;;  %v3909_v5 = vrot.slane %v3903_v22, 2  ;;  %v8453_v9 = vmul.f32 %v3331_v44, %v7752_v46  ;;  %s8617_s16 = sld [smem:[#allocation7 + $0x313]] }
 0x2c7   : > { %v3210_v28 = vpop.permute.xlu1 %3209  ;;  %v3924_v17 = vmul.f32 %v3923_v60, %v8182_v19  ;;  %v4477_v12 = vstv %s8434_s7  ;;  %s8620_s7 = sld [smem:[#allocation8 + $0x5]] }
 0x2c8   : > { %v3214_v54 = vadd.f32 %v3210_v28, %v3200_v32  ;;  %v4407_v28 = vrot.slane %v4400_v14, 1  ;;  %v4425_v55 = vrot.slane %v4419_v16, 1  ;;  %v3874_v32 = vrot.slane %v3867_v31, 1 }
 0x2c9   : > { %v5403_v36 = vpop.eup %5402  ;;  %4369 = vrot.lane.b32.xlu1 %v4366_v23, %s9113_s8  ;;  %v3208_v0 = vpop.permute.xlu0 %3207  ;;  %v3872_v23 = vrot.slane %v8396_v3, 1  ;;  %v3905_v14 = vmul.f32 %v3902_v42, %v8244_v6  ;;  %v3332_v16 = vmul.f32 %v3331_v44, %v7780_v10 }
 0x2ca   : > { %v3089_v63 = vadd.f32 1.0, %v5403_v36  ;;  %4367 = vrot.lane.b32.xlu0 %v4364_v33, %s9113_s8  ;;  %v3241_v33 = vsel %vm463_vm9, %v3238_v15, %v3240_v52  ;;  %v3199_v36 = vadd.f32 %v8363_v24, %v3185_v7  ;;  %v8432_v24 = vmul.f32 %v3902_v42, %v8210_v25 }
 0x2cb   : > { %v3224_v21 = vpop.permute.xlu1 %3223  ;;  %v3873_v2 = vsel %vm463_vm9, %v3871_v13, %v3872_v23  ;;  %v4408_v61 = vsel %vm463_vm9, %v4405_v50, %v4407_v28  ;;  %v3334_v50 = vmul.f32 %v3331_v44, %v7805_v59  ;;  %v3944_v44 = vstv %s8450_s9  ;;  %s8628_s9 = sld [smem:[#allocation7 + $0x300]] }
 0x2cc   : > { %5406 = vrcp.f32 %v3089_v63  ;;  %v3228_v38 = vadd.f32 %v3224_v21, %v3214_v54  ;;  %v4456_v63 = vstv %s8390_s26  ;;  %v3213_v51 = vadd.f32 %v3208_v0, %v3199_v36  ;;  %s8589_s26 = sld [smem:[#allocation7 + $0x312]] }
 0x2cd   : > { %4388 = vrot.lane.b32.xlu1 %v4385_v57, %s9114_s11  ;;  %v3222_v40 = vpop.permute.xlu0 %3221  ;;  %v4457_v37 = vmul.f32 %v4456_v63, %v8281_v53  ;;  %v8440_v0 = vmul.f32 %v4456_v63, %v8266_v48  ;;  %v3875_v54 = vsel %vm463_vm9, %v3872_v23, %v3874_v32  ;;  %v3341_v42 = vrot.slane %v3334_v50, 2 }
 0x2ce   : > { %3836 = vrot.lane.b32.xlu0 %v3833_v43, %s9114_s11  ;;  %v3227_v1 = vadd.f32 %v3222_v40, %v3213_v51  ;;  %v3245_v11 = vadd.f32 %v3241_v33, %v3228_v38  ;;  %v4427_v43 = vsel %vm463_vm9, %v4425_v55, %v4426_v49  ;;  %v3910_v40 = vrot.slane %v8432_v24, 2 }
 0x2cf   : > { %v8401_v4 = vpop.permute.xlu1 %3261  ;;  %v5405_v35 = vpop.eup %5404  ;;  %v4464_v13 = vrot.slane %v8440_v0, 2  ;;  %v4459_v28 = vmul.f32 %v4456_v63, %v8310_v18  ;;  %v3912_v55 = vrot.slane %v3905_v14, 2  ;;  %v8485_v63 = vmul.f32 %v4477_v12, %v8266_v48 }
 0x2d0   : > { %v3090_v34 = vadd.f32 1.0, %v5405_v35  ;;  %v3266_v35 = vadd.f32 %v8401_v4, %v3245_v11  ;;  %v3911_v4 = vsel %vm565_vm10, %v3909_v5, %v3910_v40 }
 0x2d1   : > { %3855 = vrot.lane.b32.xlu1 %v3852_v27, %s9115_s13  ;;  %v8418_v20 = vpop.permute.xlu0 %3259  ;;  %v4466_v0 = vrot.slane %v4459_v28, 2 }
 0x2d2   : > { %5408 = vrcp.f32 %v3090_v34  ;;  %4390 = vrot.lane.b32.xlu0 %v4387_v26, %s9114_s11  ;;  %v4428_v26 = vrot.slane %v4421_v8, 1  ;;  %v8468_v34 = vmul.f32 %v3923_v60, %v8210_v25  ;;  %v3338_v8 = vrot.slane %v3332_v16, 2 }
 0x2d3   : > { %v3283_v57 = vpop.permute.xlu1 %3282 }
 0x2d4   : > { %v3287_v7 = vadd.f32 %v3283_v57, %v3266_v35  ;;  %v4429_v38 = vsel %vm463_vm9, %v4426_v49, %v4428_v26  ;;  %v3931_v22 = vrot.slane %v8468_v34, 2  ;;  %v4478_v49 = vmul.f32 %v4477_v12, %v8281_v53 }
 0x2d5   : > { %4409 = vrot.lane.b32.xlu1 %v4406_v56, %s9115_s13  ;;  %v3281_v21 = vpop.permute.xlu0 %3280  ;;  %v4463_v56 = vrot.slane %v4457_v37, 2 }
 0x2d6   : > { %3857 = vrot.lane.b32.xlu0 %v3854_v62, %s9115_s13  ;;  %v3339_v62 = vrot.slane %v8453_v9, 2  ;;  %v4484_v32 = vrot.slane %v4478_v49, 2 }
 0x2d7   : > { %v3304_v58 = vpop.permute.xlu1 %3303  ;;  %v4465_v23 = vsel %vm565_vm10, %v4463_v56, %v4464_v13  ;;  %v4480_v56 = vmul.f32 %v4477_v12, %v8310_v18 }
 0x2d8   : > { %v3308_v57 = vadd.f32 %v3304_v58, %v3287_v7  ;;  %v3342_v11 = vsel %vm565_vm10, %v3339_v62, %v3341_v42 }
 0x2d9   : > { %v5407_v27 = vpop.eup %5406  ;;  %3876 = vrot.lane.b32.xlu1 %v3873_v2, %s9116_s10  ;;  %v3302_v52 = vpop.permute.xlu0 %3301  ;;  %v3930_v2 = vrot.slane %v3924_v17, 2 }
 0x2da   : > { %v3093_v3 = vmul.f32 %v5407_v27, %v8288_v47  ;;  %v3244_v47 = vadd.f32 %v3239_v45, %v3227_v1  ;;  %4411 = vrot.lane.b32.xlu0 %v4408_v61, %s9115_s13  ;;  %v3913_v45 = vsel %vm565_vm10, %v3910_v40, %v3912_v55  ;;  %v3926_v61 = vmul.f32 %v3923_v60, %v8244_v6 }
 0x2db   : > { %v3325_v15 = vpop.permute.xlu1 %3324  ;;  %v8505_v40 = vmul.f32 %v3944_v44, %v8210_v25  ;;  %v4498_v60 = vstv %s8473_s12  ;;  %v4487_v55 = vrot.slane %v4480_v56, 2  ;;  %s8648_s12 = sld [smem:[#allocation7 + $0x315]] }
 0x2dc   : > { %5062 = vst.msk [vmem:[%s6112_s23 + $0xc0] sm:$0xff] %vm388_vm15, %v3093_v3  ;;  %v3265_v31 = vadd.f32 %v8418_v20, %v3244_v47  ;;  %v3329_v58 = vadd.f32 %v3325_v15, %v3308_v57  ;;  %v3945_v3 = vmul.f32 %v3944_v44, %v8182_v19  ;;  %v3340_v15 = vsel %vm565_vm10, %v3338_v8, %v3339_v62 }
 0x2dd   : > { %4430 = vrot.lane.b32.xlu1 %v4427_v43, %s9116_s10  ;;  %v3323_v33 = vpop.permute.xlu0 %3322  ;;  %v4485_v43 = vrot.slane %v8485_v63, 2  ;;  %v4467_v47 = vsel %vm565_vm10, %v4464_v13, %v4466_v0  ;;  %v3933_v35 = vrot.slane %v3926_v61, 2  ;;  %v4499_v7 = vmul.f32 %v4498_v60, %v8281_v53 }
 0x2de   : > { %3878 = vrot.lane.b32.xlu0 %v3875_v54, %s9116_s10  ;;  %v3286_v24 = vadd.f32 %v3281_v21, %v3265_v31  ;;  %v3932_v21 = vsel %vm565_vm10, %v3930_v2, %v3931_v22  ;;  %v3951_v17 = vrot.slane %v3945_v3, 2  ;;  %v8522_v54 = vmul.f32 %v4498_v60, %v8266_v48 }
 0x2df   : > { %v3363_v36 = vpop.permute.xlu1 %3362  ;;  %v5409_v51 = vpop.eup %5408  ;;  %v4486_v16 = vsel %vm565_vm10, %v4484_v32, %v4485_v43  ;;  %v3952_v62 = vrot.slane %v8505_v40, 2  ;;  %v3965_v13 = vstv %s8489_s15  ;;  %v4519_v0 = vstv %s8513_s14  ;;  %s8653_s15 = sld [smem:[#allocation7 + $0x305]] }
 0x2e0   : > { %v3094_v20 = vmul.f32 %v5409_v51, %v8321_v39  ;;  %v3307_v27 = vadd.f32 %v3302_v52, %v3286_v24  ;;  %v3432_v39 = vstv %s8461_s30  ;;  %v3346_v52 = vadd.f32 %v3342_v11, %v3329_v58  ;;  %s8635_s30 = sld [smem:[#allocation7 + $0x393]] }
 0x2e1   : > { %3914 = vrot.lane.b32.xlu1 %v3911_v4, %s9113_s8  ;;  %v3361_v1 = vpop.permute.xlu0 %3360  ;;  %v8510_v26 = vmul.f32 %v3432_v39, %v7752_v46  ;;  %v3435_v14 = vmul.f32 %v3432_v39, %v7805_v59  ;;  %v4506_v51 = vrot.slane %v8522_v54, 2  ;;  %v3966_v2 = vmul.f32 %v3965_v13, %v8182_v19  ;;  %s8668_s14 = sld [smem:[#allocation7 + $0x395]] }
 0x2e2   : > { %5063 = vst.msk [vmem:[%s6112_s23 + $0xc8] sm:$0xff] %vm388_vm15, %v3094_v20  ;;  %4432 = vrot.lane.b32.xlu0 %v4429_v38, %s9116_s10  ;;  %v3328_v5 = vadd.f32 %v3323_v33, %v3307_v27  ;;  %v3367_v33 = vadd.f32 %v3363_v36, %v3346_v52  ;;  %v3433_v38 = vmul.f32 %v3432_v39, %v7780_v10  ;;  %v4505_v36 = vrot.slane %v4499_v7, 2 }
 0x2e3   : > { %v3384_v37 = vpop.permute.xlu1 %3383  ;;  %v3440_v28 = vrot.slane %v8510_v26, 3  ;;  %v3442_v31 = vrot.slane %v3435_v14, 3  ;;  %v8538_v49 = vmul.f32 %v3965_v13, %v8210_v25  ;;  %v3934_v24 = vsel %vm565_vm10, %v3931_v22, %v3933_v35 }
 0x2e4   : > { %v3345_v4 = vadd.f32 %v3340_v15, %v3328_v5  ;;  %v3388_v57 = vadd.f32 %v3384_v37, %v3367_v33  ;;  %v3953_v58 = vsel %vm565_vm10, %v3951_v17, %v3952_v62  ;;  %v3439_v8 = vrot.slane %v3433_v38, 3 }
 0x2e5   : > { %4468 = vrot.lane.b32.xlu1 %v4465_v23, %s9113_s8  ;;  %v3382_v9 = vpop.permute.xlu0 %3381  ;;  %v3947_v23 = vmul.f32 %v3944_v44, %v8244_v6  ;;  %v3443_v11 = vsel %vm667_vm11, %v3440_v28, %v3442_v31  ;;  %v4507_v34 = vsel %vm565_vm10, %v4505_v36, %v4506_v51  ;;  %v4501_v22 = vmul.f32 %v4498_v60, %v8310_v18 }
 0x2e6   : > { %3916 = vrot.lane.b32.xlu0 %v3913_v45, %s9113_s8  ;;  %v3366_v63 = vadd.f32 %v3361_v1, %v3345_v4  ;;  %v4488_v1 = vsel %vm565_vm10, %v4485_v43, %v4487_v55  ;;  %v3972_v39 = vrot.slane %v3966_v2, 2  ;;  %v4520_v3 = vmul.f32 %v4519_v0, %v8281_v53 }
 0x2e7   : > { %v3405_v50 = vpop.permute.xlu1 %3404  ;;  %v3954_v61 = vrot.slane %v3947_v23, 2  ;;  %v8556_v5 = vmul.f32 %v4519_v0, %v8266_v48  ;;  %v4003_v43 = vstv %s8526_s0  ;;  %v3968_v15 = vmul.f32 %v3965_v13, %v8244_v6  ;;  %s8686_s0 = sld [smem:[#allocation7 + $0x316]] }
 0x2e8   : > { %v3409_v20 = vadd.f32 %v3405_v50, %v3388_v57  ;;  %v3387_v27 = vadd.f32 %v3382_v9, %v3366_v63  ;;  %v3441_v60 = vsel %vm667_vm11, %v3439_v8, %v3440_v28  ;;  %v3533_v26 = vstv %s8531_s1  ;;  %s8702_s1 = sld [smem:[#allocation7 + $0x396]] }
 0x2e9   : > { %3935 = vrot.lane.b32.xlu1 %v3932_v21, %s9114_s11  ;;  %v3403_v12 = vpop.permute.xlu0 %3402  ;;  %v3973_v21 = vrot.slane %v8538_v49, 2  ;;  %v3955_v14 = vsel %vm565_vm10, %v3952_v62, %v3954_v61  ;;  %v4004_v35 = vmul.f32 %v4003_v43, %v8182_v19  ;;  %v8569_v56 = vmul.f32 %v4003_v43, %v8210_v25 }
 0x2ea   : > { %4470 = vrot.lane.b32.xlu0 %v4467_v47, %s9113_s8  ;;  %v3408_v32 = vadd.f32 %v3403_v12, %v3387_v27  ;;  %v4508_v47 = vrot.slane %v4501_v22, 2  ;;  %v4526_v17 = vrot.slane %v4520_v3, 2  ;;  %v4527_v7 = vrot.slane %v8556_v5, 2 }
 0x2eb   : > { %v3426_v42 = vpop.permute.xlu1 %3425  ;;  %v4557_v54 = vstv %s8544_s17  ;;  %v3975_v62 = vrot.slane %v3968_v15, 2  ;;  %v3535_v13 = vmul.f32 %v3533_v26, %v7752_v46  ;;  %v3536_v12 = vmul.f32 %v3533_v26, %v7805_v59  ;;  %s8724_s17 = sld [smem:[#allocation7 + $0x317]] }
 0x2ec   : > { %v3430_v45 = vadd.f32 %v3426_v42, %v3409_v20  ;;  %v4522_v28 = vmul.f32 %v4519_v0, %v8310_v18  ;;  %v4010_v31 = vrot.slane %v4004_v35, 3  ;;  %v4011_v57 = vrot.slane %v8569_v56, 3 }
 0x2ed   : > { %4489 = vrot.lane.b32.xlu1 %v4486_v16, %s9114_s11  ;;  %v3424_v44 = vpop.permute.xlu0 %3423  ;;  %v3974_v16 = vsel %vm565_vm10, %v3972_v39, %v3973_v21  ;;  %v4558_v55 = vmul.f32 %v4557_v54, %v8281_v53  ;;  %v8584_v23 = vmul.f32 %v4557_v54, %v8266_v48  ;;  %v4509_v46 = vsel %vm565_vm10, %v4506_v51, %v4508_v47 }
 0x2ee   : > { %3937 = vrot.lane.b32.xlu0 %v3934_v24, %s9114_s11  ;;  %v3429_v9 = vadd.f32 %v3424_v44, %v3408_v32  ;;  %v3447_v50 = vadd.f32 %v3443_v11, %v3430_v45  ;;  %v4528_v59 = vsel %vm565_vm10, %v4526_v17, %v4527_v7  ;;  %v4024_v2 = vstv %s8559_s25  ;;  %s8737_s25 = sld [smem:[#allocation7 + $0x397]] }
 0x2ef   : > { %v3464_v37 = vpop.permute.xlu1 %3463  ;;  %v3976_v20 = vsel %vm565_vm10, %v3973_v21, %v3975_v62  ;;  %v3534_v24 = vmul.f32 %v3533_v26, %v7780_v10  ;;  %v3543_v44 = vrot.slane %v3536_v12, 4  ;;  %v4006_v0 = vmul.f32 %v4003_v43, %v8244_v6 }
 0x2f0   : > { %v3446_v42 = vadd.f32 %v3441_v60, %v3429_v9  ;;  %v3468_v38 = vadd.f32 %v3464_v37, %v3447_v50  ;;  %v4529_v37 = vrot.slane %v4522_v28, 2  ;;  %v4012_v51 = vsel %vm667_vm11, %v4010_v31, %v4011_v57 }
 0x2f1   : > { %3956 = vrot.lane.b32.xlu1 %v3953_v58, %s9115_s13  ;;  %v3462_v52 = vpop.permute.xlu0 %3461  ;;  %v3541_v58 = vrot.slane %v3535_v13, 4  ;;  %v4564_v27 = vrot.slane %v4558_v55, 3  ;;  %v4565_v45 = vrot.slane %v8584_v23, 3  ;;  %v4578_v22 = vstv %s8574_s2  ;;  %s8742_s2 = sld [smem:[#allocation7 + $0x380]] }
 0x2f2   : > { %4491 = vrot.lane.b32.xlu0 %v4488_v1, %s9114_s11  ;;  %v3467_v8 = vadd.f32 %v3462_v52, %v3446_v42  ;;  %v4025_v1 = vmul.f32 %v4024_v2, %v8182_v19  ;;  %v3540_v21 = vrot.slane %v3534_v24, 4  ;;  %v4530_v43 = vsel %vm565_vm10, %v4527_v7, %v4529_v37 }
 0x2f3   : > { %v3485_v40 = vpop.permute.xlu1 %3484  ;;  %v3544_v32 = vsel %vm769_vm12, %v3541_v58, %v3543_v44  ;;  %v4013_v52 = vrot.slane %v4006_v0, 3  ;;  %v4566_v15 = vsel %vm667_vm11, %v4564_v27, %v4565_v45  ;;  %v4579_v60 = vmul.f32 %v4578_v22, %v8281_v53 }
 0x2f4   : > { %v3489_v36 = vadd.f32 %v3485_v40, %v3468_v38  ;;  %v4560_v40 = vmul.f32 %v4557_v54, %v8310_v18  ;;  %v4031_v9 = vrot.slane %v4025_v1, 3  ;;  %v8613_v50 = vmul.f32 %v4578_v22, %v8266_v48 }
 0x2f5   : > { %4510 = vrot.lane.b32.xlu1 %v4507_v34, %s9115_s13  ;;  %v3483_v4 = vpop.permute.xlu0 %3482  ;;  %v8602_v34 = vmul.f32 %v4024_v2, %v8210_v25  ;;  %v4045_v35 = vstv %s8589_s26  ;;  %v3542_v56 = vsel %vm769_vm12, %v3540_v21, %v3541_v58  ;;  %v4014_v7 = vsel %vm667_vm11, %v4011_v57, %v4013_v52  ;;  %s8753_s26 = sld [smem:[#allocation7 + $0x318]] }
 0x2f6   : > { %3958 = vrot.lane.b32.xlu0 %v3955_v14, %s9115_s13  ;;  %v3488_v10 = vadd.f32 %v3483_v4, %v3467_v8  ;;  %v4567_v54 = vrot.slane %v4560_v40, 3  ;;  %v4027_v4 = vmul.f32 %v4024_v2, %v8244_v6  ;;  %v4586_v62 = vrot.slane %v8613_v50, 3 }
 0x2f7   : > { %v3506_v33 = vpop.permute.xlu1 %3505  ;;  %v4032_v47 = vrot.slane %v8602_v34, 3  ;;  %v4046_v13 = vmul.f32 %v4045_v35, %v8182_v19  ;;  %v4599_v12 = vstv %s8599_s6  ;;  %v8633_v31 = vmul.f32 %v4045_v35, %v8210_v25  ;;  %s8757_s6 = sld [smem:[#allocation7 + $0x385]] }
 0x2f8   : > { %v3510_v11 = vadd.f32 %v3506_v33, %v3489_v36  ;;  %v4585_v33 = vrot.slane %v4579_v60, 3  ;;  %v4581_v23 = vmul.f32 %v4578_v22, %v8310_v18  ;;  %v4568_v2 = vsel %vm667_vm11, %v4565_v45, %v4567_v54 }
 0x2f9   : > { %3977 = vrot.lane.b32.xlu1 %v3974_v16, %s9116_s10  ;;  %v3504_v49 = vpop.permute.xlu0 %3503  ;;  %v4033_v28 = vsel %vm667_vm11, %v4031_v9, %v4032_v47  ;;  %v4053_v44 = vrot.slane %v8633_v31, 3  ;;  %v4066_v8 = vstv %s8617_s16  ;;  %v3634_v37 = vstv %s8620_s7  ;;  %s8775_s16 = sld [smem:[#allocation7 + $0x398]] }
 0x2fa   : > { %4512 = vrot.lane.b32.xlu0 %v4509_v46, %s9115_s13  ;;  %v3509_v5 = vadd.f32 %v3504_v49, %v3488_v10  ;;  %v4034_v46 = vrot.slane %v4027_v4, 3  ;;  %v4587_v49 = vsel %vm667_vm11, %v4585_v33, %v4586_v62  ;;  %v4048_v27 = vmul.f32 %v4045_v35, %v8244_v6  ;;  %s5128_s7 = sld [smem:[#allocation7 + $0x314]] }
 0x2fb   : > { %v3527_v63 = vpop.permute.xlu1 %3526  ;;  %v3724_v34 = vstv %s8628_s9  ;;  %v8661_v21 = vmul.f32 %v4066_v8, %v8210_v25  ;;  %v4104_v4 = vstv %s8648_s12  ;;  %s5164_s9 = sld [smem:[#allocation7 + $0x394]] }
 0x2fc   : > { %v3531_v61 = vadd.f32 %v3527_v63, %v3510_v11  ;;  %v4052_v63 = vrot.slane %v4046_v13, 3  ;;  %v4035_v10 = vsel %vm667_vm11, %v4032_v47, %v4034_v46  ;;  %v4055_v9 = vrot.slane %v4048_v27, 3  ;;  %s8973_s12 = sld [smem:[#allocation8 + $0x7]] }
 0x2fd   : > { %4531 = vrot.lane.b32.xlu1 %v4528_v59, %s9116_s10  ;;  %v3525_v39 = vpop.permute.xlu0 %3524  ;;  %v4600_v59 = vmul.f32 %v4599_v12, %v8281_v53  ;;  %v4069_v13 = vmul.f32 %v4066_v8, %v8244_v6 }
 0x2fe   : > { %3979 = vrot.lane.b32.xlu0 %v3976_v20, %s9116_s10  ;;  %v3530_v26 = vadd.f32 %v3525_v39, %v3509_v5  ;;  %v3548_v14 = vadd.f32 %v3544_v32, %v3531_v61  ;;  %v8644_v20 = vmul.f32 %v4599_v12, %v8266_v48  ;;  %v4067_v39 = vmul.f32 %v4066_v8, %v8182_v19 }
 0x2ff   : > { %v3565_v3 = vpop.permute.xlu1 %3564  ;;  %v4606_v61 = vrot.slane %v4600_v59, 3  ;;  %v4054_v5 = vsel %vm667_vm11, %v4052_v63, %v4053_v44  ;;  %v4076_v8 = vrot.slane %v4069_v13, 3 }
 0x300   : > { %v3547_v42 = vadd.f32 %v3542_v56, %v3530_v26  ;;  %v3569_v38 = vadd.f32 %v3565_v3, %v3548_v14  ;;  %v4607_v22 = vrot.slane %v8644_v20, 3  ;;  %v3725_v26 = vmul.f32 %v3724_v34, %v8182_v19 }
 0x301   : > { %4015 = vrot.lane.b32.xlu1 %v4012_v51, %s9113_s8  ;;  %v3563_v16 = vpop.permute.xlu0 %3562  ;;  %v4588_v51 = vrot.slane %v4581_v23, 3  ;;  %v4602_v14 = vmul.f32 %v4599_v12, %v8310_v18  ;;  %v4073_v35 = vrot.slane %v4067_v39, 3  ;;  %v4074_v56 = vrot.slane %v8661_v21, 3 }
 0x302   : > { %4533 = vrot.lane.b32.xlu0 %v4530_v43, %s9116_s10  ;;  %v3568_v24 = vadd.f32 %v3563_v16, %v3547_v42  ;;  %v4620_v43 = vstv %s8635_s30  ;;  %v4608_v47 = vsel %vm667_vm11, %v4606_v61, %v4607_v22  ;;  %s8964_s30 = sld [smem:[#allocation8 + $0x6]] }
 0x303   : > { %v3586_v17 = vpop.permute.xlu1 %3585  ;;  %v4621_v16 = vmul.f32 %v4620_v43, %v8281_v53  ;;  %v8683_v54 = vmul.f32 %v4620_v43, %v8266_v48  ;;  %v4609_v31 = vrot.slane %v4602_v14, 3 }
 0x304   : > { %v3590_v36 = vadd.f32 %v3586_v17, %v3569_v38  ;;  %v3784_v38 = vstv %s8653_s15  ;;  %s5177_s15 = sshll.u32 %s5630_s22, 12 }
 0x305   : > { %4569 = vrot.lane.b32.xlu1 %v4566_v15, %s9113_s8  ;;  %v3584_v57 = vpop.permute.xlu0 %3583  ;;  %v4589_v15 = vsel %vm667_vm11, %v4586_v62, %v4588_v51  ;;  %v4627_v46 = vrot.slane %v4621_v16, 3  ;;  %v4628_v59 = vrot.slane %v8683_v54, 3  ;;  %v3785_v63 = vmul.f32 %v3784_v38, %v8182_v19 }
 0x306   : > { %4017 = vrot.lane.b32.xlu0 %v4014_v7, %s9113_s8  ;;  %v3589_v45 = vadd.f32 %v3584_v57, %v3568_v24  ;;  %v4105_v57 = vmul.f32 %v4104_v4, %v8182_v19  ;;  %v8706_v20 = vmul.f32 %v3784_v38, %v8210_v25  ;;  %v4658_v24 = vstv %s8668_s14  ;;  %s4774_s14 = sshll.u32 %s6112_s23, 4  ;;  %s9003_s14 = int_to_ptr.vmem [resolvable:$true] %s4774_s14 }
 0x307   : > { %v3607_v55 = vpop.permute.xlu1 %3606  ;;  %v4629_v27 = vsel %vm667_vm11, %v4627_v46, %v4628_v59  ;;  %v3791_v39 = vrot.slane %v3785_v63, 1  ;;  %v4661_v16 = vmul.f32 %v4658_v24, %v8310_v18  ;;  %s5494_s22 = scalar_lea.vmem %s9003_s14, 4096 }
 0x308   : > { %v3611_v58 = vadd.f32 %v3607_v55, %v3590_v36  ;;  %v8698_v55 = vmul.f32 %v4104_v4, %v8210_v25  ;;  %v4075_v36 = vsel %vm667_vm11, %v4073_v35, %v4074_v56  ;;  %p5495_p8 = scmp.ne.s32.totalorder %s9003_s14, %s5494_s22 }
 0x309   : > { %4036 = vrot.lane.b32.xlu1 %v4033_v28, %s9114_s11  ;;  %v3605_v11 = vpop.permute.xlu0 %3604  ;;  %v4056_v28 = vsel %vm667_vm11, %v4053_v44, %v4055_v9  ;;  %v4668_v46 = vrot.slane %v4661_v16, 4 }
 0x30a   : > { %4571 = vrot.lane.b32.xlu0 %v4568_v2, %s9113_s8  ;;  %v3610_v32 = vadd.f32 %v3605_v11, %v3589_v45  ;;  %v4610_v11 = vsel %vm667_vm11, %v4607_v22, %v4609_v31  ;;  %v4112_v51 = vrot.slane %v8698_v55, 4  ;;  %v4659_v45 = vmul.f32 %v4658_v24, %v8281_v53  ;;  %p5496_p13 = pnand %p5495_p8, %p9134_p11 }
 0x30b   : > { %v3628_v0 = vpop.permute.xlu1 %3627  ;;  %v3792_v22 = vrot.slane %v8706_v20, 1 }
 0x30c   : > { %v3632_v1 = vadd.f32 %v3628_v0, %v3611_v58  ;;  %v3726_v58 = vmul.f32 %v3724_v34, %v8210_v25  ;;  %v4111_v0 = vrot.slane %v4105_v57, 4  ;;  %p5497_p1 = pneg %p5496_p13 }
 0x30d   : > { %4590 = vrot.lane.b32.xlu1 %v4587_v49, %s9114_s11  ;;  %v3626_v52 = vpop.permute.xlu0 %3625  ;;  %v3793_v35 = vsel %vm463_vm9, %v3791_v39, %v3792_v22 }
 0x30e   : > { %v8663_v3 = vadd.f32 %v3634_v37, %v3632_v1  ;;  %v3631_v60 = vadd.f32 %v3626_v52, %v3610_v32  ;;  %4038 = vrot.lane.b32.xlu0 %v4035_v10, %s9114_s11  ;;  %v8720_v1 = vmul.f32 %v4658_v24, %v8266_v48  ;;  %v4125_v10 = vstv %s8686_s0 }
 0x30f   : > { %v3710_v40 = vpop.permute.xlu1 %3709  ;;  %v4077_v32 = vsel %vm667_vm11, %v4074_v56, %v4076_v8  ;;  %v4113_v52 = vsel %vm769_vm12, %v4111_v0, %v4112_v51  ;;  %v3787_v56 = vmul.f32 %v3784_v38, %v8244_v6 }
 0x310   : > { %v3638_v50 = vsub.f32 0.0, %v8663_v3  ;;  %5106 = vst.msk [vmem:[%s6112_s23 + $0x66] sm:$0xff] %vm388_vm15, %v3710_v40  ;;  %v8680_v17 = vadd.f32 %v3634_v37, %v3631_v60  ;;  %v4623_v37 = vmul.f32 %v4620_v43, %v8310_v18  ;;  %v4126_v40 = vmul.f32 %v4125_v10, %v8182_v19 }
 0x311   : > { %4057 = vrot.lane.b32.xlu1 %v4054_v5, %s9115_s13  ;;  %v3708_v33 = vpop.permute.xlu0 %3707  ;;  %v4107_v5 = vmul.f32 %v4104_v4, %v8244_v6  ;;  %v4665_v60 = vrot.slane %v4659_v45, 4 }
 0x312   : > { %v3641_v7 = vmul.f32 1.442695, %v3638_v50  ;;  %v3637_v12 = vsub.f32 0.0, %v8680_v17  ;;  %5105 = vst.msk [vmem:[%s6112_s23 + $0x5e] sm:$0xfc] %vm386_vm14, %v3708_v33  ;;  %4592 = vrot.lane.b32.xlu0 %v4589_v15, %s9114_s11  ;;  %v4630_v43 = vrot.slane %v4623_v37, 3  ;;  %v8733_v15 = vmul.f32 %v4125_v10, %v8210_v25 }
 0x313   : > { %v3734_v62 = vpop.permute.xlu1 %3733  ;;  %v4666_v50 = vrot.slane %v8720_v1, 4  ;;  %v4114_v4 = vrot.slane %v4107_v5, 4 }
 0x314   : > { %5410 = vpow2.f32 %v3641_v7  ;;  %v3739_v42 = vadd.f32 %v3734_v62, %v3725_v26  ;;  %v3639_v23 = vmul.f32 1.442695, %v3637_v12  ;;  %v4679_v26 = vstv %s8702_s1 }
 0x315   : > { %4611 = vrot.lane.b32.xlu1 %v4608_v47, %s9115_s13  ;;  %v3712_v2 = vpop.permute.xlu0 %3711  ;;  %v4132_v62 = vrot.slane %v4126_v40, 4  ;;  %v4133_v13 = vrot.slane %v8733_v15, 4  ;;  %v4680_v12 = vmul.f32 %v4679_v26, %v8281_v53  ;;  %v4667_v57 = vsel %vm769_vm12, %v4665_v60, %v4666_v50 }
 0x316   : > { %5412 = vpow2.f32 %v3639_v23  ;;  %5107 = vst.msk [vmem:[%s6112_s23 + $0x6e] sm:$0x3] %vm390_vm13, %v3712_v2  ;;  %4059 = vrot.lane.b32.xlu0 %v4056_v28, %s9115_s13  ;;  %v4631_v28 = vsel %vm667_vm11, %v4628_v59, %v4630_v43  ;;  %v4146_v2 = vstv %s8724_s17  ;;  %v4115_v20 = vsel %vm769_vm12, %v4112_v51, %v4114_v4  ;;  %s9001_s17 = scalar_lea.hbm %s9054_s5, %s5177_s15 }
 0x317   : > { %v3748_v49 = vpop.permute.xlu1 %3747  ;;  %v4134_v24 = vsel %vm769_vm12, %v4132_v62, %v4133_v13  ;;  %v4147_v37 = vmul.f32 %v4146_v2, %v8182_v19  ;;  %v8768_v0 = vmul.f32 %v4146_v2, %v8210_v25  ;;  %v4700_v51 = vstv %s8737_s25  ;;  %s9133_s25 = sand.u32 1, %s5558_s19  }
 0x318   : > { %v3753_v44 = vadd.f32 %v3748_v49, %v3739_v42  ;;  %v8749_v42 = vmul.f32 %v4679_v26, %v8266_v48  ;;  %v4701_v43 = vmul.f32 %v4700_v51, %v8281_v53  ;;  %v4149_v16 = vmul.f32 %v4146_v2, %v8244_v6 }
 0x319   : > { %4078 = vrot.lane.b32.xlu1 %v4075_v36, %s9116_s10  ;;  %v3736_v61 = vpop.permute.xlu0 %3735  ;;  %v3794_v36 = vrot.slane %v3787_v56, 1  ;;  %v4154_v60 = vrot.slane %v8768_v0, 4 }
 0x31a   : > { %4613 = vrot.lane.b32.xlu0 %v4610_v11, %s9115_s13  ;;  %v3740_v9 = vadd.f32 %v3736_v61, %v3726_v58  ;;  %v4128_v58 = vmul.f32 %v4125_v10, %v8244_v6  ;;  %v4687_v8 = vrot.slane %v8749_v42, 4  ;;  %v4669_v61 = vsel %vm769_vm12, %v4666_v50, %v4668_v46 }
 0x31b   : > { %v3762_v34 = vpop.permute.xlu1 %3761  ;;  %v3795_v45 = vsel %vm463_vm9, %v3792_v22, %v3794_v36  ;;  %v4682_v10 = vmul.f32 %v4679_v26, %v8310_v18  ;;  %v4167_v50 = vstv %s8753_s26  ;;  %v4156_v2 = vrot.slane %v4149_v16, 4  ;;  %s5576_s26 = smov [#allocation10]  }
 0x31c   : > { %v3767_v21 = vadd.f32 %v3762_v34, %v3753_v44  ;;  %v4686_v44 = vrot.slane %v4680_v12, 4  ;;  %v4278_v34 = vstv %s8742_s2  ;;  %v4135_v22 = vrot.slane %v4128_v58, 4  ;;  %s9009_s2 = scalar_lea.sflag [#allocation3], %s9133_s25 }
 0x31d   : > { %4632 = vrot.lane.b32.xlu1 %v4629_v27, %s9116_s10  ;;  %v3750_v14 = vpop.permute.xlu0 %3749  ;;  %v8798_v62 = vmul.f32 %v4167_v50, %v8210_v25  ;;  %v4279_v12 = vmul.f32 %v4278_v34, %v8281_v53 }
 0x31e   : > { %v3754_v7 = vadd.f32 %v3750_v14, %v3740_v9  ;;  %4080 = vrot.lane.b32.xlu0 %v4077_v32, %s9116_s10  ;;  %v4280_v32 = vmul.f32 %v4278_v34, %v8266_v48  ;;  %v4688_v5 = vsel %vm769_vm12, %v4686_v44, %v4687_v8  ;;  %v4153_v9 = vrot.slane %v4147_v37, 4 }
 0x31f   : > { %v3776_v47 = vpop.permute.xlu1 %3775  ;;  %v4136_v42 = vsel %vm769_vm12, %v4133_v13, %v4135_v22  ;;  %v4703_v13 = vmul.f32 %v4700_v51, %v8310_v18 }
 0x320   : > { %v3781_v54 = vadd.f32 %v3776_v47, %v3767_v21  ;;  %v4689_v47 = vrot.slane %v4682_v10, 4 }
 0x321   : > { %v5411_v33 = vpop.eup %5410  ;;  %4116 = vrot.lane.b32.xlu1 %v4113_v52, %s9113_s8  ;;  %v3764_v55 = vpop.permute.xlu0 %3763  ;;  %v8785_v52 = vmul.f32 %v4700_v51, %v8266_v48 }
 0x322   : > { %v3644_v38 = vadd.f32 1.0, %v5411_v33  ;;  %v3798_v31 = vadd.f32 %v3793_v35, %v3781_v54  ;;  %v3768_v49 = vadd.f32 %v3764_v55, %v3754_v7  ;;  %4634 = vrot.lane.b32.xlu0 %v4631_v28, %s9116_s10  ;;  %v4338_v7 = vstv %s8757_s6  ;;  %s5498_s6 = sshll.u32 %s5576_s26, 4  ;;  %s5499_s6 = int_to_ptr.vmem [resolvable:$false] %s5498_s6 }
 0x323   : > { %v3814_v23 = vpop.permute.xlu1 %3813  ;;  %v5413_v59 = vpop.eup %5412  ;;  %v4707_v54 = vrot.slane %v4701_v43, 4  ;;  %v4708_v4 = vrot.slane %v8785_v52, 4  ;;  %v4168_v33 = vmul.f32 %v4167_v50, %v8182_v19  ;;  %v4341_v55 = vmul.f32 %v4338_v7, %v8310_v18  ;;  %p5501_p2 = scmp.lt.s32.totalorder %s9003_s14, %s5499_s6 }
 0x324   : > { %5414 = vrcp.f32 %v3644_v38  ;;  %v3819_v63 = vadd.f32 %v3814_v23, %v3798_v31  ;;  %v3643_v11 = vadd.f32 1.0, %v5413_v59  ;;  %v4155_v38 = vsel %vm769_vm12, %v4153_v9, %v4154_v60 }
 0x325   : > { %4670 = vrot.lane.b32.xlu1 %v4667_v57, %s9113_s8  ;;  %v3778_v27 = vpop.permute.xlu0 %3777  ;;  %v4340_v57 = vmul.f32 %v4338_v7, %v8266_v48  ;;  %v4721_v23 = vstv %s8775_s16  ;;  %v4690_v46 = vsel %vm769_vm12, %v4687_v8, %v4689_v47  ;;  %v4709_v15 = vsel %vm769_vm12, %v4707_v54, %v4708_v4  ;;  %s5500_s16 = scalar_lea.vmem %s5499_s6, 8192 }
 0x326   : > { %5416 = vrcp.f32 %v3643_v11  ;;  %v3782_v39 = vadd.f32 %v3778_v27, %v3768_v49  ;;  %4118 = vrot.lane.b32.xlu0 %v4115_v20, %s9113_s8  ;;  %v4175_v20 = vrot.slane %v8798_v62, 4  ;;  %v4722_v58 = vmul.f32 %v4721_v23, %v8281_v53  ;;  %p5502_p3 = scmp.lt.s32.totalorder %s5500_s16, %s5494_s22 }
 0x327   : > { %v3835_v1 = vpop.permute.xlu1 %3834  ;;  %v4723_v44 = vmul.f32 %v4721_v23, %v8266_v48  ;;  %v4339_v37 = vmul.f32 %v4338_v7, %v8281_v53  ;;  %v4346_v0 = vrot.slane %v4340_v57, 1  ;;  %v4348_v27 = vrot.slane %v4341_v55, 1 }
 0x328   : > { %v8777_v21 = vadd.f32 %v3835_v1, %v3819_v63  ;;  %v3799_v40 = vadd.f32 %v3795_v45, %v3782_v39  ;;  %v4174_v63 = vrot.slane %v4168_v33, 4  ;;  %v4170_v39 = vmul.f32 %v4167_v50, %v8244_v6  ;;  %p5503_p4 = por %p5502_p3, %p5501_p2 }
 0x329   : > { %4137 = vrot.lane.b32.xlu1 %v4134_v24, %s9114_s11  ;;  %v3816_v26 = vpop.permute.xlu0 %3815  ;;  %v4729_v22 = vrot.slane %v4723_v44, 4  ;;  %v4345_v52 = vrot.slane %v4339_v37, 1  ;;  %v4724_v47 = vmul.f32 %v4721_v23, %v8310_v18 }
 0x32a   : > { %v8789_v35 = vadd.f32 %v3816_v26, %v3799_v40  ;;  %4672 = vrot.lane.b32.xlu0 %v4669_v61, %s9113_s8  ;;  %v4710_v61 = vrot.slane %v4703_v13, 4  ;;  %v4176_v34 = vsel %vm769_vm12, %v4174_v63, %v4175_v20  ;;  %v4349_v40 = vsel %vm463_vm9, %v4346_v0, %v4348_v27  ;;  %s5118_s8 = sld [smem:[#allocation7 + $0x30a]]  ;;  %p5504_p9 = pnand %p5503_p4, %p5497_p1 }
 0x32b   : > { %v4290_v14 = vpop.permute.xlu1 %4289  ;;  %v4347_v16 = vsel %vm463_vm9, %v4345_v52, %v4346_v0 }
 0x32c   : > { %v4294_v56 = vadd.f32 %v4290_v14, %v4280_v32  ;;  %v4728_v32 = vrot.slane %v4722_v58, 4  ;;  %v4711_v26 = vsel %vm769_vm12, %v4708_v4, %v4710_v61  ;;  %v4177_v14 = vrot.slane %v4170_v39, 4 }
 0x32d   : > { %4691 = vrot.lane.b32.xlu1 %v4688_v5, %s9114_s11  ;;  %v4288_v28 = vpop.permute.xlu0 %4287 }
 0x32e   : > { %4139 = vrot.lane.b32.xlu0 %v4136_v42, %s9114_s11  ;;  %v4293_v24 = vadd.f32 %v4288_v28, %v4279_v12  ;;  %v4730_v50 = vsel %vm769_vm12, %v4728_v32, %v4729_v22  ;;  %v4178_v4 = vsel %vm769_vm12, %v4175_v20, %v4177_v14  ;;  %v4731_v12 = vrot.slane %v4724_v47, 4 }
 0x32f   : > { %v4304_v31 = vpop.permute.xlu1 %4303 }
 0x330   : > { %v4308_v36 = vadd.f32 %v4304_v31, %v4294_v56  ;;  %v4732_v57 = vsel %vm769_vm12, %v4729_v22, %v4731_v12 }
 0x331   : > { %v5415_v49 = vpop.eup %5414  ;;  %4158 = vrot.lane.b32.xlu1 %v4155_v38, %s9115_s13  ;;  %v4302_v8 = vpop.permute.xlu0 %4301 }
 0x332   : > { %v3648_v59 = vmul.f32 %v5415_v49, %v8663_v3  ;;  %v4307_v45 = vadd.f32 %v4302_v8, %v4293_v24  ;;  %4693 = vrot.lane.b32.xlu0 %v4690_v46, %s9114_s11  ;;  %v4157_v3 = vsel %vm769_vm12, %v4154_v60, %v4156_v2 }
 0x333   : > { %v4318_v11 = vpop.permute.xlu1 %4317  ;;  %v5417_v1 = vpop.eup %5416 }
 0x334   : > { %5099 = vst.msk [vmem:[%s6112_s23 + $0xd8] sm:$0xff] %vm388_vm15, %v3648_v59  ;;  %v4322_v51 = vadd.f32 %v4318_v11, %v4308_v36  ;;  %v3647_v10 = vmul.f32 %v5417_v1, %v8680_v17 }
 0x335   : > { %4712 = vrot.lane.b32.xlu1 %v4709_v15, %s9115_s13  ;;  %v4316_v5 = vpop.permute.xlu0 %4315 }
 0x336   : > { %5098 = vst.msk [vmem:[%s6112_s23 + $0xd0] sm:$0xff] %vm388_vm15, %v3647_v10  ;;  %v4321_v9 = vadd.f32 %v4316_v5, %v4307_v45  ;;  %4160 = vrot.lane.b32.xlu0 %v4157_v3, %s9115_s13 }
 0x337   : > { %v4332_v43 = vpop.permute.xlu1 %4331 }
 0x338   : > { %v4336_v60 = vadd.f32 %v4332_v43, %v4322_v51 }
 0x339   : > { %4179 = vrot.lane.b32.xlu1 %v4176_v34, %s9116_s10  ;;  %v4330_v56 = vpop.permute.xlu0 %4329 }
 0x33a   : > { %v4353_v17 = vadd.f32 %v4349_v40, %v4336_v60  ;;  %v4335_v54 = vadd.f32 %v4330_v56, %v4321_v9  ;;  %4714 = vrot.lane.b32.xlu0 %v4711_v26, %s9115_s13  ;;  %v3885_v26 = vstv %s5118_s8  ;;  %s5123_s13 = sld [smem:[#allocation7 + $0x30f]] }
 0x33b   : > { %v4370_v7 = vpop.permute.xlu1 %4369  ;;  %v3887_v47 = vmul.f32 %v3885_v26, %v8210_v25 }
 0x33c   : > { %v4374_v33 = vadd.f32 %v4370_v7, %v4353_v17  ;;  %v4352_v62 = vadd.f32 %v4347_v16, %v4335_v54 }
 0x33d   : > { %4733 = vrot.lane.b32.xlu1 %v4730_v50, %s9116_s10  ;;  %v4368_v42 = vpop.permute.xlu0 %4367  ;;  %v3886_v50 = vmul.f32 %v3885_v26, %v8182_v19 }
 0x33e   : > { %v4373_v28 = vadd.f32 %v4368_v42, %v4352_v62  ;;  %4181 = vrot.lane.b32.xlu0 %v4178_v4, %s9116_s10 }
 0x33f   : > { %v4389_v38 = vpop.permute.xlu1 %4388  ;;  %v3892_v54 = vrot.slane %v3886_v50, 2 }
 0x340   : > { %v4394_v31 = vadd.f32 %v4389_v38, %v4373_v28  ;;  %v3888_v38 = vmul.f32 %v3885_v26, %v8244_v6 }
 0x341   : > { %4261 = vrot.lane.b32.xlu1 %v8261_v30, %s9114_s11  ;;  %v3837_v55 = vpop.permute.xlu0 %3836 }
 0x342   : > { %v3841_v36 = vadd.f32 %v3837_v55, %v8789_v35  ;;  %4735 = vrot.lane.b32.xlu0 %v4732_v57, %s9116_s10  ;;  %s5159_s10 = sld [smem:[#allocation7 + $0x38f]]  ;;  %v3986_v55 = vstv %s5123_s13 }
 0x343   : > { %v3856_v23 = vpop.permute.xlu1 %3855 }
 0x344   : > { %v3861_v46 = vadd.f32 %v3856_v23, %v8777_v21 }
 0x345   : > { %4265 = vrot.lane.b32.xlu1 %v8295_v29, %s9114_s11  ;;  %v4391_v2 = vpop.permute.xlu0 %4390 }
 0x346   : > { %v4395_v15 = vadd.f32 %v4391_v2, %v4374_v33  ;;  %4263 = vrot.lane.b32.xlu0 %v8249_v41, %s9114_s11  ;;  %s5154_s11 = sld [smem:[#allocation7 + $0x38a]]  ;;  %v3893_v33 = vrot.slane %v3887_v47, 2  ;;  %v3895_v2 = vrot.slane %v3888_v38, 2 }
 0x347   : > { %v4410_v49 = vpop.permute.xlu1 %4409 }
 0x348   : > { %v4415_v13 = vadd.f32 %v4410_v49, %v4394_v31  ;;  %v3894_v28 = vsel %vm565_vm10, %v3892_v54, %v3893_v33 }
 0x349   : > { %v3858_v30 = vpop.permute.xlu0 %3857 }
 0x34a   : > { %v3862_v20 = vadd.f32 %v3858_v30, %v3841_v36  ;;  %v3988_v30 = vmul.f32 %v3986_v55, %v8210_v25 }
 0x34b   : > { %v3877_v63 = vpop.permute.xlu1 %3876 }
 0x34c   : > { %v3882_v59 = vadd.f32 %v3877_v63, %v3861_v46  ;;  %v4439_v56 = vstv %s5154_s11  ;;  %v3994_v50 = vrot.slane %v3988_v30, 3 }
 0x34d   : > { %v4412_v24 = vpop.permute.xlu0 %4411  ;;  %v4440_v62 = vmul.f32 %v4439_v56, %v8281_v53  ;;  %v4441_v4 = vmul.f32 %v4439_v56, %v8266_v48  ;;  %v4442_v49 = vmul.f32 %v4439_v56, %v8310_v18 }
 0x34e   : > { %v4416_v58 = vadd.f32 %v4412_v24, %v4395_v15  ;;  %v3899_v46 = vadd.f32 %v3894_v28, %v3882_v59 }
 0x34f   : > { %v4431_v35 = vpop.permute.xlu1 %4430  ;;  %v4446_v31 = vrot.slane %v4440_v62, 2  ;;  %v4447_v57 = vrot.slane %v4441_v4, 2  ;;  %v3989_v62 = vmul.f32 %v3986_v55, %v8244_v6 }
 0x350   : > { %v8849_v21 = vadd.f32 %v4431_v35, %v4415_v13  ;;  %v3987_v13 = vmul.f32 %v3986_v55, %v8182_v19  ;;  %v4087_v55 = vstv %s5128_s7 }
 0x351   : > { %v3879_v44 = vpop.permute.xlu0 %3878  ;;  %v4448_v15 = vsel %vm565_vm10, %v4446_v31, %v4447_v57 }
 0x352   : > { %v8851_v11 = vadd.f32 %v3879_v44, %v3862_v20  ;;  %v4540_v20 = vstv %s5159_s10  ;;  %v4453_v59 = vadd.f32 %v4448_v15, %v8849_v21  ;;  %v4449_v44 = vrot.slane %v4442_v49, 2 }
 0x353   : > { %v3915_v8 = vpop.permute.xlu1 %3914  ;;  %v3993_v26 = vrot.slane %v3987_v13, 3  ;;  %v4541_v47 = vmul.f32 %v4540_v20, %v8281_v53  ;;  %v4542_v56 = vmul.f32 %v4540_v20, %v8266_v48  ;;  %v3996_v49 = vrot.slane %v3989_v62, 3 }
 0x354   : > { %v3920_v63 = vadd.f32 %v3915_v8, %v3899_v46  ;;  %v4450_v28 = vsel %vm565_vm10, %v4447_v57, %v4449_v44  ;;  %v4543_v15 = vmul.f32 %v4540_v20, %v8310_v18  ;;  %v4641_v44 = vstv %s5164_s9 }
 0x355   : > { %v4433_v29 = vpop.permute.xlu0 %4432  ;;  %v3995_v31 = vsel %vm667_vm11, %v3993_v26, %v3994_v50  ;;  %v4547_v46 = vrot.slane %v4541_v47, 3 }
 0x356   : > { %v8855_v0 = vadd.f32 %v4433_v29, %v4416_v58  ;;  %v3896_v58 = vsel %vm565_vm10, %v3893_v33, %v3895_v2  ;;  %v4548_v2 = vrot.slane %v4542_v56, 3 }
 0x357   : > { %v8853_v37 = vpop.permute.xlu1 %4468  ;;  %v3900_v21 = vadd.f32 %v3896_v58, %v8851_v11 }
 0x358   : > { %v4474_v8 = vadd.f32 %v8853_v37, %v4453_v59 }
 0x359   : > { %v8857_v27 = vpop.permute.xlu0 %3916 }
 0x35a   : > { %v3921_v37 = vadd.f32 %v8857_v27, %v3900_v21  ;;  %v4088_v27 = vmul.f32 %v4087_v55, %v8182_v19 }
 0x35b   : > { %v3936_v41 = vpop.permute.xlu1 %3935 }
 0x35c   : > { %v3941_v29 = vadd.f32 %v3936_v41, %v3920_v63  ;;  %v4549_v63 = vsel %vm667_vm11, %v4547_v46, %v4548_v2 }
 0x35d   : > { %v8859_v45 = vpop.permute.xlu0 %4470 }
 0x35f   : > { %v8861_v51 = vpop.permute.xlu1 %4489 }
 0x360   : > { %v4495_v41 = vadd.f32 %v8861_v51, %v4474_v8  ;;  %v4454_v51 = vadd.f32 %v4450_v28, %v8855_v0  ;;  %v3997_v0 = vsel %vm667_vm11, %v3994_v50, %v3996_v49 }
 0x361   : > { %v8863_v1 = vpop.permute.xlu0 %3937 }
 0x362   : > { %v4475_v58 = vadd.f32 %v8859_v45, %v4454_v51  ;;  %v4642_v45 = vmul.f32 %v4641_v44, %v8281_v53 }
 0x363   : > { %v3957_v3 = vpop.permute.xlu1 %3956 }
 0x364   : > { %v3962_v54 = vadd.f32 %v3957_v3, %v3941_v29  ;;  %v4550_v29 = vrot.slane %v4543_v15, 3 }
 0x365   : > { %v8865_v61 = vpop.permute.xlu0 %4491 }
 0x366   : > { %v4551_v62 = vsel %vm667_vm11, %v4548_v2, %v4550_v29 }
 0x367   : > { %v8867_v34 = vpop.permute.xlu1 %4510 }
 0x368   : > { %v4516_v3 = vadd.f32 %v8867_v34, %v4495_v41  ;;  %v4089_v34 = vmul.f32 %v4087_v55, %v8210_v25  ;;  %v4094_v25 = vrot.slane %v4088_v27, 4 }
 0x369   : > { %v8869_v10 = vpop.permute.xlu0 %3958 }
 0x36a   : > { %v4095_v8 = vrot.slane %v4089_v34, 4 }
 0x36b   : > { %v3978_v39 = vpop.permute.xlu1 %3977 }
 0x36c   : > { %v3983_v33 = vadd.f32 %v3978_v39, %v3962_v54  ;;  %v3942_v39 = vadd.f32 %v8863_v1, %v3921_v37  ;;  %v4096_v53 = vsel %vm769_vm12, %v4094_v25, %v4095_v8 }
 0x36d   : > { %v8871_v32 = vpop.permute.xlu0 %4512 }
 0x36e   : > { %v4000_v30 = vadd.f32 %v3995_v31, %v3983_v33  ;;  %v3963_v20 = vadd.f32 %v8869_v10, %v3942_v39  ;;  %v4643_v10 = vmul.f32 %v4641_v44, %v8266_v48  ;;  %v4090_v48 = vmul.f32 %v4087_v55, %v8244_v6 }
 0x36f   : > { %v8873_v22 = vpop.permute.xlu1 %4531  ;;  %v4644_v6 = vmul.f32 %v4641_v44, %v8310_v18 }
 0x370   : > { %v4537_v57 = vadd.f32 %v8873_v22, %v4516_v3  ;;  %v4496_v22 = vadd.f32 %v8865_v61, %v4475_v58  ;;  %v4649_v28 = vrot.slane %v4643_v10, 4  ;;  %v4097_v37 = vrot.slane %v4090_v48, 4 }
 0x371   : > { %v8875_v5 = vpop.permute.xlu0 %3979  ;;  %v4651_v18 = vrot.slane %v4644_v6, 4 }
 0x372   : > { %v3984_v47 = vadd.f32 %v8875_v5, %v3963_v20  ;;  %v4554_v56 = vadd.f32 %v4549_v63, %v4537_v57  ;;  %v4098_v57 = vsel %vm769_vm12, %v4095_v8, %v4097_v37  ;;  %v4188_v63 = vstv %s8964_s30 }
 0x373   : > { %v8877_v43 = vpop.permute.xlu1 %4015 }
 0x374   : > { %v4021_v59 = vadd.f32 %v8877_v43, %v4000_v30  ;;  %v4517_v43 = vadd.f32 %v8871_v32, %v4496_v22  ;;  %v4001_v41 = vadd.f32 %v3997_v0, %v3984_v47  ;;  %v4648_v32 = vrot.slane %v4642_v45, 4 }
 0x375   : > { %v8879_v52 = vpop.permute.xlu0 %4533 }
 0x376   : > { %v4538_v5 = vadd.f32 %v8879_v52, %v4517_v43  ;;  %v4650_v3 = vsel %vm769_vm12, %v4648_v32, %v4649_v28 }
 0x377   : > { %v8881_v40 = vpop.permute.xlu1 %4569 }
 0x378   : > { %v4575_v50 = vadd.f32 %v8881_v40, %v4554_v56  ;;  %v4555_v52 = vadd.f32 %v4551_v62, %v4538_v5 }
 0x379   : > { %v8883_v9 = vpop.permute.xlu0 %4017 }
 0x37a   : > { %v4022_v40 = vadd.f32 %v8883_v9, %v4001_v41 }
 0x37b   : > { %v8885_v60 = vpop.permute.xlu1 %4036 }
 0x37c   : > { %v4042_v19 = vadd.f32 %v8885_v60, %v4021_v59 }
 0x37d   : > { %v8887_v17 = vpop.permute.xlu0 %4571 }
 0x37e   : > { %v4576_v55 = vadd.f32 %v8887_v17, %v4555_v52 }
 0x37f   : > { %v8889_v14 = vpop.permute.xlu1 %4590 }
 0x380   : > { %v4596_v60 = vadd.f32 %v8889_v14, %v4575_v50 }
 0x381   : > { %v8893_v16 = vpop.permute.xlu0 %4038 }
 0x382   : > { %v4043_v2 = vadd.f32 %v8893_v16, %v4022_v40 }
 0x383   : > { %v8895_v7 = vpop.permute.xlu1 %4057 }
 0x384   : > { %v4063_v54 = vadd.f32 %v8895_v7, %v4042_v19 }
 0x385   : > { %v8899_v12 = vpop.permute.xlu0 %4592 }
 0x386   : > { %v4597_v16 = vadd.f32 %v8899_v12, %v4576_v55 }
 0x387   : > { %v8901_v42 = vpop.permute.xlu1 %4611 }
 0x388   : > { %v4617_v7 = vadd.f32 %v8901_v42, %v4596_v60 }
 0x389   : > { %v8905_v23 = vpop.permute.xlu0 %4059 }
 0x38a   : > { %v4064_v9 = vadd.f32 %v8905_v23, %v4043_v2 }
 0x38b   : > { %v8907_v36 = vpop.permute.xlu1 %4078 }
 0x38c   : > { %v4084_v33 = vadd.f32 %v8907_v36, %v4063_v54 }
 0x38d   : > { %v8913_v24 = vpop.permute.xlu0 %4613 }
 0x38e   : > { %v4101_v36 = vadd.f32 %v4096_v53, %v4084_v33  ;;  %v4618_v17 = vadd.f32 %v8913_v24, %v4597_v16 }
 0x38f   : > { %v8915_v35 = vpop.permute.xlu1 %4632 }
 0x390   : > { %v4638_v14 = vadd.f32 %v8915_v35, %v4617_v7 }
 0x391   : > { %v8923_v4 = vpop.permute.xlu0 %4080 }
 0x392   : > { %v4085_v35 = vadd.f32 %v8923_v4, %v4064_v9  ;;  %v4655_v51 = vadd.f32 %v4650_v3, %v4638_v14  ;;  %v4652_v4 = vsel %vm769_vm12, %v4649_v28, %v4651_v18 }
 0x393   : > { %v8925_v38 = vpop.permute.xlu1 %4116 }
 0x394   : > { %v4122_v42 = vadd.f32 %v8925_v38, %v4101_v36  ;;  %v4102_v58 = vadd.f32 %v4098_v57, %v4085_v35 }
 0x395   : > { %v8934_v13 = vpop.permute.xlu0 %4634 }
 0x396   : > { %v4639_v34 = vadd.f32 %v8934_v13, %v4618_v17 }
 0x397   : > { %v8936_v11 = vpop.permute.xlu1 %4670 }
 0x398   : > { %v4676_v23 = vadd.f32 %v8936_v11, %v4655_v51  ;;  %v4656_v22 = vadd.f32 %v4652_v4, %v4639_v34 }
 0x399   : > { %v4119_v1 = vpop.permute.xlu0 %4118 }
 0x39a   : > { %v4123_v59 = vadd.f32 %v4119_v1, %v4102_v58 }
 0x39b   : > { %v4138_v26 = vpop.permute.xlu1 %4137 }
 0x39c   : > { %v4143_v39 = vadd.f32 %v4138_v26, %v4122_v42  ;;  %v4742_v26 = vstv %s8973_s12 }
 0x39d   : > { %v4673_v61 = vpop.permute.xlu0 %4672 }
 0x39e   : > { %v4677_v19 = vadd.f32 %v4673_v61, %v4656_v22 }
 0x39f   : > { %v4692_v21 = vpop.permute.xlu1 %4691 }
 0x3a0   : > { %v4697_v12 = vadd.f32 %v4692_v21, %v4676_v23 }
 0x3a1   : > { %v4140_v31 = vpop.permute.xlu0 %4139 }
 0x3a2   : > { %v4144_v11 = vadd.f32 %v4140_v31, %v4123_v59 }
 0x3a3   : > { %v4159_v46 = vpop.permute.xlu1 %4158 }
 0x3a4   : > { %v4164_v30 = vadd.f32 %v4159_v46, %v4143_v39 }
 0x3a5   : > { %v4694_v49 = vpop.permute.xlu0 %4693 }
 0x3a6   : > { %v4698_v43 = vadd.f32 %v4694_v49, %v4677_v19 }
 0x3a7   : > { %v4713_v15 = vpop.permute.xlu1 %4712 }
 0x3a8   : > { %v4718_v44 = vadd.f32 %v4713_v15, %v4697_v12 }
 0x3a9   : > { %v4161_v38 = vpop.permute.xlu0 %4160 }
 0x3aa   : > { %v4165_v25 = vadd.f32 %v4161_v38, %v4144_v11 }
 0x3ab   : > { %v4180_v27 = vpop.permute.xlu1 %4179 }
 0x3ac   : > { %v4185_v20 = vadd.f32 %v4180_v27, %v4164_v30 }
 0x3ad   : > { %v4715_v29 = vpop.permute.xlu0 %4714 }
 0x3ae   : > { %v4189_v0 = vadd.f32 %v4188_v63, %v4185_v20  ;;  %v4719_v54 = vadd.f32 %v4715_v29, %v4698_v43 }
 0x3af   : > { %v4734_v24 = vpop.permute.xlu1 %4733 }
 0x3b0   : > { %v4191_v47 = vsub.f32 0.0, %v4189_v0  ;;  %v4739_v56 = vadd.f32 %v4734_v24, %v4718_v44 }
 0x3b1   : > { %v4182_v45 = vpop.permute.xlu0 %4181 }
 0x3b2   : > { %v4193_v8 = vmul.f32 1.442695, %v4191_v47  ;;  %v4743_v13 = vadd.f32 %v4742_v26, %v4739_v56  ;;  %v4186_v1 = vadd.f32 %v4182_v45, %v4165_v25 }
 0x3b3   : > { %v4262_v10 = vpop.permute.xlu1 %4261 }
 0x3b4   : > { %5418 = vpow2.f32 %v4193_v8  ;;  %v4745_v50 = vsub.f32 0.0, %v4743_v13  ;;  %5141 = vst.msk [vmem:[%s6112_s23 + $0x6e] sm:$0xfc] %vm386_vm14, %v4262_v10  ;;  %v4190_v62 = vadd.f32 %v4188_v63, %v4186_v1 }
 0x3b5   : > { %v4736_v5 = vpop.permute.xlu0 %4735 }
 0x3b6   : > { %v4747_v21 = vmul.f32 1.442695, %v4745_v50  ;;  %v4192_v60 = vsub.f32 0.0, %v4190_v62  ;;  %v4740_v61 = vadd.f32 %v4736_v5, %v4719_v54 }
 0x3b7   : > { %v4266_v41 = vpop.permute.xlu1 %4265 }
 0x3b8   : > { %5420 = vpow2.f32 %v4747_v21  ;;  %5143 = vst.msk [vmem:[%s6112_s23 + $0x7e] sm:$0x3] %vm390_vm13, %v4266_v41  ;;  %v4195_v33 = vmul.f32 1.442695, %v4192_v60  ;;  %v4744_v53 = vadd.f32 %v4742_v26, %v4740_v61 }
 0x3b9   : > { %v4264_v48 = vpop.permute.xlu0 %4263 }
 0x3ba   : > { %5422 = vpow2.f32 %v4195_v33  ;;  %v4746_v32 = vsub.f32 0.0, %v4744_v53  ;;  %5142 = vst.msk [vmem:[%s6112_s23 + $0x76] sm:$0xff] %vm388_vm15, %v4264_v48 }
 0x3bc   : > { %v4749_v28 = vmul.f32 1.442695, %v4746_v32 }
 0x3be   : > { %5424 = vpow2.f32 %v4749_v28 }
 0x3c1   : > { %v5419_v40 = vpop.eup %5418 }
 0x3c2   : > { %v4197_v7 = vadd.f32 1.0, %v5419_v40 }
 0x3c4   : > { %5426 = vrcp.f32 %v4197_v7 }
 0x3c5   : > { %v5421_v31 = vpop.eup %5420 }
 0x3c6   : > { %v4751_v46 = vadd.f32 1.0, %v5421_v31 }
 0x3c7   : > { %v5423_v52 = vpop.eup %5422 }
 0x3c8   : > { %5428 = vrcp.f32 %v4751_v46  ;;  %v4198_v2 = vadd.f32 1.0, %v5423_v52 }
 0x3ca   : > { %5430 = vrcp.f32 %v4198_v2 }
 0x3cb   : > { %v5425_v14 = vpop.eup %5424 }
 0x3cc   : > { %v4752_v36 = vadd.f32 1.0, %v5425_v14 }
 0x3ce   : > { %5432 = vrcp.f32 %v4752_v36 }
 0x3d1   : > { %v5427_v37 = vpop.eup %5426 }
 0x3d2   : > { %v4201_v3 = vmul.f32 %v5427_v37, %v4189_v0 }
 0x3d4   : > { %5134 = vst.msk [vmem:[%s6112_s23 + $0xe0] sm:$0xff] %vm388_vm15, %v4201_v3 }
 0x3d5   : > { %v5429_v6 = vpop.eup %5428 }
 0x3d6   : > { %v4755_v55 = vmul.f32 %v5429_v6, %v4743_v13 }
 0x3d7   : > { %v5431_v9 = vpop.eup %5430 }
 0x3d8   : > { %5170 = vst.msk [vmem:[%s6112_s23 + $0xf0] sm:$0xff] %vm388_vm15, %v4755_v55  ;;  %v4202_v42 = vmul.f32 %v5431_v9, %v4190_v62 }
 0x3da   : > { %5135 = vst.msk [vmem:[%s6112_s23 + $0xe8] sm:$0xff] %vm388_vm15, %v4202_v42 }
 0x3db   : > { %v5433_v49 = vpop.eup %5432 }
 0x3dc   : > { %v4756_v15 = vmul.f32 %v5433_v49, %v4744_v53 }
 0x3de   : > { %5171 = vst.msk [vmem:[%s6112_s23 + $0xf8] sm:$0xff] %vm388_vm15, %v4756_v15 }
 0x3df   : > { %5507 = shalt.err (!%p5504_p9)
}
 0x3e0   : > { %s5508_s23 = scalar_lea.hbm %s9001_s17, 4096  ;;  %s5512_s13 = scalar_lea.hbm %s9054_s5, 8192 }
 0x3e1   : > { %p5509_p7 = scmp.ne.s32.totalorder %s9001_s17, %s5508_s23  ;;  %p5513_p6 = scmp.lt.s32.totalorder %s9001_s17, %s9054_s5 }
 0x3e2   : > { %p5514_p12 = scmp.lt.s32.totalorder %s5512_s13, %s5508_s23 }
 0x3e3   : > { %p5510_p0 = pnand %p5509_p7, %p9134_p11 }
 0x3e4   : > { %p5515_p10 = por %p5514_p12, %p5513_p6 }
 0x3e5   : > { %p5511_p5 = pneg %p5510_p0 }
 0x3e7   : > { %p5516_p8 = pnand %p5515_p10, %p5511_p5 }
 0x3e9   : > { %5519 = shalt.err (!%p5516_p8)
}
 0x3ea   : > { %s5577_s9 = smov 128   ;;  %s5578_s30 = smov 8  }
 0x3eb   : > { %5204 = dma.vmem_to_hbm [thread:$0]  (%p9134_p11), %s9003_s14, 4096, %s9001_s17, %s9009_s2, %s5577_s9, %s5577_s9, %s5578_s30  }
 0x3ec PF: > { %p5231_p13 = scmp.ge.s32.totalorder %s5566_s21, 2  ;;  %s4789_s12 = sand.u32 1, %s5554_s18  }
 0x3ed   : > { %p9135_p1 = scmp.ne.s32.totalorder %s9086_s29, 0  ;;  %s4790_s15 = scalar_lea.sflag [#allocation3], %s4789_s12 }
 0x3ef   : > { %p5220_p2 = pnand %p5231_p13, %p9135_p1 }
 0x3f1   : > { %p5221_p3 = pneg %p5220_p2 }
 0x3f3   : > { %5549 = dma.done.wait (%p5221_p3), %s4790_s15, 4096  }
 0x3f4   : > { %5551 = vsyncadd (%p5221_p3), %s4790_s15, 4294963200  ;;  %p18_p4 = scmp.ge.s32.totalorder %s5634_s24, 4   ;;  %s9136_s18 = smov %s5558_s19 }
 0x3f5   : > { %s9137_s19 = smov %s5562_s20  ;;  %s9138_s20 = smov %s5645_s27 }
 0x3f6   : > { %s9139_s21 = smov %s5634_s24  ;;  %20 = sbr.rel (!%p18_p4) target bundleno = 10 (0xa), region = 107 }
 0x3fb   :  { %4795 = vsyncpa [#allocation3], 1 }
 0x3fc   :  { %4797 = vsyncpa [#allocation3 + $0x1], 1 }
 0x3fd   :  { %4798 = vsyncpa [#allocation4], 1 }
 0x3fe   :  { %4800 = vsyncpa [#allocation4 + $0x1], 1 }
 0x3ff   :  { %4801 = vsyncpa [#allocation6], 1 }
 0x400   :  { %4802 = vsyncpa [#allocation9], 1 }

</bundles_post_ra>
